<compile_context>
chip_gen: v7x
topology: tpu7x:2x2x1
jax: 0.10.0
libtpu: 0.0.40
codegen_flags: <defaults>
</compile_context>

<pallas_src>
import jax
import jax.numpy as jnp
from jax.experimental import pallas as pl
from jax.experimental.pallas import tpu as pltpu


TILE_N = 1024      # points per grid step (multiple of 128); sweep 512/1024/2048
CO_CHUNK = 256     # conv3 output-channel slab (rows of the 1024-channel output)


# ---------------------------------------------------------------------------
# Fully fused STN3d kernel
# ---------------------------------------------------------------------------

def _stn3d_kernel(x_ref,
                  w1_ref, b1_ref,
                  w2_ref, b2_ref,
                  w3_ref, b3_ref,
                  wf1_ref, b4_ref,
                  wf2_ref, b5_ref,
                  wf3_ref, b6_ref,
                  o_ref,
                  g_ref):
    nt = pl.program_id(1)

    # relu(.) before the max is folded into a 0-initialized max accumulator:
    # max_n relu(h_n) == max(0, max_n h_n).
    @pl.when(nt == 0)
    def _init():
        g_ref[...] = jnp.zeros_like(g_ref)

    x = x_ref[...]                                   # (3, TILE_N) f32, points on lanes

    # conv1 + bn1 + relu: cin=3 -> three broadcast FMAs on the VPU
    # (BN scale already folded into w1 in f32; epilogue is "+ shift, relu").
    w1 = w1_ref[...]                                 # (64, 3) f32
    h = (w1[:, 0:1] * x[0:1, :]
         + w1[:, 1:2] * x[1:2, :]
         + w1[:, 2:3] * x[2:3, :])                   # (64, TILE_N) f32
    h = jnp.maximum(h + b1_ref[...], 0.0)

    # conv2 + bn2 + relu: MXU matmul, bf16 inputs, f32 accumulation.
    h = jnp.dot(w2_ref[...], h.astype(jnp.bfloat16),
                preferred_element_type=jnp.float32)  # (128, TILE_N) f32
    h = jnp.maximum(h + b2_ref[...], 0.0).astype(jnp.bfloat16)

    # conv3 + bn3 + running max over points, chunked over output channels.
    # The per-channel shift commutes with the lane max, so it is added to the
    # (CO_CHUNK, 1) reduction instead of the (CO_CHUNK, TILE_N) tensor; the lane
    # reduction itself runs on the XLU (separate slot from the VALU).
    n_co = w3_ref.shape[0]
    for co in range(0, n_co, CO_CHUNK):
        c = jnp.dot(w3_ref[co:co + CO_CHUNK, :], h,
                    preferred_element_type=jnp.float32)        # (CO_CHUNK, TILE_N)
        m = jnp.max(c, axis=1, keepdims=True) + b3_ref[co:co + CO_CHUNK, :]
        g_ref[co:co + CO_CHUNK, :] = jnp.maximum(g_ref[co:co + CO_CHUNK, :], m)

    # FC head fused into the last N-tile step (weights stay resident in VMEM;
    # removes the second pallas_call and the HBM round trip of the global feature).
    @pl.when(nt == pl.num_programs(1) - 1)
    def _head():
        g = g_ref[...].astype(jnp.bfloat16)                          # (1024, 1)
        t = jnp.dot(wf1_ref[...], g, preferred_element_type=jnp.float32)
        t = jnp.maximum(t + b4_ref[...], 0.0).astype(jnp.bfloat16)   # (512, 1)
        t = jnp.dot(wf2_ref[...], t, preferred_element_type=jnp.float32)
        t = jnp.maximum(t + b5_ref[...], 0.0).astype(jnp.bfloat16)   # (256, 1)
        t = jnp.dot(wf3_ref[...], t, preferred_element_type=jnp.float32)
        o_ref[...] = t + b6_ref[...]            # (k*k, 1); identity folded into b6


def stn3d_forward(x, params, k=3):
    """STN3d forward: x (B, 3, N) f32 (torch Conv1d layout) -> (B, 3, 3)."""
    b, c, n = x.shape
    assert c == k == 3 and n >= 1
    # Large tile to amortize per-grid-step overhead, capped by the 128-aligned
    # point count so tiny inputs are not over-padded.
    tile_n = min(TILE_N, pl.cdiv(n, 128) * 128)
    n_pad = pl.cdiv(n, tile_n) * tile_n
    if n_pad != n:
        # Pad with copies of the first point: the max over points is unchanged.
        pad = jnp.broadcast_to(x[:, :, :1], (b, c, n_pad - n))
        x = jnp.concatenate([x, pad], axis=2)

    c1, c2, c3 = params["conv1"], params["conv2"], params["conv3"]
    f1, f2, f3 = params["fc1"], params["fc2"], params["fc3"]

    def resident(shape):       # same block every grid step -> stays in VMEM
        return pl.BlockSpec(shape, lambda bi, ni: (0,) * len(shape))

    out = pl.pallas_call(
        _stn3d_kernel,
        out_shape=jax.ShapeDtypeStruct((b, k * k, 1), jnp.float32),
        grid=(b, n_pad // tile_n),
        in_specs=[
            pl.BlockSpec((None, 3, tile_n), lambda bi, ni: (bi, 0, ni)),  # streamed
            resident(c1["w"].shape), resident(c1["shift"].shape),
            resident(c2["w"].shape), resident(c2["shift"].shape),
            resident(c3["w"].shape), resident(c3["shift"].shape),
            resident(f1["w"].shape), resident(f1["shift"].shape),
            resident(f2["w"].shape), resident(f2["shift"].shape),
            resident(f3["w"].shape), resident(f3["shift"].shape),
        ],
        out_specs=pl.BlockSpec((None, k * k, 1), lambda bi, ni: (bi, 0, 0)),
        scratch_shapes=[pltpu.VMEM((c3["w"].shape[0], 1), jnp.float32)],  # max accum
        compiler_params=pltpu.CompilerParams(
            dimension_semantics=("parallel", "arbitrary"),
            vmem_limit_bytes=32 * 1024 * 1024,
        ),
    )(x,
      c1["w"], c1["shift"],
      c2["w"], c2["shift"],
      c3["w"], c3["shift"],
      f1["w"], f1["shift"],
      f2["w"], f2["shift"],
      f3["w"], f3["shift"])
    return out.reshape(b, k, k)


# ---------------------------------------------------------------------------
# Deterministic parameters (torch (out, in) weight layout, BN folded in f32)
# ---------------------------------------------------------------------------

def make_layer(key, cin, cout, *, bn=True, w_dtype=jnp.bfloat16, eps=1e-5):
    """y = scale*(W@h + b) + (beta - scale*mean) == (scale[:,None]*W)@h + shift.

    The BN scale is folded into W in f32 BEFORE any bf16 cast (no double
    rounding), so kernels only apply "+ shift".
    """
    kw, kb, kg, kz = jax.random.split(key, 4)
    w = jax.random.normal(kw, (cout, cin), jnp.float32) / jnp.sqrt(jnp.float32(cin))
    bias = 0.1 * jax.random.normal(kb, (cout,), jnp.float32)
    if bn:
        gamma = 1.0 + 0.1 * jax.random.normal(kg, (cout,), jnp.float32)
        beta = 0.1 * jax.random.normal(kz, (cout,), jnp.float32)
        running_mean = jnp.zeros((cout,), jnp.float32)
        running_var = jnp.ones((cout,), jnp.float32)
        scale = gamma / jnp.sqrt(running_var + eps)
        shift = beta + scale * (bias - running_mean)
        w = w * scale[:, None]
    else:
        shift = bias
    return {"w": w.astype(w_dtype),
            "shift": shift.reshape(cout, 1).astype(jnp.float32)}


def make_params(key, k=3):
    ks = jax.random.split(key, 6)
    p = {
        "conv1": make_layer(ks[0], k, 64, w_dtype=jnp.float32),   # VPU path keeps f32
        "conv2": make_layer(ks[1], 64, 128),
        "conv3": make_layer(ks[2], 128, 1024),
        "fc1": make_layer(ks[3], 1024, 512),
        "fc2": make_layer(ks[4], 512, 256),
        "fc3": make_layer(ks[5], 256, k * k, bn=False),
    }
    # Fold the post-fc3 identity matrix into the fc3 bias.
    p["fc3"]["shift"] = p["fc3"]["shift"] + jnp.eye(k, dtype=jnp.float32).reshape(k * k, 1)
    return p


# ---------------------------------------------------------------------------

if __name__ == "__main__":
    key = jax.random.PRNGKey(0)
    kp, kx = jax.random.split(key)
    params = make_params(kp, k=3)

    B, C, N = 2, 3, 256                   # torch Conv1d layout (B, C=3, N points)
    x = jax.random.normal(kx, (B, C, N), jnp.float32)

    fwd = jax.jit(stn3d_forward)
    out = jax.block_until_ready(fwd(x, params))
    assert out.shape == (B, 3, 3), out.shape
    assert bool(jnp.all(jnp.isfinite(out)))
    print("KERNEL_OK")
</pallas_src>

<mosaic_0001>
module attributes {stable_mosaic.version = 11 : i64} {
  func.func @_stn3d_kernel(%arg0: i32, %arg1: i32, %arg2: memref<1x3x256xf32, #tpu.memory_space<vmem>>, %arg3: memref<64x3xf32, #tpu.memory_space<vmem>>, %arg4: memref<64x1xf32, #tpu.memory_space<vmem>>, %arg5: memref<128x64xbf16, #tpu.memory_space<vmem>>, %arg6: memref<128x1xf32, #tpu.memory_space<vmem>>, %arg7: memref<1024x128xbf16, #tpu.memory_space<vmem>>, %arg8: memref<1024x1xf32, #tpu.memory_space<vmem>>, %arg9: memref<512x1024xbf16, #tpu.memory_space<vmem>>, %arg10: memref<512x1xf32, #tpu.memory_space<vmem>>, %arg11: memref<256x512xbf16, #tpu.memory_space<vmem>>, %arg12: memref<256x1xf32, #tpu.memory_space<vmem>>, %arg13: memref<9x256xbf16, #tpu.memory_space<vmem>>, %arg14: memref<9x1xf32, #tpu.memory_space<vmem>>, %arg15: memref<1x9x1xf32, #tpu.memory_space<vmem>>, %arg16: memref<1024x1xf32, #tpu.memory_space<vmem>>) attributes {dimension_semantics = [#tpu.dimension_semantics<parallel>, #tpu.dimension_semantics<arbitrary>], iteration_bounds = array<i64: 2, 1>, scalar_prefetch = 0 : i64, scratch_operands = 1 : i64, tpu.core_type = #tpu.core_type<tc>, window_params = [{transform_indices = @transform_0, window_bounds = array<i64: 1, 3, 256>}, {pipeline_mode = #tpu.pipeline_mode<synchronous>, transform_indices = @transform_1, window_bounds = array<i64: 64, 3>}, {pipeline_mode = #tpu.pipeline_mode<synchronous>, transform_indices = @transform_2, window_bounds = array<i64: 64, 1>}, {pipeline_mode = #tpu.pipeline_mode<synchronous>, transform_indices = @transform_3, window_bounds = array<i64: 128, 64>}, {pipeline_mode = #tpu.pipeline_mode<synchronous>, transform_indices = @transform_4, window_bounds = array<i64: 128, 1>}, {pipeline_mode = #tpu.pipeline_mode<synchronous>, transform_indices = @transform_5, window_bounds = array<i64: 1024, 128>}, {pipeline_mode = #tpu.pipeline_mode<synchronous>, transform_indices = @transform_6, window_bounds = array<i64: 1024, 1>}, {pipeline_mode = #tpu.pipeline_mode<synchronous>, transform_indices = @transform_7, window_bounds = array<i64: 512, 1024>}, {pipeline_mode = #tpu.pipeline_mode<synchronous>, transform_indices = @transform_8, window_bounds = array<i64: 512, 1>}, {pipeline_mode = #tpu.pipeline_mode<synchronous>, transform_indices = @transform_9, window_bounds = array<i64: 256, 512>}, {pipeline_mode = #tpu.pipeline_mode<synchronous>, transform_indices = @transform_10, window_bounds = array<i64: 256, 1>}, {pipeline_mode = #tpu.pipeline_mode<synchronous>, transform_indices = @transform_11, window_bounds = array<i64: 9, 256>}, {pipeline_mode = #tpu.pipeline_mode<synchronous>, transform_indices = @transform_12, window_bounds = array<i64: 9, 1>}, {transform_indices = @transform_13, window_bounds = array<i64: 1, 9, 1>}]} {
    %c0_i32 = arith.constant 0 : i32
    %0 = arith.cmpi eq, %arg1, %c0_i32 : i32
    %1 = arith.extui %0 : i1 to i32
    %c0_i32_0 = arith.constant 0 : i32
    %2 = arith.cmpi ne, %1, %c0_i32_0 : i32
    scf.if %2 {
      %cst_52 = arith.constant 0.000000e+00 : f32
      %76 = vector.broadcast %cst_52 : f32 to vector<1024x1xf32>
      %c0_53 = arith.constant 0 : index
      %c0_54 = arith.constant 0 : index
      %77 = vector.load %arg16[%c0_53, %c0_54] : memref<1024x1xf32, #tpu.memory_space<vmem>>, vector<1024x1xf32>
      tpu.vector_store %arg16[%c0_53, %c0_54], %76 {strides = array<i32>} : memref<1024x1xf32, #tpu.memory_space<vmem>>, vector<1024x1xf32>,
    } else {
    }
    %c0 = arith.constant 0 : index
    %c0_1 = arith.constant 0 : index
    %c0_2 = arith.constant 0 : index
    %3 = vector.load %arg2[%c0, %c0_1, %c0_2] : memref<1x3x256xf32, #tpu.memory_space<vmem>>, vector<1x3x256xf32>
    %4 = vector.shape_cast %3 : vector<1x3x256xf32> to vector<3x256xf32>
    %c0_3 = arith.constant 0 : index
    %c0_4 = arith.constant 0 : index
    %5 = vector.load %arg3[%c0_3, %c0_4] : memref<64x3xf32, #tpu.memory_space<vmem>>, vector<64x3xf32>
    %6 = vector.extract_strided_slice %5 {offsets = [0, 0], sizes = [64, 1], strides = [1, 1]} : vector<64x3xf32> to vector<64x1xf32>
    %7 = vector.extract_strided_slice %4 {offsets = [0, 0], sizes = [1, 256], strides = [1, 1]} : vector<3x256xf32> to vector<1x256xf32>
    %8 = vector.broadcast %6 : vector<64x1xf32> to vector<64x256xf32>
    %9 = vector.broadcast %7 : vector<1x256xf32> to vector<64x256xf32>
    %10 = arith.mulf %8, %9 : vector<64x256xf32>
    %11 = vector.extract_strided_slice %5 {offsets = [0, 1], sizes = [64, 1], strides = [1, 1]} : vector<64x3xf32> to vector<64x1xf32>
    %12 = vector.extract_strided_slice %4 {offsets = [1, 0], sizes = [1, 256], strides = [1, 1]} : vector<3x256xf32> to vector<1x256xf32>
    %13 = vector.broadcast %11 : vector<64x1xf32> to vector<64x256xf32>
    %14 = vector.broadcast %12 : vector<1x256xf32> to vector<64x256xf32>
    %15 = arith.mulf %13, %14 : vector<64x256xf32>
    %16 = arith.addf %10, %15 : vector<64x256xf32>
    %17 = vector.extract_strided_slice %5 {offsets = [0, 2], sizes = [64, 1], strides = [1, 1]} : vector<64x3xf32> to vector<64x1xf32>
    %18 = vector.extract_strided_slice %4 {offsets = [2, 0], sizes = [1, 256], strides = [1, 1]} : vector<3x256xf32> to vector<1x256xf32>
    %19 = vector.broadcast %17 : vector<64x1xf32> to vector<64x256xf32>
    %20 = vector.broadcast %18 : vector<1x256xf32> to vector<64x256xf32>
    %21 = arith.mulf %19, %20 : vector<64x256xf32>
    %22 = arith.addf %16, %21 : vector<64x256xf32>
    %c0_5 = arith.constant 0 : index
    %c0_6 = arith.constant 0 : index
    %23 = vector.load %arg4[%c0_5, %c0_6] : memref<64x1xf32, #tpu.memory_space<vmem>>, vector<64x1xf32>
    %24 = vector.broadcast %23 : vector<64x1xf32> to vector<64x256xf32>
    %25 = arith.addf %22, %24 : vector<64x256xf32>
    %cst = arith.constant 0.000000e+00 : f32
    %26 = vector.broadcast %cst : f32 to vector<64x256xf32>
    %27 = arith.maximumf %25, %26 : vector<64x256xf32>
    %c0_7 = arith.constant 0 : index
    %c0_8 = arith.constant 0 : index
    %28 = vector.load %arg5[%c0_7, %c0_8] : memref<128x64xbf16, #tpu.memory_space<vmem>>, vector<128x64xbf16>
    %29 = arith.truncf %27 : vector<64x256xf32> to vector<64x256xbf16>
    %cst_9 = arith.constant dense<0.000000e+00> : vector<128x256xf32>
    %30 = tpu.matmul %28, %29, %cst_9 {dimension_numbers = #tpu.dot_dimension_numbers<[1], [0], [0], [1], [0, 0, 1, 1], [], []>} : vector<128x64xbf16>, vector<64x256xbf16>, vector<128x256xf32> -> vector<128x256xf32>
    %c0_10 = arith.constant 0 : index
    %c0_11 = arith.constant 0 : index
    %31 = vector.load %arg6[%c0_10, %c0_11] : memref<128x1xf32, #tpu.memory_space<vmem>>, vector<128x1xf32>
    %32 = vector.broadcast %31 : vector<128x1xf32> to vector<128x256xf32>
    %33 = arith.addf %30, %32 : vector<128x256xf32>
    %cst_12 = arith.constant 0.000000e+00 : f32
    %34 = vector.broadcast %cst_12 : f32 to vector<128x256xf32>
    %35 = arith.maximumf %33, %34 : vector<128x256xf32>
    %36 = arith.truncf %35 : vector<128x256xf32> to vector<128x256xbf16>
    %c0_13 = arith.constant 0 : index
    %c0_14 = arith.constant 0 : index
    %37 = vector.load %arg7[%c0_13, %c0_14] : memref<1024x128xbf16, #tpu.memory_space<vmem>>, vector<256x128xbf16>
    %cst_15 = arith.constant dense<0.000000e+00> : vector<256x256xf32>
    %38 = tpu.matmul %37, %36, %cst_15 {dimension_numbers = #tpu.dot_dimension_numbers<[1], [0], [0], [1], [0, 0, 1, 1], [], []>} : vector<256x128xbf16>, vector<128x256xbf16>, vector<256x256xf32> -> vector<256x256xf32>
    %cst_16 = arith.constant dense<0xFF800000> : vector<256xf32>
    %39 = vector.multi_reduction <maximumf>, %38, %cst_16 [1] : vector<256x256xf32> to vector<256xf32>
    %40 = vector.shape_cast %39 : vector<256xf32> to vector<256x1xf32>
    %c0_17 = arith.constant 0 : index
    %c0_18 = arith.constant 0 : index
    %41 = vector.load %arg8[%c0_17, %c0_18] : memref<1024x1xf32, #tpu.memory_space<vmem>>, vector<256x1xf32>
    %42 = arith.addf %40, %41 : vector<256x1xf32>
    %c0_19 = arith.constant 0 : index
    %c0_20 = arith.constant 0 : index
    %43 = vector.load %arg16[%c0_19, %c0_20] : memref<1024x1xf32, #tpu.memory_space<vmem>>, vector<256x1xf32>
    %44 = arith.maximumf %43, %42 : vector<256x1xf32>
    %c0_21 = arith.constant 0 : index
    %c0_22 = arith.constant 0 : index
    %45 = vector.load %arg16[%c0_21, %c0_22] : memref<1024x1xf32, #tpu.memory_space<vmem>>, vector<256x1xf32>
    tpu.vector_store %arg16[%c0_21, %c0_22], %44 {strides = array<i32>} : memref<1024x1xf32, #tpu.memory_space<vmem>>, vector<256x1xf32>,
    %c256 = arith.constant 256 : index
    %c0_23 = arith.constant 0 : index
    %46 = vector.load %arg7[%c256, %c0_23] : memref<1024x128xbf16, #tpu.memory_space<vmem>>, vector<256x128xbf16>
    %cst_24 = arith.constant dense<0.000000e+00> : vector<256x256xf32>
    %47 = tpu.matmul %46, %36, %cst_24 {dimension_numbers = #tpu.dot_dimension_numbers<[1], [0], [0], [1], [0, 0, 1, 1], [], []>} : vector<256x128xbf16>, vector<128x256xbf16>, vector<256x256xf32> -> vector<256x256xf32>
    %cst_25 = arith.constant dense<0xFF800000> : vector<256xf32>
    %48 = vector.multi_reduction <maximumf>, %47, %cst_25 [1] : vector<256x256xf32> to vector<256xf32>
    %49 = vector.shape_cast %48 : vector<256xf32> to vector<256x1xf32>
    %c256_26 = arith.constant 256 : index
    %c0_27 = arith.constant 0 : index
    %50 = vector.load %arg8[%c256_26, %c0_27] : memref<1024x1xf32, #tpu.memory_space<vmem>>, vector<256x1xf32>
    %51 = arith.addf %49, %50 : vector<256x1xf32>
    %c256_28 = arith.constant 256 : index
    %c0_29 = arith.constant 0 : index
    %52 = vector.load %arg16[%c256_28, %c0_29] : memref<1024x1xf32, #tpu.memory_space<vmem>>, vector<256x1xf32>
    %53 = arith.maximumf %52, %51 : vector<256x1xf32>
    %c256_30 = arith.constant 256 : index
    %c0_31 = arith.constant 0 : index
    %54 = vector.load %arg16[%c256_30, %c0_31] : memref<1024x1xf32, #tpu.memory_space<vmem>>, vector<256x1xf32>
    tpu.vector_store %arg16[%c256_30, %c0_31], %53 {strides = array<i32>} : memref<1024x1xf32, #tpu.memory_space<vmem>>, vector<256x1xf32>,
    %c512 = arith.constant 512 : index
    %c0_32 = arith.constant 0 : index
    %55 = vector.load %arg7[%c512, %c0_32] : memref<1024x128xbf16, #tpu.memory_space<vmem>>, vector<256x128xbf16>
    %cst_33 = arith.constant dense<0.000000e+00> : vector<256x256xf32>
    %56 = tpu.matmul %55, %36, %cst_33 {dimension_numbers = #tpu.dot_dimension_numbers<[1], [0], [0], [1], [0, 0, 1, 1], [], []>} : vector<256x128xbf16>, vector<128x256xbf16>, vector<256x256xf32> -> vector<256x256xf32>
    %cst_34 = arith.constant dense<0xFF800000> : vector<256xf32>
    %57 = vector.multi_reduction <maximumf>, %56, %cst_34 [1] : vector<256x256xf32> to vector<256xf32>
    %58 = vector.shape_cast %57 : vector<256xf32> to vector<256x1xf32>
    %c512_35 = arith.constant 512 : index
    %c0_36 = arith.constant 0 : index
    %59 = vector.load %arg8[%c512_35, %c0_36] : memref<1024x1xf32, #tpu.memory_space<vmem>>, vector<256x1xf32>
    %60 = arith.addf %58, %59 : vector<256x1xf32>
    %c512_37 = arith.constant 512 : index
    %c0_38 = arith.constant 0 : index
    %61 = vector.load %arg16[%c512_37, %c0_38] : memref<1024x1xf32, #tpu.memory_space<vmem>>, vector<256x1xf32>
    %62 = arith.maximumf %61, %60 : vector<256x1xf32>
    %c512_39 = arith.constant 512 : index
    %c0_40 = arith.constant 0 : index
    %63 = vector.load %arg16[%c512_39, %c0_40] : memref<1024x1xf32, #tpu.memory_space<vmem>>, vector<256x1xf32>
    tpu.vector_store %arg16[%c512_39, %c0_40], %62 {strides = array<i32>} : memref<1024x1xf32, #tpu.memory_space<vmem>>, vector<256x1xf32>,
    %c768 = arith.constant 768 : index
    %c0_41 = arith.constant 0 : index
    %64 = vector.load %arg7[%c768, %c0_41] : memref<1024x128xbf16, #tpu.memory_space<vmem>>, vector<256x128xbf16>
    %cst_42 = arith.constant dense<0.000000e+00> : vector<256x256xf32>
    %65 = tpu.matmul %64, %36, %cst_42 {dimension_numbers = #tpu.dot_dimension_numbers<[1], [0], [0], [1], [0, 0, 1, 1], [], []>} : vector<256x128xbf16>, vector<128x256xbf16>, vector<256x256xf32> -> vector<256x256xf32>
    %cst_43 = arith.constant dense<0xFF800000> : vector<256xf32>
    %66 = vector.multi_reduction <maximumf>, %65, %cst_43 [1] : vector<256x256xf32> to vector<256xf32>
    %67 = vector.shape_cast %66 : vector<256xf32> to vector<256x1xf32>
    %c768_44 = arith.constant 768 : index
    %c0_45 = arith.constant 0 : index
    %68 = vector.load %arg8[%c768_44, %c0_45] : memref<1024x1xf32, #tpu.memory_space<vmem>>, vector<256x1xf32>
    %69 = arith.addf %67, %68 : vector<256x1xf32>
    %c768_46 = arith.constant 768 : index
    %c0_47 = arith.constant 0 : index
    %70 = vector.load %arg16[%c768_46, %c0_47] : memref<1024x1xf32, #tpu.memory_space<vmem>>, vector<256x1xf32>
    %71 = arith.maximumf %70, %69 : vector<256x1xf32>
    %c768_48 = arith.constant 768 : index
    %c0_49 = arith.constant 0 : index
    %72 = vector.load %arg16[%c768_48, %c0_49] : memref<1024x1xf32, #tpu.memory_space<vmem>>, vector<256x1xf32>
    tpu.vector_store %arg16[%c768_48, %c0_49], %71 {strides = array<i32>} : memref<1024x1xf32, #tpu.memory_space<vmem>>, vector<256x1xf32>,
    %c0_i32_50 = arith.constant 0 : i32
    %73 = arith.cmpi eq, %arg1, %c0_i32_50 : i32
    %74 = arith.extui %73 : i1 to i32
    %c0_i32_51 = arith.constant 0 : i32
    %75 = arith.cmpi ne, %74, %c0_i32_51 : i32
    scf.if %75 {
      %c0_52 = arith.constant 0 : index
      %c0_53 = arith.constant 0 : index
      %76 = vector.load %arg16[%c0_52, %c0_53] : memref<1024x1xf32, #tpu.memory_space<vmem>>, vector<1024x1xf32>
      %77 = arith.truncf %76 : vector<1024x1xf32> to vector<1024x1xbf16>
      %c0_54 = arith.constant 0 : index
      %c0_55 = arith.constant 0 : index
      %78 = vector.load %arg9[%c0_54, %c0_55] : memref<512x1024xbf16, #tpu.memory_space<vmem>>, vector<512x1024xbf16>
      %cst_56 = arith.constant dense<0.000000e+00> : vector<512x1xf32>
      %79 = tpu.matmul %78, %77, %cst_56 {dimension_numbers = #tpu.dot_dimension_numbers<[1], [0], [0], [1], [0, 0, 1, 1], [], []>} : vector<512x1024xbf16>, vector<1024x1xbf16>, vector<512x1xf32> -> vector<512x1xf32>
      %c0_57 = arith.constant 0 : index
      %c0_58 = arith.constant 0 : index
      %80 = vector.load %arg10[%c0_57, %c0_58] : memref<512x1xf32, #tpu.memory_space<vmem>>, vector<512x1xf32>
      %81 = arith.addf %79, %80 : vector<512x1xf32>
      %cst_59 = arith.constant 0.000000e+00 : f32
      %82 = vector.broadcast %cst_59 : f32 to vector<512x1xf32>
      %83 = arith.maximumf %81, %82 : vector<512x1xf32>
      %84 = arith.truncf %83 : vector<512x1xf32> to vector<512x1xbf16>
      %c0_60 = arith.constant 0 : index
      %c0_61 = arith.constant 0 : index
      %85 = vector.load %arg11[%c0_60, %c0_61] : memref<256x512xbf16, #tpu.memory_space<vmem>>, vector<256x512xbf16>
      %cst_62 = arith.constant dense<0.000000e+00> : vector<256x1xf32>
      %86 = tpu.matmul %85, %84, %cst_62 {dimension_numbers = #tpu.dot_dimension_numbers<[1], [0], [0], [1], [0, 0, 1, 1], [], []>} : vector<256x512xbf16>, vector<512x1xbf16>, vector<256x1xf32> -> vector<256x1xf32>
      %c0_63 = arith.constant 0 : index
      %c0_64 = arith.constant 0 : index
      %87 = vector.load %arg12[%c0_63, %c0_64] : memref<256x1xf32, #tpu.memory_space<vmem>>, vector<256x1xf32>
      %88 = arith.addf %86, %87 : vector<256x1xf32>
      %cst_65 = arith.constant 0.000000e+00 : f32
      %89 = vector.broadcast %cst_65 : f32 to vector<256x1xf32>
      %90 = arith.maximumf %88, %89 : vector<256x1xf32>
      %91 = arith.truncf %90 : vector<256x1xf32> to vector<256x1xbf16>
      %c0_66 = arith.constant 0 : index
      %c0_67 = arith.constant 0 : index
      %92 = vector.load %arg13[%c0_66, %c0_67] : memref<9x256xbf16, #tpu.memory_space<vmem>>, vector<9x256xbf16>
      %cst_68 = arith.constant dense<0.000000e+00> : vector<9x1xf32>
      %93 = tpu.matmul %92, %91, %cst_68 {dimension_numbers = #tpu.dot_dimension_numbers<[1], [0], [0], [1], [0, 0, 1, 1], [], []>} : vector<9x256xbf16>, vector<256x1xbf16>, vector<9x1xf32> -> vector<9x1xf32>
      %c0_69 = arith.constant 0 : index
      %c0_70 = arith.constant 0 : index
      %94 = vector.load %arg14[%c0_69, %c0_70] : memref<9x1xf32, #tpu.memory_space<vmem>>, vector<9x1xf32>
      %95 = arith.addf %93, %94 : vector<9x1xf32>
      %c0_71 = arith.constant 0 : index
      %c0_72 = arith.constant 0 : index
      %c0_73 = arith.constant 0 : index
      %96 = vector.load %arg15[%c0_71, %c0_72, %c0_73] : memref<1x9x1xf32, #tpu.memory_space<vmem>>, vector<1x9x1xf32>
      %97 = vector.shape_cast %96 : vector<1x9x1xf32> to vector<9x1xf32>
      %98 = vector.shape_cast %95 : vector<9x1xf32> to vector<1x9x1xf32>
      tpu.vector_store %arg15[%c0_71, %c0_72, %c0_73], %98 {strides = array<i32>} : memref<1x9x1xf32, #tpu.memory_space<vmem>>, vector<1x9x1xf32>,
    } else {
    }
    return
  }
  func.func @transform_0(%arg0: i32, %arg1: i32) -> (i32, i32, i32) {
    %c0_i32 = arith.constant 0 : i32
    %c0_i32_0 = arith.constant 0 : i32
    return %arg0, %c0_i32, %arg1 : i32, i32, i32
  }
  func.func @transform_1(%arg0: i32, %arg1: i32) -> (i32, i32) {
    %c0_i32 = arith.constant 0 : i32
    %c0_i32_0 = arith.constant 0 : i32
    %c0_i32_1 = arith.constant 0 : i32
    return %c0_i32, %c0_i32_0 : i32, i32
  }
  func.func @transform_2(%arg0: i32, %arg1: i32) -> (i32, i32) {
    %c0_i32 = arith.constant 0 : i32
    %c0_i32_0 = arith.constant 0 : i32
    %c0_i32_1 = arith.constant 0 : i32
    return %c0_i32, %c0_i32_0 : i32, i32
  }
  func.func @transform_3(%arg0: i32, %arg1: i32) -> (i32, i32) {
    %c0_i32 = arith.constant 0 : i32
    %c0_i32_0 = arith.constant 0 : i32
    %c0_i32_1 = arith.constant 0 : i32
    return %c0_i32, %c0_i32_0 : i32, i32
  }
  func.func @transform_4(%arg0: i32, %arg1: i32) -> (i32, i32) {
    %c0_i32 = arith.constant 0 : i32
    %c0_i32_0 = arith.constant 0 : i32
    %c0_i32_1 = arith.constant 0 : i32
    return %c0_i32, %c0_i32_0 : i32, i32
  }
  func.func @transform_5(%arg0: i32, %arg1: i32) -> (i32, i32) {
    %c0_i32 = arith.constant 0 : i32
    %c0_i32_0 = arith.constant 0 : i32
    %c0_i32_1 = arith.constant 0 : i32
    return %c0_i32, %c0_i32_0 : i32, i32
  }
  func.func @transform_6(%arg0: i32, %arg1: i32) -> (i32, i32) {
    %c0_i32 = arith.constant 0 : i32
    %c0_i32_0 = arith.constant 0 : i32
    %c0_i32_1 = arith.constant 0 : i32
    return %c0_i32, %c0_i32_0 : i32, i32
  }
  func.func @transform_7(%arg0: i32, %arg1: i32) -> (i32, i32) {
    %c0_i32 = arith.constant 0 : i32
    %c0_i32_0 = arith.constant 0 : i32
    %c0_i32_1 = arith.constant 0 : i32
    return %c0_i32, %c0_i32_0 : i32, i32
  }
  func.func @transform_8(%arg0: i32, %arg1: i32) -> (i32, i32) {
    %c0_i32 = arith.constant 0 : i32
    %c0_i32_0 = arith.constant 0 : i32
    %c0_i32_1 = arith.constant 0 : i32
    return %c0_i32, %c0_i32_0 : i32, i32
  }
  func.func @transform_9(%arg0: i32, %arg1: i32) -> (i32, i32) {
    %c0_i32 = arith.constant 0 : i32
    %c0_i32_0 = arith.constant 0 : i32
    %c0_i32_1 = arith.constant 0 : i32
    return %c0_i32, %c0_i32_0 : i32, i32
  }
  func.func @transform_10(%arg0: i32, %arg1: i32) -> (i32, i32) {
    %c0_i32 = arith.constant 0 : i32
    %c0_i32_0 = arith.constant 0 : i32
    %c0_i32_1 = arith.constant 0 : i32
    return %c0_i32, %c0_i32_0 : i32, i32
  }
  func.func @transform_11(%arg0: i32, %arg1: i32) -> (i32, i32) {
    %c0_i32 = arith.constant 0 : i32
    %c0_i32_0 = arith.constant 0 : i32
    %c0_i32_1 = arith.constant 0 : i32
    return %c0_i32, %c0_i32_0 : i32, i32
  }
  func.func @transform_12(%arg0: i32, %arg1: i32) -> (i32, i32) {
    %c0_i32 = arith.constant 0 : i32
    %c0_i32_0 = arith.constant 0 : i32
    %c0_i32_1 = arith.constant 0 : i32
    return %c0_i32, %c0_i32_0 : i32, i32
  }
  func.func @transform_13(%arg0: i32, %arg1: i32) -> (i32, i32, i32) {
    %c0_i32 = arith.constant 0 : i32
    %c0_i32_0 = arith.constant 0 : i32
    %c0_i32_1 = arith.constant 0 : i32
    return %arg0, %c0_i32, %c0_i32_0 : i32, i32, i32
  }
}

</mosaic_0001>

<bundles_post_ra>
// kernel: stn3d_forward.1
= control target key start
LH: loop header
LB: loop body
LE: loop exit
PB: predicated region body
PF: predicated region fallthrough
CT: control target
= control target key end

     0   :  { %18 = vsyncpa [#allocation4], 0  ;;  %s12516_s0 = inlined_call_operand.vmem [shape: f32[2,3,256], index: 0, kind: input, shape index: {}]   ;;  %s12517_s1 = inlined_call_operand.vmem [shape: f32[64,3], index: 1, kind: input, shape index: {}]   ;;  %s12518_s2 = inlined_call_operand.vmem [shape: f32[64,1], index: 2, kind: input, shape index: {}]   ;;  %s12519_s3 = inlined_call_operand.vmem [shape: bf16[128,64], index: 3, kind: input, shape index: {}]   ;;  %s12520_s4 = inlined_call_operand.vmem [shape: f32[128,1], index: 4, kind: input, shape index: {}]   ;;  %s12521_s5 = inlined_call_operand.hbm [shape: bf16[1024,128], index: 5, kind: input, shape index: {}]   ;;  %s12522_s6 = inlined_call_operand.vmem [shape: f32[1024,1], index: 6, kind: input, shape index: {}]   ;;  %s12523_s7 = inlined_call_operand.vmem [shape: bf16[512,1024], index: 7, kind: input, shape index: {}]   ;;  %s12524_s8 = inlined_call_operand.vmem [shape: f32[512,1], index: 8, kind: input, shape index: {}]   ;;  %s12525_s9 = inlined_call_operand.hbm [shape: bf16[256,512], index: 9, kind: input, shape index: {}]   ;;  %s12526_s10 = inlined_call_operand.vmem [shape: f32[256,1], index: 10, kind: input, shape index: {}]   ;;  %s12527_s11 = inlined_call_operand.vmem [shape: bf16[9,256], index: 11, kind: input, shape index: {}]   ;;  %s12528_s12 = inlined_call_operand.vmem [shape: f32[9,1], index: 12, kind: input, shape index: {}]   ;;  %s12529_s13 = inlined_call_operand.vmem [shape: f32[2,9,1], index: 13, kind: output, shape index: {}]  }
   0x1   :  { %19 = vsyncpa [#allocation6], 0  ;;  %s9071_s25 = smov 0   ;;  %s9073_s26 = smov 0  }
   0x2   :  { %s9075_s27 = smov 0  }
   0x3 LB: > { %12619 = sst [smem:[#allocation9_spill]] %s8985_s26  ;;  %s7599_s28 = sadd.s32 4294967295, %s8989_s27   ;;  %s8989_s27 = sphi %s9075_s27, %s25_s27   ;;  %s8985_s26 = sphi %s9073_s26, %s12858_s26   ;;  %s8981_s25 = sphi %s9071_s25, %s12857_s25  }
   0x4   : > { %12620 = sst [smem:[#allocation10_spill]] %s8989_s27  ;;  %s37_s29 = sadd.s32 1, %s8985_s26 }
   0x5   : > { %p39_p0 = scmp.ge.s32.totalorder %s37_s29, 2  ;;  %p7601_p1 = scmp.ge.s32.totalorder %s8989_s27, 1 }
   0x6   : > { %p348_p2 = scmp.lt.s32.totalorder %s8989_s27, 3  ;;  %p9096_p4 = scmp.eq.s32.totalorder %s7599_s28, 0 }
   0x7   : > { %s12860_s29 = smov (%p39_p0, %s37_s29), 0  ;;  %s8991_s15 = smov [#allocation3]  }
   0x8   : > { %12621 = sst [smem:[#allocation11_spill]] %s12860_s29  ;;  %p9092_p3 = pnand %p7601_p1, %p348_p2 }
   0x9   : > { %s12623_s14 = scalar_select %p9096_p4, 1, 0 }
   0xa   : > { %s12622_s30 = scalar_select %p9092_p3, 1, 0 }
   0xb   : > { %p8672_p5 = pneg %p9092_p3  ;;  %s372_s16 = sshll.u32 %s8991_s15, 4  ;;  %s373_s16 = int_to_ptr.vmem [resolvable:$true] %s372_s16 }
   0xc   : > { %s8992_s18 = smov [#allocation5]   ;;  %s8903_s22 = scalar_lea.hbm %s12521_s5, 8192 }
   0xd   : > { %p9104_p6 = pnand %p9096_p4, %p8672_p5  ;;  %s394_s19 = sshll.u32 %s8992_s18, 4  ;;  %s9108_s19 = int_to_ptr.vmem [resolvable:$true] %s394_s19 }
   0xe   : > { %p8904_p7 = scmp.ne.s32.totalorder %s12521_s5, %s8903_s22  ;;  %p8910_p11 = scmp.lt.u32.totalorder %s8903_s22, %s12521_s5 }
   0xf   : > { %p8905_p8 = pneg %p9104_p6 }
  0x11   : > { %p8906_p9 = pnand %p8905_p8, %p8904_p7 }
  0x13   : > { %p8907_p10 = pneg %p8906_p9 }
  0x15   : > { %p8912_p12 = pnand %p8910_p11, %p8907_p10 }
  0x17   : > { %8915 = shalt.err (!%p8912_p12)
}
  0x18   : > { %s8916_s18 = scalar_lea.vmem %s373_s16, 8192  ;;  %p8924_p2 = scmp.lt.s32.totalorder %s373_s16, %s373_s16 }
  0x19   : > { %p8917_p13 = scmp.ne.s32.totalorder %s373_s16, %s8916_s18  ;;  %p8925_p5 = scmp.lt.s32.totalorder %s8916_s18, %s8916_s18 }
  0x1b   : > { %p8919_p0 = pnand %p8917_p13, %p8905_p8  ;;  %p8926_p4 = por %p8925_p5, %p8924_p2 }
  0x1d   : > { %p8920_p1 = pneg %p8919_p0 }
  0x1f   : > { %p8927_p3 = pnand %p8926_p4, %p8920_p1 }
  0x21   : > { %8930 = shalt.err (!%p8927_p3)
}
  0x22   : > { %s8993_s20 = smov 64   ;;  %s8994_s21 = smov 4  }
  0x23   : > { %8675 = dma.hbm_to_vmem [thread:$0]  (!%p9104_p6), %s12521_s5, 8192, %s373_s16, [#allocation4], %s8993_s20, %s8993_s20, %s8994_s21  }
  0x24   : > { %s8931_s15 = scalar_lea.hbm %s12525_s9, 8192 }
  0x25   : > { %p8932_p7 = scmp.ne.s32.totalorder %s12525_s9, %s8931_s15  ;;  %p8938_p9 = scmp.lt.u32.totalorder %s8931_s15, %s12525_s9 }
  0x27   : > { %p8934_p3 = pnand %p8932_p7, %p8905_p8 }
  0x29   : > { %p8935_p4 = pneg %p8934_p3 }
  0x2b   : > { %p8940_p10 = pnand %p8938_p9, %p8935_p4 }
  0x2d   : > { %8943 = shalt.err (!%p8940_p10)
}
  0x2e   : > { %s8944_s16 = scalar_lea.vmem %s9108_s19, 8192  ;;  %p8952_p0 = scmp.lt.s32.totalorder %s9108_s19, %s9108_s19 }
  0x2f   : > { %p8945_p11 = scmp.ne.s32.totalorder %s9108_s19, %s8944_s16  ;;  %p8953_p1 = scmp.lt.s32.totalorder %s8944_s16, %s8944_s16 }
  0x31   : > { %p8947_p12 = pnand %p8945_p11, %p8905_p8  ;;  %p8954_p2 = por %p8953_p1, %p8952_p0 }
  0x33   : > { %p8948_p13 = pneg %p8947_p12 }
  0x35   : > { %p8955_p5 = pnand %p8954_p2, %p8948_p13 }
  0x37   : > { %8958 = shalt.err (!%p8955_p5)
}
  0x38   : > { %s8995_s26 = smov 256   ;;  %s8996_s27 = smov 16  }
  0x39   : > { %8678 = dma.hbm_to_vmem [thread:$0]  (!%p9104_p6), %s12525_s9, 8192, %s9108_s19, [#allocation6], %s8995_s26, %s8995_s26, %s8996_s27  }
  0x3a   : > { %p12625_p7 = scmp.ne.s32.totalorder %s12622_s30, 0 }
  0x3c   : > { %432 = sbr.rel (%p12625_p7) target bundleno = 2752 (0xac0), region = 72 }
  0x43   : > { %p12626_p8 = scmp.ne.s32.totalorder %s12623_s14, 0 }
  0x45   : > { %8972 = dma.done.wait (%p12626_p8), [#allocation4], 8192  }
  0x46   : > { %8974 = vsyncadd (%p12626_p8), [#allocation4], 4294959104 }
  0x47   : > { %8976 = dma.done.wait (%p12626_p8), [#allocation6], 8192  }
  0x48   : > { %8978 = vsyncadd (%p12626_p8), [#allocation6], 4294959104  ;;  %v8997_v0 = vmov 2   ;;  %v8998_v1 = vmov 1   ;;  %v12535_v2 = vmov 0   ;;  %v634_v3 = vld [vmem:[%s12517_s1] sm:$0xff]  ;;  %v683_v39 = vlaneseq }
  0x49   : > { %8718 = vset.pattern.permute.xlu0 %v8997_v0  ;;  %8717 = vset.pattern.permute.xlu1 %v8998_v1  ;;  %v636_v4 = vld [vmem:[%s12517_s1 + $0x10] sm:$0xff]  ;;  %v635_v5 = vld [vmem:[%s12517_s1 + $0x8] sm:$0xff]  ;;  %v638_v7 = vld [vmem:[%s12517_s1 + $0x20] sm:$0xff]  ;;  %p485_p6 = scmp.lt.s32.totalorder %s8981_s25, 1  ;;  %vm1121_vm0 = vcmask 523264   ;;  %vm504_vm1 = vcmask 7168  }
  0x4a   : > { %1178 = vmatprep.mubr.bf16.mxu0 %v12535_v2  ;;  %1587 = vmatprep.mubr.bf16.mxu1 %v12535_v2  ;;  %v639_v6 = vld [vmem:[%s12517_s1 + $0x28] sm:$0xff]  ;;  %v641_v8 = vld [vmem:[%s12517_s1 + $0x38] sm:$0xff]  ;;  %v881_v10 = vld [vmem:[%s12518_s2] sm:$0xff]  ;;  %v684_v42 = vshrl.u32 %v683_v39, 7  ;;  %vm7505_vm2 = vcmask 0  }
  0x4b   : > { %800 = vperm.xlu0 %8718, %v634_v3   ;;  %718 = vperm.xlu1 %8717, %v634_v3   ;;  %v637_v9 = vld [vmem:[%s12517_s1 + $0x18] sm:$0xff]  ;;  %v882_v11 = vld [vmem:[%s12518_s2 + $0x8] sm:$0xff]  ;;  %v640_v12 = vld [vmem:[%s12517_s1 + $0x30] sm:$0xff]  ;;  %s12862_s25 = smov (!%p485_p6, %s8981_s25), 1 }
  0x4c   : > { %v885_v13 = vld [vmem:[%s12518_s2 + $0x20] sm:$0xff]  ;;  %v888_v14 = vld [vmem:[%s12518_s2 + $0x38] sm:$0xff]  ;;  %v986_v15 = vld [vmem:[%s12520_s4 + $0x8] sm:$0xff]  ;;  %s8016_s30 = sshll.u32 %s12862_s25, 3  ;;  %v751_v44 = vsub.s32 1, %v684_v42  ;;  %v755_v45 = vsub.s32 5, %v684_v42 }
  0x4d   : > { %v988_v16 = vld [vmem:[%s12520_s4 + $0x18] sm:$0xff]  ;;  %v883_v17 = vld [vmem:[%s12518_s2 + $0x10] sm:$0xff]  ;;  %v990_v18 = vld [vmem:[%s12520_s4 + $0x28] sm:$0xff]  ;;  %s492_s14 = scalar_lea.vmem %s12516_s0, %s8016_s30  ;;  %v685_v46 = vsub.s32 0, %v684_v42  ;;  %v689_v47 = vsub.s32 4, %v684_v42  ;;  %v833_v50 = vsub.s32 2, %v684_v42 }
  0x4e   : > { %v884_v19 = vld [vmem:[%s12518_s2 + $0x18] sm:$0xff]  ;;  %v994_v21 = vld [vmem:[%s12520_s4 + $0x48] sm:$0xff]  ;;  %v887_v26 = vld [vmem:[%s12518_s2 + $0x30] sm:$0xff]  ;;  %v837_v51 = vsub.s32 6, %v684_v42  ;;  %s8017_s28 = sshll.u32 %s12862_s25, 4 }
  0x4f   : > { %808 = vperm.xlu0 %8718, %v636_v4   ;;  %722 = vperm.xlu1 %8717, %v635_v5   ;;  %v992_v20 = vld [vmem:[%s12520_s4 + $0x38] sm:$0xff]  ;;  %v998_v23 = vld [vmem:[%s12520_s4 + $0x68] sm:$0xff]  ;;  %v985_v27 = vld [vmem:[%s12520_s4] sm:$0xff]  ;;  %s498_s27 = scalar_lea.vmem %s12529_s13, %s8017_s28 }
  0x50   : > { %v996_v22 = vld [vmem:[%s12520_s4 + $0x58] sm:$0xff]  ;;  %v886_v25 = vld [vmem:[%s12518_s2 + $0x28] sm:$0xff]  ;;  %v987_v28 = vld [vmem:[%s12520_s4 + $0x10] sm:$0xff] }
  0x51   : > { %v1000_v24 = vld [vmem:[%s12520_s4 + $0x78] sm:$0xff]  ;;  %v989_v29 = vld [vmem:[%s12520_s4 + $0x20] sm:$0xff]  ;;  %v991_v30 = vld [vmem:[%s12520_s4 + $0x30] sm:$0xff] }
  0x52   : > { %v993_v31 = vld [vmem:[%s12520_s4 + $0x40] sm:$0xff]  ;;  %v995_v32 = vld [vmem:[%s12520_s4 + $0x50] sm:$0xff] }
  0x53   : > { %820 = vperm.xlu0 %8718, %v639_v6   ;;  %8719 = vset.pattern.permute.xlu1 %v8997_v0  ;;  %v997_v33 = vld [vmem:[%s12520_s4 + $0x60] sm:$0xff]  ;;  %v999_v34 = vld [vmem:[%s12520_s4 + $0x70] sm:$0xff] }
  0x54   : > { %804 = vperm.xlu1 %8719, %v635_v5   ;;  %v633_v49 = vld [vmem:[%s492_s14] sm:$0x77] }
  0x55   : > { %v752_v53 = vrot.slane %v633_v49, %v751_v44  ;;  %v756_v54 = vrot.slane %v633_v49, %v755_v45  ;;  %v686_v55 = vrot.slane %v633_v49, %v685_v46  ;;  %v690_v56 = vrot.slane %v633_v49, %v689_v47 }
  0x56   : > { %v834_v58 = vrot.slane %v633_v49, %v833_v50  ;;  %v838_v59 = vrot.slane %v633_v49, %v837_v51 }
  0x57   : > { %8726 = vset.pattern.permute.xlu0 %v8998_v1  ;;  %v9298_v60 = vrot.slane %v752_v53, %v751_v44  ;;  %v9300_v61 = vrot.slane %v756_v54, %v751_v44  ;;  %v9302_v62 = vrot.slane %v686_v55, %v685_v46  ;;  %v9304_v63 = vrot.slane %v690_v56, %v685_v46 }
  0x58   : > { %734 = vperm.xlu0 %8726, %v638_v7   ;;  %8720 = vset.pattern.permute.xlu1 %v12535_v2 }
  0x59   : > { %654 = vperm.xlu1 %8720, %v636_v4  }
  0x5c   : > { %746 = vperm.xlu0 %8726, %v641_v8  }
  0x5d   : > { %8721 = vset.pattern.permute.xlu1 %v8998_v1 }
  0x5e   : > { %726 = vperm.xlu1 %8721, %v636_v4  }
  0x60   : > { %8729 = vset.pattern.permute.xlu0 %v12535_v2 }
  0x61   : > { %644 = vperm.xlu0 %8729, %v634_v3  }
  0x62   : > { %730 = vperm.xlu1 %8721, %v637_v9  }
  0x65   : > { %649 = vperm.xlu0 %8729, %v635_v5  }
  0x66   : > { %8722 = vset.pattern.permute.xlu1 %v8997_v0 }
  0x67   : > { %812 = vperm.xlu1 %8722, %v637_v9  }
  0x69   : > { %659 = vperm.xlu0 %8729, %v637_v9  }
  0x6b   : > { %8723 = vset.pattern.permute.xlu1 %v12535_v2 }
  0x6c   : > { %891 = vperm.xlu1 %8723, %v881_v10  }
  0x6d   : > { %896 = vperm.xlu0 %8729, %v882_v11  }
  0x70   : > { %664 = vperm.xlu1 %8723, %v638_v7  }
  0x71   : > { %674 = vperm.xlu0 %8729, %v640_v12  }
  0x74   : > { %669 = vperm.xlu1 %8723, %v639_v6  }
  0x75   : > { %911 = vperm.xlu0 %8729, %v885_v13  }
  0x78   : > { %8724 = vset.pattern.permute.xlu1 %v8998_v1 }
  0x79   : > { %926 = vperm.xlu0 %8729, %v888_v14   ;;  %738 = vperm.xlu1 %8724, %v639_v6  }
  0x7d   : > { %1008 = vperm.xlu0 %8729, %v986_v15   ;;  %8725 = vset.pattern.permute.xlu1 %v8997_v0 }
  0x7e   : > { %816 = vperm.xlu1 %8725, %v638_v7   ;;  %v9310_v7 = vrot.slane %v834_v58, %v833_v50 }
  0x81   : > { %1018 = vperm.xlu0 %8729, %v988_v16  }
  0x82   : > { %8727 = vset.pattern.permute.xlu1 %v12535_v2 }
  0x83   : > { %901 = vperm.xlu1 %8727, %v883_v17  }
  0x85   : > { %1028 = vperm.xlu0 %8729, %v990_v18  }
  0x87   : > { %906 = vperm.xlu1 %8727, %v884_v19  }
  0x89   : > { %1038 = vperm.xlu0 %8729, %v992_v20  }
  0x8b   : > { %679 = vperm.xlu1 %8727, %v641_v8  }
  0x8d   : > { %1048 = vperm.xlu0 %8729, %v994_v21  }
  0x8f   : > { %8728 = vset.pattern.permute.xlu1 %v8998_v1 }
  0x90   : > { %742 = vperm.xlu1 %8728, %v640_v12  }
  0x91   : > { %1058 = vperm.xlu0 %8729, %v996_v22  }
  0x94   : > { %8730 = vset.pattern.permute.xlu1 %v8997_v0 }
  0x95   : > { %1068 = vperm.xlu0 %8729, %v998_v23   ;;  %824 = vperm.xlu1 %8730, %v640_v12  }
  0x99   : > { %1078 = vperm.xlu0 %8729, %v1000_v24   ;;  %828 = vperm.xlu1 %8730, %v641_v8   ;;  %v9312_v8 = vrot.slane %v838_v59, %v833_v50 }
  0x9d   : > { %8731 = vset.pattern.permute.xlu1 %v12535_v2 }
  0x9e   : > { %916 = vperm.xlu1 %8731, %v886_v25  }
  0xa2   : > { %921 = vperm.xlu1 %8731, %v887_v26  }
  0xa6   : > { %1003 = vperm.xlu1 %8731, %v985_v27  }
  0xaa   : > { %1013 = vperm.xlu1 %8731, %v987_v28  }
  0xae   : > { %1023 = vperm.xlu1 %8731, %v989_v29  }
  0xb2   : > { %1033 = vperm.xlu1 %8731, %v991_v30  }
  0xb6   : > { %1043 = vperm.xlu1 %8731, %v993_v31  }
  0xba   : > { %1053 = vperm.xlu1 %8731, %v995_v32  }
  0xbe   : > { %1063 = vperm.xlu1 %8731, %v997_v33  }
  0xc2   : > { %1073 = vperm.xlu1 %8731, %v999_v34  }
  0xca   : > { %v719_v35 = vpop.permute.xlu1 %718  ;;  %v801_v36 = vpop.permute.xlu0 %800 }
  0xcb   : > { %v767_v5 = vmul.f32 %v9298_v60, %v719_v35  ;;  %v768_v6 = vmul.f32 %v9300_v61, %v719_v35  ;;  %v849_v14 = vmul.f32 %v9310_v7, %v801_v36  ;;  %v850_v15 = vmul.f32 %v9312_v8, %v801_v36 }
  0xce   : > { %v723_v37 = vpop.permute.xlu1 %722  ;;  %v9281_v38 = vpop.permute.xlu0 %808 }
  0xcf   : > { %v769_v10 = vmul.f32 %v9298_v60, %v723_v37  ;;  %v770_v11 = vmul.f32 %v9300_v61, %v723_v37  ;;  %v853_v55 = vmul.f32 %v9310_v7, %v9281_v38  ;;  %v854_v56 = vmul.f32 %v9312_v8, %v9281_v38 }
  0xd2   : > { %v9286_v40 = vpop.permute.xlu0 %820 }
  0xd3   : > { %v805_v41 = vpop.permute.xlu1 %804 }
  0xd4   : > { %v851_v22 = vmul.f32 %v9310_v7, %v805_v41  ;;  %v852_v23 = vmul.f32 %v9312_v8, %v805_v41 }
  0xd7   : > { %v9292_v43 = vpop.permute.xlu0 %734 }
  0xd8   : > { %v9294_v48 = vpop.permute.xlu1 %654 }
  0xd9   : > { %v705_v49 = vmul.f32 %v9302_v62, %v9294_v48  ;;  %v706_v50 = vmul.f32 %v9304_v63, %v9294_v48 }
  0xdb   : > { %v9296_v52 = vpop.permute.xlu0 %746 }
  0xdd   : > { %v727_v57 = vpop.permute.xlu1 %726 }
  0xde   : > { %v771_v46 = vmul.f32 %v9298_v60, %v727_v57  ;;  %v772_v47 = vmul.f32 %v9300_v61, %v727_v57 }
  0xe0   : > { %v645_v0 = vpop.permute.xlu0 %644  ;;  %v787_v58 = vadd.f32 %v771_v46, %v705_v49  ;;  %v788_v59 = vadd.f32 %v772_v47, %v706_v50  ;;  %v782_v49 = vmul.f32 %v9300_v61, %v9296_v52 }
  0xe1   : > { %v731_v1 = vpop.permute.xlu1 %730  ;;  %v701_v3 = vmul.f32 %v9302_v62, %v645_v0  ;;  %v702_v4 = vmul.f32 %v9304_v63, %v645_v0 }
  0xe2   : > { %v773_v57 = vmul.f32 %v9298_v60, %v731_v1  ;;  %v774_v0 = vmul.f32 %v9300_v61, %v731_v1 }
  0xe3   : > { %v783_v16 = vadd.f32 %v767_v5, %v701_v3  ;;  %v784_v17 = vadd.f32 %v768_v6, %v702_v4 }
  0xe4   : > { %v650_v9 = vpop.permute.xlu0 %649 }
  0xe5   : > { %v703_v12 = vmul.f32 %v9302_v62, %v650_v9  ;;  %v704_v13 = vmul.f32 %v9304_v63, %v650_v9  ;;  %v865_v24 = vadd.f32 %v849_v14, %v783_v16  ;;  %v866_v25 = vadd.f32 %v850_v15, %v784_v17 }
  0xe6   : > { %v813_v18 = vpop.permute.xlu1 %812  ;;  %v869_v9 = vadd.f32 %v853_v55, %v787_v58 }
  0xe7   : > { %v785_v19 = vadd.f32 %v769_v10, %v703_v12  ;;  %v786_v20 = vadd.f32 %v770_v11, %v704_v13  ;;  %v855_v5 = vmul.f32 %v9310_v7, %v813_v18  ;;  %v856_v6 = vmul.f32 %v9312_v8, %v813_v18 }
  0xe8   : > { %v660_v21 = vpop.permute.xlu0 %659  ;;  %v870_v10 = vadd.f32 %v854_v56, %v788_v59  ;;  %v775_v18 = vmul.f32 %v9298_v60, %v9292_v43 }
  0xe9   : > { %v867_v27 = vadd.f32 %v851_v22, %v785_v19  ;;  %v868_v28 = vadd.f32 %v852_v23, %v786_v20  ;;  %v707_v51 = vmul.f32 %v9302_v62, %v660_v21  ;;  %v708_v53 = vmul.f32 %v9304_v63, %v660_v21 }
  0xeb   : > { %v892_v26 = vpop.permute.xlu1 %891  ;;  %v789_v3 = vadd.f32 %v773_v57, %v707_v51  ;;  %v790_v4 = vadd.f32 %v774_v0, %v708_v53 }
  0xec   : > { %v929_v29 = vadd.f32 %v892_v26, %v865_v24  ;;  %v897_v30 = vpop.permute.xlu0 %896  ;;  %v930_v31 = vadd.f32 %v892_v26, %v866_v25  ;;  %v776_v25 = vmul.f32 %v9300_v61, %v9292_v43 }
  0xed   : > { %v931_v32 = vadd.f32 %v897_v30, %v867_v27  ;;  %v932_v33 = vadd.f32 %v897_v30, %v868_v28  ;;  %v871_v13 = vadd.f32 %v855_v5, %v789_v3  ;;  %v872_v14 = vadd.f32 %v856_v6, %v790_v4 }
  0xee   : > { %v946_v34 = vmax.f32 %v930_v31, 0.0  ;;  %v945_v35 = vmax.f32 %v929_v29, 0.0 }
  0xef   : > { %v665_v36 = vpop.permute.xlu1 %664  ;;  %v948_v37 = vmax.f32 %v932_v33, 0.0  ;;  %v947_v39 = vmax.f32 %v931_v32, 0.0 }
  0xf0   : > { %v709_v26 = vmul.f32 %v9302_v62, %v665_v36  ;;  %v710_v27 = vmul.f32 %v9304_v63, %v665_v36  ;;  %v675_v28 = vpop.permute.xlu0 %674 }
  0xf1   : > { %v978_v42 = vpack.c.bf16 %v948_v37, %v946_v34  ;;  %v977_v44 = vpack.c.bf16 %v947_v39, %v945_v35  ;;  %v713_v58 = vmul.f32 %v9302_v62, %v675_v28  ;;  %v714_v59 = vmul.f32 %v9304_v63, %v675_v28  ;;  %v8732_v28 = vld [vmem:[%s12519_s3] sm:$0xff]  }
  0xf2   : > { %v791_v34 = vadd.f32 %v775_v18, %v709_v26  ;;  %v792_v35 = vadd.f32 %v776_v25, %v710_v27 }
  0xf3   : > { %v670_v45 = vpop.permute.xlu1 %669  ;;  %1146 = vmatprep.subr.bf16.mxu0 %v978_v42  ;;  %v859_v42 = vmul.f32 %v9310_v7, %v9286_v40 }
  0xf4   : > { %1147 = vmatpush1.bf16.msra.mxu0 %v977_v44  ;;  %v711_v37 = vmul.f32 %v9302_v62, %v670_v45  ;;  %v712_v43 = vmul.f32 %v9304_v63, %v670_v45  ;;  %v860_v44 = vmul.f32 %v9312_v8, %v9286_v40  ;;  %v912_v53 = vpop.permute.xlu0 %911 }
  0xf8   : > { %v739_v41 = vpop.permute.xlu1 %738 }
  0xf9   : > { %v777_v31 = vmul.f32 %v9298_v60, %v739_v41  ;;  %v778_v32 = vmul.f32 %v9300_v61, %v739_v41  ;;  %v781_v41 = vmul.f32 %v9298_v60, %v9296_v52 }
  0xfb   : > { %v793_v50 = vadd.f32 %v777_v31, %v711_v37  ;;  %v794_v45 = vadd.f32 %v778_v32, %v712_v43  ;;  %v8735_v31 = vld [vmem:[%s12519_s3 + $0x18] sm:$0xff]   ;;  %v8736_v32 = vld [vmem:[%s12519_s3 + $0x20] sm:$0xff]  }
  0xfd   : > { %v817_v54 = vpop.permute.xlu1 %816  ;;  %v875_v6 = vadd.f32 %v859_v42, %v793_v50 }
  0xfe   : > { %v857_v29 = vmul.f32 %v9310_v7, %v817_v54  ;;  %v858_v30 = vmul.f32 %v9312_v8, %v817_v54 }
 0x100   : > { %v873_v46 = vadd.f32 %v857_v29, %v791_v34  ;;  %v874_v47 = vadd.f32 %v858_v30, %v792_v35  ;;  %v8733_v29 = vld [vmem:[%s12519_s3 + $0x8] sm:$0xff]   ;;  %v8734_v30 = vld [vmem:[%s12519_s3 + $0x10] sm:$0xff]   ;;  %v8739_v35 = vld [vmem:[%s12519_s3 + $0x38] sm:$0xff]  }
 0x101   : > { %v8738_v34 = vld [vmem:[%s12519_s3 + $0x30] sm:$0xff]  }
 0x102   : > { %v902_v48 = vpop.permute.xlu1 %901  ;;  %v938_v4 = vadd.f32 %v912_v53, %v874_v47 }
 0x103   : > { %v933_v11 = vadd.f32 %v902_v48, %v869_v9  ;;  %v934_v12 = vadd.f32 %v902_v48, %v870_v10  ;;  %v937_v48 = vadd.f32 %v912_v53, %v873_v46 }
 0x105   : > { %v949_v17 = vmax.f32 %v933_v11, 0.0  ;;  %v950_v19 = vmax.f32 %v934_v12, 0.0 }
 0x106   : > { %v907_v38 = vpop.permute.xlu1 %906 }
 0x107   : > { %v935_v15 = vadd.f32 %v907_v38, %v871_v13  ;;  %v936_v16 = vadd.f32 %v907_v38, %v872_v14  ;;  %v954_v38 = vmax.f32 %v938_v4, 0.0 }
 0x109   : > { %v951_v20 = vmax.f32 %v935_v15, 0.0  ;;  %v952_v1 = vmax.f32 %v936_v16, 0.0  ;;  %v953_v15 = vmax.f32 %v937_v48, 0.0 }
 0x10a   : > { %v680_v21 = vpop.permute.xlu1 %679 }
 0x10b   : > { %v980_v22 = vpack.c.bf16 %v952_v1, %v950_v19  ;;  %v979_v23 = vpack.c.bf16 %v951_v20, %v949_v17  ;;  %v715_v39 = vmul.f32 %v9302_v62, %v680_v21  ;;  %v716_v36 = vmul.f32 %v9304_v63, %v680_v21  ;;  %v927_v62 = vpop.permute.xlu0 %926 }
 0x10d   : > { %1148 = vmatprep.subr.bf16.mxu0 %v980_v22  ;;  %v797_v57 = vadd.f32 %v781_v41, %v715_v39  ;;  %v798_v0 = vadd.f32 %v782_v49, %v716_v36 }
 0x10e   : > { %1149 = vmatpush1.bf16.msra.mxu0 %v979_v23 }
 0x10f   : > { %v743_v24 = vpop.permute.xlu1 %742  ;;  %v1009_v42 = vpop.permute.xlu0 %1008 }
 0x110   : > { %v779_v54 = vmul.f32 %v9298_v60, %v743_v24  ;;  %v780_v55 = vmul.f32 %v9300_v61, %v743_v24  ;;  %v876_v61 = vadd.f32 %v860_v44, %v794_v45 }
 0x112   : > { %v795_v9 = vadd.f32 %v779_v54, %v713_v58  ;;  %v796_v10 = vadd.f32 %v780_v55, %v714_v59 }
 0x114   : > { %v825_v33 = vpop.permute.xlu1 %824 }
 0x115   : > { %v861_v52 = vmul.f32 %v9310_v7, %v825_v33  ;;  %v862_v3 = vmul.f32 %v9312_v8, %v825_v33  ;;  %v8737_v33 = vld [vmem:[%s12519_s3 + $0x28] sm:$0xff]  }
 0x117   : > { %v877_v14 = vadd.f32 %v861_v52, %v795_v9  ;;  %v878_v63 = vadd.f32 %v862_v3, %v796_v10 }
 0x118   : > { %v829_v51 = vpop.permute.xlu1 %828 }
 0x119   : > { %v863_v56 = vmul.f32 %v9310_v7, %v829_v51  ;;  %v864_v40 = vmul.f32 %v9312_v8, %v829_v51 }
 0x11b   : > { %v879_v5 = vadd.f32 %v863_v56, %v797_v57  ;;  %v880_v60 = vadd.f32 %v864_v40, %v798_v0  ;;  %v1019_v57 = vpop.permute.xlu0 %1018 }
 0x11d   : > { %v917_v11 = vpop.permute.xlu1 %916  ;;  %v944_v17 = vadd.f32 %v927_v62, %v880_v60  ;;  %v943_v8 = vadd.f32 %v927_v62, %v879_v5 }
 0x11e   : > { %v939_v12 = vadd.f32 %v917_v11, %v875_v6  ;;  %v940_v13 = vadd.f32 %v917_v11, %v876_v61 }
 0x11f   : > { %v960_v18 = vmax.f32 %v944_v17, 0.0  ;;  %v959_v25 = vmax.f32 %v943_v8, 0.0 }
 0x120   : > { %v955_v16 = vmax.f32 %v939_v12, 0.0  ;;  %v956_v7 = vmax.f32 %v940_v13, 0.0 }
 0x121   : > { %v922_v19 = vpop.permute.xlu1 %921 }
 0x122   : > { %v941_v20 = vadd.f32 %v922_v19, %v877_v14  ;;  %v942_v1 = vadd.f32 %v922_v19, %v878_v63  ;;  %v982_v21 = vpack.c.bf16 %v956_v7, %v954_v38  ;;  %v981_v22 = vpack.c.bf16 %v955_v16, %v953_v15  ;;  %v1029_v14 = vpop.permute.xlu0 %1028 }
 0x124   : > { %v957_v23 = vmax.f32 %v941_v20, 0.0  ;;  %v958_v24 = vmax.f32 %v942_v1, 0.0  ;;  %1150 = vmatprep.subr.bf16.mxu0 %v982_v21 }
 0x125   : > { %1151 = vmatpush1.bf16.msra.mxu0 %v981_v22  ;;  %v1004_v37 = vpop.permute.xlu1 %1003 }
 0x126   : > { %v984_v26 = vpack.c.bf16 %v960_v18, %v958_v24  ;;  %v983_v27 = vpack.c.bf16 %v959_v25, %v957_v23  ;;  %v1039_v25 = vpop.permute.xlu0 %1038 }
 0x128   : > { %1152 = vmatprep.subr.bf16.mxu0 %v984_v26 }
 0x129   : > { %1153 = vmatpush1.bf16.msra.mxu0 %v983_v27  ;;  %v1014_v55 = vpop.permute.xlu1 %1013 }
 0x12c   : > { %7620 = vmatmul.mubr.msk.bf16.vlgmr.msra.gmra.mrb[0].mxu0 %vm1121_vm0, %v8732_v28 }
 0x12d   : > { %1188 = vmatprep.mubr.bf16.mxu0 %v12535_v2  ;;  %v1024_v10 = vpop.permute.xlu1 %1023 }
 0x131   : > { %v1034_v21 = vpop.permute.xlu1 %1033 }
 0x134   : > { %7621 = vmatmul.mubr.msk.bf16.gmra.mrb[4].mxu0 %vm1121_vm0, %v8733_v29 }
 0x135   : > { %1198 = vmatprep.mubr.bf16.mxu0 %v12535_v2 }
 0x13c   : > { %7622 = vmatmul.mubr.msk.bf16.gmra.mrb[8].mxu0 %vm1121_vm0, %v8734_v30 }
 0x13d   : > { %1208 = vmatprep.mubr.bf16.mxu0 %v12535_v2 }
 0x144   : > { %7623 = vmatmul.mubr.msk.bf16.gmra.mrb[12].mxu0 %vm1121_vm0, %v8735_v31 }
 0x145   : > { %1218 = vmatprep.mubr.bf16.mxu0 %v12535_v2 }
 0x14c   : > { %7624 = vmatmul.mubr.msk.bf16.gmra.mrb[16].mxu0 %vm1121_vm0, %v8736_v32 }
 0x14d   : > { %1228 = vmatprep.mubr.bf16.mxu0 %v12535_v2 }
 0x154   : > { %7625 = vmatmul.mubr.msk.bf16.gmra.mrb[20].mxu0 %vm1121_vm0, %v8737_v33 }
 0x155   : > { %1238 = vmatprep.mubr.bf16.mxu0 %v12535_v2 }
 0x15c   : > { %7626 = vmatmul.mubr.msk.bf16.gmra.mrb[24].mxu0 %vm1121_vm0, %v8738_v34 }
 0x15d   : > { %1248 = vmatprep.mubr.bf16.mxu0 %v12535_v2 }
 0x164   : > { %7627 = vmatmul.mubr.msk.bf16.gmra.mrb[28].mxu0 %vm1121_vm0, %v8739_v35 }
 0x165   : > { %1467 = vmatprep.mubr.bf16.mxu0 %v12535_v2 }
 0x1ff   : > { %v1180_v43 = vpop.f32.mrb[0].mxu0 }
 0x200   : > { %v1181_v39 = vadd.f32 %v1180_v43, %v1004_v37  ;;  %v1182_v36 = vpop.f32.mrb[1].mxu0 }
 0x201   : > { %v1183_v44 = vadd.f32 %v1182_v36, %v1004_v37  ;;  %v1184_v46 = vpop.f32.mrb[2].mxu0  ;;  %v1044_v37 = vpop.permute.xlu1 %1043 }
 0x202   : > { %v1185_v47 = vadd.f32 %v1184_v46, %v1009_v42  ;;  %v1186_v41 = vpop.f32.mrb[3].mxu0  ;;  %v1259_v50 = vmax.f32 %v1181_v39, 0.0 }
 0x203   : > { %v1187_v49 = vadd.f32 %v1186_v41, %v1009_v42  ;;  %v1260_v51 = vmax.f32 %v1183_v44, 0.0  ;;  %v1049_v44 = vpop.permute.xlu0 %1048 }
 0x204   : > { %v1261_v45 = vmax.f32 %v1185_v47, 0.0 }
 0x205   : > { %v1262_v53 = vmax.f32 %v1187_v49, 0.0 }
 0x206   : > { %v9408_v54 = vpack.c.bf16 %v1261_v45, %v1259_v50 }
 0x207   : > { %v9410_v56 = vpack.c.bf16 %v1262_v53, %v1260_v51  ;;  %v1190_v40 = vpop.f32.mrb[4].mxu0 }
 0x208   : > { %v1191_v58 = vadd.f32 %v1190_v40, %v1014_v55  ;;  %v1192_v59 = vpop.f32.mrb[5].mxu0 }
 0x209   : > { %v1193_v0 = vadd.f32 %v1192_v59, %v1014_v55  ;;  %v1194_v52 = vpop.f32.mrb[6].mxu0  ;;  %1435 = vmatprep.subr.bf16.mxu0 %v9410_v56  ;;  %8264 = vmatprep.subr.bf16.mxu1 %v9410_v56 }
 0x20a   : > { %v1195_v3 = vadd.f32 %v1194_v52, %v1019_v57  ;;  %v1196_v4 = vpop.f32.mrb[7].mxu0  ;;  %1436 = vmatpush1.bf16.msra.mxu0 %v9408_v54  ;;  %8272 = vmatpush1.bf16.msra.mxu1 %v9408_v54  ;;  %v1263_v5 = vmax.f32 %v1191_v58, 0.0  ;;  %v1054_v58 = vpop.permute.xlu1 %1053 }
 0x20b   : > { %v1197_v48 = vadd.f32 %v1196_v4, %v1019_v57  ;;  %v1264_v6 = vmax.f32 %v1193_v0, 0.0 }
 0x20c   : > { %v1265_v60 = vmax.f32 %v1195_v3, 0.0  ;;  %v1059_v3 = vpop.permute.xlu0 %1058 }
 0x20d   : > { %v1266_v61 = vmax.f32 %v1197_v48, 0.0 }
 0x20e   : > { %v9416_v9 = vpack.c.bf16 %v1265_v60, %v1263_v5 }
 0x20f   : > { %v9418_v11 = vpack.c.bf16 %v1266_v61, %v1264_v6  ;;  %v1200_v12 = vpop.f32.mrb[8].mxu0 }
 0x210   : > { %v1201_v13 = vadd.f32 %v1200_v12, %v1024_v10  ;;  %v1202_v62 = vpop.f32.mrb[9].mxu0 }
 0x211   : > { %v1203_v63 = vadd.f32 %v1202_v62, %v1024_v10  ;;  %v1204_v38 = vpop.f32.mrb[10].mxu0  ;;  %1437 = vmatprep.subr.bf16.mxu0 %v9418_v11  ;;  %8265 = vmatprep.subr.bf16.mxu1 %v9418_v11 }
 0x212   : > { %v1205_v15 = vadd.f32 %v1204_v38, %v1029_v14  ;;  %v1206_v16 = vpop.f32.mrb[11].mxu0  ;;  %1438 = vmatpush1.bf16.msra.mxu0 %v9416_v9  ;;  %8273 = vmatpush1.bf16.msra.mxu1 %v9416_v9  ;;  %v1267_v17 = vmax.f32 %v1201_v13, 0.0 }
 0x213   : > { %v1207_v7 = vadd.f32 %v1206_v16, %v1029_v14  ;;  %v1268_v19 = vmax.f32 %v1203_v63, 0.0  ;;  %v1064_v14 = vpop.permute.xlu1 %1063 }
 0x214   : > { %v1269_v8 = vmax.f32 %v1205_v15, 0.0 }
 0x215   : > { %v1270_v20 = vmax.f32 %v1207_v7, 0.0  ;;  %v1069_v7 = vpop.permute.xlu0 %1068 }
 0x216   : > { %v9424_v1 = vpack.c.bf16 %v1269_v8, %v1267_v17 }
 0x217   : > { %v9426_v22 = vpack.c.bf16 %v1270_v20, %v1268_v19  ;;  %v1210_v23 = vpop.f32.mrb[12].mxu0 }
 0x218   : > { %v1211_v24 = vadd.f32 %v1210_v23, %v1034_v21  ;;  %v1212_v18 = vpop.f32.mrb[13].mxu0 }
 0x219   : > { %v1213_v26 = vadd.f32 %v1212_v18, %v1034_v21  ;;  %v1214_v27 = vpop.f32.mrb[14].mxu0  ;;  %1439 = vmatprep.subr.bf16.mxu0 %v9426_v22  ;;  %8266 = vmatprep.subr.bf16.mxu1 %v9426_v22 }
 0x21a   : > { %v1215_v28 = vadd.f32 %v1214_v27, %v1039_v25  ;;  %v1216_v29 = vpop.f32.mrb[15].mxu0  ;;  %1440 = vmatpush1.bf16.msra.mxu0 %v9424_v1  ;;  %8274 = vmatpush1.bf16.msra.mxu1 %v9424_v1  ;;  %v1271_v31 = vmax.f32 %v1211_v24, 0.0  ;;  %v1074_v27 = vpop.permute.xlu1 %1073 }
 0x21b   : > { %v1217_v30 = vadd.f32 %v1216_v29, %v1039_v25  ;;  %v1272_v33 = vmax.f32 %v1213_v26, 0.0 }
 0x21c   : > { %v1273_v32 = vmax.f32 %v1215_v28, 0.0 }
 0x21d   : > { %v1274_v34 = vmax.f32 %v1217_v30, 0.0 }
 0x21e   : > { %v9432_v35 = vpack.c.bf16 %v1273_v32, %v1271_v31  ;;  %v1079_v32 = vpop.permute.xlu0 %1078 }
 0x21f   : > { %v9434_v43 = vpack.c.bf16 %v1274_v34, %v1272_v33  ;;  %v1220_v39 = vpop.f32.mrb[16].mxu0 }
 0x220   : > { %v1221_v36 = vadd.f32 %v1220_v39, %v1044_v37  ;;  %v1222_v42 = vpop.f32.mrb[17].mxu0 }
 0x221   : > { %v1223_v46 = vadd.f32 %v1222_v42, %v1044_v37  ;;  %v1224_v47 = vpop.f32.mrb[18].mxu0  ;;  %1441 = vmatprep.subr.bf16.mxu0 %v9434_v43  ;;  %8267 = vmatprep.subr.bf16.mxu1 %v9434_v43 }
 0x222   : > { %v1225_v41 = vadd.f32 %v1224_v47, %v1049_v44  ;;  %v1226_v49 = vpop.f32.mrb[19].mxu0  ;;  %1442 = vmatpush1.bf16.msra.mxu0 %v9432_v35  ;;  %8275 = vmatpush1.bf16.msra.mxu1 %v9432_v35  ;;  %v1275_v45 = vmax.f32 %v1221_v36, 0.0 }
 0x223   : > { %v1227_v50 = vadd.f32 %v1226_v49, %v1049_v44  ;;  %v1276_v53 = vmax.f32 %v1223_v46, 0.0 }
 0x224   : > { %v1277_v51 = vmax.f32 %v1225_v41, 0.0 }
 0x225   : > { %v1278_v55 = vmax.f32 %v1227_v50, 0.0  ;;  %v8740_v50 = vld [vmem:[#allocation3] sm:$0xff]  }
 0x226   : > { %v9440_v40 = vpack.c.bf16 %v1277_v51, %v1275_v45  ;;  %v8741_v45 = vld [vmem:[#allocation3 + $0x60] sm:$0xff]   ;;  %v8742_v51 = vld [vmem:[#allocation3 + $0x8] sm:$0xff]  }
 0x227   : > { %v9442_v59 = vpack.c.bf16 %v1278_v55, %v1276_v53  ;;  %v1230_v57 = vpop.f32.mrb[20].mxu0  ;;  %v8758_v53 = vld [vmem:[#allocation3 + $0x68] sm:$0xff]   ;;  %v8743_v55 = vld [vmem:[#allocation3 + $0x10] sm:$0xff]  }
 0x228   : > { %v1231_v0 = vadd.f32 %v1230_v57, %v1054_v58  ;;  %v1232_v52 = vpop.f32.mrb[21].mxu0  ;;  %v8744_v57 = vld [vmem:[#allocation3 + $0x18] sm:$0xff]  }
 0x229   : > { %v1233_v4 = vadd.f32 %v1232_v52, %v1054_v58  ;;  %v1234_v48 = vpop.f32.mrb[22].mxu0  ;;  %1443 = vmatprep.subr.bf16.mxu0 %v9442_v59  ;;  %8268 = vmatprep.subr.bf16.mxu1 %v9442_v59  ;;  %v8760_v58 = vld [vmem:[#allocation3 + $0x70] sm:$0xff]   ;;  %v8745_v52 = vld [vmem:[#allocation3 + $0x20] sm:$0xff]  }
 0x22a   : > { %v1235_v5 = vadd.f32 %v1234_v48, %v1059_v3  ;;  %v1236_v60 = vpop.f32.mrb[23].mxu0  ;;  %1444 = vmatpush1.bf16.msra.mxu0 %v9440_v40  ;;  %8276 = vmatpush1.bf16.msra.mxu1 %v9440_v40  ;;  %v1279_v61 = vmax.f32 %v1231_v0, 0.0  ;;  %v8762_v0 = vld [vmem:[#allocation3 + $0x78] sm:$0xff]   ;;  %v8767_v48 = vld [vmem:[#allocation3 + $0x108] sm:$0xff]  }
 0x22b   : > { %v1237_v6 = vadd.f32 %v1236_v60, %v1059_v3  ;;  %v1280_v12 = vmax.f32 %v1233_v4, 0.0  ;;  %v8765_v3 = vld [vmem:[#allocation3 + $0x100] sm:$0xff]   ;;  %v8746_v4 = vld [vmem:[#allocation3 + $0x28] sm:$0xff]   ;;  %v8769_v60 = vld [vmem:[#allocation3 + $0x110] sm:$0xff]  }
 0x22c   : > { %v1281_v10 = vmax.f32 %v1235_v5, 0.0  ;;  %v8747_v5 = vld [vmem:[#allocation3 + $0x30] sm:$0xff]  }
 0x22d   : > { %v1282_v13 = vmax.f32 %v1237_v6, 0.0  ;;  %v8771_v6 = vld [vmem:[#allocation3 + $0x118] sm:$0xff]  }
 0x22e   : > { %v9448_v62 = vpack.c.bf16 %v1281_v10, %v1279_v61  ;;  %v8749_v61 = vld [vmem:[#allocation3 + $0x40] sm:$0xff]  }
 0x22f   : > { %v9450_v63 = vpack.c.bf16 %v1282_v13, %v1280_v12  ;;  %v1240_v38 = vpop.f32.mrb[24].mxu0  ;;  %v8773_v10 = vld [vmem:[#allocation3 + $0x120] sm:$0xff]   ;;  %v8750_v12 = vld [vmem:[#allocation3 + $0x48] sm:$0xff]  }
 0x230   : > { %v1241_v15 = vadd.f32 %v1240_v38, %v1064_v14  ;;  %v1242_v16 = vpop.f32.mrb[25].mxu0  ;;  %v8775_v13 = vld [vmem:[#allocation3 + $0x128] sm:$0xff]   ;;  %v8777_v38 = vld [vmem:[#allocation3 + $0x130] sm:$0xff]  }
 0x231   : > { %v1243_v17 = vadd.f32 %v1242_v16, %v1064_v14  ;;  %v1244_v8 = vpop.f32.mrb[26].mxu0  ;;  %1445 = vmatprep.subr.bf16.mxu0 %v9450_v63  ;;  %8269 = vmatprep.subr.bf16.mxu1 %v9450_v63  ;;  %v8751_v14 = vld [vmem:[#allocation3 + $0x50] sm:$0xff]   ;;  %v8779_v16 = vld [vmem:[#allocation3 + $0x138] sm:$0xff]  }
 0x232   : > { %v1245_v19 = vadd.f32 %v1244_v8, %v1069_v7  ;;  %v1246_v20 = vpop.f32.mrb[27].mxu0  ;;  %1446 = vmatpush1.bf16.msra.mxu0 %v9448_v62  ;;  %8277 = vmatpush1.bf16.msra.mxu1 %v9448_v62  ;;  %v1283_v23 = vmax.f32 %v1241_v15, 0.0  ;;  %v8752_v15 = vld [vmem:[#allocation3 + $0x58] sm:$0xff]   ;;  %v8754_v8 = vld [vmem:[#allocation3 + $0x88] sm:$0xff]  }
 0x233   : > { %v1247_v21 = vadd.f32 %v1246_v20, %v1069_v7  ;;  %v1284_v18 = vmax.f32 %v1243_v17, 0.0  ;;  %v8753_v7 = vld [vmem:[#allocation3 + $0x80] sm:$0xff]   ;;  %v8787_v20 = vld [vmem:[#allocation3 + $0x178] sm:$0xff]  }
 0x234   : > { %v1285_v24 = vmax.f32 %v1245_v19, 0.0  ;;  %v8780_v17 = vld [vmem:[#allocation3 + $0x140] sm:$0xff]   ;;  %v8781_v19 = vld [vmem:[#allocation3 + $0x148] sm:$0xff]  }
 0x235   : > { %v1286_v25 = vmax.f32 %v1247_v21, 0.0  ;;  %v8764_v21 = vld [vmem:[#allocation3 + $0xc0] sm:$0xff]  }
 0x236   : > { %v9456_v26 = vpack.c.bf16 %v1285_v24, %v1283_v23  ;;  %v8766_v23 = vld [vmem:[#allocation3 + $0xc8] sm:$0xff]   ;;  %v8768_v24 = vld [vmem:[#allocation3 + $0xd0] sm:$0xff]  }
 0x237   : > { %v9458_v28 = vpack.c.bf16 %v1286_v25, %v1284_v18  ;;  %v1250_v29 = vpop.f32.mrb[28].mxu0  ;;  %v8770_v18 = vld [vmem:[#allocation3 + $0xd8] sm:$0xff]   ;;  %v8772_v25 = vld [vmem:[#allocation3 + $0xe0] sm:$0xff]  }
 0x238   : > { %v1251_v30 = vadd.f32 %v1250_v29, %v1074_v27  ;;  %v1252_v31 = vpop.f32.mrb[29].mxu0 }
 0x239   : > { %v1253_v33 = vadd.f32 %v1252_v31, %v1074_v27  ;;  %v1254_v34 = vpop.f32.mrb[30].mxu0  ;;  %1447 = vmatprep.subr.bf16.mxu0 %v9458_v28  ;;  %8270 = vmatprep.subr.bf16.mxu1 %v9458_v28  ;;  %v8776_v27 = vld [vmem:[#allocation3 + $0xf0] sm:$0xff]  }
 0x23a   : > { %v1255_v37 = vadd.f32 %v1254_v34, %v1079_v32  ;;  %v1256_v39 = vpop.f32.mrb[31].mxu0  ;;  %1448 = vmatpush1.bf16.msra.mxu0 %v9456_v26  ;;  %8278 = vmatpush1.bf16.msra.mxu1 %v9456_v26  ;;  %v1287_v42 = vmax.f32 %v1251_v30, 0.0  ;;  %v8778_v30 = vld [vmem:[#allocation3 + $0xf8] sm:$0xff]  }
 0x23b   : > { %v1257_v36 = vadd.f32 %v1256_v39, %v1079_v32  ;;  %v1288_v46 = vmax.f32 %v1253_v33, 0.0 }
 0x23c   : > { %v1289_v44 = vmax.f32 %v1255_v37, 0.0 }
 0x23d   : > { %v1290_v47 = vmax.f32 %v1257_v36, 0.0 }
 0x23e   : > { %v9464_v41 = vpack.c.bf16 %v1289_v44, %v1287_v42 }
 0x23f   : > { %v9466_v49 = vpack.c.bf16 %v1290_v47, %v1288_v46 }
 0x241   : > { %1449 = vmatprep.subr.bf16.mxu0 %v9466_v49  ;;  %8271 = vmatprep.subr.bf16.mxu1 %v9466_v49 }
 0x242   : > { %1450 = vmatpush1.bf16.msra.mxu0 %v9464_v41  ;;  %8279 = vmatpush1.bf16.msra.mxu1 %v9464_v41 }
 0x243   : > { %2013 = vmatprep.subr.bf16.mxu0 %v9410_v56  ;;  %2590 = vmatprep.subr.bf16.mxu1 %v9410_v56 }
 0x245   : > { %1468 = vmatmul.mubr.bf16.vlgmr.msra.gmra.mrb[32].mxu0 %v8740_v50  ;;  %1588 = vmatmul.mubr.bf16.vlgmr.msra.gmra.mrb[0].mxu1 %v8741_v45 }
 0x246   : > { %2014 = vmatpush1.bf16.msra.mxu0 %v9408_v54  ;;  %2591 = vmatpush1.bf16.msra.mxu1 %v9408_v54 }
 0x247   : > { %2015 = vmatprep.subr.bf16.mxu0 %v9418_v11  ;;  %2592 = vmatprep.subr.bf16.mxu1 %v9418_v11 }
 0x248   : > { %1477 = vmatprep.mubr.bf16.mxu0 %v12535_v2  ;;  %1597 = vmatprep.mubr.bf16.mxu1 %v12535_v2 }
 0x24a   : > { %2016 = vmatpush1.bf16.msra.mxu0 %v9416_v9  ;;  %2593 = vmatpush1.bf16.msra.mxu1 %v9416_v9 }
 0x24b   : > { %2017 = vmatprep.subr.bf16.mxu0 %v9426_v22  ;;  %2594 = vmatprep.subr.bf16.mxu1 %v9426_v22 }
 0x24d   : > { %1478 = vmatmul.mubr.bf16.gmra.mrb[36].mxu0 %v8742_v51  ;;  %1598 = vmatmul.mubr.bf16.gmra.mrb[4].mxu1 %v8758_v53 }
 0x24e   : > { %2018 = vmatpush1.bf16.msra.mxu0 %v9424_v1  ;;  %2595 = vmatpush1.bf16.msra.mxu1 %v9424_v1 }
 0x24f   : > { %2019 = vmatprep.subr.bf16.mxu0 %v9434_v43  ;;  %2596 = vmatprep.subr.bf16.mxu1 %v9434_v43 }
 0x250   : > { %1487 = vmatprep.mubr.bf16.mxu0 %v12535_v2  ;;  %1607 = vmatprep.mubr.bf16.mxu1 %v12535_v2 }
 0x252   : > { %2020 = vmatpush1.bf16.msra.mxu0 %v9432_v35  ;;  %2597 = vmatpush1.bf16.msra.mxu1 %v9432_v35 }
 0x253   : > { %2021 = vmatprep.subr.bf16.mxu0 %v9442_v59  ;;  %2598 = vmatprep.subr.bf16.mxu1 %v9442_v59 }
 0x255   : > { %1488 = vmatmul.mubr.bf16.gmra.mrb[40].mxu0 %v8743_v55  ;;  %1608 = vmatmul.mubr.bf16.gmra.mrb[8].mxu1 %v8760_v58 }
 0x256   : > { %2022 = vmatpush1.bf16.msra.mxu0 %v9440_v40  ;;  %2599 = vmatpush1.bf16.msra.mxu1 %v9440_v40 }
 0x257   : > { %2023 = vmatprep.subr.bf16.mxu0 %v9450_v63  ;;  %2600 = vmatprep.subr.bf16.mxu1 %v9450_v63 }
 0x258   : > { %1497 = vmatprep.mubr.bf16.mxu0 %v12535_v2  ;;  %1617 = vmatprep.mubr.bf16.mxu1 %v12535_v2 }
 0x25a   : > { %2024 = vmatpush1.bf16.msra.mxu0 %v9448_v62  ;;  %2601 = vmatpush1.bf16.msra.mxu1 %v9448_v62 }
 0x25b   : > { %2025 = vmatprep.subr.bf16.mxu0 %v9458_v28  ;;  %2602 = vmatprep.subr.bf16.mxu1 %v9458_v28 }
 0x25d   : > { %1498 = vmatmul.mubr.bf16.gmra.mrb[44].mxu0 %v8744_v57  ;;  %1618 = vmatmul.mubr.bf16.gmra.mrb[12].mxu1 %v8762_v0 }
 0x25e   : > { %2026 = vmatpush1.bf16.msra.mxu0 %v9456_v26  ;;  %2603 = vmatpush1.bf16.msra.mxu1 %v9456_v26 }
 0x25f   : > { %2027 = vmatprep.subr.bf16.mxu0 %v9466_v49  ;;  %2604 = vmatprep.subr.bf16.mxu1 %v9466_v49 }
 0x260   : > { %1507 = vmatprep.mubr.bf16.mxu0 %v12535_v2  ;;  %2622 = vmatprep.mubr.bf16.mxu1 %v12535_v2 }
 0x262   : > { %2028 = vmatpush1.bf16.msra.mxu0 %v9464_v41  ;;  %2605 = vmatpush1.bf16.msra.mxu1 %v9464_v41 }
 0x263   : > { %3167 = vmatprep.subr.bf16.mxu0 %v9410_v56  ;;  %5700 = vmatprep.subr.bf16.mxu1 %v12535_v2  ;;  %v8748_v56 = vld [vmem:[#allocation3 + $0x38] sm:$0xff]  }
 0x265   : > { %1508 = vmatmul.mubr.bf16.gmra.mrb[48].mxu0 %v8745_v52  ;;  %2623 = vmatmul.mubr.bf16.vlgmr.msra.gmra.mrb[16].mxu1 %v8765_v3 }
 0x266   : > { %1517 = vmatprep.mubr.bf16.mxu0 %v12535_v2  ;;  %2632 = vmatprep.mubr.bf16.mxu1 %v12535_v2 }
 0x26d   : > { %1518 = vmatmul.mubr.bf16.gmra.mrb[52].mxu0 %v8746_v4  ;;  %2633 = vmatmul.mubr.bf16.gmra.mrb[20].mxu1 %v8767_v48 }
 0x26e   : > { %1527 = vmatprep.mubr.bf16.mxu0 %v12535_v2  ;;  %2642 = vmatprep.mubr.bf16.mxu1 %v12535_v2 }
 0x275   : > { %1528 = vmatmul.mubr.bf16.gmra.mrb[56].mxu0 %v8747_v5  ;;  %2643 = vmatmul.mubr.bf16.gmra.mrb[24].mxu1 %v8769_v60 }
 0x276   : > { %1537 = vmatprep.mubr.bf16.mxu0 %v12535_v2  ;;  %2652 = vmatprep.mubr.bf16.mxu1 %v12535_v2 }
 0x27d   : > { %1538 = vmatmul.mubr.bf16.gmra.mrb[60].mxu0 %v8748_v56  ;;  %2653 = vmatmul.mubr.bf16.gmra.mrb[28].mxu1 %v8771_v6 }
 0x27e   : > { %1547 = vmatprep.mubr.bf16.mxu0 %v12535_v2  ;;  %2662 = vmatprep.mubr.bf16.mxu1 %v12535_v2 }
 0x285   : > { %1548 = vmatmul.mubr.bf16.gmra.mrb[64].mxu0 %v8749_v61  ;;  %2663 = vmatmul.mubr.bf16.gmra.mrb[32].mxu1 %v8773_v10 }
 0x286   : > { %1557 = vmatprep.mubr.bf16.mxu0 %v12535_v2  ;;  %2672 = vmatprep.mubr.bf16.mxu1 %v12535_v2 }
 0x28d   : > { %1558 = vmatmul.mubr.bf16.gmra.mrb[68].mxu0 %v8750_v12  ;;  %2673 = vmatmul.mubr.bf16.gmra.mrb[36].mxu1 %v8775_v13 }
 0x28e   : > { %1567 = vmatprep.mubr.bf16.mxu0 %v12535_v2  ;;  %2682 = vmatprep.mubr.bf16.mxu1 %v12535_v2 }
 0x295   : > { %1568 = vmatmul.mubr.bf16.gmra.mrb[72].mxu0 %v8751_v14  ;;  %2683 = vmatmul.mubr.bf16.gmra.mrb[40].mxu1 %v8777_v38 }
 0x296   : > { %1577 = vmatprep.mubr.bf16.mxu0 %v12535_v2  ;;  %2692 = vmatprep.mubr.bf16.mxu1 %v12535_v2 }
 0x29d   : > { %1578 = vmatmul.mubr.bf16.gmra.mrb[76].mxu0 %v8752_v15  ;;  %2693 = vmatmul.mubr.bf16.gmra.mrb[44].mxu1 %v8779_v16 }
 0x29e   : > { %2045 = vmatprep.mubr.bf16.mxu0 %v12535_v2  ;;  %2702 = vmatprep.mubr.bf16.mxu1 %v12535_v2 }
 0x2a5   : > { %2046 = vmatmul.mubr.bf16.vlgmr.msra.gmra.mrb[80].mxu0 %v8753_v7  ;;  %2703 = vmatmul.mubr.bf16.gmra.mrb[48].mxu1 %v8780_v17 }
 0x2a6   : > { %3168 = vmatpush1.bf16.msra.mxu0 %v9408_v54  ;;  %2055 = vmatprep.mubr.bf16.mxu0 %v12535_v2  ;;  %v8755_v54 = vld [vmem:[#allocation3 + $0x90] sm:$0xff]  }
 0x2a7   : > { %3169 = vmatprep.subr.bf16.mxu0 %v9418_v11  ;;  %2712 = vmatprep.mubr.bf16.mxu1 %v12535_v2  ;;  %v8782_v11 = vld [vmem:[#allocation3 + $0x150] sm:$0xff]  }
 0x2aa   : > { %3170 = vmatpush1.bf16.msra.mxu0 %v9416_v9  ;;  %v8756_v9 = vld [vmem:[#allocation3 + $0x98] sm:$0xff]  }
 0x2ab   : > { %3171 = vmatprep.subr.bf16.mxu0 %v9426_v22  ;;  %v8757_v22 = vld [vmem:[#allocation3 + $0xa0] sm:$0xff]  }
 0x2ad   : > { %2056 = vmatmul.mubr.bf16.gmra.mrb[84].mxu0 %v8754_v8  ;;  %2713 = vmatmul.mubr.bf16.gmra.mrb[52].mxu1 %v8781_v19 }
 0x2ae   : > { %3172 = vmatpush1.bf16.msra.mxu0 %v9424_v1  ;;  %2065 = vmatprep.mubr.bf16.mxu0 %v12535_v2  ;;  %v8783_v1 = vld [vmem:[#allocation3 + $0x158] sm:$0xff]  }
 0x2af   : > { %3173 = vmatprep.subr.bf16.mxu0 %v9434_v43  ;;  %2722 = vmatprep.mubr.bf16.mxu1 %v12535_v2  ;;  %v8759_v43 = vld [vmem:[#allocation3 + $0xa8] sm:$0xff]  }
 0x2b2   : > { %3174 = vmatpush1.bf16.msra.mxu0 %v9432_v35  ;;  %v8784_v35 = vld [vmem:[#allocation3 + $0x160] sm:$0xff]  }
 0x2b3   : > { %3175 = vmatprep.subr.bf16.mxu0 %v9442_v59  ;;  %v8761_v59 = vld [vmem:[#allocation3 + $0xb0] sm:$0xff]  }
 0x2b5   : > { %2066 = vmatmul.mubr.bf16.gmra.mrb[88].mxu0 %v8755_v54  ;;  %2723 = vmatmul.mubr.bf16.gmra.mrb[56].mxu1 %v8782_v11 }
 0x2b6   : > { %3176 = vmatpush1.bf16.msra.mxu0 %v9440_v40  ;;  %2075 = vmatprep.mubr.bf16.mxu0 %v12535_v2  ;;  %v8785_v40 = vld [vmem:[#allocation3 + $0x168] sm:$0xff]  }
 0x2b7   : > { %3177 = vmatprep.subr.bf16.mxu0 %v9450_v63  ;;  %2732 = vmatprep.mubr.bf16.mxu1 %v12535_v2  ;;  %v8763_v63 = vld [vmem:[#allocation3 + $0xb8] sm:$0xff]  }
 0x2ba   : > { %3178 = vmatpush1.bf16.msra.mxu0 %v9448_v62  ;;  %v8786_v62 = vld [vmem:[#allocation3 + $0x170] sm:$0xff]  }
 0x2bb   : > { %3179 = vmatprep.subr.bf16.mxu0 %v9458_v28 }
 0x2bd   : > { %2076 = vmatmul.mubr.bf16.gmra.mrb[92].mxu0 %v8756_v9  ;;  %2733 = vmatmul.mubr.bf16.gmra.mrb[60].mxu1 %v8783_v1 }
 0x2be   : > { %3180 = vmatpush1.bf16.msra.mxu0 %v9456_v26  ;;  %2085 = vmatprep.mubr.bf16.mxu0 %v12535_v2  ;;  %v8774_v26 = vld [vmem:[#allocation3 + $0xe8] sm:$0xff]  }
 0x2bf   : > { %3181 = vmatprep.subr.bf16.mxu0 %v9466_v49  ;;  %2742 = vmatprep.mubr.bf16.mxu1 %v12535_v2 }
 0x2c2   : > { %3182 = vmatpush1.bf16.msra.mxu0 %v9464_v41 }
 0x2c3   : > { %5411 = vmatprep.subr.bf16.mxu0 %v12535_v2 }
 0x2c5   : > { %2086 = vmatmul.mubr.bf16.gmra.mrb[96].mxu0 %v8757_v22  ;;  %2743 = vmatmul.mubr.bf16.gmra.mrb[64].mxu1 %v8784_v35 }
 0x2c6   : > { %2095 = vmatprep.mubr.bf16.mxu0 %v12535_v2  ;;  %2752 = vmatprep.mubr.bf16.mxu1 %v12535_v2 }
 0x2cd   : > { %2096 = vmatmul.mubr.bf16.gmra.mrb[100].mxu0 %v8759_v43  ;;  %2753 = vmatmul.mubr.bf16.gmra.mrb[68].mxu1 %v8785_v40 }
 0x2ce   : > { %2105 = vmatprep.mubr.bf16.mxu0 %v12535_v2  ;;  %2762 = vmatprep.mubr.bf16.mxu1 %v12535_v2 }
 0x2d5   : > { %2106 = vmatmul.mubr.bf16.gmra.mrb[104].mxu0 %v8761_v59  ;;  %2763 = vmatmul.mubr.bf16.gmra.mrb[72].mxu1 %v8786_v62 }
 0x2d6   : > { %2115 = vmatprep.mubr.bf16.mxu0 %v12535_v2  ;;  %2772 = vmatprep.mubr.bf16.mxu1 %v12535_v2 }
 0x2dd   : > { %2116 = vmatmul.mubr.bf16.gmra.mrb[108].mxu0 %v8763_v63  ;;  %2773 = vmatmul.mubr.bf16.gmra.mrb[76].mxu1 %v8787_v20 }
 0x2de   : > { %2125 = vmatprep.mubr.bf16.mxu0 %v12535_v2 }
 0x2e5   : > { %2126 = vmatmul.mubr.bf16.gmra.mrb[112].mxu0 %v8764_v21 }
 0x2e6   : > { %2135 = vmatprep.mubr.bf16.mxu0 %v12535_v2 }
 0x2ed   : > { %2136 = vmatmul.mubr.bf16.gmra.mrb[116].mxu0 %v8766_v23 }
 0x2ee   : > { %2145 = vmatprep.mubr.bf16.mxu0 %v12535_v2 }
 0x2f5   : > { %2146 = vmatmul.mubr.bf16.gmra.mrb[120].mxu0 %v8768_v24 }
 0x2f6   : > { %2155 = vmatprep.mubr.bf16.mxu0 %v12535_v2 }
 0x2fd   : > { %2156 = vmatmul.mubr.bf16.gmra.mrb[124].mxu0 %v8770_v18 }
 0x2fe   : > { %2165 = vmatprep.mubr.bf16.mxu0 %v12535_v2 }
 0x305   : > { %2166 = vmatmul.mubr.bf16.gmra.mrb[128].mxu0 %v8772_v25 }
 0x306   : > { %2175 = vmatprep.mubr.bf16.mxu0 %v12535_v2 }
 0x30d   : > { %2176 = vmatmul.mubr.bf16.gmra.mrb[132].mxu0 %v8774_v26 }
 0x30e   : > { %2185 = vmatprep.mubr.bf16.mxu0 %v12535_v2 }
 0x315   : > { %2186 = vmatmul.mubr.bf16.gmra.mrb[136].mxu0 %v8776_v27 }
 0x316   : > { %2195 = vmatprep.mubr.bf16.mxu0 %v12535_v2 }
 0x318   : > { %v9568_v28 = vpop.f32.mrb[32].mxu0  ;;  %v9687_v25 = vpop.f32.mrb[0].mxu1 }
 0x319   : > { %12627 = vst [vmem:[#allocation12_spill] sm:$0xff] %v9568_v28  ;;  %v9570_v29 = vpop.f32.mrb[33].mxu0  ;;  %12667 = vst [vmem:[#allocation52_spill] sm:$0xff] %v9687_v25  ;;  %v9691_v27 = vpop.f32.mrb[1].mxu1 }
 0x31a   : > { %12628 = vst [vmem:[#allocation13_spill] sm:$0xff] %v9570_v29  ;;  %v9574_v32 = vpop.f32.mrb[34].mxu0  ;;  %12668 = vst [vmem:[#allocation53_spill] sm:$0xff] %v9691_v27  ;;  %v9695_v63 = vpop.f32.mrb[2].mxu1 }
 0x31b   : > { %12629 = vst [vmem:[#allocation14_spill] sm:$0xff] %v9574_v32  ;;  %v9576_v33 = vpop.f32.mrb[35].mxu0  ;;  %12669 = vst [vmem:[#allocation54_spill] sm:$0xff] %v9695_v63  ;;  %v9697_v40 = vpop.f32.mrb[3].mxu1 }
 0x31c   : > { %12630 = vst [vmem:[#allocation15_spill] sm:$0xff] %v9576_v33  ;;  %12670 = vst [vmem:[#allocation55_spill] sm:$0xff] %v9697_v40 }
 0x31d   : > { %2196 = vmatmul.mubr.bf16.gmra.mrb[140].mxu0 %v8778_v30 }
 0x31e   : > { %3199 = vmatprep.mubr.bf16.mxu0 %v12535_v2 }
 0x320   : > { %v9581_v37 = vpop.f32.mrb[36].mxu0  ;;  %v9701_v22 = vpop.f32.mrb[4].mxu1 }
 0x321   : > { %12631 = vst [vmem:[#allocation16_spill] sm:$0xff] %v9581_v37  ;;  %v9583_v39 = vpop.f32.mrb[37].mxu0  ;;  %12671 = vst [vmem:[#allocation56_spill] sm:$0xff] %v9701_v22  ;;  %v9705_v8 = vpop.f32.mrb[5].mxu1 }
 0x322   : > { %12632 = vst [vmem:[#allocation17_spill] sm:$0xff] %v9583_v39  ;;  %v9587_v42 = vpop.f32.mrb[38].mxu0  ;;  %12673 = vst [vmem:[#allocation58_spill] sm:$0xff] %v9705_v8  ;;  %v9711_v14 = vpop.f32.mrb[6].mxu1 }
 0x323   : > { %12633 = vst [vmem:[#allocation18_spill] sm:$0xff] %v9587_v42  ;;  %v9589_v44 = vpop.f32.mrb[39].mxu0  ;;  %12675 = vst [vmem:[#allocation60_spill] sm:$0xff] %v9711_v14  ;;  %v9717_v56 = vpop.f32.mrb[7].mxu1 }
 0x324   : > { %12634 = vst [vmem:[#allocation19_spill] sm:$0xff] %v9589_v44  ;;  %12677 = vst [vmem:[#allocation62_spill] sm:$0xff] %v9717_v56 }
 0x328   : > { %v9593_v47 = vpop.f32.mrb[40].mxu0  ;;  %v9723_v52 = vpop.f32.mrb[8].mxu1 }
 0x329   : > { %12635 = vst [vmem:[#allocation20_spill] sm:$0xff] %v9593_v47  ;;  %v9595_v41 = vpop.f32.mrb[41].mxu0  ;;  %12679 = vst [vmem:[#allocation64_spill] sm:$0xff] %v9723_v52  ;;  %v9727_v26 = vpop.f32.mrb[9].mxu1 }
 0x32a   : > { %12636 = vst [vmem:[#allocation21_spill] sm:$0xff] %v9595_v41  ;;  %v9599_v50 = vpop.f32.mrb[42].mxu0  ;;  %12680 = vst [vmem:[#allocation65_spill] sm:$0xff] %v9727_v26  ;;  %v9731_v30 = vpop.f32.mrb[10].mxu1 }
 0x32b   : > { %12637 = vst [vmem:[#allocation22_spill] sm:$0xff] %v9599_v50  ;;  %v9601_v45 = vpop.f32.mrb[43].mxu0  ;;  %12681 = vst [vmem:[#allocation66_spill] sm:$0xff] %v9731_v30  ;;  %v9733_v49 = vpop.f32.mrb[11].mxu1 }
 0x32c   : > { %12638 = vst [vmem:[#allocation23_spill] sm:$0xff] %v9601_v45  ;;  %12682 = vst [vmem:[#allocation67_spill] sm:$0xff] %v9733_v49 }
 0x330   : > { %v9605_v53 = vpop.f32.mrb[44].mxu0  ;;  %v9737_v36 = vpop.f32.mrb[12].mxu1 }
 0x331   : > { %12639 = vst [vmem:[#allocation24_spill] sm:$0xff] %v9605_v53  ;;  %v9607_v55 = vpop.f32.mrb[45].mxu0  ;;  %12683 = vst [vmem:[#allocation68_spill] sm:$0xff] %v9737_v36  ;;  %v9741_v34 = vpop.f32.mrb[13].mxu1 }
 0x332   : > { %12640 = vst [vmem:[#allocation25_spill] sm:$0xff] %v9607_v55  ;;  %v9611_v57 = vpop.f32.mrb[46].mxu0  ;;  %12685 = vst [vmem:[#allocation70_spill] sm:$0xff] %v9741_v34  ;;  %v9747_v2 = vpop.f32.mrb[14].mxu1 }
 0x333   : > { %12641 = vst [vmem:[#allocation26_spill] sm:$0xff] %v9611_v57  ;;  %v9613_v0 = vpop.f32.mrb[47].mxu0  ;;  %12687 = vst [vmem:[#allocation72_spill] sm:$0xff] %v9747_v2  ;;  %v9753_v52 = vpop.f32.mrb[15].mxu1 }
 0x334   : > { %12642 = vst [vmem:[#allocation27_spill] sm:$0xff] %v9613_v0  ;;  %12689 = vst [vmem:[#allocation74_spill] sm:$0xff] %v9753_v52 }
 0x338   : > { %v9617_v3 = vpop.f32.mrb[48].mxu0  ;;  %v9759_v30 = vpop.f32.mrb[16].mxu1 }
 0x339   : > { %12643 = vst [vmem:[#allocation28_spill] sm:$0xff] %v9617_v3  ;;  %v9619_v4 = vpop.f32.mrb[49].mxu0  ;;  %v9763_v58 = vpop.f32.mrb[17].mxu1 }
 0x33a   : > { %12644 = vst [vmem:[#allocation29_spill] sm:$0xff] %v9619_v4  ;;  %v9623_v5 = vpop.f32.mrb[50].mxu0  ;;  %v9767_v51 = vpop.f32.mrb[18].mxu1 }
 0x33b   : > { %12645 = vst [vmem:[#allocation30_spill] sm:$0xff] %v9623_v5  ;;  %v9625_v60 = vpop.f32.mrb[51].mxu0  ;;  %v9769_v36 = vpop.f32.mrb[19].mxu1 }
 0x33c   : > { %12646 = vst [vmem:[#allocation31_spill] sm:$0xff] %v9625_v60 }
 0x340   : > { %v9629_v6 = vpop.f32.mrb[52].mxu0  ;;  %v9773_v8 = vpop.f32.mrb[20].mxu1 }
 0x341   : > { %12647 = vst [vmem:[#allocation32_spill] sm:$0xff] %v9629_v6  ;;  %v9631_v61 = vpop.f32.mrb[53].mxu0  ;;  %v9775_v52 = vpop.f32.mrb[21].mxu1 }
 0x342   : > { %12648 = vst [vmem:[#allocation33_spill] sm:$0xff] %v9631_v61  ;;  %v9635_v12 = vpop.f32.mrb[54].mxu0  ;;  %v9779_v22 = vpop.f32.mrb[22].mxu1 }
 0x343   : > { %12649 = vst [vmem:[#allocation34_spill] sm:$0xff] %v9635_v12  ;;  %v9637_v13 = vpop.f32.mrb[55].mxu0  ;;  %v9781_v63 = vpop.f32.mrb[23].mxu1 }
 0x344   : > { %12650 = vst [vmem:[#allocation35_spill] sm:$0xff] %v9637_v13 }
 0x348   : > { %v9641_v38 = vpop.f32.mrb[56].mxu0  ;;  %v9785_v14 = vpop.f32.mrb[24].mxu1 }
 0x349   : > { %12651 = vst [vmem:[#allocation36_spill] sm:$0xff] %v9641_v38  ;;  %v9643_v15 = vpop.f32.mrb[57].mxu0 }
 0x34a   : > { %12652 = vst [vmem:[#allocation37_spill] sm:$0xff] %v9643_v15  ;;  %v9647_v7 = vpop.f32.mrb[58].mxu0 }
 0x34b   : > { %12653 = vst [vmem:[#allocation38_spill] sm:$0xff] %v9647_v7  ;;  %v9649_v17 = vpop.f32.mrb[59].mxu0 }
 0x34c   : > { %12654 = vst [vmem:[#allocation39_spill] sm:$0xff] %v9649_v17 }
 0x350   : > { %v9653_v19 = vpop.f32.mrb[60].mxu0 }
 0x351   : > { %12655 = vst [vmem:[#allocation40_spill] sm:$0xff] %v9653_v19  ;;  %v9655_v54 = vpop.f32.mrb[61].mxu0 }
 0x352   : > { %12656 = vst [vmem:[#allocation41_spill] sm:$0xff] %v9655_v54  ;;  %v9659_v9 = vpop.f32.mrb[62].mxu0 }
 0x353   : > { %12657 = vst [vmem:[#allocation42_spill] sm:$0xff] %v9659_v9  ;;  %v9661_v1 = vpop.f32.mrb[63].mxu0 }
 0x354   : > { %12658 = vst [vmem:[#allocation43_spill] sm:$0xff] %v9661_v1 }
 0x358   : > { %v9665_v35 = vpop.f32.mrb[64].mxu0 }
 0x359   : > { %12659 = vst [vmem:[#allocation44_spill] sm:$0xff] %v9665_v35  ;;  %v9667_v43 = vpop.f32.mrb[65].mxu0 }
 0x35a   : > { %12660 = vst [vmem:[#allocation45_spill] sm:$0xff] %v9667_v43  ;;  %v9671_v59 = vpop.f32.mrb[66].mxu0 }
 0x35b   : > { %12661 = vst [vmem:[#allocation46_spill] sm:$0xff] %v9671_v59  ;;  %v9673_v62 = vpop.f32.mrb[67].mxu0 }
 0x35c   : > { %12662 = vst [vmem:[#allocation47_spill] sm:$0xff] %v9673_v62 }
 0x360   : > { %v9677_v20 = vpop.f32.mrb[68].mxu0 }
 0x361   : > { %12663 = vst [vmem:[#allocation48_spill] sm:$0xff] %v9677_v20  ;;  %v9679_v21 = vpop.f32.mrb[69].mxu0 }
 0x362   : > { %12664 = vst [vmem:[#allocation49_spill] sm:$0xff] %v9679_v21  ;;  %v9683_v24 = vpop.f32.mrb[70].mxu0 }
 0x363   : > { %12665 = vst [vmem:[#allocation50_spill] sm:$0xff] %v9683_v24  ;;  %v9685_v18 = vpop.f32.mrb[71].mxu0 }
 0x364   : > { %12666 = vst [vmem:[#allocation51_spill] sm:$0xff] %v9685_v18 }
 0x368   : > { %v9703_v11 = vpop.f32.mrb[72].mxu0 }
 0x369   : > { %12672 = vst [vmem:[#allocation57_spill] sm:$0xff] %v9703_v11  ;;  %v9707_v16 = vpop.f32.mrb[73].mxu0 }
 0x36a   : > { %12674 = vst [vmem:[#allocation59_spill] sm:$0xff] %v9707_v16  ;;  %v9715_v10 = vpop.f32.mrb[74].mxu0 }
 0x36b   : > { %12676 = vst [vmem:[#allocation61_spill] sm:$0xff] %v9715_v10  ;;  %v9719_v23 = vpop.f32.mrb[75].mxu0 }
 0x36c   : > { %12678 = vst [vmem:[#allocation63_spill] sm:$0xff] %v9719_v23 }
 0x370   : > { %v9739_v48 = vpop.f32.mrb[76].mxu0 }
 0x371   : > { %12684 = vst [vmem:[#allocation69_spill] sm:$0xff] %v9739_v48  ;;  %v9743_v31 = vpop.f32.mrb[77].mxu0 }
 0x372   : > { %12686 = vst [vmem:[#allocation71_spill] sm:$0xff] %v9743_v31  ;;  %v9751_v26 = vpop.f32.mrb[78].mxu0 }
 0x373   : > { %12688 = vst [vmem:[#allocation73_spill] sm:$0xff] %v9751_v26  ;;  %v9755_v46 = vpop.f32.mrb[79].mxu0  ;;  %v9787_v26 = vpop.f32.mrb[25].mxu1 }
 0x374   : > { %12690 = vst [vmem:[#allocation75_spill] sm:$0xff] %v9755_v46  ;;  %v9791_v56 = vpop.f32.mrb[26].mxu1 }
 0x375   : > { %v9793_v48 = vpop.f32.mrb[27].mxu1 }
 0x378   : > { %v2047_v49 = vpop.f32.mrb[80].mxu0 }
 0x379   : > { %v2049_v2 = vpop.f32.mrb[81].mxu0 }
 0x37a   : > { %v2051_v40 = vpop.f32.mrb[82].mxu0  ;;  %v2206_v34 = vmax.f32 %v2047_v49, %v2049_v2  ;;  %v9797_v49 = vpop.f32.mrb[28].mxu1 }
 0x37b   : > { %v2053_v27 = vpop.f32.mrb[83].mxu0  ;;  %v9799_v23 = vpop.f32.mrb[29].mxu1 }
 0x37c   : > { %2207 = vmax.xlane.f32.xlu1 %v2206_v34  ;;  %v2209_v46 = vmax.f32 %v2051_v40, %v2053_v27  ;;  %v9803_v27 = vpop.f32.mrb[30].mxu1 }
 0x37e   : > { %2210 = vmax.xlane.f32.xlu0 %v2209_v46  ;;  %v9807_v46 = vpop.f32.mrb[31].mxu1 }
 0x37f   : > { %v9813_v11 = vpop.f32.mrb[32].mxu1 }
 0x380   : > { %v2057_v25 = vpop.f32.mrb[84].mxu0  ;;  %v9817_v24 = vpop.f32.mrb[33].mxu1 }
 0x381   : > { %v2059_v34 = vpop.f32.mrb[85].mxu0 }
 0x382   : > { %v9805_v31 = vpop.f32.mrb[86].mxu0  ;;  %v2212_v10 = vmax.f32 %v2057_v25, %v2059_v34  ;;  %v9821_v25 = vpop.f32.mrb[34].mxu1  ;;  %v9000_v34 = vmov 0.0  }
 0x383   : > { %v9809_v16 = vpop.f32.mrb[87].mxu0  ;;  %537 = vst.msk [vmem:[#allocation2 + $0x100] sm:$0xff] %vm504_vm1, %v9000_v34  ;;  %505 = vst.msk [vmem:[#allocation2] sm:$0xff] %vm504_vm1, %v9000_v34 }
 0x384   : > { %2213 = vmax.xlane.f32.xlu0 %v2212_v10  ;;  %v2215_v18 = vmax.f32 %v9805_v31, %v9809_v16  ;;  %506 = vst.msk [vmem:[#allocation2 + $0x8] sm:$0xff] %vm504_vm1, %v9000_v34  ;;  %507 = vst.msk [vmem:[#allocation2 + $0x10] sm:$0xff] %vm504_vm1, %v9000_v34  ;;  %v10082_v10 = vpop.f32.mrb[35].mxu1 }
 0x385   : > { %508 = vst.msk [vmem:[#allocation2 + $0x18] sm:$0xff] %vm504_vm1, %v9000_v34  ;;  %509 = vst.msk [vmem:[#allocation2 + $0x20] sm:$0xff] %vm504_vm1, %v9000_v34  ;;  %v10086_v2 = vpop.f32.mrb[36].mxu1 }
 0x386   : > { %510 = vst.msk [vmem:[#allocation2 + $0x28] sm:$0xff] %vm504_vm1, %v9000_v34  ;;  %511 = vst.msk [vmem:[#allocation2 + $0x30] sm:$0xff] %vm504_vm1, %v9000_v34  ;;  %2216 = vmax.xlane.f32.xlu1 %v2215_v18  ;;  %v10088_v20 = vpop.f32.mrb[37].mxu1 }
 0x387   : > { %512 = vst.msk [vmem:[#allocation2 + $0x38] sm:$0xff] %vm504_vm1, %v9000_v34  ;;  %513 = vst.msk [vmem:[#allocation2 + $0x40] sm:$0xff] %vm504_vm1, %v9000_v34  ;;  %v10092_v1 = vpop.f32.mrb[38].mxu1 }
 0x388   : > { %514 = vst.msk [vmem:[#allocation2 + $0x48] sm:$0xff] %vm504_vm1, %v9000_v34  ;;  %515 = vst.msk [vmem:[#allocation2 + $0x50] sm:$0xff] %vm504_vm1, %v9000_v34  ;;  %v2067_v21 = vpop.f32.mrb[88].mxu0  ;;  %v10094_v16 = vpop.f32.mrb[39].mxu1 }
 0x389   : > { %516 = vst.msk [vmem:[#allocation2 + $0x58] sm:$0xff] %vm504_vm1, %v9000_v34  ;;  %517 = vst.msk [vmem:[#allocation2 + $0x60] sm:$0xff] %vm504_vm1, %v9000_v34  ;;  %v2069_v62 = vpop.f32.mrb[89].mxu0  ;;  %v10098_v40 = vpop.f32.mrb[40].mxu1 }
 0x38a   : > { %518 = vst.msk [vmem:[#allocation2 + $0x68] sm:$0xff] %vm504_vm1, %v9000_v34  ;;  %519 = vst.msk [vmem:[#allocation2 + $0x70] sm:$0xff] %vm504_vm1, %v9000_v34  ;;  %v2071_v43 = vpop.f32.mrb[90].mxu0  ;;  %v10100_v9 = vpop.f32.mrb[41].mxu1 }
 0x38b   : > { %520 = vst.msk [vmem:[#allocation2 + $0x78] sm:$0xff] %vm504_vm1, %v9000_v34  ;;  %521 = vst.msk [vmem:[#allocation2 + $0x80] sm:$0xff] %vm504_vm1, %v9000_v34  ;;  %v2073_v35 = vpop.f32.mrb[91].mxu0  ;;  %v10104_v54 = vpop.f32.mrb[42].mxu1 }
 0x38c   : > { %522 = vst.msk [vmem:[#allocation2 + $0x88] sm:$0xff] %vm504_vm1, %v9000_v34  ;;  %523 = vst.msk [vmem:[#allocation2 + $0x90] sm:$0xff] %vm504_vm1, %v9000_v34  ;;  %v2221_v31 = vmax.f32 %v2071_v43, %v2073_v35 }
 0x38d   : > { %524 = vst.msk [vmem:[#allocation2 + $0x98] sm:$0xff] %vm504_vm1, %v9000_v34  ;;  %525 = vst.msk [vmem:[#allocation2 + $0xa0] sm:$0xff] %vm504_vm1, %v9000_v34 }
 0x38e   : > { %526 = vst.msk [vmem:[#allocation2 + $0xa8] sm:$0xff] %vm504_vm1, %v9000_v34  ;;  %527 = vst.msk [vmem:[#allocation2 + $0xb0] sm:$0xff] %vm504_vm1, %v9000_v34  ;;  %2222 = vmax.xlane.f32.xlu1 %v2221_v31 }
 0x38f   : > { %528 = vst.msk [vmem:[#allocation2 + $0xb8] sm:$0xff] %vm504_vm1, %v9000_v34  ;;  %529 = vst.msk [vmem:[#allocation2 + $0xc0] sm:$0xff] %vm504_vm1, %v9000_v34 }
 0x390   : > { %530 = vst.msk [vmem:[#allocation2 + $0xc8] sm:$0xff] %vm504_vm1, %v9000_v34  ;;  %531 = vst.msk [vmem:[#allocation2 + $0xd0] sm:$0xff] %vm504_vm1, %v9000_v34 }
 0x391   : > { %532 = vst.msk [vmem:[#allocation2 + $0xd8] sm:$0xff] %vm504_vm1, %v9000_v34  ;;  %533 = vst.msk [vmem:[#allocation2 + $0xe0] sm:$0xff] %vm504_vm1, %v9000_v34 }
 0x392   : > { %534 = vst.msk [vmem:[#allocation2 + $0xe8] sm:$0xff] %vm504_vm1, %v9000_v34  ;;  %535 = vst.msk [vmem:[#allocation2 + $0xf0] sm:$0xff] %vm504_vm1, %v9000_v34 }
 0x393   : > { %536 = vst.msk [vmem:[#allocation2 + $0xf8] sm:$0xff] %vm504_vm1, %v9000_v34  ;;  %538 = vst.msk [vmem:[#allocation2 + $0x108] sm:$0xff] %vm504_vm1, %v9000_v34 }
 0x394   : > { %539 = vst.msk [vmem:[#allocation2 + $0x110] sm:$0xff] %vm504_vm1, %v9000_v34  ;;  %540 = vst.msk [vmem:[#allocation2 + $0x118] sm:$0xff] %vm504_vm1, %v9000_v34 }
 0x395   : > { %541 = vst.msk [vmem:[#allocation2 + $0x120] sm:$0xff] %vm504_vm1, %v9000_v34  ;;  %542 = vst.msk [vmem:[#allocation2 + $0x128] sm:$0xff] %vm504_vm1, %v9000_v34 }
 0x396   : > { %543 = vst.msk [vmem:[#allocation2 + $0x130] sm:$0xff] %vm504_vm1, %v9000_v34  ;;  %544 = vst.msk [vmem:[#allocation2 + $0x138] sm:$0xff] %vm504_vm1, %v9000_v34 }
 0x397   : > { %545 = vst.msk [vmem:[#allocation2 + $0x140] sm:$0xff] %vm504_vm1, %v9000_v34  ;;  %546 = vst.msk [vmem:[#allocation2 + $0x148] sm:$0xff] %vm504_vm1, %v9000_v34 }
 0x398   : > { %547 = vst.msk [vmem:[#allocation2 + $0x150] sm:$0xff] %vm504_vm1, %v9000_v34  ;;  %548 = vst.msk [vmem:[#allocation2 + $0x158] sm:$0xff] %vm504_vm1, %v9000_v34 }
 0x399   : > { %549 = vst.msk [vmem:[#allocation2 + $0x160] sm:$0xff] %vm504_vm1, %v9000_v34  ;;  %550 = vst.msk [vmem:[#allocation2 + $0x168] sm:$0xff] %vm504_vm1, %v9000_v34 }
 0x39a   : > { %551 = vst.msk [vmem:[#allocation2 + $0x170] sm:$0xff] %vm504_vm1, %v9000_v34  ;;  %552 = vst.msk [vmem:[#allocation2 + $0x178] sm:$0xff] %vm504_vm1, %v9000_v34 }
 0x39b   : > { %553 = vst.msk [vmem:[#allocation2 + $0x180] sm:$0xff] %vm504_vm1, %v9000_v34  ;;  %554 = vst.msk [vmem:[#allocation2 + $0x188] sm:$0xff] %vm504_vm1, %v9000_v34 }
 0x39c   : > { %555 = vst.msk [vmem:[#allocation2 + $0x190] sm:$0xff] %vm504_vm1, %v9000_v34  ;;  %556 = vst.msk [vmem:[#allocation2 + $0x198] sm:$0xff] %vm504_vm1, %v9000_v34 }
 0x39d   : > { %557 = vst.msk [vmem:[#allocation2 + $0x1a0] sm:$0xff] %vm504_vm1, %v9000_v34  ;;  %558 = vst.msk [vmem:[#allocation2 + $0x1a8] sm:$0xff] %vm504_vm1, %v9000_v34 }
 0x39e   : > { %559 = vst.msk [vmem:[#allocation2 + $0x1b0] sm:$0xff] %vm504_vm1, %v9000_v34  ;;  %560 = vst.msk [vmem:[#allocation2 + $0x1b8] sm:$0xff] %vm504_vm1, %v9000_v34 }
 0x39f   : > { %561 = vst.msk [vmem:[#allocation2 + $0x1c0] sm:$0xff] %vm504_vm1, %v9000_v34  ;;  %562 = vst.msk [vmem:[#allocation2 + $0x1c8] sm:$0xff] %vm504_vm1, %v9000_v34 }
 0x3a0   : > { %563 = vst.msk [vmem:[#allocation2 + $0x1d0] sm:$0xff] %vm504_vm1, %v9000_v34  ;;  %564 = vst.msk [vmem:[#allocation2 + $0x1d8] sm:$0xff] %vm504_vm1, %v9000_v34 }
 0x3a1   : > { %565 = vst.msk [vmem:[#allocation2 + $0x1e0] sm:$0xff] %vm504_vm1, %v9000_v34  ;;  %566 = vst.msk [vmem:[#allocation2 + $0x1e8] sm:$0xff] %vm504_vm1, %v9000_v34 }
 0x3a2   : > { %567 = vst.msk [vmem:[#allocation2 + $0x1f0] sm:$0xff] %vm504_vm1, %v9000_v34  ;;  %568 = vst.msk [vmem:[#allocation2 + $0x1f8] sm:$0xff] %vm504_vm1, %v9000_v34 }
 0x3a3   : > { %569 = vst.msk [vmem:[#allocation2 + $0x200] sm:$0xff] %vm504_vm1, %v9000_v34  ;;  %570 = vst.msk [vmem:[#allocation2 + $0x208] sm:$0xff] %vm504_vm1, %v9000_v34 }
 0x3a4   : > { %571 = vst.msk [vmem:[#allocation2 + $0x210] sm:$0xff] %vm504_vm1, %v9000_v34  ;;  %572 = vst.msk [vmem:[#allocation2 + $0x218] sm:$0xff] %vm504_vm1, %v9000_v34 }
 0x3a5   : > { %573 = vst.msk [vmem:[#allocation2 + $0x220] sm:$0xff] %vm504_vm1, %v9000_v34  ;;  %574 = vst.msk [vmem:[#allocation2 + $0x228] sm:$0xff] %vm504_vm1, %v9000_v34 }
 0x3a6   : > { %575 = vst.msk [vmem:[#allocation2 + $0x230] sm:$0xff] %vm504_vm1, %v9000_v34  ;;  %576 = vst.msk [vmem:[#allocation2 + $0x238] sm:$0xff] %vm504_vm1, %v9000_v34 }
 0x3a7   : > { %577 = vst.msk [vmem:[#allocation2 + $0x240] sm:$0xff] %vm504_vm1, %v9000_v34  ;;  %578 = vst.msk [vmem:[#allocation2 + $0x248] sm:$0xff] %vm504_vm1, %v9000_v34 }
 0x3a8   : > { %579 = vst.msk [vmem:[#allocation2 + $0x250] sm:$0xff] %vm504_vm1, %v9000_v34  ;;  %580 = vst.msk [vmem:[#allocation2 + $0x258] sm:$0xff] %vm504_vm1, %v9000_v34 }
 0x3a9   : > { %581 = vst.msk [vmem:[#allocation2 + $0x260] sm:$0xff] %vm504_vm1, %v9000_v34  ;;  %582 = vst.msk [vmem:[#allocation2 + $0x268] sm:$0xff] %vm504_vm1, %v9000_v34 }
 0x3aa   : > { %583 = vst.msk [vmem:[#allocation2 + $0x270] sm:$0xff] %vm504_vm1, %v9000_v34  ;;  %584 = vst.msk [vmem:[#allocation2 + $0x278] sm:$0xff] %vm504_vm1, %v9000_v34 }
 0x3ab   : > { %585 = vst.msk [vmem:[#allocation2 + $0x280] sm:$0xff] %vm504_vm1, %v9000_v34  ;;  %586 = vst.msk [vmem:[#allocation2 + $0x288] sm:$0xff] %vm504_vm1, %v9000_v34 }
 0x3ac   : > { %587 = vst.msk [vmem:[#allocation2 + $0x290] sm:$0xff] %vm504_vm1, %v9000_v34  ;;  %588 = vst.msk [vmem:[#allocation2 + $0x298] sm:$0xff] %vm504_vm1, %v9000_v34 }
 0x3ad   : > { %589 = vst.msk [vmem:[#allocation2 + $0x2a0] sm:$0xff] %vm504_vm1, %v9000_v34  ;;  %590 = vst.msk [vmem:[#allocation2 + $0x2a8] sm:$0xff] %vm504_vm1, %v9000_v34 }
 0x3ae   : > { %591 = vst.msk [vmem:[#allocation2 + $0x2b0] sm:$0xff] %vm504_vm1, %v9000_v34  ;;  %592 = vst.msk [vmem:[#allocation2 + $0x2b8] sm:$0xff] %vm504_vm1, %v9000_v34 }
 0x3af   : > { %593 = vst.msk [vmem:[#allocation2 + $0x2c0] sm:$0xff] %vm504_vm1, %v9000_v34  ;;  %594 = vst.msk [vmem:[#allocation2 + $0x2c8] sm:$0xff] %vm504_vm1, %v9000_v34 }
 0x3b0   : > { %595 = vst.msk [vmem:[#allocation2 + $0x2d0] sm:$0xff] %vm504_vm1, %v9000_v34  ;;  %596 = vst.msk [vmem:[#allocation2 + $0x2d8] sm:$0xff] %vm504_vm1, %v9000_v34 }
 0x3b1   : > { %597 = vst.msk [vmem:[#allocation2 + $0x2e0] sm:$0xff] %vm504_vm1, %v9000_v34  ;;  %598 = vst.msk [vmem:[#allocation2 + $0x2e8] sm:$0xff] %vm504_vm1, %v9000_v34 }
 0x3b2   : > { %599 = vst.msk [vmem:[#allocation2 + $0x2f0] sm:$0xff] %vm504_vm1, %v9000_v34  ;;  %600 = vst.msk [vmem:[#allocation2 + $0x2f8] sm:$0xff] %vm504_vm1, %v9000_v34 }
 0x3b3   : > { %601 = vst.msk [vmem:[#allocation2 + $0x300] sm:$0xff] %vm504_vm1, %v9000_v34  ;;  %602 = vst.msk [vmem:[#allocation2 + $0x308] sm:$0xff] %vm504_vm1, %v9000_v34 }
 0x3b4   : > { %603 = vst.msk [vmem:[#allocation2 + $0x310] sm:$0xff] %vm504_vm1, %v9000_v34  ;;  %604 = vst.msk [vmem:[#allocation2 + $0x318] sm:$0xff] %vm504_vm1, %v9000_v34 }
 0x3b5   : > { %605 = vst.msk [vmem:[#allocation2 + $0x320] sm:$0xff] %vm504_vm1, %v9000_v34  ;;  %606 = vst.msk [vmem:[#allocation2 + $0x328] sm:$0xff] %vm504_vm1, %v9000_v34 }
 0x3b6   : > { %607 = vst.msk [vmem:[#allocation2 + $0x330] sm:$0xff] %vm504_vm1, %v9000_v34  ;;  %608 = vst.msk [vmem:[#allocation2 + $0x338] sm:$0xff] %vm504_vm1, %v9000_v34 }
 0x3b7   : > { %609 = vst.msk [vmem:[#allocation2 + $0x340] sm:$0xff] %vm504_vm1, %v9000_v34  ;;  %610 = vst.msk [vmem:[#allocation2 + $0x348] sm:$0xff] %vm504_vm1, %v9000_v34 }
 0x3b8   : > { %611 = vst.msk [vmem:[#allocation2 + $0x350] sm:$0xff] %vm504_vm1, %v9000_v34  ;;  %612 = vst.msk [vmem:[#allocation2 + $0x358] sm:$0xff] %vm504_vm1, %v9000_v34 }
 0x3b9   : > { %613 = vst.msk [vmem:[#allocation2 + $0x360] sm:$0xff] %vm504_vm1, %v9000_v34  ;;  %614 = vst.msk [vmem:[#allocation2 + $0x368] sm:$0xff] %vm504_vm1, %v9000_v34 }
 0x3ba   : > { %615 = vst.msk [vmem:[#allocation2 + $0x370] sm:$0xff] %vm504_vm1, %v9000_v34  ;;  %616 = vst.msk [vmem:[#allocation2 + $0x378] sm:$0xff] %vm504_vm1, %v9000_v34 }
 0x3bb   : > { %617 = vst.msk [vmem:[#allocation2 + $0x380] sm:$0xff] %vm504_vm1, %v9000_v34  ;;  %618 = vst.msk [vmem:[#allocation2 + $0x388] sm:$0xff] %vm504_vm1, %v9000_v34 }
 0x3bc   : > { %619 = vst.msk [vmem:[#allocation2 + $0x390] sm:$0xff] %vm504_vm1, %v9000_v34  ;;  %620 = vst.msk [vmem:[#allocation2 + $0x398] sm:$0xff] %vm504_vm1, %v9000_v34 }
 0x3bd   : > { %621 = vst.msk [vmem:[#allocation2 + $0x3a0] sm:$0xff] %vm504_vm1, %v9000_v34  ;;  %622 = vst.msk [vmem:[#allocation2 + $0x3a8] sm:$0xff] %vm504_vm1, %v9000_v34 }
 0x3be   : > { %623 = vst.msk [vmem:[#allocation2 + $0x3b0] sm:$0xff] %vm504_vm1, %v9000_v34  ;;  %624 = vst.msk [vmem:[#allocation2 + $0x3b8] sm:$0xff] %vm504_vm1, %v9000_v34 }
 0x3bf   : > { %625 = vst.msk [vmem:[#allocation2 + $0x3c0] sm:$0xff] %vm504_vm1, %v9000_v34  ;;  %626 = vst.msk [vmem:[#allocation2 + $0x3c8] sm:$0xff] %vm504_vm1, %v9000_v34 }
 0x3c0   : > { %627 = vst.msk [vmem:[#allocation2 + $0x3d0] sm:$0xff] %vm504_vm1, %v9000_v34  ;;  %628 = vst.msk [vmem:[#allocation2 + $0x3d8] sm:$0xff] %vm504_vm1, %v9000_v34 }
 0x3c1   : > { %629 = vst.msk [vmem:[#allocation2 + $0x3e0] sm:$0xff] %vm504_vm1, %v9000_v34  ;;  %630 = vst.msk [vmem:[#allocation2 + $0x3e8] sm:$0xff] %vm504_vm1, %v9000_v34 }
 0x3c2   : > { %631 = vst.msk [vmem:[#allocation2 + $0x3f0] sm:$0xff] %vm504_vm1, %v9000_v34  ;;  %632 = vst.msk [vmem:[#allocation2 + $0x3f8] sm:$0xff] %vm504_vm1, %v9000_v34  ;;  %v2218_v34 = vmax.f32 %v2067_v21, %v2069_v62  ;;  %v2077_v62 = vpop.f32.mrb[92].mxu0  ;;  %v10106_v21 = vpop.f32.mrb[43].mxu1 }
 0x3c3   : > { %v10110_v43 = vpop.f32.mrb[44].mxu1 }
 0x3c4   : > { %2219 = vmax.xlane.f32.xlu0 %v2218_v34  ;;  %v2079_v34 = vpop.f32.mrb[93].mxu0  ;;  %v10112_v17 = vpop.f32.mrb[45].mxu1 }
 0x3c5   : > { %v2081_v18 = vpop.f32.mrb[94].mxu0  ;;  %v2224_v19 = vmax.f32 %v2077_v62, %v2079_v34  ;;  %v10116_v59 = vpop.f32.mrb[46].mxu1 }
 0x3c6   : > { %v2083_v31 = vpop.f32.mrb[95].mxu0  ;;  %v10118_v38 = vpop.f32.mrb[47].mxu1 }
 0x3c7   : > { %v2227_v15 = vmax.f32 %v2081_v18, %v2083_v31  ;;  %v10122_v35 = vpop.f32.mrb[48].mxu1  ;;  %v2087_v7 = vpop.f32.mrb[96].mxu0 }
 0x3c8   : > { %2225 = vmax.xlane.f32.xlu0 %v2224_v19  ;;  %v10124_v12 = vpop.f32.mrb[49].mxu1  ;;  %v2089_v19 = vpop.f32.mrb[97].mxu0 }
 0x3c9   : > { %2228 = vmax.xlane.f32.xlu1 %v2227_v15  ;;  %v10128_v34 = vpop.f32.mrb[50].mxu1  ;;  %v2091_v13 = vpop.f32.mrb[98].mxu0  ;;  %v2230_v6 = vmax.f32 %v2087_v7, %v2089_v19 }
 0x3ca   : > { %v10130_v61 = vpop.f32.mrb[51].mxu1  ;;  %v2093_v15 = vpop.f32.mrb[99].mxu0 }
 0x3cb   : > { %v10134_v31 = vpop.f32.mrb[52].mxu1  ;;  %v2233_v4 = vmax.f32 %v2091_v13, %v2093_v15  ;;  %v2097_v5 = vpop.f32.mrb[100].mxu0 }
 0x3cc   : > { %v10136_v60 = vpop.f32.mrb[53].mxu1  ;;  %2231 = vmax.xlane.f32.xlu0 %v2230_v6  ;;  %v2099_v6 = vpop.f32.mrb[101].mxu0 }
 0x3cd   : > { %v10140_v62 = vpop.f32.mrb[54].mxu1  ;;  %2234 = vmax.xlane.f32.xlu1 %v2233_v4  ;;  %v2101_v0 = vpop.f32.mrb[102].mxu0  ;;  %v2236_v53 = vmax.f32 %v2097_v5, %v2099_v6 }
 0x3ce   : > { %v10142_v3 = vpop.f32.mrb[55].mxu1  ;;  %v2103_v4 = vpop.f32.mrb[103].mxu0 }
 0x3cf   : > { %v10146_v18 = vpop.f32.mrb[56].mxu1  ;;  %v2239_v41 = vmax.f32 %v2101_v0, %v2103_v4  ;;  %v2107_v50 = vpop.f32.mrb[104].mxu0 }
 0x3d0   : > { %v10148_v57 = vpop.f32.mrb[57].mxu1  ;;  %2237 = vmax.xlane.f32.xlu0 %v2236_v53  ;;  %v2109_v53 = vpop.f32.mrb[105].mxu0 }
 0x3d1   : > { %v10152_v19 = vpop.f32.mrb[58].mxu1  ;;  %2240 = vmax.xlane.f32.xlu1 %v2239_v41  ;;  %v2111_v44 = vpop.f32.mrb[106].mxu0  ;;  %v2242_v37 = vmax.f32 %v2107_v50, %v2109_v53 }
 0x3d2   : > { %v10154_v55 = vpop.f32.mrb[59].mxu1  ;;  %v2113_v41 = vpop.f32.mrb[107].mxu0 }
 0x3d3   : > { %v10158_v15 = vpop.f32.mrb[60].mxu1  ;;  %v2245_v29 = vmax.f32 %v2111_v44, %v2113_v41  ;;  %v2117_v32 = vpop.f32.mrb[108].mxu0 }
 0x3d4   : > { %v10160_v45 = vpop.f32.mrb[61].mxu1  ;;  %2243 = vmax.xlane.f32.xlu0 %v2242_v37  ;;  %v2119_v37 = vpop.f32.mrb[109].mxu0 }
 0x3d5   : > { %v10164_v7 = vpop.f32.mrb[62].mxu1  ;;  %2246 = vmax.xlane.f32.xlu1 %v2245_v29  ;;  %v2121_v41 = vpop.f32.mrb[110].mxu0 }
 0x3d6   : > { %12691 = vst [vmem:[#allocation76_spill] sm:$0xff] %v10164_v7  ;;  %v10166_v47 = vpop.f32.mrb[63].mxu1 }
 0x3d7   : > { %12692 = vst [vmem:[#allocation77_spill] sm:$0xff] %v10166_v47  ;;  %v10170_v13 = vpop.f32.mrb[64].mxu1 }
 0x3d8   : > { %12693 = vst [vmem:[#allocation78_spill] sm:$0xff] %v10170_v13  ;;  %v10172_v42 = vpop.f32.mrb[65].mxu1 }
 0x3d9   : > { %12694 = vst [vmem:[#allocation79_spill] sm:$0xff] %v10172_v42  ;;  %v10176_v6 = vpop.f32.mrb[66].mxu1 }
 0x3da   : > { %12695 = vst [vmem:[#allocation80_spill] sm:$0xff] %v10176_v6  ;;  %v10178_v39 = vpop.f32.mrb[67].mxu1 }
 0x3db   : > { %12696 = vst [vmem:[#allocation81_spill] sm:$0xff] %v10178_v39  ;;  %v10182_v4 = vpop.f32.mrb[68].mxu1 }
 0x3dc   : > { %12697 = vst [vmem:[#allocation82_spill] sm:$0xff] %v10182_v4  ;;  %v10184_v33 = vpop.f32.mrb[69].mxu1  ;;  %v2248_v4 = vmax.f32 %v2117_v32, %v2119_v37 }
 0x3dd   : > { %12698 = vst [vmem:[#allocation83_spill] sm:$0xff] %v10184_v33  ;;  %v10188_v5 = vpop.f32.mrb[70].mxu1 }
 0x3de   : > { %12699 = vst [vmem:[#allocation84_spill] sm:$0xff] %v10188_v5  ;;  %v10190_v28 = vpop.f32.mrb[71].mxu1  ;;  %2249 = vmax.xlane.f32.xlu0 %v2248_v4 }
 0x3df   : > { %12700 = vst [vmem:[#allocation85_spill] sm:$0xff] %v10190_v28  ;;  %v10194_v0 = vpop.f32.mrb[72].mxu1  ;;  %v2123_v28 = vpop.f32.mrb[111].mxu0 }
 0x3e0   : > { %12701 = vst [vmem:[#allocation86_spill] sm:$0xff] %v10194_v0  ;;  %v10196_v39 = vpop.f32.mrb[73].mxu1  ;;  %v2251_v5 = vmax.f32 %v2121_v41, %v2123_v28 }
 0x3e1   : > { %12702 = vst [vmem:[#allocation87_spill] sm:$0xff] %v10196_v39  ;;  %v10200_v53 = vpop.f32.mrb[74].mxu1 }
 0x3e2   : > { %12703 = vst [vmem:[#allocation88_spill] sm:$0xff] %v10200_v53  ;;  %v10202_v33 = vpop.f32.mrb[75].mxu1  ;;  %2252 = vmax.xlane.f32.xlu1 %v2251_v5 }
 0x3e3   : > { %12704 = vst [vmem:[#allocation89_spill] sm:$0xff] %v10202_v33  ;;  %v10206_v42 = vpop.f32.mrb[76].mxu1  ;;  %v2127_v33 = vpop.f32.mrb[112].mxu0 }
 0x3e4   : > { %12705 = vst [vmem:[#allocation90_spill] sm:$0xff] %v10206_v42  ;;  %v10208_v29 = vpop.f32.mrb[77].mxu1  ;;  %v2129_v32 = vpop.f32.mrb[113].mxu0 }
 0x3e5   : > { %12706 = vst [vmem:[#allocation91_spill] sm:$0xff] %v10208_v29  ;;  %v10212_v39 = vpop.f32.mrb[78].mxu1  ;;  %v2131_v37 = vpop.f32.mrb[114].mxu0  ;;  %v2254_v53 = vmax.f32 %v2127_v33, %v2129_v32 }
 0x3e6   : > { %12707 = vst [vmem:[#allocation92_spill] sm:$0xff] %v10212_v39  ;;  %v10214_v0 = vpop.f32.mrb[79].mxu1  ;;  %v2133_v6 = vpop.f32.mrb[115].mxu0 }
 0x3e7   : > { %12708 = vst [vmem:[#allocation93_spill] sm:$0xff] %v10214_v0  ;;  %2255 = vmax.xlane.f32.xlu0 %v2254_v53  ;;  %v2257_v13 = vmax.f32 %v2131_v37, %v2133_v6  ;;  %v2137_v28 = vpop.f32.mrb[116].mxu0 }
 0x3e8   : > { %v2139_v4 = vpop.f32.mrb[117].mxu0 }
 0x3e9   : > { %2258 = vmax.xlane.f32.xlu1 %v2257_v13  ;;  %v2141_v41 = vpop.f32.mrb[118].mxu0  ;;  %v2260_v50 = vmax.f32 %v2137_v28, %v2139_v4 }
 0x3ea   : > { %v2143_v29 = vpop.f32.mrb[119].mxu0 }
 0x3eb   : > { %2261 = vmax.xlane.f32.xlu0 %v2260_v50  ;;  %v2263_v42 = vmax.f32 %v2141_v41, %v2143_v29  ;;  %v2147_v5 = vpop.f32.mrb[120].mxu0 }
 0x3ec   : > { %v2149_v47 = vpop.f32.mrb[121].mxu0 }
 0x3ed   : > { %2264 = vmax.xlane.f32.xlu1 %v2263_v42  ;;  %v2151_v7 = vpop.f32.mrb[122].mxu0  ;;  %v2266_v44 = vmax.f32 %v2147_v5, %v2149_v47 }
 0x3ee   : > { %v2153_v0 = vpop.f32.mrb[123].mxu0 }
 0x3ef   : > { %2267 = vmax.xlane.f32.xlu0 %v2266_v44  ;;  %v2269_v39 = vmax.f32 %v2151_v7, %v2153_v0  ;;  %v2157_v33 = vpop.f32.mrb[124].mxu0 }
 0x3f0   : > { %v2159_v53 = vpop.f32.mrb[125].mxu0 }
 0x3f1   : > { %2270 = vmax.xlane.f32.xlu1 %v2269_v39  ;;  %v2161_v6 = vpop.f32.mrb[126].mxu0  ;;  %v2272_v13 = vmax.f32 %v2157_v33, %v2159_v53 }
 0x3f2   : > { %v2163_v32 = vpop.f32.mrb[127].mxu0 }
 0x3f3   : > { %2273 = vmax.xlane.f32.xlu0 %v2272_v13  ;;  %v2275_v37 = vmax.f32 %v2161_v6, %v2163_v32  ;;  %v2167_v28 = vpop.f32.mrb[128].mxu0 }
 0x3f4   : > { %v2169_v50 = vpop.f32.mrb[129].mxu0 }
 0x3f5   : > { %2276 = vmax.xlane.f32.xlu1 %v2275_v37  ;;  %v2171_v29 = vpop.f32.mrb[130].mxu0  ;;  %v2278_v42 = vmax.f32 %v2167_v28, %v2169_v50 }
 0x3f6   : > { %v2173_v4 = vpop.f32.mrb[131].mxu0 }
 0x3f7   : > { %2279 = vmax.xlane.f32.xlu0 %v2278_v42  ;;  %v2281_v41 = vmax.f32 %v2171_v29, %v2173_v4  ;;  %v2177_v47 = vpop.f32.mrb[132].mxu0 }
 0x3f8   : > { %v2179_v44 = vpop.f32.mrb[133].mxu0 }
 0x3f9   : > { %2282 = vmax.xlane.f32.xlu1 %v2281_v41  ;;  %v2181_v7 = vpop.f32.mrb[134].mxu0  ;;  %v2284_v39 = vmax.f32 %v2177_v47, %v2179_v44  ;;  %v12709_v47 = vmax.f32 %v9759_v30, %v9763_v58  ;;  %v12710_v44 = vmax.f32 %v9767_v51, %v9769_v36  ;;  %v12714_v58 = vmax.f32 %v9791_v56, %v9793_v48  ;;  %v2303_v48 = vld [vmem:[%s12522_s6 + $0x108] sm:$0xff] }
 0x3fa   : > { %v2183_v0 = vpop.f32.mrb[135].mxu0  ;;  %v12715_v36 = vmax.f32 %v9797_v49, %v9799_v23  ;;  %v12716_v51 = vmax.f32 %v9803_v27, %v9807_v46  ;;  %v12719_v27 = vmax.f32 %v10086_v2, %v10088_v20  ;;  %v2304_v46 = vld [vmem:[%s12522_s6 + $0x110] sm:$0xff]  ;;  %v2305_v2 = vld [vmem:[%s12522_s6 + $0x118] sm:$0xff] }
 0x3fb   : > { %2285 = vmax.xlane.f32.xlu0 %v2284_v39  ;;  %v2287_v5 = vmax.f32 %v2181_v7, %v2183_v0  ;;  %v2187_v33 = vpop.f32.mrb[136].mxu0  ;;  %v12711_v7 = vmax.f32 %v9773_v8, %v9775_v52  ;;  %v12712_v39 = vmax.f32 %v9779_v22, %v9781_v63  ;;  %v12713_v0 = vmax.f32 %v9785_v14, %v9787_v26  ;;  %v2302_v52 = vld [vmem:[%s12522_s6 + $0x100] sm:$0xff]  ;;  %v2367_v26 = vld [vmem:[#allocation2 + $0x108] sm:$0xff]  ;;  %v2368_v20 = vld [vmem:[#allocation2 + $0x110] sm:$0xff] }
 0x3fc   : > { %v2189_v53 = vpop.f32.mrb[137].mxu0  ;;  %v12717_v14 = vmax.f32 %v9813_v11, %v9817_v24  ;;  %v2366_v22 = vld [vmem:[#allocation2 + $0x100] sm:$0xff]  ;;  %v12718_v63 = vmax.f32 %v9821_v25, %v10082_v10  ;;  %v12720_v24 = vmax.f32 %v10092_v1, %v10094_v16  ;;  %v12721_v25 = vmax.f32 %v10098_v40, %v10100_v9  ;;  %v10277_v16 = vld [vmem:[%s12523_s7 + $0x8] sm:$0xff] }
 0x3fd   : > { %2288 = vmax.xlane.f32.xlu1 %v2287_v5  ;;  %v2191_v6 = vpop.f32.mrb[138].mxu0  ;;  %v2290_v13 = vmax.f32 %v2187_v33, %v2189_v53  ;;  %v12722_v1 = vmax.f32 %v10104_v54, %v10106_v21  ;;  %v2369_v53 = vld [vmem:[#allocation2 + $0x118] sm:$0xff]  ;;  %v10282_v9 = vld [vmem:[%s12523_s7 + $0x28] sm:$0xff] }
 0x3fe   : > { %v2193_v32 = vpop.f32.mrb[139].mxu0  ;;  %v7694_v54 = vcombine.low %v10277_v16, %v10282_v9  ;;  %v7695_v21 = vcombine.high %v10277_v16, %v10282_v9  ;;  %v3828_v16 = vld [vmem:[%s12523_s7 + $0x88] sm:$0xff] }
 0x3ff   : > { %2291 = vmax.xlane.f32.xlu0 %v2290_v13  ;;  %v2293_v37 = vmax.f32 %v2191_v6, %v2193_v32  ;;  %v2197_v28 = vpop.f32.mrb[140].mxu0  ;;  %v12723_v13 = vmax.f32 %v10110_v43, %v10112_v17  ;;  %v3832_v9 = vld [vmem:[%s12523_s7 + $0xa8] sm:$0xff] }
 0x400   : > { %v2199_v50 = vpop.f32.mrb[141].mxu0  ;;  %5732 = vmatprep.mubr.bf16.mxu1 %v7695_v21  ;;  %v12743_v21 = vld [vmem:[#allocation83_spill] sm:$0xff] }
 0x401   : > { %2294 = vmax.xlane.f32.xlu1 %v2293_v37  ;;  %v2201_v29 = vpop.f32.mrb[142].mxu0  ;;  %v2296_v42 = vmax.f32 %v2197_v28, %v2199_v50  ;;  %v12724_v37 = vmax.f32 %v10116_v59, %v10118_v38  ;;  %v2306_v28 = vld [vmem:[%s12522_s6 + $0x120] sm:$0xff]  ;;  %v12725_v50 = vmax.f32 %v10122_v35, %v10124_v12  ;;  %v2307_v38 = vld [vmem:[%s12522_s6 + $0x128] sm:$0xff]  ;;  %v12728_v35 = vmax.f32 %v10134_v31, %v10136_v60 }
 0x402   : > { %v2203_v4 = vpop.f32.mrb[143].mxu0 }
 0x403   : > { %2297 = vmax.xlane.f32.xlu0 %v2296_v42  ;;  %v2299_v41 = vmax.f32 %v2201_v29, %v2203_v4  ;;  %v2370_v4 = vld [vmem:[#allocation2 + $0x120] sm:$0xff] }
 0x405   : > { %2300 = vmax.xlane.f32.xlu1 %v2299_v41  ;;  %v12726_v41 = vmax.f32 %v10128_v34, %v10130_v61  ;;  %v2308_v61 = vld [vmem:[%s12522_s6 + $0x130] sm:$0xff] }
 0x407   : > { %2784 = vmax.xlane.f32.xlu0 %v12709_v47 }
 0x409   : > { %2787 = vmax.xlane.f32.xlu1 %v12710_v44  ;;  %v2208_v8 = vpop.xlane.xlu1 %2207  ;;  %v2371_v44 = vld [vmem:[#allocation2 + $0x128] sm:$0xff] }
 0x40a   : > { %v2334_v56 = vadd.f32 %v2302_v52, %v2208_v8  ;;  %v2372_v52 = vld [vmem:[#allocation2 + $0x130] sm:$0xff]  ;;  %v12731_v8 = vmax.f32 %v10152_v19, %v10154_v55  ;;  %v12734_v55 = vld [vmem:[#allocation77_spill] sm:$0xff] }
 0x40b   : > { %2790 = vmax.xlane.f32.xlu0 %v12711_v7  ;;  %v2211_v23 = vpop.xlane.xlu0 %2210  ;;  %v12727_v7 = vmov 0  }
 0x40c   : > { %v2398_v30 = vmax.f32 %v2366_v22, %v2334_v56  ;;  %v2335_v49 = vadd.f32 %v2303_v48, %v2211_v23  ;;  %v2373_v48 = vld [vmem:[#allocation2 + $0x138] sm:$0xff]  ;;  %v12732_v56 = vmax.f32 %v10158_v15, %v10160_v45  ;;  %v12733_v23 = vld [vmem:[#allocation76_spill] sm:$0xff] }
 0x40d   : > { %2793 = vmax.xlane.f32.xlu1 %v12712_v39  ;;  %v12735_v19 = vmax.f32 %v12733_v23, %v12734_v55  ;;  %v12737_v45 = vld [vmem:[#allocation79_spill] sm:$0xff] }
 0x40e   : > { %2430 = vst.msk [vmem:[#allocation2 + $0x100] sm:$0xff] %vm504_vm1, %v2398_v30  ;;  %v2399_v11 = vmax.f32 %v2367_v26, %v2335_v49  ;;  %v2310_v26 = vld [vmem:[%s12522_s6 + $0x140] sm:$0xff] }
 0x40f   : > { %2796 = vmax.xlane.f32.xlu0 %v12713_v0 }
 0x410   : > { %2431 = vst.msk [vmem:[#allocation2 + $0x108] sm:$0xff] %vm504_vm1, %v2399_v11 }
 0x411   : > { %2799 = vmax.xlane.f32.xlu1 %v12714_v58  ;;  %v2214_v10 = vpop.xlane.xlu0 %2213  ;;  %v12729_v58 = vmax.f32 %v10140_v62, %v10142_v3  ;;  %v2309_v3 = vld [vmem:[%s12522_s6 + $0x138] sm:$0xff]  ;;  %v8788_v62 = vld [vmem:[#allocation3 + $0x180] sm:$0xff]  }
 0x412   : > { %v2336_v5 = vadd.f32 %v2304_v46, %v2214_v10  ;;  %3200 = vmatmul.mubr.bf16.vlgmr.msra.gmra.mrb[144].mxu0 %v8788_v62  ;;  %v2374_v46 = vld [vmem:[#allocation2 + $0x140] sm:$0xff]  ;;  %v8789_v10 = vld [vmem:[#allocation3 + $0x188] sm:$0xff]  }
 0x413   : > { %2802 = vmax.xlane.f32.xlu0 %v12715_v36  ;;  %v2217_v33 = vpop.xlane.xlu1 %2216  ;;  %3209 = vmatprep.mubr.bf16.mxu0 %v12727_v7 }
 0x414   : > { %v2400_v40 = vmax.f32 %v2368_v20, %v2336_v5  ;;  %v2337_v6 = vadd.f32 %v2305_v2, %v2217_v33  ;;  %v12739_v2 = vld [vmem:[#allocation80_spill] sm:$0xff]  ;;  %v12740_v5 = vld [vmem:[#allocation81_spill] sm:$0xff] }
 0x415   : > { %2805 = vmax.xlane.f32.xlu1 %v12716_v51  ;;  %v3651_v17 = vld [vmem:[#allocation2 + $0x100] sm:$0xff]  ;;  %v12730_v51 = vmax.f32 %v10146_v18, %v10148_v57 }
 0x416   : > { %2432 = vst.msk [vmem:[#allocation2 + $0x110] sm:$0xff] %vm504_vm1, %v2400_v40  ;;  %v2401_v32 = vmax.f32 %v2369_v53, %v2337_v6  ;;  %v2375_v53 = vld [vmem:[#allocation2 + $0x148] sm:$0xff] }
 0x417   : > { %2808 = vmax.xlane.f32.xlu0 %v12717_v14  ;;  %v3652_v43 = vld [vmem:[#allocation2 + $0x108] sm:$0xff] }
 0x418   : > { %2433 = vst.msk [vmem:[#allocation2 + $0x118] sm:$0xff] %vm504_vm1, %v2401_v32  ;;  %v3763_v29 = vpack.c.bf16 %v3652_v43, %v3651_v17  ;;  %v12746_v17 = vld [vmem:[#allocation85_spill] sm:$0xff] }
 0x419   : > { %2811 = vmax.xlane.f32.xlu1 %v12718_v63 }
 0x41a   : > { %5701 = vmatpush1.bf16.msra.mxu1 %v3763_v29  ;;  %3210 = vmatmul.mubr.bf16.gmra.mrb[148].mxu0 %v8789_v10 }
 0x41b   : > { %2814 = vmax.xlane.f32.xlu0 %v12719_v27  ;;  %v2223_v47 = vpop.xlane.xlu1 %2222  ;;  %5702 = vmatprep.subr.bf16.mxu1 %v12727_v7  ;;  %v12736_v27 = vld [vmem:[#allocation78_spill] sm:$0xff] }
 0x41c   : > { %v2339_v12 = vadd.f32 %v2307_v38, %v2223_v47  ;;  %v12738_v15 = vmax.f32 %v12736_v27, %v12737_v45  ;;  %3219 = vmatprep.mubr.bf16.mxu0 %v12727_v7  ;;  %v12749_v38 = vld [vmem:[#allocation87_spill] sm:$0xff]  ;;  %v12763_v45 = vld [vmem:[#allocation14_spill] sm:$0xff] }
 0x41d   : > { %2817 = vmax.xlane.f32.xlu1 %v12720_v24  ;;  %v3653_v34 = vld [vmem:[#allocation2 + $0x110] sm:$0xff] }
 0x41e   : > { %v2403_v0 = vmax.f32 %v2371_v44, %v2339_v12  ;;  %v2376_v44 = vld [vmem:[#allocation2 + $0x150] sm:$0xff] }
 0x41f   : > { %2820 = vmax.xlane.f32.xlu0 %v12721_v25  ;;  %v3654_v36 = vld [vmem:[#allocation2 + $0x118] sm:$0xff]  ;;  %v2311_v25 = vld [vmem:[%s12522_s6 + $0x148] sm:$0xff]  ;;  %v8790_v12 = vld [vmem:[#allocation3 + $0x190] sm:$0xff]  }
 0x420   : > { %2435 = vst.msk [vmem:[#allocation2 + $0x128] sm:$0xff] %vm504_vm1, %v2403_v0  ;;  %v3764_v60 = vpack.c.bf16 %v3654_v36, %v3653_v34  ;;  %v12751_v0 = vld [vmem:[#allocation88_spill] sm:$0xff]  ;;  %v2377_v36 = vld [vmem:[#allocation2 + $0x158] sm:$0xff] }
 0x421   : > { %2823 = vmax.xlane.f32.xlu1 %v12722_v1  ;;  %v12741_v1 = vmax.f32 %v12739_v2, %v12740_v5  ;;  %v12767_v2 = vld [vmem:[#allocation17_spill] sm:$0xff] }
 0x422   : > { %5703 = vmatpush1.bf16.msra.mxu1 %v3764_v60  ;;  %3220 = vmatmul.mubr.bf16.gmra.mrb[152].mxu0 %v8790_v12 }
 0x423   : > { %2826 = vmax.xlane.f32.xlu0 %v12723_v13  ;;  %5704 = vmatprep.subr.bf16.mxu1 %v12727_v7  ;;  %v12742_v13 = vld [vmem:[#allocation82_spill] sm:$0xff] }
 0x424   : > { %v12744_v32 = vmax.f32 %v12742_v13, %v12743_v21  ;;  %3229 = vmatprep.mubr.bf16.mxu0 %v12727_v7 }
 0x425   : > { %2829 = vmax.xlane.f32.xlu1 %v12724_v37 }
 0x427   : > { %2832 = vmax.xlane.f32.xlu0 %v12725_v50  ;;  %v3656_v49 = vld [vmem:[#allocation2 + $0x128] sm:$0xff]  ;;  %v2312_v50 = vld [vmem:[%s12522_s6 + $0x150] sm:$0xff] }
 0x429   : > { %2835 = vmax.xlane.f32.xlu1 %v12726_v41 }
 0x42b   : > { %2838 = vmax.xlane.f32.xlu0 %v12728_v35 }
 0x42d   : > { %2841 = vmax.xlane.f32.xlu1 %v12729_v58  ;;  %v12752_v58 = vld [vmem:[#allocation89_spill] sm:$0xff] }
 0x42f   : > { %2844 = vmax.xlane.f32.xlu0 %v12730_v51 }
 0x431   : > { %2847 = vmax.xlane.f32.xlu1 %v12731_v8  ;;  %v12758_v8 = vld [vmem:[#allocation93_spill] sm:$0xff] }
 0x433   : > { %2850 = vmax.xlane.f32.xlu0 %v12732_v56  ;;  %v12760_v56 = vld [vmem:[#allocation12_spill] sm:$0xff] }
 0x435   : > { %2853 = vmax.xlane.f32.xlu1 %v12735_v19 }
 0x437   : > { %2856 = vmax.xlane.f32.xlu0 %v12738_v15  ;;  %v12764_v15 = vld [vmem:[#allocation15_spill] sm:$0xff] }
 0x439   : > { %2859 = vmax.xlane.f32.xlu1 %v12741_v1 }
 0x43b   : > { %2862 = vmax.xlane.f32.xlu0 %v12744_v32  ;;  %v12772_v32 = vld [vmem:[#allocation20_spill] sm:$0xff] }
 0x451   : > { %v2220_v42 = vpop.xlane.xlu0 %2219 }
 0x452   : > { %v2338_v59 = vadd.f32 %v2306_v28, %v2220_v42  ;;  %v12745_v28 = vld [vmem:[#allocation84_spill] sm:$0xff] }
 0x453   : > { %v12747_v43 = vmax.f32 %v12745_v28, %v12746_v17 }
 0x454   : > { %v2402_v39 = vmax.f32 %v2370_v4, %v2338_v59  ;;  %v12748_v4 = vld [vmem:[#allocation86_spill] sm:$0xff] }
 0x455   : > { %v2226_v31 = vpop.xlane.xlu0 %2225  ;;  %2865 = vmax.xlane.f32.xlu1 %v12747_v43  ;;  %v12750_v59 = vmax.f32 %v12748_v4, %v12749_v38  ;;  %v12775_v38 = vld [vmem:[#allocation22_spill] sm:$0xff] }
 0x456   : > { %2434 = vst.msk [vmem:[#allocation2 + $0x120] sm:$0xff] %vm504_vm1, %v2402_v39  ;;  %v2340_v14 = vadd.f32 %v2308_v61, %v2226_v31  ;;  %v2229_v22 = vpop.xlane.xlu1 %2228  ;;  %v2313_v39 = vld [vmem:[%s12522_s6 + $0x158] sm:$0xff]  ;;  %v12753_v61 = vmax.f32 %v12751_v0, %v12752_v58  ;;  %v12754_v31 = vld [vmem:[#allocation90_spill] sm:$0xff]  ;;  %v12779_v0 = vld [vmem:[#allocation25_spill] sm:$0xff] }
 0x457   : > { %v2341_v18 = vadd.f32 %v2309_v3, %v2229_v22  ;;  %2868 = vmax.xlane.f32.xlu0 %v12750_v59  ;;  %v12776_v59 = vld [vmem:[#allocation23_spill] sm:$0xff] }
 0x458   : > { %v2404_v57 = vmax.f32 %v2372_v52, %v2340_v14  ;;  %v12755_v52 = vld [vmem:[#allocation91_spill] sm:$0xff]  ;;  %v12757_v14 = vld [vmem:[#allocation92_spill] sm:$0xff] }
 0x459   : > { %v2405_v63 = vmax.f32 %v2373_v48, %v2341_v18  ;;  %v2232_v24 = vpop.xlane.xlu0 %2231  ;;  %2871 = vmax.xlane.f32.xlu1 %v12753_v61  ;;  %v12756_v3 = vmax.f32 %v12754_v31, %v12755_v52  ;;  %v12759_v22 = vmax.f32 %v12757_v14, %v12758_v8  ;;  %v2314_v48 = vld [vmem:[%s12522_s6 + $0x160] sm:$0xff] }
 0x45a   : > { %2436 = vst.msk [vmem:[#allocation2 + $0x130] sm:$0xff] %vm504_vm1, %v2404_v57  ;;  %v2342_v20 = vadd.f32 %v2310_v26, %v2232_v24  ;;  %v2235_v33 = vpop.xlane.xlu1 %2234  ;;  %v2378_v26 = vld [vmem:[#allocation2 + $0x160] sm:$0xff] }
 0x45b   : > { %2437 = vst.msk [vmem:[#allocation2 + $0x138] sm:$0xff] %vm504_vm1, %v2405_v63  ;;  %v2343_v6 = vadd.f32 %v2311_v25, %v2235_v33  ;;  %2874 = vmax.xlane.f32.xlu0 %v12756_v3  ;;  %v12761_v63 = vld [vmem:[#allocation13_spill] sm:$0xff]  ;;  %v12769_v33 = vld [vmem:[#allocation18_spill] sm:$0xff]  ;;  %v12784_v3 = vld [vmem:[#allocation28_spill] sm:$0xff] }
 0x45c   : > { %v2406_v40 = vmax.f32 %v2374_v46, %v2342_v20  ;;  %v12762_v23 = vmax.f32 %v12760_v56, %v12761_v63  ;;  %v2379_v46 = vld [vmem:[#allocation2 + $0x168] sm:$0xff]  ;;  %v12766_v20 = vld [vmem:[#allocation16_spill] sm:$0xff]  ;;  %v12787_v63 = vld [vmem:[#allocation30_spill] sm:$0xff] }
 0x45d   : > { %v3655_v30 = vld [vmem:[#allocation2 + $0x120] sm:$0xff]  ;;  %v2407_v37 = vmax.f32 %v2375_v53, %v2343_v6  ;;  %v2238_v47 = vpop.xlane.xlu0 %2237  ;;  %2877 = vmax.xlane.f32.xlu1 %v12759_v22  ;;  %v12768_v5 = vmax.f32 %v12766_v20, %v12767_v2  ;;  %v12770_v53 = vld [vmem:[#allocation19_spill] sm:$0xff]  ;;  %v2316_v6 = vld [vmem:[%s12522_s6 + $0x170] sm:$0xff] }
 0x45e   : > { %v3765_v11 = vpack.c.bf16 %v3656_v49, %v3655_v30  ;;  %2438 = vst.msk [vmem:[#allocation2 + $0x140] sm:$0xff] %vm504_vm1, %v2406_v40  ;;  %v2344_v35 = vadd.f32 %v2312_v50, %v2238_v47  ;;  %v2241_v34 = vpop.xlane.xlu1 %2240  ;;  %v2315_v30 = vld [vmem:[%s12522_s6 + $0x168] sm:$0xff]  ;;  %v8791_v49 = vld [vmem:[#allocation3 + $0x198] sm:$0xff]   ;;  %v12771_v40 = vmax.f32 %v12769_v33, %v12770_v53  ;;  %v2380_v50 = vld [vmem:[#allocation2 + $0x170] sm:$0xff] }
 0x45f   : > { %2439 = vst.msk [vmem:[#allocation2 + $0x148] sm:$0xff] %vm504_vm1, %v2407_v37  ;;  %v2345_v60 = vadd.f32 %v2313_v39, %v2241_v34  ;;  %1629 = vmax.xlane.f32.xlu0 %v12762_v23  ;;  %3230 = vmatmul.mubr.bf16.gmra.mrb[156].mxu0 %v8791_v49  ;;  %v12773_v37 = vld [vmem:[#allocation21_spill] sm:$0xff]  ;;  %v12781_v34 = vld [vmem:[#allocation26_spill] sm:$0xff]  ;;  %v12788_v23 = vld [vmem:[#allocation31_spill] sm:$0xff] }
 0x460   : > { %5705 = vmatpush1.bf16.msra.mxu1 %v3765_v11  ;;  %v2408_v51 = vmax.f32 %v2376_v44, %v2344_v35  ;;  %v12765_v11 = vmax.f32 %v12763_v45, %v12764_v15  ;;  %3239 = vmatprep.mubr.bf16.mxu0 %v12727_v7  ;;  %v12774_v28 = vmax.f32 %v12772_v32, %v12773_v37  ;;  %v2381_v44 = vld [vmem:[#allocation2 + $0x178] sm:$0xff]  ;;  %v12778_v35 = vld [vmem:[#allocation24_spill] sm:$0xff]  ;;  %v12791_v45 = vld [vmem:[#allocation33_spill] sm:$0xff] }
 0x461   : > { %5706 = vmatprep.subr.bf16.mxu1 %v12727_v7  ;;  %v3657_v29 = vld [vmem:[#allocation2 + $0x130] sm:$0xff]  ;;  %v2409_v62 = vmax.f32 %v2377_v36, %v2345_v60  ;;  %v2244_v19 = vpop.xlane.xlu0 %2243  ;;  %v12780_v58 = vmax.f32 %v12778_v35, %v12779_v0  ;;  %v12782_v36 = vld [vmem:[#allocation27_spill] sm:$0xff]  ;;  %v2318_v60 = vld [vmem:[%s12522_s6 + $0x180] sm:$0xff] }
 0x462   : > { %v3658_v42 = vld [vmem:[#allocation2 + $0x138] sm:$0xff]  ;;  %2440 = vst.msk [vmem:[#allocation2 + $0x150] sm:$0xff] %vm504_vm1, %v2408_v51  ;;  %v2346_v27 = vadd.f32 %v2314_v48, %v2244_v19  ;;  %1632 = vmax.xlane.f32.xlu1 %v12765_v11  ;;  %v2247_v24 = vpop.xlane.xlu1 %2246  ;;  %v12783_v51 = vmax.f32 %v12781_v34, %v12782_v36  ;;  %v2382_v48 = vld [vmem:[#allocation2 + $0x180] sm:$0xff]  ;;  %v12799_v37 = vld [vmem:[#allocation38_spill] sm:$0xff] }
 0x463   : > { %v3766_v41 = vpack.c.bf16 %v3658_v42, %v3657_v29  ;;  %2441 = vst.msk [vmem:[#allocation2 + $0x158] sm:$0xff] %vm504_vm1, %v2409_v62  ;;  %v2347_v10 = vadd.f32 %v2315_v30, %v2247_v24  ;;  %1635 = vmax.xlane.f32.xlu0 %v12768_v5  ;;  %v2317_v29 = vld [vmem:[%s12522_s6 + $0x178] sm:$0xff]  ;;  %v8792_v42 = vld [vmem:[#allocation3 + $0x1a0] sm:$0xff]   ;;  %v12785_v62 = vld [vmem:[#allocation29_spill] sm:$0xff] }
 0x464   : > { %v2410_v25 = vmax.f32 %v2378_v26, %v2346_v27  ;;  %v12786_v14 = vmax.f32 %v12784_v3, %v12785_v62  ;;  %v2383_v26 = vld [vmem:[#allocation2 + $0x188] sm:$0xff]  ;;  %v12790_v27 = vld [vmem:[#allocation32_spill] sm:$0xff]  ;;  %v12793_v24 = vld [vmem:[#allocation34_spill] sm:$0xff] }
 0x465   : > { %5707 = vmatpush1.bf16.msra.mxu1 %v3766_v41  ;;  %v3659_v57 = vld [vmem:[#allocation2 + $0x140] sm:$0xff]  ;;  %v2411_v1 = vmax.f32 %v2379_v46, %v2347_v10  ;;  %v12777_v41 = vmax.f32 %v12775_v38, %v12776_v59  ;;  %v12792_v15 = vmax.f32 %v12790_v27, %v12791_v45  ;;  %v12794_v46 = vld [vmem:[#allocation35_spill] sm:$0xff]  ;;  %v2320_v10 = vld [vmem:[%s12522_s6 + $0x190] sm:$0xff] }
 0x466   : > { %5708 = vmatprep.subr.bf16.mxu1 %v12727_v7  ;;  %v3660_v18 = vld [vmem:[#allocation2 + $0x148] sm:$0xff]  ;;  %2442 = vst.msk [vmem:[#allocation2 + $0x160] sm:$0xff] %vm504_vm1, %v2410_v25  ;;  %1638 = vmax.xlane.f32.xlu1 %v12771_v40  ;;  %v12795_v25 = vmax.f32 %v12793_v24, %v12794_v46  ;;  %v12796_v5 = vld [vmem:[#allocation36_spill] sm:$0xff]  ;;  %v12811_v62 = vld [vmem:[#allocation46_spill] sm:$0xff] }
 0x467   : > { %v3767_v55 = vpack.c.bf16 %v3660_v18, %v3659_v57  ;;  %2443 = vst.msk [vmem:[#allocation2 + $0x168] sm:$0xff] %vm504_vm1, %v2411_v1  ;;  %1641 = vmax.xlane.f32.xlu0 %v12774_v28  ;;  %3240 = vmatmul.mubr.bf16.gmra.mrb[160].mxu0 %v8792_v42  ;;  %v2319_v57 = vld [vmem:[%s12522_s6 + $0x188] sm:$0xff]  ;;  %v12800_v28 = vld [vmem:[#allocation39_spill] sm:$0xff] }
 0x468   : > { %3249 = vmatprep.mubr.bf16.mxu0 %v12727_v7  ;;  %v8793_v18 = vld [vmem:[#allocation3 + $0x1a8] sm:$0xff]  }
 0x469   : > { %5709 = vmatpush1.bf16.msra.mxu1 %v3767_v55  ;;  %v3661_v13 = vld [vmem:[#allocation2 + $0x150] sm:$0xff]  ;;  %v12789_v55 = vmax.f32 %v12787_v63, %v12788_v23  ;;  %v12797_v1 = vld [vmem:[#allocation37_spill] sm:$0xff] }
 0x46a   : > { %5710 = vmatprep.subr.bf16.mxu1 %v12727_v7  ;;  %v3662_v21 = vld [vmem:[#allocation2 + $0x158] sm:$0xff]  ;;  %1644 = vmax.xlane.f32.xlu1 %v12777_v41  ;;  %v12798_v33 = vmax.f32 %v12796_v5, %v12797_v1  ;;  %v12803_v38 = vld [vmem:[#allocation41_spill] sm:$0xff] }
 0x46b   : > { %v3768_v17 = vpack.c.bf16 %v3662_v21, %v3661_v13  ;;  %v2250_v43 = vpop.xlane.xlu0 %2249  ;;  %1647 = vmax.xlane.f32.xlu0 %v12780_v58  ;;  %v2321_v13 = vld [vmem:[%s12522_s6 + $0x198] sm:$0xff]  ;;  %v8794_v21 = vld [vmem:[#allocation3 + $0x1b0] sm:$0xff]   ;;  %v12808_v58 = vld [vmem:[#allocation44_spill] sm:$0xff] }
 0x46c   : > { %v2348_v4 = vadd.f32 %v2316_v6, %v2250_v43  ;;  %v2384_v6 = vld [vmem:[#allocation2 + $0x190] sm:$0xff]  ;;  %v12815_v63 = vld [vmem:[#allocation49_spill] sm:$0xff] }
 0x46d   : > { %5711 = vmatpush1.bf16.msra.mxu1 %v3768_v17  ;;  %v3663_v31 = vld [vmem:[#allocation2 + $0x160] sm:$0xff]  ;;  %v12801_v17 = vmax.f32 %v12799_v37, %v12800_v28  ;;  %v12823_v1 = vld [vmem:[#allocation61_spill] sm:$0xff]  ;;  %v12827_v37 = vld [vmem:[#allocation71_spill] sm:$0xff] }
 0x46e   : > { %5712 = vmatprep.subr.bf16.mxu1 %v12727_v7  ;;  %v2412_v39 = vmax.f32 %v2380_v50, %v2348_v4  ;;  %1650 = vmax.xlane.f32.xlu1 %v12783_v51  ;;  %v3664_v52 = vld [vmem:[#allocation2 + $0x168] sm:$0xff]  ;;  %v2385_v50 = vld [vmem:[#allocation2 + $0x198] sm:$0xff]  ;;  %v12802_v4 = vld [vmem:[#allocation40_spill] sm:$0xff] }
 0x46f   : > { %v2253_v47 = vpop.xlane.xlu1 %2252  ;;  %1653 = vmax.xlane.f32.xlu0 %v12786_v14  ;;  %v3769_v8 = vpack.c.bf16 %v3664_v52, %v3663_v31  ;;  %3250 = vmatmul.mubr.bf16.gmra.mrb[164].mxu0 %v8793_v18  ;;  %v12804_v59 = vmax.f32 %v12802_v4, %v12803_v38  ;;  %v2323_v31 = vld [vmem:[%s12522_s6 + $0x1a8] sm:$0xff]  ;;  %v8795_v52 = vld [vmem:[#allocation3 + $0x1b8] sm:$0xff]  }
 0x470   : > { %v2349_v12 = vadd.f32 %v2317_v29, %v2253_v47  ;;  %2444 = vst.msk [vmem:[#allocation2 + $0x170] sm:$0xff] %vm504_vm1, %v2412_v39  ;;  %3259 = vmatprep.mubr.bf16.mxu0 %v12727_v7  ;;  %v12805_v47 = vld [vmem:[#allocation42_spill] sm:$0xff]  ;;  %v12812_v14 = vld [vmem:[#allocation47_spill] sm:$0xff] }
 0x471   : > { %5713 = vmatpush1.bf16.msra.mxu1 %v3769_v8  ;;  %v12813_v8 = vmax.f32 %v12811_v62, %v12812_v14  ;;  %v12839_v62 = vld [vmem:[#allocation58_spill] sm:$0xff] }
 0x472   : > { %v2413_v61 = vmax.f32 %v2381_v44, %v2349_v12  ;;  %1656 = vmax.xlane.f32.xlu1 %v12789_v55  ;;  %5714 = vmatprep.subr.bf16.mxu1 %v12727_v7  ;;  %v12806_v44 = vld [vmem:[#allocation43_spill] sm:$0xff]  ;;  %v2322_v12 = vld [vmem:[%s12522_s6 + $0x1a0] sm:$0xff] }
 0x473   : > { %1659 = vmax.xlane.f32.xlu0 %v12792_v15  ;;  %v12807_v39 = vmax.f32 %v12805_v47, %v12806_v44  ;;  %v12820_v15 = vld [vmem:[#allocation57_spill] sm:$0xff] }
 0x474   : > { %2445 = vst.msk [vmem:[#allocation2 + $0x178] sm:$0xff] %vm504_vm1, %v2413_v61  ;;  %v2256_v22 = vpop.xlane.xlu0 %2255  ;;  %v12809_v61 = vld [vmem:[#allocation45_spill] sm:$0xff] }
 0x475   : > { %v2350_v56 = vadd.f32 %v2318_v60, %v2256_v22  ;;  %v12810_v34 = vmax.f32 %v12808_v58, %v12809_v61  ;;  %v2386_v60 = vld [vmem:[#allocation2 + $0x1a0] sm:$0xff]  ;;  %v12835_v61 = vld [vmem:[#allocation54_spill] sm:$0xff] }
 0x476   : > { %v2259_v19 = vpop.xlane.xlu1 %2258  ;;  %1662 = vmax.xlane.f32.xlu1 %v12795_v25 }
 0x477   : > { %v2414_v30 = vmax.f32 %v2382_v48, %v2350_v56  ;;  %v2351_v49 = vadd.f32 %v2319_v57, %v2259_v19  ;;  %v3665_v20 = vld [vmem:[#allocation2 + $0x170] sm:$0xff]  ;;  %1665 = vmax.xlane.f32.xlu0 %v12798_v33  ;;  %3260 = vmatmul.mubr.bf16.gmra.mrb[168].mxu0 %v8794_v21  ;;  %v2387_v48 = vld [vmem:[#allocation2 + $0x1a8] sm:$0xff]  ;;  %v12814_v56 = vld [vmem:[#allocation48_spill] sm:$0xff] }
 0x478   : > { %v2262_v40 = vpop.xlane.xlu0 %2261  ;;  %3269 = vmatprep.mubr.bf16.mxu0 %v12727_v7  ;;  %v12816_v23 = vmax.f32 %v12814_v56, %v12815_v63  ;;  %v12817_v19 = vld [vmem:[#allocation50_spill] sm:$0xff]  ;;  %v12824_v33 = vld [vmem:[#allocation63_spill] sm:$0xff] }
 0x479   : > { %2446 = vst.msk [vmem:[#allocation2 + $0x180] sm:$0xff] %vm504_vm1, %v2414_v30  ;;  %v2415_v11 = vmax.f32 %v2383_v26, %v2351_v49  ;;  %v2352_v32 = vadd.f32 %v2320_v10, %v2262_v40  ;;  %v12818_v26 = vld [vmem:[#allocation51_spill] sm:$0xff]  ;;  %v2324_v49 = vld [vmem:[%s12522_s6 + $0x1b0] sm:$0xff] }
 0x47a   : > { %1668 = vmax.xlane.f32.xlu1 %v12801_v17  ;;  %v2265_v43 = vpop.xlane.xlu1 %2264  ;;  %v12819_v30 = vmax.f32 %v12817_v19, %v12818_v26  ;;  %v2388_v10 = vld [vmem:[#allocation2 + $0x1b0] sm:$0xff] }
 0x47b   : > { %v3666_v2 = vld [vmem:[#allocation2 + $0x178] sm:$0xff]  ;;  %2447 = vst.msk [vmem:[#allocation2 + $0x188] sm:$0xff] %vm504_vm1, %v2415_v11  ;;  %v2416_v29 = vmax.f32 %v2384_v6, %v2352_v32  ;;  %v2353_v42 = vadd.f32 %v2321_v13, %v2265_v43  ;;  %1671 = vmax.xlane.f32.xlu0 %v12804_v59  ;;  %v12826_v32 = vld [vmem:[#allocation69_spill] sm:$0xff]  ;;  %v12832_v59 = vld [vmem:[#allocation52_spill] sm:$0xff] }
 0x47c   : > { %v3770_v53 = vpack.c.bf16 %v3666_v2, %v3665_v20  ;;  %v2268_v51 = vpop.xlane.xlu0 %2267  ;;  %v12821_v11 = vld [vmem:[#allocation59_spill] sm:$0xff]  ;;  %v8796_v2 = vld [vmem:[#allocation3 + $0x1c0] sm:$0xff]   ;;  %v12828_v28 = vmax.f32 %v12826_v32, %v12827_v37  ;;  %v12829_v43 = vld [vmem:[#allocation73_spill] sm:$0xff] }
 0x47d   : > { %2448 = vst.msk [vmem:[#allocation2 + $0x190] sm:$0xff] %vm504_vm1, %v2416_v29  ;;  %v2417_v41 = vmax.f32 %v2385_v50, %v2353_v42  ;;  %v2354_v3 = vadd.f32 %v2322_v12, %v2268_v51  ;;  %v12822_v24 = vmax.f32 %v12820_v15, %v12821_v11  ;;  %v2325_v20 = vld [vmem:[%s12522_s6 + $0x1b8] sm:$0xff]  ;;  %v2326_v42 = vld [vmem:[%s12522_s6 + $0x1c0] sm:$0xff]  ;;  %v12847_v11 = vld [vmem:[#allocation66_spill] sm:$0xff] }
 0x47e   : > { %5715 = vmatpush1.bf16.msra.mxu1 %v3770_v53  ;;  %1674 = vmax.xlane.f32.xlu1 %v12807_v39  ;;  %v2271_v22 = vpop.xlane.xlu1 %2270  ;;  %v12825_v53 = vmax.f32 %v12823_v1, %v12824_v33  ;;  %v2389_v6 = vld [vmem:[#allocation2 + $0x1b8] sm:$0xff]  ;;  %v2390_v12 = vld [vmem:[#allocation2 + $0x1c0] sm:$0xff]  ;;  %v12851_v1 = vld [vmem:[#allocation70_spill] sm:$0xff] }
 0x47f   : > { %5716 = vmatprep.subr.bf16.mxu1 %v12727_v7  ;;  %2449 = vst.msk [vmem:[#allocation2 + $0x198] sm:$0xff] %vm504_vm1, %v2417_v41  ;;  %1677 = vmax.xlane.f32.xlu0 %v12810_v34  ;;  %v2418_v57 = vmax.f32 %v2386_v60, %v2354_v3  ;;  %v2355_v18 = vadd.f32 %v2323_v31, %v2271_v22  ;;  %v12830_v50 = vld [vmem:[#allocation75_spill] sm:$0xff]  ;;  %v12833_v41 = vld [vmem:[#allocation53_spill] sm:$0xff]  ;;  %v12838_v3 = vld [vmem:[#allocation56_spill] sm:$0xff] }
 0x480   : > { %v3667_v35 = vld [vmem:[#allocation2 + $0x180] sm:$0xff]  ;;  %3270 = vmatmul.mubr.bf16.gmra.mrb[172].mxu0 %v8795_v52  ;;  %v2274_v25 = vpop.xlane.xlu0 %2273  ;;  %v12831_v29 = vmax.f32 %v12829_v43, %v12830_v50  ;;  %v12834_v47 = vmax.f32 %v12832_v59, %v12833_v41  ;;  %v12836_v34 = vld [vmem:[#allocation55_spill] sm:$0xff]  ;;  %v2391_v60 = vld [vmem:[#allocation2 + $0x1c8] sm:$0xff]  ;;  %v12840_v14 = vmax.f32 %v12838_v3, %v12839_v62 }
 0x481   : > { %3279 = vmatprep.mubr.bf16.mxu0 %v12727_v7  ;;  %2450 = vst.msk [vmem:[#allocation2 + $0x1a0] sm:$0xff] %vm504_vm1, %v2418_v57  ;;  %v2419_v55 = vmax.f32 %v2387_v48, %v2355_v18  ;;  %v2356_v5 = vadd.f32 %v2324_v49, %v2274_v25  ;;  %v12841_v22 = vld [vmem:[#allocation60_spill] sm:$0xff]  ;;  %v12842_v48 = vld [vmem:[#allocation62_spill] sm:$0xff]  ;;  %v2331_v50 = vld [vmem:[%s12522_s6 + $0x1e8] sm:$0xff] }
 0x482   : > { %v3668_v0 = vld [vmem:[#allocation2 + $0x188] sm:$0xff]  ;;  %1680 = vmax.xlane.f32.xlu1 %v12813_v8  ;;  %v2277_v40 = vpop.xlane.xlu1 %2276  ;;  %v12843_v57 = vmax.f32 %v12841_v22, %v12842_v48  ;;  %v2328_v18 = vld [vmem:[%s12522_s6 + $0x1d0] sm:$0xff]  ;;  %v2394_v43 = vld [vmem:[#allocation2 + $0x1e0] sm:$0xff] }
 0x483   : > { %v3771_v36 = vpack.c.bf16 %v3668_v0, %v3667_v35  ;;  %1683 = vmax.xlane.f32.xlu0 %v12816_v23  ;;  %2451 = vst.msk [vmem:[#allocation2 + $0x1a8] sm:$0xff] %vm504_vm1, %v2419_v55  ;;  %v2420_v13 = vmax.f32 %v2388_v10, %v2356_v5  ;;  %v2357_v21 = vadd.f32 %v2325_v20, %v2277_v40  ;;  %v2327_v35 = vld [vmem:[%s12522_s6 + $0x1c8] sm:$0xff]  ;;  %v12844_v23 = vld [vmem:[#allocation64_spill] sm:$0xff]  ;;  %v2392_v49 = vld [vmem:[#allocation2 + $0x1d0] sm:$0xff] }
 0x484   : > { %v3669_v27 = vld [vmem:[#allocation2 + $0x190] sm:$0xff]  ;;  %v2280_v39 = vpop.xlane.xlu0 %2279  ;;  %v8797_v0 = vld [vmem:[#allocation3 + $0x1c8] sm:$0xff]   ;;  %v2393_v10 = vld [vmem:[#allocation2 + $0x1d8] sm:$0xff] }
 0x485   : > { %5717 = vmatpush1.bf16.msra.mxu1 %v3771_v36  ;;  %2452 = vst.msk [vmem:[#allocation2 + $0x1b0] sm:$0xff] %vm504_vm1, %v2420_v13  ;;  %v2421_v17 = vmax.f32 %v2389_v6, %v2357_v21  ;;  %v2358_v58 = vadd.f32 %v2326_v42, %v2280_v39  ;;  %v12837_v36 = vmax.f32 %v12835_v61, %v12836_v34  ;;  %v12845_v55 = vld [vmem:[#allocation65_spill] sm:$0xff]  ;;  %v12850_v5 = vld [vmem:[#allocation68_spill] sm:$0xff]  ;;  %v12854_v6 = vld [vmem:[#allocation74_spill] sm:$0xff] }
 0x486   : > { %5718 = vmatprep.subr.bf16.mxu1 %v12727_v7  ;;  %1686 = vmax.xlane.f32.xlu1 %v12819_v30  ;;  %v3670_v45 = vld [vmem:[#allocation2 + $0x198] sm:$0xff]  ;;  %v2283_v51 = vpop.xlane.xlu1 %2282  ;;  %v12846_v19 = vmax.f32 %v12844_v23, %v12845_v55  ;;  %v12852_v33 = vmax.f32 %v12850_v5, %v12851_v1  ;;  %v12853_v40 = vld [vmem:[#allocation72_spill] sm:$0xff]  ;;  %v2884_v1 = vld [vmem:[%s12522_s6 + $0x228] sm:$0xff] }
 0x487   : > { %1689 = vmax.xlane.f32.xlu0 %v12822_v24  ;;  %v3772_v46 = vpack.c.bf16 %v3670_v45, %v3669_v27  ;;  %2453 = vst.msk [vmem:[#allocation2 + $0x1b8] sm:$0xff] %vm504_vm1, %v2421_v17  ;;  %v2422_v31 = vmax.f32 %v2390_v12, %v2358_v58  ;;  %v2359_v52 = vadd.f32 %v2327_v35, %v2283_v51  ;;  %v2329_v27 = vld [vmem:[%s12522_s6 + $0x1d8] sm:$0xff]  ;;  %v8798_v45 = vld [vmem:[#allocation3 + $0x1d0] sm:$0xff]   ;;  %v2330_v21 = vld [vmem:[%s12522_s6 + $0x1e0] sm:$0xff] }
 0x488   : > { %3280 = vmatmul.mubr.bf16.gmra.mrb[176].mxu0 %v8796_v2  ;;  %v3671_v4 = vld [vmem:[#allocation2 + $0x1a0] sm:$0xff]  ;;  %v2286_v30 = vpop.xlane.xlu0 %2285  ;;  %v12848_v24 = vld [vmem:[#allocation67_spill] sm:$0xff]  ;;  %v12855_v13 = vmax.f32 %v12853_v40, %v12854_v6  ;;  %v2396_v58 = vld [vmem:[#allocation2 + $0x1f0] sm:$0xff] }
 0x489   : > { %5719 = vmatpush1.bf16.msra.mxu1 %v3772_v46  ;;  %3289 = vmatprep.mubr.bf16.mxu0 %v12727_v7  ;;  %2454 = vst.msk [vmem:[#allocation2 + $0x1c0] sm:$0xff] %vm504_vm1, %v2422_v31  ;;  %v2423_v8 = vmax.f32 %v2391_v60, %v2359_v52  ;;  %v2360_v15 = vadd.f32 %v2328_v18, %v2286_v30  ;;  %v2333_v61 = vld [vmem:[%s12522_s6 + $0x1f8] sm:$0xff]  ;;  %v8800_v34 = vld [vmem:[#allocation3 + $0x1e0] sm:$0xff]   ;;  %v8801_v30 = vld [vmem:[#allocation3 + $0x1e8] sm:$0xff]  }
 0x48a   : > { %1692 = vmax.xlane.f32.xlu1 %v12825_v53  ;;  %5720 = vmatprep.subr.bf16.mxu1 %v12727_v7  ;;  %v3672_v38 = vld [vmem:[#allocation2 + $0x1a8] sm:$0xff]  ;;  %v12849_v46 = vmax.f32 %v12847_v11, %v12848_v24  ;;  %v2289_v25 = vpop.xlane.xlu1 %2288  ;;  %v2397_v60 = vld [vmem:[#allocation2 + $0x1f8] sm:$0xff]  ;;  %v2879_v31 = vld [vmem:[%s12522_s6 + $0x200] sm:$0xff] }
 0x48b   : > { %1695 = vmax.xlane.f32.xlu0 %v12828_v28  ;;  %v3773_v44 = vpack.c.bf16 %v3672_v38, %v3671_v4  ;;  %2455 = vst.msk [vmem:[#allocation2 + $0x1c8] sm:$0xff] %vm504_vm1, %v2423_v8  ;;  %v2424_v20 = vmax.f32 %v2392_v49, %v2360_v15  ;;  %v2361_v2 = vadd.f32 %v2329_v27, %v2289_v25  ;;  %v2395_v38 = vld [vmem:[#allocation2 + $0x1e8] sm:$0xff]  ;;  %v2945_v27 = vld [vmem:[#allocation2 + $0x210] sm:$0xff]  ;;  %v2883_v25 = vld [vmem:[%s12522_s6 + $0x220] sm:$0xff] }
 0x48c   : > { %v3673_v56 = vld [vmem:[#allocation2 + $0x1b0] sm:$0xff]  ;;  %v2292_v17 = vpop.xlane.xlu0 %2291  ;;  %v2880_v8 = vld [vmem:[%s12522_s6 + $0x208] sm:$0xff]  ;;  %v2947_v5 = vld [vmem:[#allocation2 + $0x220] sm:$0xff] }
 0x48d   : > { %5721 = vmatpush1.bf16.msra.mxu1 %v3773_v44  ;;  %2456 = vst.msk [vmem:[#allocation2 + $0x1d0] sm:$0xff] %vm504_vm1, %v2424_v20  ;;  %v2425_v53 = vmax.f32 %v2393_v10, %v2361_v2  ;;  %v2362_v42 = vadd.f32 %v2330_v21, %v2292_v17  ;;  %v2332_v44 = vld [vmem:[%s12522_s6 + $0x1f0] sm:$0xff]  ;;  %v10613_v21 = vld [vmem:[%s12523_s7 + $0x68] sm:$0xff] }
 0x48e   : > { %1698 = vmax.xlane.f32.xlu1 %v12831_v29  ;;  %5722 = vmatprep.subr.bf16.mxu1 %v12727_v7  ;;  %v3674_v63 = vld [vmem:[#allocation2 + $0x1b8] sm:$0xff]  ;;  %v2295_v4 = vpop.xlane.xlu1 %2294  ;;  %v2885_v6 = vld [vmem:[%s12522_s6 + $0x230] sm:$0xff] }
 0x48f   : > { %1701 = vmax.xlane.f32.xlu0 %v12834_v47  ;;  %v3774_v26 = vpack.c.bf16 %v3674_v63, %v3673_v56  ;;  %2457 = vst.msk [vmem:[#allocation2 + $0x1d8] sm:$0xff] %vm504_vm1, %v2425_v53  ;;  %v8799_v29 = vld [vmem:[#allocation3 + $0x1d8] sm:$0xff]   ;;  %v2426_v59 = vmax.f32 %v2394_v43, %v2362_v42  ;;  %v2363_v41 = vadd.f32 %v2331_v50, %v2295_v4  ;;  %v2881_v56 = vld [vmem:[%s12522_s6 + $0x210] sm:$0xff] }
 0x490   : > { %3290 = vmatmul.mubr.bf16.gmra.mrb[180].mxu0 %v8797_v0  ;;  %v3675_v32 = vld [vmem:[#allocation2 + $0x1c0] sm:$0xff]  ;;  %v2298_v0 = vpop.xlane.xlu0 %2297  ;;  %v8802_v17 = vld [vmem:[#allocation3 + $0x1f0] sm:$0xff]  }
 0x491   : > { %3299 = vmatprep.mubr.bf16.mxu0 %v12727_v7  ;;  %5723 = vmatpush1.bf16.msra.mxu1 %v3774_v26  ;;  %2458 = vst.msk [vmem:[#allocation2 + $0x1e0] sm:$0xff] %vm504_vm1, %v2426_v59  ;;  %v2427_v47 = vmax.f32 %v2395_v38, %v2363_v41  ;;  %v2949_v4 = vld [vmem:[#allocation2 + $0x230] sm:$0xff]  ;;  %v2886_v38 = vld [vmem:[%s12522_s6 + $0x238] sm:$0xff] }
 0x492   : > { %1704 = vmax.xlane.f32.xlu1 %v12837_v36  ;;  %5724 = vmatprep.subr.bf16.mxu1 %v12727_v7  ;;  %v3676_v37 = vld [vmem:[#allocation2 + $0x1c8] sm:$0xff]  ;;  %v2364_v36 = vadd.f32 %v2332_v44, %v2298_v0  ;;  %v2301_v51 = vpop.xlane.xlu1 %2300 }
 0x493   : > { %1707 = vmax.xlane.f32.xlu0 %v12840_v14  ;;  %v3775_v28 = vpack.c.bf16 %v3676_v37, %v3675_v32  ;;  %2459 = vst.msk [vmem:[#allocation2 + $0x1e8] sm:$0xff] %vm504_vm1, %v2427_v47  ;;  %v2365_v3 = vadd.f32 %v2333_v61, %v2301_v51  ;;  %v2943_v14 = vld [vmem:[#allocation2 + $0x200] sm:$0xff] }
 0x494   : > { %v3677_v39 = vld [vmem:[#allocation2 + $0x1d0] sm:$0xff]  ;;  %v2428_v52 = vmax.f32 %v2396_v58, %v2364_v36  ;;  %v2785_v62 = vpop.xlane.xlu0 %2784  ;;  %v2951_v58 = vld [vmem:[#allocation2 + $0x240] sm:$0xff] }
 0x495   : > { %5725 = vmatpush1.bf16.msra.mxu1 %v3775_v28  ;;  %v2429_v22 = vmax.f32 %v2397_v60, %v2365_v3  ;;  %v2911_v48 = vadd.f32 %v2879_v31, %v2785_v62  ;;  %v2889_v3 = vld [vmem:[%s12522_s6 + $0x250] sm:$0xff] }
 0x496   : > { %1710 = vmax.xlane.f32.xlu1 %v12843_v57  ;;  %5726 = vmatprep.subr.bf16.mxu1 %v12727_v7  ;;  %v3678_v12 = vld [vmem:[#allocation2 + $0x1d8] sm:$0xff]  ;;  %2460 = vst.msk [vmem:[#allocation2 + $0x1f0] sm:$0xff] %vm504_vm1, %v2428_v52  ;;  %v2944_v57 = vld [vmem:[#allocation2 + $0x208] sm:$0xff]  ;;  %v2788_v18 = vpop.xlane.xlu1 %2787 }
 0x497   : > { %1713 = vmax.xlane.f32.xlu0 %v12846_v19  ;;  %v3776_v35 = vpack.c.bf16 %v3678_v12, %v3677_v39  ;;  %2461 = vst.msk [vmem:[#allocation2 + $0x1f8] sm:$0xff] %vm504_vm1, %v2429_v22  ;;  %v2975_v55 = vmax.f32 %v2943_v14, %v2911_v48  ;;  %v2912_v19 = vadd.f32 %v2880_v8, %v2788_v18  ;;  %v2950_v39 = vld [vmem:[#allocation2 + $0x238] sm:$0xff]  ;;  %v2887_v12 = vld [vmem:[%s12522_s6 + $0x240] sm:$0xff]  ;;  %v2952_v52 = vld [vmem:[#allocation2 + $0x248] sm:$0xff] }
 0x498   : > { %3300 = vmatmul.mubr.bf16.gmra.mrb[184].mxu0 %v8798_v45  ;;  %v3679_v63 = vld [vmem:[#allocation2 + $0x1e0] sm:$0xff]  ;;  %v2791_v49 = vpop.xlane.xlu0 %2790  ;;  %v2882_v45 = vld [vmem:[%s12522_s6 + $0x218] sm:$0xff] }
 0x499   : > { %3309 = vmatprep.mubr.bf16.mxu0 %v12727_v7  ;;  %5727 = vmatpush1.bf16.msra.mxu1 %v3776_v35  ;;  %3007 = vst.msk [vmem:[#allocation2 + $0x200] sm:$0xff] %vm504_vm1, %v2975_v55  ;;  %v2976_v15 = vmax.f32 %v2944_v57, %v2912_v19  ;;  %v2913_v11 = vadd.f32 %v2881_v56, %v2791_v49  ;;  %v2953_v57 = vld [vmem:[#allocation2 + $0x250] sm:$0xff]  ;;  %v2890_v18 = vld [vmem:[%s12522_s6 + $0x258] sm:$0xff] }
 0x49a   : > { %1716 = vmax.xlane.f32.xlu1 %v12849_v46  ;;  %5728 = vmatprep.subr.bf16.mxu1 %v12727_v7  ;;  %v3680_v23 = vld [vmem:[#allocation2 + $0x1e8] sm:$0xff]  ;;  %v2794_v24 = vpop.xlane.xlu1 %2793  ;;  %v2946_v46 = vld [vmem:[#allocation2 + $0x218] sm:$0xff]  ;;  %v7711_v55 = vcombine.high %v3828_v16, %v3832_v9 }
 0x49b   : > { %1719 = vmax.xlane.f32.xlu0 %v12852_v33  ;;  %v3777_v26 = vpack.c.bf16 %v3680_v23, %v3679_v63  ;;  %3008 = vst.msk [vmem:[#allocation2 + $0x208] sm:$0xff] %vm504_vm1, %v2976_v15  ;;  %v2977_v10 = vmax.f32 %v2945_v27, %v2913_v11  ;;  %v2914_v20 = vadd.f32 %v2882_v45, %v2794_v24  ;;  %v2948_v33 = vld [vmem:[#allocation2 + $0x228] sm:$0xff]  ;;  %v2955_v45 = vld [vmem:[#allocation2 + $0x260] sm:$0xff] }
 0x49c   : > { %v2797_v2 = vpop.xlane.xlu0 %2796  ;;  %v2892_v11 = vld [vmem:[%s12522_s6 + $0x268] sm:$0xff] }
 0x49d   : > { %5729 = vmatpush1.bf16.msra.mxu1 %v3777_v26  ;;  %3009 = vst.msk [vmem:[#allocation2 + $0x210] sm:$0xff] %vm504_vm1, %v2977_v10  ;;  %v2978_v53 = vmax.f32 %v2946_v46, %v2914_v20  ;;  %v2915_v40 = vadd.f32 %v2883_v25, %v2797_v2  ;;  %v3681_v37 = vld [vmem:[#allocation2 + $0x1f0] sm:$0xff]  ;;  %v2954_v26 = vld [vmem:[#allocation2 + $0x258] sm:$0xff]  ;;  %v2956_v20 = vld [vmem:[#allocation2 + $0x268] sm:$0xff] }
 0x49e   : > { %1722 = vmax.xlane.f32.xlu1 %v12855_v13  ;;  %5730 = vmatprep.subr.bf16.mxu1 %v12727_v7  ;;  %v10608_v13 = vld [vmem:[%s12523_s7 + $0x48] sm:$0xff]  ;;  %v2800_v32 = vpop.xlane.xlu1 %2799  ;;  %v3682_v28 = vld [vmem:[#allocation2 + $0x1f8] sm:$0xff] }
 0x49f   : > { %3010 = vst.msk [vmem:[#allocation2 + $0x218] sm:$0xff] %vm504_vm1, %v2978_v53  ;;  %v2979_v43 = vmax.f32 %v2947_v5, %v2915_v40  ;;  %v2916_v50 = vadd.f32 %v2884_v1, %v2800_v32  ;;  %v7703_v47 = vcombine.high %v10608_v13, %v10613_v21  ;;  %v7702_v56 = vcombine.low %v10608_v13, %v10613_v21  ;;  %v2893_v1 = vld [vmem:[%s12522_s6 + $0x270] sm:$0xff]  ;;  %v3840_v53 = vld [vmem:[%s12523_s7 + $0xe8] sm:$0xff]  ;;  %v2894_v32 = vld [vmem:[%s12522_s6 + $0x278] sm:$0xff] }
 0x4a0   : > { %3310 = vmatmul.mubr.bf16.gmra.mrb[188].mxu0 %v8799_v29  ;;  %v3778_v29 = vpack.c.bf16 %v3682_v28, %v3681_v37  ;;  %v2803_v42 = vpop.xlane.xlu0 %2802  ;;  %v3683_v36 = vld [vmem:[#allocation2 + $0x200] sm:$0xff]  ;;  %v2957_v21 = vld [vmem:[#allocation2 + $0x270] sm:$0xff]  ;;  %v7710_v37 = vcombine.low %v3828_v16, %v3832_v9 }
 0x4a1   : > { %3319 = vmatprep.mubr.bf16.mxu0 %v12727_v7  ;;  %3011 = vst.msk [vmem:[#allocation2 + $0x220] sm:$0xff] %vm504_vm1, %v2979_v43  ;;  %v2980_v59 = vmax.f32 %v2948_v33, %v2916_v50  ;;  %v2917_v41 = vadd.f32 %v2885_v6, %v2803_v42  ;;  %v3836_v33 = vld [vmem:[%s12523_s7 + $0xc8] sm:$0xff]  ;;  %v2895_v42 = vld [vmem:[%s12522_s6 + $0x280] sm:$0xff] }
 0x4a2   : > { %5731 = vmatpush1.bf16.msra.mxu1 %v3778_v29  ;;  %v2806_v44 = vpop.xlane.xlu1 %2805  ;;  %v3684_v51 = vld [vmem:[#allocation2 + $0x208] sm:$0xff]  ;;  %v7719_v43 = vcombine.high %v3836_v33, %v3840_v53  ;;  %v2958_v29 = vld [vmem:[#allocation2 + $0x278] sm:$0xff] }
 0x4a3   : > { %5989 = vmatprep.subr.bf16.mxu1 %v12727_v7  ;;  %3012 = vst.msk [vmem:[#allocation2 + $0x228] sm:$0xff] %vm504_vm1, %v2980_v59  ;;  %v2981_v35 = vmax.f32 %v2949_v4, %v2917_v41  ;;  %v2918_v0 = vadd.f32 %v2886_v38, %v2806_v44  ;;  %v3779_v62 = vpack.c.bf16 %v3684_v51, %v3683_v36  ;;  %v2959_v59 = vld [vmem:[#allocation2 + $0x280] sm:$0xff]  ;;  %v3844_v36 = vld [vmem:[%s12523_s7 + $0x108] sm:$0xff] }
 0x4a4   : > { %v2809_v61 = vpop.xlane.xlu0 %2808  ;;  %v3685_v24 = vld [vmem:[#allocation2 + $0x210] sm:$0xff]  ;;  %v3848_v51 = vld [vmem:[%s12523_s7 + $0x128] sm:$0xff] }
 0x4a5   : > { %5733 = vmatmul.mubr.bf16.vlgmr.msra.gmra.mrb[80].mxu1 %v7694_v54  ;;  %3013 = vst.msk [vmem:[#allocation2 + $0x230] sm:$0xff] %vm504_vm1, %v2981_v35  ;;  %v2982_v60 = vmax.f32 %v2950_v39, %v2918_v0  ;;  %v2919_v31 = vadd.f32 %v2887_v12, %v2809_v61  ;;  %v8803_v54 = vld [vmem:[#allocation3 + $0x1f8] sm:$0xff]   ;;  %v2960_v0 = vld [vmem:[#allocation2 + $0x288] sm:$0xff] }
 0x4a6   : > { %5740 = vmatprep.mubr.bf16.mxu1 %v7703_v47  ;;  %v2812_v14 = vpop.xlane.xlu1 %2811  ;;  %5990 = vmatpush1.bf16.msra.mxu1 %v3779_v62  ;;  %v3686_v46 = vld [vmem:[#allocation2 + $0x218] sm:$0xff]  ;;  %v2896_v47 = vld [vmem:[%s12522_s6 + $0x288] sm:$0xff] }
 0x4a7   : > { %3014 = vst.msk [vmem:[#allocation2 + $0x238] sm:$0xff] %vm504_vm1, %v2982_v60  ;;  %v2983_v8 = vmax.f32 %v2951_v58, %v2919_v31  ;;  %5991 = vmatprep.subr.bf16.mxu1 %v12727_v7  ;;  %v3780_v2 = vpack.c.bf16 %v3686_v46, %v3685_v24  ;;  %v2898_v62 = vld [vmem:[%s12522_s6 + $0x298] sm:$0xff]  ;;  %v3856_v24 = vld [vmem:[%s12523_s7 + $0x168] sm:$0xff] }
 0x4a8   : > { %3320 = vmatmul.mubr.bf16.gmra.mrb[192].mxu0 %v8800_v34  ;;  %v2888_v34 = vld [vmem:[%s12522_s6 + $0x248] sm:$0xff]  ;;  %v2815_v48 = vpop.xlane.xlu0 %2814  ;;  %v3687_v44 = vld [vmem:[#allocation2 + $0x220] sm:$0xff] }
 0x4a9   : > { %3329 = vmatprep.mubr.bf16.mxu0 %v12727_v7  ;;  %v2920_v22 = vadd.f32 %v2888_v34, %v2812_v14  ;;  %3015 = vst.msk [vmem:[#allocation2 + $0x240] sm:$0xff] %vm504_vm1, %v2983_v8  ;;  %v2921_v23 = vadd.f32 %v2889_v3, %v2815_v48  ;;  %v2897_v34 = vld [vmem:[%s12522_s6 + $0x290] sm:$0xff]  ;;  %v7718_v14 = vcombine.low %v3836_v33, %v3840_v53  ;;  %v2899_v48 = vld [vmem:[%s12522_s6 + $0x2a0] sm:$0xff] }
 0x4aa   : > { %v2818_v19 = vpop.xlane.xlu1 %2817  ;;  %5992 = vmatpush1.bf16.msra.mxu1 %v3780_v2  ;;  %v3688_v39 = vld [vmem:[#allocation2 + $0x228] sm:$0xff]  ;;  %v2961_v3 = vld [vmem:[#allocation2 + $0x290] sm:$0xff]  ;;  %v2902_v2 = vld [vmem:[%s12522_s6 + $0x2b8] sm:$0xff] }
 0x4ab   : > { %v2984_v63 = vmax.f32 %v2952_v52, %v2920_v22  ;;  %v2985_v49 = vmax.f32 %v2953_v57, %v2921_v23  ;;  %v2922_v27 = vadd.f32 %v2890_v18, %v2818_v19  ;;  %5993 = vmatprep.subr.bf16.mxu1 %v12727_v7  ;;  %v3781_v58 = vpack.c.bf16 %v3688_v39, %v3687_v44  ;;  %v2962_v22 = vld [vmem:[#allocation2 + $0x298] sm:$0xff]  ;;  %v2900_v23 = vld [vmem:[%s12522_s6 + $0x2a8] sm:$0xff] }
 0x4ac   : > { %v2821_v15 = vpop.xlane.xlu0 %2820  ;;  %v3864_v44 = vld [vmem:[%s12523_s7 + $0x1a8] sm:$0xff] }
 0x4ad   : > { %3016 = vst.msk [vmem:[#allocation2 + $0x248] sm:$0xff] %vm504_vm1, %v2984_v63  ;;  %5741 = vmatmul.mubr.bf16.gmra.mrb[84].mxu1 %v7702_v56  ;;  %3017 = vst.msk [vmem:[#allocation2 + $0x250] sm:$0xff] %vm504_vm1, %v2985_v49  ;;  %v2986_v25 = vmax.f32 %v2954_v26, %v2922_v27  ;;  %v2963_v56 = vld [vmem:[#allocation2 + $0x2a0] sm:$0xff]  ;;  %v2964_v49 = vld [vmem:[#allocation2 + $0x2a8] sm:$0xff] }
 0x4ae   : > { %5748 = vmatprep.mubr.bf16.mxu1 %v7711_v55  ;;  %v2824_v5 = vpop.xlane.xlu1 %2823  ;;  %5994 = vmatpush1.bf16.msra.mxu1 %v3781_v58  ;;  %v3689_v55 = vld [vmem:[#allocation2 + $0x230] sm:$0xff]  ;;  %v3690_v19 = vld [vmem:[#allocation2 + $0x238] sm:$0xff] }
 0x4af   : > { %3018 = vst.msk [vmem:[#allocation2 + $0x258] sm:$0xff] %vm504_vm1, %v2986_v25  ;;  %v2924_v6 = vadd.f32 %v2892_v11, %v2824_v5  ;;  %5995 = vmatprep.subr.bf16.mxu1 %v12727_v7  ;;  %v3782_v27 = vpack.c.bf16 %v3690_v19, %v3689_v55  ;;  %v3852_v11 = vld [vmem:[%s12523_s7 + $0x148] sm:$0xff]  ;;  %v7726_v5 = vcombine.low %v3844_v36, %v3848_v51  ;;  %v2906_v58 = vld [vmem:[%s12522_s6 + $0x2d8] sm:$0xff] }
 0x4b0   : > { %3330 = vmatmul.mubr.bf16.gmra.mrb[196].mxu0 %v8801_v30  ;;  %v2891_v30 = vld [vmem:[%s12522_s6 + $0x260] sm:$0xff]  ;;  %v2827_v13 = vpop.xlane.xlu0 %2826  ;;  %v7735_v53 = vcombine.high %v3852_v11, %v3856_v24  ;;  %v3872_v55 = vld [vmem:[%s12523_s7 + $0x1e8] sm:$0xff] }
 0x4b1   : > { %3339 = vmatprep.mubr.bf16.mxu0 %v12727_v7  ;;  %v2923_v10 = vadd.f32 %v2891_v30, %v2821_v15  ;;  %v2988_v28 = vmax.f32 %v2956_v20, %v2924_v6  ;;  %v2901_v15 = vld [vmem:[%s12522_s6 + $0x2b0] sm:$0xff]  ;;  %v2966_v6 = vld [vmem:[#allocation2 + $0x2b8] sm:$0xff] }
 0x4b2   : > { %v2830_v50 = vpop.xlane.xlu1 %2829  ;;  %5996 = vmatpush1.bf16.msra.mxu1 %v3782_v27  ;;  %v2965_v20 = vld [vmem:[#allocation2 + $0x2b0] sm:$0xff]  ;;  %v2910_v27 = vld [vmem:[%s12522_s6 + $0x2f8] sm:$0xff] }
 0x4b3   : > { %v2987_v40 = vmax.f32 %v2955_v45, %v2923_v10  ;;  %3020 = vst.msk [vmem:[#allocation2 + $0x268] sm:$0xff] %vm504_vm1, %v2988_v28  ;;  %v2926_v38 = vadd.f32 %v2894_v32, %v2830_v50  ;;  %5997 = vmatprep.subr.bf16.mxu1 %v12727_v7 }
 0x4b4   : > { %v2833_v41 = vpop.xlane.xlu0 %2832  ;;  %v3692_v50 = vld [vmem:[#allocation2 + $0x248] sm:$0xff] }
 0x4b5   : > { %3019 = vst.msk [vmem:[#allocation2 + $0x260] sm:$0xff] %vm504_vm1, %v2987_v40  ;;  %5749 = vmatmul.mubr.bf16.gmra.mrb[88].mxu1 %v7710_v37  ;;  %v2990_v12 = vmax.f32 %v2958_v29, %v2926_v38  ;;  %v2927_v35 = vadd.f32 %v2895_v42, %v2833_v41  ;;  %v2967_v37 = vld [vmem:[#allocation2 + $0x2c0] sm:$0xff]  ;;  %v2905_v41 = vld [vmem:[%s12522_s6 + $0x2d0] sm:$0xff] }
 0x4b6   : > { %5756 = vmatprep.mubr.bf16.mxu1 %v7719_v43  ;;  %v2836_v61 = vpop.xlane.xlu1 %2835  ;;  %v3691_v43 = vld [vmem:[#allocation2 + $0x240] sm:$0xff] }
 0x4b7   : > { %3022 = vst.msk [vmem:[#allocation2 + $0x278] sm:$0xff] %vm504_vm1, %v2990_v12  ;;  %v2991_v60 = vmax.f32 %v2959_v59, %v2927_v35  ;;  %v2928_v31 = vadd.f32 %v2896_v47, %v2836_v61  ;;  %v3783_v38 = vpack.c.bf16 %v3692_v50, %v3691_v43  ;;  %v3860_v47 = vld [vmem:[%s12523_s7 + $0x188] sm:$0xff]  ;;  %v7734_v61 = vcombine.low %v3852_v11, %v3856_v24 }
 0x4b8   : > { %3340 = vmatmul.mubr.bf16.gmra.mrb[200].mxu0 %v8802_v17  ;;  %v2925_v17 = vadd.f32 %v2893_v1, %v2827_v13  ;;  %v2839_v52 = vpop.xlane.xlu0 %2838  ;;  %v2903_v13 = vld [vmem:[%s12522_s6 + $0x2c0] sm:$0xff]  ;;  %v3880_v43 = vld [vmem:[%s12523_s7 + $0x228] sm:$0xff] }
 0x4b9   : > { %3349 = vmatprep.mubr.bf16.mxu0 %v12727_v7  ;;  %3023 = vst.msk [vmem:[#allocation2 + $0x280] sm:$0xff] %vm504_vm1, %v2991_v60  ;;  %v2992_v16 = vmax.f32 %v2960_v0, %v2928_v31  ;;  %v2929_v9 = vadd.f32 %v2897_v34, %v2839_v52  ;;  %5998 = vmatpush1.bf16.msra.mxu1 %v3783_v38  ;;  %v2969_v0 = vld [vmem:[#allocation2 + $0x2d0] sm:$0xff]  ;;  %v2970_v31 = vld [vmem:[#allocation2 + $0x2d8] sm:$0xff]  ;;  %v2907_v52 = vld [vmem:[%s12522_s6 + $0x2e0] sm:$0xff] }
 0x4ba   : > { %v2989_v4 = vmax.f32 %v2957_v21, %v2925_v17  ;;  %v2842_v8 = vpop.xlane.xlu1 %2841  ;;  %v2904_v17 = vld [vmem:[%s12522_s6 + $0x2c8] sm:$0xff]  ;;  %5999 = vmatprep.subr.bf16.mxu1 %v12727_v7  ;;  %v1727_v38 = vld [vmem:[%s12522_s6 + $0x18] sm:$0xff] }
 0x4bb   : > { %3024 = vst.msk [vmem:[#allocation2 + $0x288] sm:$0xff] %vm504_vm1, %v2992_v16  ;;  %v2993_v57 = vmax.f32 %v2961_v3, %v2929_v9  ;;  %v2930_v18 = vadd.f32 %v2898_v62, %v2842_v8  ;;  %v2908_v9 = vld [vmem:[%s12522_s6 + $0x2e8] sm:$0xff]  ;;  %v3694_v8 = vld [vmem:[#allocation2 + $0x258] sm:$0xff] }
 0x4bc   : > { %3021 = vst.msk [vmem:[#allocation2 + $0x270] sm:$0xff] %vm504_vm1, %v2989_v4  ;;  %v2845_v63 = vpop.xlane.xlu0 %2844  ;;  %v2968_v4 = vld [vmem:[#allocation2 + $0x2c8] sm:$0xff] }
 0x4bd   : > { %5757 = vmatmul.mubr.bf16.gmra.mrb[92].mxu1 %v7718_v14  ;;  %3025 = vst.msk [vmem:[#allocation2 + $0x290] sm:$0xff] %vm504_vm1, %v2993_v57  ;;  %v2994_v26 = vmax.f32 %v2962_v22, %v2930_v18  ;;  %v2931_v30 = vadd.f32 %v2899_v48, %v2845_v63  ;;  %v2971_v14 = vld [vmem:[#allocation2 + $0x2e0] sm:$0xff]  ;;  %v2972_v57 = vld [vmem:[#allocation2 + $0x2e8] sm:$0xff]  ;;  %v2909_v63 = vld [vmem:[%s12522_s6 + $0x2f0] sm:$0xff] }
 0x4be   : > { %v2848_v45 = vpop.xlane.xlu1 %2847 }
 0x4bf   : > { %3026 = vst.msk [vmem:[#allocation2 + $0x298] sm:$0xff] %vm504_vm1, %v2994_v26  ;;  %v2995_v46 = vmax.f32 %v2963_v56, %v2931_v30  ;;  %v2932_v25 = vadd.f32 %v2900_v23, %v2848_v45  ;;  %v3868_v23 = vld [vmem:[%s12523_s7 + $0x1c8] sm:$0xff]  ;;  %v7742_v45 = vcombine.low %v3860_v47, %v3864_v44 }
 0x4c0   : > { %3350 = vmatmul.mubr.bf16.gmra.mrb[204].mxu0 %v8803_v54  ;;  %v7727_v54 = vcombine.high %v3844_v36, %v3848_v51  ;;  %v2851_v10 = vpop.xlane.xlu0 %2850  ;;  %v7743_v51 = vcombine.high %v3860_v47, %v3864_v44  ;;  %v7751_v24 = vcombine.high %v3868_v23, %v3872_v55 }
 0x4c1   : > { %3027 = vst.msk [vmem:[#allocation2 + $0x2a0] sm:$0xff] %vm504_vm1, %v2995_v46  ;;  %v2996_v1 = vmax.f32 %v2964_v49, %v2932_v25  ;;  %v2933_v33 = vadd.f32 %v2901_v15, %v2851_v10  ;;  %v2973_v49 = vld [vmem:[#allocation2 + $0x2f0] sm:$0xff]  ;;  %v2974_v25 = vld [vmem:[#allocation2 + $0x2f8] sm:$0xff]  ;;  %v1724_v10 = vld [vmem:[%s12522_s6] sm:$0xff] }
 0x4c2   : > { %5764 = vmatprep.mubr.bf16.mxu1 %v7727_v54  ;;  %v2854_v40 = vpop.xlane.xlu1 %2853  ;;  %v3693_v54 = vld [vmem:[#allocation2 + $0x250] sm:$0xff] }
 0x4c3   : > { %3028 = vst.msk [vmem:[#allocation2 + $0x2a8] sm:$0xff] %vm504_vm1, %v2996_v1  ;;  %v2997_v21 = vmax.f32 %v2965_v20, %v2933_v33  ;;  %v2934_v32 = vadd.f32 %v2902_v2, %v2854_v40  ;;  %v3784_v18 = vpack.c.bf16 %v3694_v8, %v3693_v54  ;;  %v1725_v33 = vld [vmem:[%s12522_s6 + $0x8] sm:$0xff] }
 0x4c4   : > { %v2857_v28 = vpop.xlane.xlu0 %2856  ;;  %v3696_v40 = vld [vmem:[#allocation2 + $0x268] sm:$0xff] }
 0x4c5   : > { %5765 = vmatmul.mubr.bf16.gmra.mrb[96].mxu1 %v7726_v5  ;;  %3029 = vst.msk [vmem:[#allocation2 + $0x2b0] sm:$0xff] %vm504_vm1, %v2997_v21  ;;  %v2998_v29 = vmax.f32 %v2966_v6, %v2934_v32  ;;  %v2935_v42 = vadd.f32 %v2903_v13, %v2857_v28  ;;  %v1788_v5 = vld [vmem:[#allocation2] sm:$0xff]  ;;  %v1789_v21 = vld [vmem:[#allocation2 + $0x8] sm:$0xff]  ;;  %v1726_v28 = vld [vmem:[%s12522_s6 + $0x10] sm:$0xff] }
 0x4c6   : > { %5772 = vmatprep.mubr.bf16.mxu1 %v7735_v53  ;;  %v2860_v59 = vpop.xlane.xlu1 %2859  ;;  %6000 = vmatpush1.bf16.msra.mxu1 %v3784_v18  ;;  %v3695_v53 = vld [vmem:[#allocation2 + $0x260] sm:$0xff]  ;;  %v10809_v54 = vld [vmem:[%s12523_s7 + $0x268] sm:$0xff]  ;;  %v1731_v18 = vld [vmem:[%s12522_s6 + $0x38] sm:$0xff] }
 0x4c7   : > { %3030 = vst.msk [vmem:[#allocation2 + $0x2b8] sm:$0xff] %vm504_vm1, %v2998_v29  ;;  %v2999_v39 = vmax.f32 %v2967_v37, %v2935_v42  ;;  %v2936_v12 = vadd.f32 %v2904_v17, %v2860_v59  ;;  %6001 = vmatprep.subr.bf16.mxu1 %v12727_v7  ;;  %v3785_v32 = vpack.c.bf16 %v3696_v40, %v3695_v53  ;;  %v3876_v17 = vld [vmem:[%s12523_s7 + $0x208] sm:$0xff] }
 0x4c8   : > { %v2863_v35 = vpop.xlane.xlu0 %2862  ;;  %v7750_v59 = vcombine.low %v3868_v23, %v3872_v55  ;;  %v7759_v44 = vcombine.high %v3876_v17, %v3880_v43  ;;  %v1795_v55 = vld [vmem:[#allocation2 + $0x38] sm:$0xff]  ;;  %v10833_v53 = vld [vmem:[%s12523_s7 + $0x288] sm:$0xff] }
 0x4c9   : > { %3031 = vst.msk [vmem:[#allocation2 + $0x2c0] sm:$0xff] %vm504_vm1, %v2999_v39  ;;  %v3000_v34 = vmax.f32 %v2968_v4, %v2936_v12  ;;  %v2937_v36 = vadd.f32 %v2905_v41, %v2863_v35  ;;  %v1790_v4 = vld [vmem:[#allocation2 + $0x10] sm:$0xff]  ;;  %v1791_v12 = vld [vmem:[#allocation2 + $0x18] sm:$0xff]  ;;  %v1728_v35 = vld [vmem:[%s12522_s6 + $0x20] sm:$0xff] }
 0x4ca   : > { %6002 = vmatpush1.bf16.msra.mxu1 %v3785_v32  ;;  %v10839_v32 = vld [vmem:[%s12523_s7 + $0x2a8] sm:$0xff] }
 0x4cb   : > { %3032 = vst.msk [vmem:[#allocation2 + $0x2c8] sm:$0xff] %vm504_vm1, %v3000_v34  ;;  %v3001_v3 = vmax.f32 %v2969_v0, %v2937_v36  ;;  %6003 = vmatprep.subr.bf16.mxu1 %v12727_v7  ;;  %v1729_v36 = vld [vmem:[%s12522_s6 + $0x28] sm:$0xff] }
 0x4cd   : > { %5773 = vmatmul.mubr.bf16.gmra.mrb[100].mxu1 %v7734_v61  ;;  %3033 = vst.msk [vmem:[#allocation2 + $0x2d0] sm:$0xff] %vm504_vm1, %v3001_v3  ;;  %v1792_v61 = vld [vmem:[#allocation2 + $0x20] sm:$0xff]  ;;  %v1793_v3 = vld [vmem:[#allocation2 + $0x28] sm:$0xff] }
 0x4ce   : > { %5780 = vmatprep.mubr.bf16.mxu1 %v7743_v51  ;;  %v3697_v51 = vld [vmem:[#allocation2 + $0x270] sm:$0xff] }
 0x4d5   : > { %5781 = vmatmul.mubr.bf16.gmra.mrb[104].mxu1 %v7742_v45 }
 0x4d6   : > { %5788 = vmatprep.mubr.bf16.mxu1 %v7751_v24 }
 0x4dd   : > { %5789 = vmatmul.mubr.bf16.gmra.mrb[108].mxu1 %v7750_v59  ;;  %v1799_v59 = vld [vmem:[#allocation2 + $0x58] sm:$0xff] }
 0x4de   : > { %5796 = vmatprep.mubr.bf16.mxu1 %v7759_v44  ;;  %v1736_v44 = vld [vmem:[%s12522_s6 + $0x60] sm:$0xff] }
 0x4e2   : > { %v2866_v60 = vpop.xlane.xlu1 %2865 }
 0x4e3   : > { %v2938_v62 = vadd.f32 %v2906_v58, %v2866_v60  ;;  %v3698_v60 = vld [vmem:[#allocation2 + $0x278] sm:$0xff] }
 0x4e4   : > { %v2869_v16 = vpop.xlane.xlu0 %2868 }
 0x4e5   : > { %v3002_v22 = vmax.f32 %v2970_v31, %v2938_v62  ;;  %v2939_v48 = vadd.f32 %v2907_v52, %v2869_v16  ;;  %v3786_v62 = vpack.c.bf16 %v3698_v60, %v3697_v51  ;;  %v1730_v16 = vld [vmem:[%s12522_s6 + $0x30] sm:$0xff]  ;;  %v3702_v60 = vld [vmem:[#allocation2 + $0x298] sm:$0xff] }
 0x4e6   : > { %v2872_v56 = vpop.xlane.xlu1 %2871  ;;  %v3701_v51 = vld [vmem:[#allocation2 + $0x290] sm:$0xff] }
 0x4e7   : > { %3034 = vst.msk [vmem:[#allocation2 + $0x2d8] sm:$0xff] %vm504_vm1, %v3002_v22  ;;  %v3003_v19 = vmax.f32 %v2971_v14, %v2939_v48  ;;  %v2940_v26 = vadd.f32 %v2908_v9, %v2872_v56  ;;  %v10804_v9 = vld [vmem:[%s12523_s7 + $0x248] sm:$0xff]  ;;  %6004 = vmatpush1.bf16.msra.mxu1 %v3786_v62  ;;  %v7758_v56 = vcombine.low %v3876_v17, %v3880_v43  ;;  %v1738_v62 = vld [vmem:[%s12522_s6 + $0x70] sm:$0xff] }
 0x4e8   : > { %v2875_v30 = vpop.xlane.xlu0 %2874  ;;  %6005 = vmatprep.subr.bf16.mxu1 %v12727_v7 }
 0x4e9   : > { %3035 = vst.msk [vmem:[#allocation2 + $0x2e0] sm:$0xff] %vm504_vm1, %v3003_v19  ;;  %v3004_v15 = vmax.f32 %v2972_v57, %v2940_v26  ;;  %v2941_v11 = vadd.f32 %v2909_v63, %v2875_v30  ;;  %v1794_v57 = vld [vmem:[#allocation2 + $0x30] sm:$0xff]  ;;  %v7767_v19 = vcombine.high %v10804_v9, %v10809_v54  ;;  %v1732_v30 = vld [vmem:[%s12522_s6 + $0x40] sm:$0xff]  ;;  %5797 = vmatmul.mubr.bf16.gmra.mrb[112].mxu1 %v7758_v56 }
 0x4ea   : > { %v2878_v46 = vpop.xlane.xlu1 %2877 }
 0x4eb   : > { %3036 = vst.msk [vmem:[#allocation2 + $0x2e8] sm:$0xff] %vm504_vm1, %v3004_v15  ;;  %v3005_v20 = vmax.f32 %v2973_v49, %v2941_v11  ;;  %v2942_v2 = vadd.f32 %v2910_v27, %v2878_v46  ;;  %v1796_v11 = vld [vmem:[#allocation2 + $0x40] sm:$0xff]  ;;  %5804 = vmatprep.mubr.bf16.mxu1 %v7767_v19 }
 0x4ec   : > { %v1630_v1 = vpop.xlane.xlu0 %1629 }
 0x4ed   : > { %3037 = vst.msk [vmem:[#allocation2 + $0x2f0] sm:$0xff] %vm504_vm1, %v3005_v20  ;;  %v3006_v6 = vmax.f32 %v2974_v25, %v2942_v2  ;;  %v1756_v13 = vadd.f32 %v1724_v10, %v1630_v1  ;;  %v1733_v25 = vld [vmem:[%s12522_s6 + $0x48] sm:$0xff]  ;;  %v3699_v10 = vld [vmem:[#allocation2 + $0x280] sm:$0xff] }
 0x4ee   : > { %v3700_v20 = vld [vmem:[#allocation2 + $0x288] sm:$0xff] }
 0x4ef   : > { %v1633_v37 = vpop.xlane.xlu1 %1632  ;;  %3038 = vst.msk [vmem:[#allocation2 + $0x2f8] sm:$0xff] %vm504_vm1, %v3006_v6  ;;  %v1820_v50 = vmax.f32 %v1788_v5, %v1756_v13  ;;  %v1797_v1 = vld [vmem:[#allocation2 + $0x48] sm:$0xff]  ;;  %v3787_v40 = vpack.c.bf16 %v3700_v20, %v3699_v10 }
 0x4f0   : > { %v1757_v29 = vadd.f32 %v1725_v33, %v1633_v37  ;;  %v1636_v42 = vpop.xlane.xlu0 %1635  ;;  %v1734_v33 = vld [vmem:[%s12522_s6 + $0x50] sm:$0xff] }
 0x4f1   : > { %1853 = vst.msk [vmem:[#allocation2] sm:$0xff] %vm504_vm1, %v1820_v50  ;;  %v1758_v47 = vadd.f32 %v1726_v28, %v1636_v42  ;;  %6006 = vmatpush1.bf16.msra.mxu1 %v3787_v40  ;;  %v1798_v50 = vld [vmem:[#allocation2 + $0x50] sm:$0xff]  ;;  %v7766_v42 = vcombine.low %v10804_v9, %v10809_v54  ;;  %v1805_v40 = vld [vmem:[#allocation2 + $0x88] sm:$0xff] }
 0x4f2   : > { %v1821_v41 = vmax.f32 %v1789_v21, %v1757_v29  ;;  %v1735_v29 = vld [vmem:[%s12522_s6 + $0x58] sm:$0xff]  ;;  %6007 = vmatprep.subr.bf16.mxu1 %v12727_v7 }
 0x4f3   : > { %v1639_v39 = vpop.xlane.xlu1 %1638  ;;  %v1822_v0 = vmax.f32 %v1790_v4, %v1758_v47  ;;  %5805 = vmatmul.mubr.bf16.gmra.mrb[116].mxu1 %v7766_v42 }
 0x4f4   : > { %1854 = vst.msk [vmem:[#allocation2 + $0x8] sm:$0xff] %vm504_vm1, %v1821_v41  ;;  %v1759_v58 = vadd.f32 %v1727_v38, %v1639_v39  ;;  %v1642_v34 = vpop.xlane.xlu0 %1641  ;;  %v7775_v41 = vcombine.high %v10833_v53, %v10839_v32 }
 0x4f5   : > { %1855 = vst.msk [vmem:[#allocation2 + $0x10] sm:$0xff] %vm504_vm1, %v1822_v0  ;;  %v1760_v52 = vadd.f32 %v1728_v35, %v1642_v34 }
 0x4f6   : > { %v1823_v31 = vmax.f32 %v1791_v12, %v1759_v58  ;;  %v1800_v58 = vld [vmem:[#allocation2 + $0x60] sm:$0xff]  ;;  %5812 = vmatprep.mubr.bf16.mxu1 %v7775_v41 }
 0x4f7   : > { %v1645_v14 = vpop.xlane.xlu1 %1644  ;;  %v1824_v8 = vmax.f32 %v1792_v61, %v1760_v52 }
 0x4f8   : > { %1856 = vst.msk [vmem:[#allocation2 + $0x18] sm:$0xff] %vm504_vm1, %v1823_v31  ;;  %v1761_v22 = vadd.f32 %v1729_v36, %v1645_v14  ;;  %v1648_v48 = vpop.xlane.xlu0 %1647  ;;  %v3619_v49 = vld [vmem:[#allocation2] sm:$0xff]  ;;  %v1737_v36 = vld [vmem:[%s12522_s6 + $0x68] sm:$0xff] }
 0x4f9   : > { %1857 = vst.msk [vmem:[#allocation2 + $0x20] sm:$0xff] %vm504_vm1, %v1824_v8  ;;  %v1762_v23 = vadd.f32 %v1730_v16, %v1648_v48  ;;  %v10866_v14 = vld [vmem:[%s12523_s7 + $0x2c8] sm:$0xff]  ;;  %v3788_v16 = vpack.c.bf16 %v3702_v60, %v3701_v51 }
 0x4fa   : > { %v1825_v63 = vmax.f32 %v1793_v3, %v1761_v22  ;;  %v1801_v3 = vld [vmem:[#allocation2 + $0x68] sm:$0xff] }
 0x4fb   : > { %v1651_v26 = vpop.xlane.xlu1 %1650  ;;  %v3620_v27 = vld [vmem:[#allocation2 + $0x8] sm:$0xff]  ;;  %v1826_v45 = vmax.f32 %v1794_v57, %v1762_v23  ;;  %6008 = vmatpush1.bf16.msra.mxu1 %v3788_v16  ;;  %v1739_v23 = vld [vmem:[%s12522_s6 + $0x78] sm:$0xff] }
 0x4fc   : > { %1858 = vst.msk [vmem:[#allocation2 + $0x28] sm:$0xff] %vm504_vm1, %v1825_v63  ;;  %v1763_v15 = vadd.f32 %v1731_v18, %v1651_v26  ;;  %v3747_v24 = vpack.c.bf16 %v3620_v27, %v3619_v49  ;;  %v1654_v46 = vpop.xlane.xlu0 %1653  ;;  %v3621_v13 = vld [vmem:[#allocation2 + $0x10] sm:$0xff]  ;;  %v10872_v22 = vld [vmem:[%s12523_s7 + $0x2e8] sm:$0xff]  ;;  %6009 = vmatprep.subr.bf16.mxu1 %v12727_v7 }
 0x4fd   : > { %1859 = vst.msk [vmem:[#allocation2 + $0x30] sm:$0xff] %vm504_vm1, %v1826_v45  ;;  %v1764_v5 = vadd.f32 %v1732_v30, %v1654_v46  ;;  %v1802_v63 = vld [vmem:[#allocation2 + $0x70] sm:$0xff]  ;;  %v1803_v30 = vld [vmem:[#allocation2 + $0x78] sm:$0xff]  ;;  %v7783_v49 = vcombine.high %v10866_v14, %v10872_v22  ;;  %v1740_v45 = vld [vmem:[%s12522_s6 + $0x80] sm:$0xff] }
 0x4fe   : > { %v1827_v2 = vmax.f32 %v1795_v55, %v1763_v15  ;;  %5412 = vmatpush1.bf16.msra.mxu0 %v3747_v24  ;;  %v7774_v55 = vcombine.low %v10833_v53, %v10839_v32  ;;  %v1809_v16 = vld [vmem:[#allocation2 + $0xa8] sm:$0xff] }
 0x4ff   : > { %v1657_v6 = vpop.xlane.xlu1 %1656  ;;  %5413 = vmatprep.subr.bf16.mxu0 %v12727_v7  ;;  %v3622_v21 = vld [vmem:[#allocation2 + $0x18] sm:$0xff]  ;;  %v1828_v37 = vmax.f32 %v1796_v11, %v1764_v5  ;;  %v3703_v5 = vld [vmem:[#allocation2 + $0x2a0] sm:$0xff] }
 0x500   : > { %1860 = vst.msk [vmem:[#allocation2 + $0x38] sm:$0xff] %vm504_vm1, %v1827_v2  ;;  %v1765_v28 = vadd.f32 %v1733_v25, %v1657_v6  ;;  %v3748_v17 = vpack.c.bf16 %v3622_v21, %v3621_v13  ;;  %v1660_v43 = vpop.xlane.xlu0 %1659  ;;  %v3623_v39 = vld [vmem:[#allocation2 + $0x20] sm:$0xff]  ;;  %5813 = vmatmul.mubr.bf16.gmra.mrb[120].mxu1 %v7774_v55  ;;  %v1741_v2 = vld [vmem:[%s12522_s6 + $0x88] sm:$0xff]  ;;  %v1742_v6 = vld [vmem:[%s12522_s6 + $0x90] sm:$0xff] }
 0x501   : > { %1861 = vst.msk [vmem:[#allocation2 + $0x40] sm:$0xff] %vm504_vm1, %v1828_v37  ;;  %v1766_v38 = vadd.f32 %v1734_v33, %v1660_v43  ;;  %v1804_v25 = vld [vmem:[#allocation2 + $0x80] sm:$0xff]  ;;  %5820 = vmatprep.mubr.bf16.mxu1 %v7783_v49  ;;  %v10899_v13 = vld [vmem:[%s12523_s7 + $0x308] sm:$0xff] }
 0x502   : > { %v1829_v4 = vmax.f32 %v1797_v1, %v1765_v28  ;;  %5414 = vmatpush1.bf16.msra.mxu0 %v3748_v17  ;;  %v3704_v1 = vld [vmem:[#allocation2 + $0x2a8] sm:$0xff] }
 0x503   : > { %v1663_v47 = vpop.xlane.xlu1 %1662  ;;  %5415 = vmatprep.subr.bf16.mxu0 %v12727_v7  ;;  %v3624_v12 = vld [vmem:[#allocation2 + $0x28] sm:$0xff]  ;;  %v1830_v35 = vmax.f32 %v1798_v50, %v1766_v38  ;;  %v3789_v21 = vpack.c.bf16 %v3704_v1, %v3703_v5  ;;  %v1743_v38 = vld [vmem:[%s12522_s6 + $0x98] sm:$0xff] }
 0x504   : > { %1862 = vst.msk [vmem:[#allocation2 + $0x48] sm:$0xff] %vm504_vm1, %v1829_v4  ;;  %v1767_v0 = vadd.f32 %v1735_v29, %v1663_v47  ;;  %v3749_v61 = vpack.c.bf16 %v3624_v12, %v3623_v39  ;;  %v1666_v34 = vpop.xlane.xlu0 %1665  ;;  %v3625_v54 = vld [vmem:[#allocation2 + $0x30] sm:$0xff]  ;;  %v10905_v17 = vld [vmem:[%s12523_s7 + $0x328] sm:$0xff] }
 0x505   : > { %1863 = vst.msk [vmem:[#allocation2 + $0x50] sm:$0xff] %vm504_vm1, %v1830_v35  ;;  %v1768_v52 = vadd.f32 %v1736_v44, %v1666_v34  ;;  %6010 = vmatpush1.bf16.msra.mxu1 %v3789_v21  ;;  %v1806_v4 = vld [vmem:[#allocation2 + $0x90] sm:$0xff]  ;;  %v1807_v44 = vld [vmem:[#allocation2 + $0x98] sm:$0xff]  ;;  %v7791_v39 = vcombine.high %v10899_v13, %v10905_v17  ;;  %v1744_v35 = vld [vmem:[%s12522_s6 + $0xa0] sm:$0xff] }
 0x506   : > { %v1831_v31 = vmax.f32 %v1799_v59, %v1767_v0  ;;  %5416 = vmatpush1.bf16.msra.mxu0 %v3749_v61  ;;  %v7782_v59 = vcombine.low %v10866_v14, %v10872_v22  ;;  %6011 = vmatprep.subr.bf16.mxu1 %v12727_v7  ;;  %v1813_v21 = vld [vmem:[#allocation2 + $0xc8] sm:$0xff] }
 0x507   : > { %v1669_v9 = vpop.xlane.xlu1 %1668  ;;  %5417 = vmatprep.subr.bf16.mxu0 %v12727_v7  ;;  %v3626_v8 = vld [vmem:[#allocation2 + $0x38] sm:$0xff]  ;;  %v1832_v48 = vmax.f32 %v1800_v58, %v1768_v52  ;;  %v3705_v52 = vld [vmem:[#allocation2 + $0x2b0] sm:$0xff] }
 0x508   : > { %1864 = vst.msk [vmem:[#allocation2 + $0x58] sm:$0xff] %vm504_vm1, %v1831_v31  ;;  %v1769_v57 = vadd.f32 %v1737_v36, %v1669_v9  ;;  %v3750_v18 = vpack.c.bf16 %v3626_v8, %v3625_v54  ;;  %v1672_v56 = vpop.xlane.xlu0 %1671  ;;  %v3627_v15 = vld [vmem:[#allocation2 + $0x40] sm:$0xff]  ;;  %5821 = vmatmul.mubr.bf16.gmra.mrb[124].mxu1 %v7782_v59  ;;  %v1745_v31 = vld [vmem:[%s12522_s6 + $0xa8] sm:$0xff]  ;;  %v1746_v9 = vld [vmem:[%s12522_s6 + $0xb0] sm:$0xff] }
 0x509   : > { %1865 = vst.msk [vmem:[#allocation2 + $0x60] sm:$0xff] %vm504_vm1, %v1832_v48  ;;  %v1770_v26 = vadd.f32 %v1738_v62, %v1672_v56  ;;  %v1808_v36 = vld [vmem:[#allocation2 + $0xa0] sm:$0xff]  ;;  %5828 = vmatprep.mubr.bf16.mxu1 %v7791_v39  ;;  %v10932_v54 = vld [vmem:[%s12523_s7 + $0x348] sm:$0xff] }
 0x50a   : > { %v1833_v19 = vmax.f32 %v1801_v3, %v1769_v57  ;;  %5418 = vmatpush1.bf16.msra.mxu0 %v3750_v18  ;;  %v3706_v3 = vld [vmem:[#allocation2 + $0x2b8] sm:$0xff]  ;;  %v10938_v18 = vld [vmem:[%s12523_s7 + $0x368] sm:$0xff] }
 0x50b   : > { %v1675_v27 = vpop.xlane.xlu1 %1674  ;;  %5419 = vmatprep.subr.bf16.mxu0 %v12727_v7  ;;  %v3628_v11 = vld [vmem:[#allocation2 + $0x48] sm:$0xff]  ;;  %v1834_v24 = vmax.f32 %v1802_v63, %v1770_v26  ;;  %v3790_v8 = vpack.c.bf16 %v3706_v3, %v3705_v52  ;;  %v1747_v26 = vld [vmem:[%s12522_s6 + $0xb8] sm:$0xff]  ;;  %v1752_v52 = vld [vmem:[%s12522_s6 + $0xe0] sm:$0xff] }
 0x50c   : > { %1866 = vst.msk [vmem:[#allocation2 + $0x68] sm:$0xff] %vm504_vm1, %v1833_v19  ;;  %v1771_v46 = vadd.f32 %v1739_v23, %v1675_v27  ;;  %v3751_v10 = vpack.c.bf16 %v3628_v11, %v3627_v15  ;;  %v1678_v20 = vpop.xlane.xlu0 %1677  ;;  %v3629_v37 = vld [vmem:[#allocation2 + $0x50] sm:$0xff]  ;;  %v7799_v15 = vcombine.high %v10932_v54, %v10938_v18 }
 0x50d   : > { %1867 = vst.msk [vmem:[#allocation2 + $0x70] sm:$0xff] %vm504_vm1, %v1834_v24  ;;  %v1772_v53 = vadd.f32 %v1740_v45, %v1678_v20  ;;  %6012 = vmatpush1.bf16.msra.mxu1 %v3790_v8  ;;  %v1810_v19 = vld [vmem:[#allocation2 + $0xb0] sm:$0xff]  ;;  %v1811_v45 = vld [vmem:[#allocation2 + $0xb8] sm:$0xff]  ;;  %v1748_v24 = vld [vmem:[%s12522_s6 + $0xc0] sm:$0xff] }
 0x50e   : > { %v1835_v33 = vmax.f32 %v1803_v30, %v1771_v46  ;;  %5420 = vmatpush1.bf16.msra.mxu0 %v3751_v10  ;;  %v7790_v30 = vcombine.low %v10899_v13, %v10905_v17  ;;  %6013 = vmatprep.subr.bf16.mxu1 %v12727_v7 }
 0x50f   : > { %v1681_v32 = vpop.xlane.xlu1 %1680  ;;  %5421 = vmatprep.subr.bf16.mxu0 %v12727_v7  ;;  %v3630_v28 = vld [vmem:[#allocation2 + $0x58] sm:$0xff]  ;;  %v1836_v43 = vmax.f32 %v1804_v25, %v1772_v53  ;;  %v3707_v53 = vld [vmem:[#allocation2 + $0x2c0] sm:$0xff] }
 0x510   : > { %1868 = vst.msk [vmem:[#allocation2 + $0x78] sm:$0xff] %vm504_vm1, %v1835_v33  ;;  %v1773_v50 = vadd.f32 %v1741_v2, %v1681_v32  ;;  %v3752_v29 = vpack.c.bf16 %v3630_v28, %v3629_v37  ;;  %v1684_v42 = vpop.xlane.xlu0 %1683  ;;  %v3631_v0 = vld [vmem:[#allocation2 + $0x60] sm:$0xff]  ;;  %5829 = vmatmul.mubr.bf16.gmra.mrb[128].mxu1 %v7790_v30  ;;  %v1749_v33 = vld [vmem:[%s12522_s6 + $0xc8] sm:$0xff]  ;;  %v3201_v28 = vpop.f32.mrb[144].mxu0 }
 0x511   : > { %1869 = vst.msk [vmem:[#allocation2 + $0x80] sm:$0xff] %vm504_vm1, %v1836_v43  ;;  %v1774_v47 = vadd.f32 %v1742_v6, %v1684_v42  ;;  %v1812_v2 = vld [vmem:[#allocation2 + $0xc0] sm:$0xff]  ;;  %5836 = vmatprep.mubr.bf16.mxu1 %v7799_v15  ;;  %v10962_v32 = vld [vmem:[%s12523_s7 + $0x388] sm:$0xff] }
 0x512   : > { %v1837_v41 = vmax.f32 %v1805_v40, %v1773_v50  ;;  %5422 = vmatpush1.bf16.msra.mxu0 %v3752_v29  ;;  %v3708_v40 = vld [vmem:[#allocation2 + $0x2c8] sm:$0xff]  ;;  %v1750_v50 = vld [vmem:[%s12522_s6 + $0xd0] sm:$0xff] }
 0x513   : > { %v1687_v12 = vpop.xlane.xlu1 %1686  ;;  %5423 = vmatprep.subr.bf16.mxu0 %v12727_v7  ;;  %v3632_v58 = vld [vmem:[#allocation2 + $0x68] sm:$0xff]  ;;  %v1838_v61 = vmax.f32 %v1806_v4, %v1774_v47  ;;  %v3791_v17 = vpack.c.bf16 %v3708_v40, %v3707_v53  ;;  %v3203_v4 = vpop.f32.mrb[145].mxu0 }
 0x514   : > { %1870 = vst.msk [vmem:[#allocation2 + $0x88] sm:$0xff] %vm504_vm1, %v1837_v41  ;;  %v1775_v34 = vadd.f32 %v1743_v38, %v1687_v12  ;;  %v3753_v51 = vpack.c.bf16 %v3632_v58, %v3631_v0  ;;  %v1690_v60 = vpop.xlane.xlu0 %1689  ;;  %v3633_v48 = vld [vmem:[#allocation2 + $0x70] sm:$0xff]  ;;  %v10967_v37 = vld [vmem:[%s12523_s7 + $0x3a8] sm:$0xff]  ;;  %v3360_v47 = vmax.f32 %v3201_v28, %v3203_v4  ;;  %v7798_v0 = vcombine.low %v10932_v54, %v10938_v18  ;;  %v1819_v28 = vld [vmem:[#allocation2 + $0xf8] sm:$0xff] }
 0x515   : > { %1871 = vst.msk [vmem:[#allocation2 + $0x90] sm:$0xff] %vm504_vm1, %v1838_v61  ;;  %v1776_v14 = vadd.f32 %v1744_v35, %v1690_v60  ;;  %6014 = vmatpush1.bf16.msra.mxu1 %v3791_v17  ;;  %v1814_v12 = vld [vmem:[#allocation2 + $0xd0] sm:$0xff]  ;;  %v1751_v35 = vld [vmem:[%s12522_s6 + $0xd8] sm:$0xff]  ;;  %v7807_v58 = vcombine.high %v10962_v32, %v10967_v37 }
 0x516   : > { %v1839_v62 = vmax.f32 %v1807_v44, %v1775_v34  ;;  %5424 = vmatpush1.bf16.msra.mxu0 %v3753_v51  ;;  %v3205_v44 = vpop.f32.mrb[146].mxu0  ;;  %6015 = vmatprep.subr.bf16.mxu1 %v12727_v7  ;;  %v1815_v51 = vld [vmem:[#allocation2 + $0xd8] sm:$0xff] }
 0x517   : > { %v1693_v22 = vpop.xlane.xlu1 %1692  ;;  %5425 = vmatprep.subr.bf16.mxu0 %v12727_v7  ;;  %v3634_v57 = vld [vmem:[#allocation2 + $0x78] sm:$0xff]  ;;  %v1840_v56 = vmax.f32 %v1808_v36, %v1776_v14  ;;  %v3207_v61 = vpop.f32.mrb[147].mxu0  ;;  %3361 = vmax.xlane.f32.xlu0 %v3360_v47 }
 0x518   : > { %1872 = vst.msk [vmem:[#allocation2 + $0x98] sm:$0xff] %vm504_vm1, %v1839_v62  ;;  %v1777_v63 = vadd.f32 %v1745_v31, %v1693_v22  ;;  %v3754_v23 = vpack.c.bf16 %v3634_v57, %v3633_v48  ;;  %v1696_v55 = vpop.xlane.xlu0 %1695  ;;  %v3635_v46 = vld [vmem:[#allocation2 + $0x80] sm:$0xff]  ;;  %v3363_v60 = vmax.f32 %v3205_v44, %v3207_v61  ;;  %5837 = vmatmul.mubr.bf16.gmra.mrb[132].mxu1 %v7798_v0  ;;  %v1753_v22 = vld [vmem:[%s12522_s6 + $0xe8] sm:$0xff]  ;;  %v3709_v48 = vld [vmem:[#allocation2 + $0x2d0] sm:$0xff] }
 0x519   : > { %1873 = vst.msk [vmem:[#allocation2 + $0xa0] sm:$0xff] %vm504_vm1, %v1840_v56  ;;  %v1778_v27 = vadd.f32 %v1746_v9, %v1696_v55  ;;  %v1816_v9 = vld [vmem:[#allocation2 + $0xe0] sm:$0xff]  ;;  %v3710_v57 = vld [vmem:[#allocation2 + $0x2d8] sm:$0xff]  ;;  %5844 = vmatprep.mubr.bf16.mxu1 %v7807_v58  ;;  %v11000_v55 = vld [vmem:[%s12523_s7 + $0x3e8] sm:$0xff] }
 0x51a   : > { %v1841_v49 = vmax.f32 %v1809_v16, %v1777_v63  ;;  %5426 = vmatpush1.bf16.msra.mxu0 %v3754_v23  ;;  %3364 = vmax.xlane.f32.xlu1 %v3363_v60  ;;  %v1817_v63 = vld [vmem:[#allocation2 + $0xe8] sm:$0xff] }
 0x51b   : > { %v1699_v11 = vpop.xlane.xlu1 %1698  ;;  %5427 = vmatprep.subr.bf16.mxu0 %v12727_v7  ;;  %v3636_v25 = vld [vmem:[#allocation2 + $0x88] sm:$0xff]  ;;  %v1842_v10 = vmax.f32 %v1810_v19, %v1778_v27  ;;  %v3211_v19 = vpop.f32.mrb[148].mxu0 }
 0x51c   : > { %1874 = vst.msk [vmem:[#allocation2 + $0xa8] sm:$0xff] %vm504_vm1, %v1841_v49  ;;  %v1779_v20 = vadd.f32 %v1747_v26, %v1699_v11  ;;  %v3755_v5 = vpack.c.bf16 %v3636_v25, %v3635_v46  ;;  %v1702_v1 = vpop.xlane.xlu0 %1701  ;;  %v3637_v29 = vld [vmem:[#allocation2 + $0x90] sm:$0xff]  ;;  %v10995_v23 = vld [vmem:[%s12523_s7 + $0x3c8] sm:$0xff]  ;;  %v3792_v26 = vpack.c.bf16 %v3710_v57, %v3709_v48  ;;  %v3213_v15 = vpop.f32.mrb[149].mxu0 }
 0x51d   : > { %1875 = vst.msk [vmem:[#allocation2 + $0xb0] sm:$0xff] %vm504_vm1, %v1842_v10  ;;  %v1780_v13 = vadd.f32 %v1748_v24, %v1702_v1  ;;  %v1754_v49 = vld [vmem:[%s12522_s6 + $0xf0] sm:$0xff]  ;;  %v3366_v25 = vmax.f32 %v3211_v19, %v3213_v15  ;;  %v3215_v10 = vpop.f32.mrb[150].mxu0  ;;  %v7806_v1 = vcombine.low %v10962_v32, %v10967_v37  ;;  %v7814_v61 = vcombine.low %v10995_v23, %v11000_v55 }
 0x51e   : > { %v1843_v6 = vmax.f32 %v1811_v45, %v1779_v20  ;;  %5428 = vmatpush1.bf16.msra.mxu0 %v3755_v5  ;;  %6016 = vmatpush1.bf16.msra.mxu1 %v3792_v26  ;;  %v1755_v5 = vld [vmem:[%s12522_s6 + $0xf8] sm:$0xff]  ;;  %v3217_v53 = vpop.f32.mrb[151].mxu0 }
 0x51f   : > { %v1705_v43 = vpop.xlane.xlu1 %1704  ;;  %5429 = vmatprep.subr.bf16.mxu0 %v12727_v7  ;;  %v3638_v42 = vld [vmem:[#allocation2 + $0x98] sm:$0xff]  ;;  %v1844_v38 = vmax.f32 %v1812_v2, %v1780_v13  ;;  %v1818_v2 = vld [vmem:[#allocation2 + $0xf0] sm:$0xff]  ;;  %6017 = vmatprep.subr.bf16.mxu1 %v12727_v7  ;;  %v3369_v13 = vmax.f32 %v3215_v10, %v3217_v53 }
 0x520   : > { %1876 = vst.msk [vmem:[#allocation2 + $0xb8] sm:$0xff] %vm504_vm1, %v1843_v6  ;;  %v1781_v59 = vadd.f32 %v1749_v33, %v1705_v43  ;;  %v3756_v41 = vpack.c.bf16 %v3638_v42, %v3637_v29  ;;  %v1708_v39 = vpop.xlane.xlu0 %1707  ;;  %v3639_v3 = vld [vmem:[#allocation2 + $0xa0] sm:$0xff]  ;;  %v7815_v33 = vcombine.high %v10995_v23, %v11000_v55  ;;  %3367 = vmax.xlane.f32.xlu0 %v3366_v25  ;;  %v3712_v42 = vld [vmem:[#allocation2 + $0x2e8] sm:$0xff] }
 0x521   : > { %1877 = vst.msk [vmem:[#allocation2 + $0xc0] sm:$0xff] %vm504_vm1, %v1844_v38  ;;  %v1782_v36 = vadd.f32 %v1750_v50, %v1708_v39  ;;  %3370 = vmax.xlane.f32.xlu1 %v3369_v13  ;;  %5845 = vmatmul.mubr.bf16.gmra.mrb[136].mxu1 %v7806_v1  ;;  %v3711_v29 = vld [vmem:[#allocation2 + $0x2e0] sm:$0xff]  ;;  %v3940_v38 = vld [vmem:[%s12523_s7 + $0x408] sm:$0xff] }
 0x522   : > { %v1845_v34 = vmax.f32 %v1813_v21, %v1781_v59  ;;  %5430 = vmatpush1.bf16.msra.mxu0 %v3756_v41  ;;  %5852 = vmatprep.mubr.bf16.mxu1 %v7815_v33  ;;  %v3221_v59 = vpop.f32.mrb[152].mxu0  ;;  %v3793_v41 = vpack.c.bf16 %v3712_v42, %v3711_v29  ;;  %v3944_v39 = vld [vmem:[%s12523_s7 + $0x428] sm:$0xff] }
 0x523   : > { %v1711_v31 = vpop.xlane.xlu1 %1710  ;;  %5431 = vmatprep.subr.bf16.mxu0 %v12727_v7  ;;  %v3640_v62 = vld [vmem:[#allocation2 + $0xa8] sm:$0xff]  ;;  %v1846_v14 = vmax.f32 %v1814_v12, %v1782_v36  ;;  %v3223_v12 = vpop.f32.mrb[153].mxu0  ;;  %v7823_v36 = vcombine.high %v3940_v38, %v3944_v39 }
 0x524   : > { %1878 = vst.msk [vmem:[#allocation2 + $0xc8] sm:$0xff] %vm504_vm1, %v1845_v34  ;;  %v1783_v16 = vadd.f32 %v1751_v35, %v1711_v31  ;;  %v3757_v54 = vpack.c.bf16 %v3640_v62, %v3639_v3  ;;  %v1714_v8 = vpop.xlane.xlu0 %1713  ;;  %v3641_v27 = vld [vmem:[#allocation2 + $0xb0] sm:$0xff]  ;;  %v3372_v0 = vmax.f32 %v3221_v59, %v3223_v12  ;;  %v3225_v58 = vpop.f32.mrb[154].mxu0  ;;  %6018 = vmatpush1.bf16.msra.mxu1 %v3793_v41  ;;  %v3714_v62 = vld [vmem:[#allocation2 + $0x2f8] sm:$0xff]  ;;  %v3980_v59 = vld [vmem:[%s12523_s7 + $0x548] sm:$0xff] }
 0x525   : > { %1879 = vst.msk [vmem:[#allocation2 + $0xd0] sm:$0xff] %vm504_vm1, %v1846_v14  ;;  %v1784_v56 = vadd.f32 %v1752_v52, %v1714_v8  ;;  %v3227_v34 = vpop.f32.mrb[155].mxu0  ;;  %6019 = vmatprep.subr.bf16.mxu1 %v12727_v7  ;;  %v3713_v3 = vld [vmem:[#allocation2 + $0x2f0] sm:$0xff]  ;;  %v3948_v14 = vld [vmem:[%s12523_s7 + $0x448] sm:$0xff] }
 0x526   : > { %v1847_v18 = vmax.f32 %v1815_v51, %v1783_v16  ;;  %5432 = vmatpush1.bf16.msra.mxu0 %v3757_v54  ;;  %v3375_v51 = vmax.f32 %v3225_v58, %v3227_v34  ;;  %3373 = vmax.xlane.f32.xlu0 %v3372_v0  ;;  %v3984_v41 = vld [vmem:[%s12523_s7 + $0x568] sm:$0xff] }
 0x527   : > { %v1717_v30 = vpop.xlane.xlu1 %1716  ;;  %5433 = vmatprep.subr.bf16.mxu0 %v12727_v7  ;;  %v3642_v45 = vld [vmem:[#allocation2 + $0xb8] sm:$0xff]  ;;  %v1848_v11 = vmax.f32 %v1816_v9, %v1784_v56  ;;  %v3794_v9 = vpack.c.bf16 %v3714_v62, %v3713_v3  ;;  %v7863_v0 = vcombine.high %v3980_v59, %v3984_v41  ;;  %v3988_v34 = vld [vmem:[%s12523_s7 + $0x588] sm:$0xff] }
 0x528   : > { %1880 = vst.msk [vmem:[#allocation2 + $0xd8] sm:$0xff] %vm504_vm1, %v1847_v18  ;;  %v1785_v24 = vadd.f32 %v1753_v22, %v1717_v30  ;;  %v3758_v46 = vpack.c.bf16 %v3642_v45, %v3641_v27  ;;  %v1720_v20 = vpop.xlane.xlu0 %1719  ;;  %v3643_v17 = vld [vmem:[#allocation2 + $0xc0] sm:$0xff]  ;;  %3376 = vmax.xlane.f32.xlu1 %v3375_v51  ;;  %v3952_v22 = vld [vmem:[%s12523_s7 + $0x468] sm:$0xff] }
 0x529   : > { %1881 = vst.msk [vmem:[#allocation2 + $0xe0] sm:$0xff] %vm504_vm1, %v1848_v11  ;;  %v1786_v6 = vadd.f32 %v1754_v49, %v1720_v20  ;;  %5853 = vmatmul.mubr.bf16.gmra.mrb[140].mxu1 %v7814_v61  ;;  %v7831_v55 = vcombine.high %v3948_v14, %v3952_v22  ;;  %v3956_v30 = vld [vmem:[%s12523_s7 + $0x488] sm:$0xff]  ;;  %v7830_v11 = vcombine.low %v3948_v14, %v3952_v22 }
 0x52a   : > { %v1849_v40 = vmax.f32 %v1817_v63, %v1785_v24  ;;  %5434 = vmatpush1.bf16.msra.mxu0 %v3758_v46  ;;  %5860 = vmatprep.mubr.bf16.mxu1 %v7823_v36  ;;  %v7822_v63 = vcombine.low %v3940_v38, %v3944_v39  ;;  %v3960_v49 = vld [vmem:[%s12523_s7 + $0x4a8] sm:$0xff] }
 0x52b   : > { %v1723_v21 = vpop.xlane.xlu1 %1722  ;;  %5435 = vmatprep.subr.bf16.mxu0 %v12727_v7  ;;  %v3644_v43 = vld [vmem:[#allocation2 + $0xc8] sm:$0xff]  ;;  %v1850_v32 = vmax.f32 %v1818_v2, %v1786_v6  ;;  %6020 = vmatpush1.bf16.msra.mxu1 %v3794_v9  ;;  %v7839_v46 = vcombine.high %v3956_v30, %v3960_v49  ;;  %v7838_v53 = vcombine.low %v3956_v30, %v3960_v49 }
 0x52c   : > { %1882 = vst.msk [vmem:[#allocation2 + $0xe8] sm:$0xff] %vm504_vm1, %v1849_v40  ;;  %v1787_v37 = vadd.f32 %v1755_v5, %v1723_v21  ;;  %v3759_v50 = vpack.c.bf16 %v3644_v43, %v3643_v17  ;;  %v3645_v47 = vld [vmem:[#allocation2 + $0xd0] sm:$0xff]  ;;  %6278 = vmatprep.subr.bf16.mxu1 %v12727_v7  ;;  %v3964_v20 = vld [vmem:[%s12523_s7 + $0x4c8] sm:$0xff] }
 0x52d   : > { %1883 = vst.msk [vmem:[#allocation2 + $0xf0] sm:$0xff] %vm504_vm1, %v1850_v32  ;;  %v3968_v2 = vld [vmem:[%s12523_s7 + $0x4e8] sm:$0xff] }
 0x52e   : > { %v1851_v4 = vmax.f32 %v1819_v28, %v1787_v37  ;;  %5436 = vmatpush1.bf16.msra.mxu0 %v3759_v50  ;;  %v7847_v6 = vcombine.high %v3964_v20, %v3968_v2  ;;  %v3972_v28 = vld [vmem:[%s12523_s7 + $0x508] sm:$0xff]  ;;  %v7846_v50 = vcombine.low %v3964_v20, %v3968_v2 }
 0x52f   : > { %5437 = vmatprep.subr.bf16.mxu0 %v12727_v7  ;;  %v3646_v44 = vld [vmem:[#allocation2 + $0xd8] sm:$0xff]  ;;  %v3976_v17 = vld [vmem:[%s12523_s7 + $0x528] sm:$0xff] }
 0x530   : > { %1884 = vst.msk [vmem:[#allocation2 + $0xf8] sm:$0xff] %vm504_vm1, %v1851_v4  ;;  %v3760_v35 = vpack.c.bf16 %v3646_v44, %v3645_v47  ;;  %v3647_v60 = vld [vmem:[#allocation2 + $0xe0] sm:$0xff]  ;;  %v7855_v42 = vcombine.high %v3972_v28, %v3976_v17  ;;  %v7854_v12 = vcombine.low %v3972_v28, %v3976_v17  ;;  %v3992_v36 = vld [vmem:[%s12523_s7 + $0x5a8] sm:$0xff] }
 0x531   : > { %5861 = vmatmul.mubr.bf16.gmra.mrb[144].mxu1 %v7822_v63  ;;  %v7871_v62 = vcombine.high %v3988_v34, %v3992_v36  ;;  %v3996_v9 = vld [vmem:[%s12523_s7 + $0x5c8] sm:$0xff] }
 0x532   : > { %5438 = vmatpush1.bf16.msra.mxu0 %v3760_v35  ;;  %v3231_v16 = vpop.f32.mrb[156].mxu0  ;;  %5868 = vmatprep.mubr.bf16.mxu1 %v7831_v55  ;;  %v4004_v55 = vld [vmem:[%s12523_s7 + $0x608] sm:$0xff] }
 0x533   : > { %5439 = vmatprep.subr.bf16.mxu0 %v12727_v7  ;;  %v3648_v31 = vld [vmem:[#allocation2 + $0xe8] sm:$0xff]  ;;  %v3233_v48 = vpop.f32.mrb[157].mxu0 }
 0x534   : > { %v3761_v52 = vpack.c.bf16 %v3648_v31, %v3647_v60  ;;  %v3649_v54 = vld [vmem:[#allocation2 + $0xf0] sm:$0xff]  ;;  %v3378_v18 = vmax.f32 %v3231_v16, %v3233_v48  ;;  %v3235_v56 = vpop.f32.mrb[158].mxu0 }
 0x535   : > { %v3237_v23 = vpop.f32.mrb[159].mxu0 }
 0x536   : > { %5440 = vmatpush1.bf16.msra.mxu0 %v3761_v52  ;;  %v3381_v19 = vmax.f32 %v3235_v56, %v3237_v23  ;;  %3379 = vmax.xlane.f32.xlu0 %v3378_v18  ;;  %v7862_v52 = vcombine.low %v3980_v59, %v3984_v41 }
 0x537   : > { %5441 = vmatprep.subr.bf16.mxu0 %v12727_v7  ;;  %v3650_v8 = vld [vmem:[#allocation2 + $0xf8] sm:$0xff] }
 0x538   : > { %v3762_v57 = vpack.c.bf16 %v3650_v8, %v3649_v54  ;;  %3382 = vmax.xlane.f32.xlu1 %v3381_v19  ;;  %v4000_v54 = vld [vmem:[%s12523_s7 + $0x5e8] sm:$0xff] }
 0x539   : > { %5869 = vmatmul.mubr.bf16.gmra.mrb[148].mxu1 %v7830_v11  ;;  %v7879_v56 = vcombine.high %v3996_v9, %v4000_v54  ;;  %v4008_v19 = vld [vmem:[%s12523_s7 + $0x628] sm:$0xff] }
 0x53a   : > { %5442 = vmatpush1.bf16.msra.mxu0 %v3762_v57  ;;  %v3241_v26 = vpop.f32.mrb[160].mxu0  ;;  %5876 = vmatprep.mubr.bf16.mxu1 %v7839_v46  ;;  %v7870_v57 = vcombine.low %v3988_v34, %v3992_v36  ;;  %v4012_v46 = vld [vmem:[%s12523_s7 + $0x648] sm:$0xff] }
 0x53b   : > { %v3243_v27 = vpop.f32.mrb[161].mxu0 }
 0x53c   : > { %v3384_v45 = vmax.f32 %v3241_v26, %v3243_v27  ;;  %v3245_v15 = vpop.f32.mrb[162].mxu0  ;;  %v7878_v27 = vcombine.low %v3996_v9, %v4000_v54 }
 0x53d   : > { %v3247_v24 = vpop.f32.mrb[163].mxu0 }
 0x53e   : > { %v3387_v25 = vmax.f32 %v3245_v15, %v3247_v24  ;;  %3385 = vmax.xlane.f32.xlu0 %v3384_v45  ;;  %v7887_v15 = vcombine.high %v4004_v55, %v4008_v19 }
 0x540   : > { %3388 = vmax.xlane.f32.xlu1 %v3387_v25  ;;  %v4016_v25 = vld [vmem:[%s12523_s7 + $0x668] sm:$0xff] }
 0x541   : > { %5877 = vmatmul.mubr.bf16.gmra.mrb[152].mxu1 %v7838_v53 }
 0x542   : > { %v3251_v10 = vpop.f32.mrb[164].mxu0  ;;  %5884 = vmatprep.mubr.bf16.mxu1 %v7847_v6  ;;  %v4020_v6 = vld [vmem:[%s12523_s7 + $0x688] sm:$0xff] }
 0x543   : > { %v3253_v5 = vpop.f32.mrb[165].mxu0 }
 0x544   : > { %v3390_v1 = vmax.f32 %v3251_v10, %v3253_v5  ;;  %v3255_v33 = vpop.f32.mrb[166].mxu0  ;;  %v7886_v5 = vcombine.low %v4004_v55, %v4008_v19  ;;  %v4060_v55 = vld [vmem:[%s12523_s7 + $0x7c8] sm:$0xff] }
 0x545   : > { %v3257_v40 = vpop.f32.mrb[167].mxu0  ;;  %v4064_v19 = vld [vmem:[%s12523_s7 + $0x7e8] sm:$0xff] }
 0x546   : > { %v3393_v13 = vmax.f32 %v3255_v33, %v3257_v40  ;;  %3391 = vmax.xlane.f32.xlu0 %v3390_v1  ;;  %v7895_v33 = vcombine.high %v4012_v46, %v4016_v25 }
 0x548   : > { %3394 = vmax.xlane.f32.xlu1 %v3393_v13  ;;  %v4024_v13 = vld [vmem:[%s12523_s7 + $0x6a8] sm:$0xff] }
 0x549   : > { %5885 = vmatmul.mubr.bf16.gmra.mrb[156].mxu1 %v7846_v50 }
 0x54a   : > { %v3261_v21 = vpop.f32.mrb[168].mxu0  ;;  %5892 = vmatprep.mubr.bf16.mxu1 %v7855_v42  ;;  %v4028_v42 = vld [vmem:[%s12523_s7 + $0x6c8] sm:$0xff] }
 0x54b   : > { %v3263_v43 = vpop.f32.mrb[169].mxu0 }
 0x54c   : > { %v3396_v32 = vmax.f32 %v3261_v21, %v3263_v43  ;;  %v3265_v37 = vpop.f32.mrb[170].mxu0  ;;  %v7894_v43 = vcombine.low %v4012_v46, %v4016_v25  ;;  %v7942_v25 = vcombine.low %v4060_v55, %v4064_v19 }
 0x54d   : > { %v3267_v29 = vpop.f32.mrb[171].mxu0 }
 0x54e   : > { %v3399_v4 = vmax.f32 %v3265_v37, %v3267_v29  ;;  %3397 = vmax.xlane.f32.xlu0 %v3396_v32  ;;  %v7903_v37 = vcombine.high %v4020_v6, %v4024_v13 }
 0x550   : > { %3400 = vmax.xlane.f32.xlu1 %v3399_v4  ;;  %v4032_v4 = vld [vmem:[%s12523_s7 + $0x6e8] sm:$0xff] }
 0x551   : > { %5893 = vmatmul.mubr.bf16.gmra.mrb[160].mxu1 %v7854_v12 }
 0x552   : > { %5900 = vmatprep.mubr.bf16.mxu1 %v7863_v0  ;;  %v4036_v0 = vld [vmem:[%s12523_s7 + $0x708] sm:$0xff] }
 0x553   : > { %v3271_v38 = vpop.f32.mrb[172].mxu0 }
 0x554   : > { %v3273_v47 = vpop.f32.mrb[173].mxu0 }
 0x555   : > { %v3402_v44 = vmax.f32 %v3271_v38, %v3273_v47  ;;  %v3275_v39 = vpop.f32.mrb[174].mxu0  ;;  %v7902_v47 = vcombine.low %v4020_v6, %v4024_v13  ;;  %v3825_v6 = vld [vmem:[%s12523_s7 + $0x70] sm:$0xff] }
 0x556   : > { %v3277_v35 = vpop.f32.mrb[175].mxu0 }
 0x557   : > { %v3405_v58 = vmax.f32 %v3275_v39, %v3277_v35  ;;  %3403 = vmax.xlane.f32.xlu0 %v3402_v44  ;;  %v7911_v39 = vcombine.high %v4028_v42, %v4032_v4 }
 0x559   : > { %3406 = vmax.xlane.f32.xlu1 %v3405_v58  ;;  %5901 = vmatmul.mubr.bf16.gmra.mrb[164].mxu1 %v7862_v52  ;;  %v4040_v58 = vld [vmem:[%s12523_s7 + $0x728] sm:$0xff] }
 0x55a   : > { %5908 = vmatprep.mubr.bf16.mxu1 %v7871_v62  ;;  %v4044_v62 = vld [vmem:[%s12523_s7 + $0x748] sm:$0xff] }
 0x55b   : > { %v3281_v61 = vpop.f32.mrb[176].mxu0 }
 0x55c   : > { %v3283_v51 = vpop.f32.mrb[177].mxu0 }
 0x55d   : > { %v3408_v60 = vmax.f32 %v3281_v61, %v3283_v51  ;;  %v3285_v31 = vpop.f32.mrb[178].mxu0  ;;  %v7910_v51 = vcombine.low %v4028_v42, %v4032_v4 }
 0x55e   : > { %v3287_v3 = vpop.f32.mrb[179].mxu0 }
 0x55f   : > { %v3411_v14 = vmax.f32 %v3285_v31, %v3287_v3  ;;  %3409 = vmax.xlane.f32.xlu0 %v3408_v60  ;;  %v7919_v31 = vcombine.high %v4036_v0, %v4040_v58 }
 0x561   : > { %3412 = vmax.xlane.f32.xlu1 %v3411_v14  ;;  %5909 = vmatmul.mubr.bf16.gmra.mrb[168].mxu1 %v7870_v57  ;;  %v4048_v14 = vld [vmem:[%s12523_s7 + $0x768] sm:$0xff] }
 0x562   : > { %5916 = vmatprep.mubr.bf16.mxu1 %v7879_v56  ;;  %v4056_v56 = vld [vmem:[%s12523_s7 + $0x7a8] sm:$0xff] }
 0x563   : > { %v3291_v16 = vpop.f32.mrb[180].mxu0 }
 0x564   : > { %v3293_v8 = vpop.f32.mrb[181].mxu0 }
 0x565   : > { %v3414_v22 = vmax.f32 %v3291_v16, %v3293_v8  ;;  %v3295_v48 = vpop.f32.mrb[182].mxu0  ;;  %v7918_v8 = vcombine.low %v4036_v0, %v4040_v58  ;;  %v3461_v0 = vld [vmem:[%s12522_s6 + $0x328] sm:$0xff] }
 0x566   : > { %v3297_v18 = vpop.f32.mrb[183].mxu0 }
 0x567   : > { %v3417_v63 = vmax.f32 %v3295_v48, %v3297_v18  ;;  %3415 = vmax.xlane.f32.xlu0 %v3414_v22  ;;  %v7927_v48 = vcombine.high %v4044_v62, %v4048_v14  ;;  %v4052_v18 = vld [vmem:[%s12523_s7 + $0x788] sm:$0xff] }
 0x569   : > { %3418 = vmax.xlane.f32.xlu1 %v3417_v63  ;;  %5917 = vmatmul.mubr.bf16.gmra.mrb[172].mxu1 %v7878_v27  ;;  %v7926_v63 = vcombine.low %v4044_v62, %v4048_v14  ;;  %v3813_v27 = vld [vmem:[%s12523_s7 + $0x10] sm:$0xff] }
 0x56a   : > { %5924 = vmatprep.mubr.bf16.mxu1 %v7887_v15  ;;  %v3462_v14 = vld [vmem:[%s12522_s6 + $0x330] sm:$0xff] }
 0x56b   : > { %v3301_v23 = vpop.f32.mrb[184].mxu0 }
 0x56c   : > { %v3303_v26 = vpop.f32.mrb[185].mxu0 }
 0x56d   : > { %v3420_v30 = vmax.f32 %v3301_v23, %v3303_v26  ;;  %v3305_v49 = vpop.f32.mrb[186].mxu0  ;;  %v7935_v23 = vcombine.high %v4052_v18, %v4056_v56  ;;  %v7934_v26 = vcombine.low %v4052_v18, %v4056_v56 }
 0x56e   : > { %v3307_v45 = vpop.f32.mrb[187].mxu0 }
 0x56f   : > { %v3423_v11 = vmax.f32 %v3305_v49, %v3307_v45  ;;  %3421 = vmax.xlane.f32.xlu0 %v3420_v30  ;;  %v7943_v30 = vcombine.high %v4060_v55, %v4064_v19  ;;  %v3456_v49 = vld [vmem:[%s12522_s6 + $0x300] sm:$0xff]  ;;  %v3817_v45 = vld [vmem:[%s12523_s7 + $0x30] sm:$0xff] }
 0x571   : > { %3424 = vmax.xlane.f32.xlu1 %v3423_v11  ;;  %5925 = vmatmul.mubr.bf16.gmra.mrb[176].mxu1 %v7886_v5  ;;  %v3520_v11 = vld [vmem:[#allocation2 + $0x300] sm:$0xff] }
 0x572   : > { %5932 = vmatprep.mubr.bf16.mxu1 %v7895_v33 }
 0x573   : > { %v3311_v24 = vpop.f32.mrb[188].mxu0 }
 0x574   : > { %v3313_v10 = vpop.f32.mrb[189].mxu0 }
 0x575   : > { %v3426_v20 = vmax.f32 %v3311_v24, %v3313_v10  ;;  %v3315_v2 = vpop.f32.mrb[190].mxu0  ;;  %v3457_v24 = vld [vmem:[%s12522_s6 + $0x308] sm:$0xff] }
 0x576   : > { %v3317_v1 = vpop.f32.mrb[191].mxu0 }
 0x577   : > { %v3429_v53 = vmax.f32 %v3315_v2, %v3317_v1  ;;  %3427 = vmax.xlane.f32.xlu0 %v3426_v20  ;;  %v3521_v20 = vld [vmem:[#allocation2 + $0x308] sm:$0xff]  ;;  %v7697_v2 = vcombine.high %v3813_v27, %v3817_v45 }
 0x579   : > { %3430 = vmax.xlane.f32.xlu1 %v3429_v53  ;;  %5933 = vmatmul.mubr.bf16.gmra.mrb[180].mxu1 %v7894_v43  ;;  %v3458_v53 = vld [vmem:[%s12522_s6 + $0x310] sm:$0xff]  ;;  %v7696_v43 = vcombine.low %v3813_v27, %v3817_v45  ;;  %v3464_v27 = vld [vmem:[%s12522_s6 + $0x340] sm:$0xff] }
 0x57a   : > { %5940 = vmatprep.mubr.bf16.mxu1 %v7903_v37  ;;  %v3523_v37 = vld [vmem:[#allocation2 + $0x318] sm:$0xff]  ;;  %v3845_v45 = vld [vmem:[%s12523_s7 + $0x110] sm:$0xff] }
 0x57b   : > { %v3321_v40 = vpop.f32.mrb[192].mxu0 }
 0x57c   : > { %v3323_v21 = vpop.f32.mrb[193].mxu0 }
 0x57d   : > { %v3432_v28 = vmax.f32 %v3321_v40, %v3323_v21  ;;  %v3325_v17 = vpop.f32.mrb[194].mxu0  ;;  %v3821_v40 = vld [vmem:[%s12523_s7 + $0x50] sm:$0xff] }
 0x57e   : > { %v3327_v32 = vpop.f32.mrb[195].mxu0  ;;  %v3522_v21 = vld [vmem:[#allocation2 + $0x310] sm:$0xff] }
 0x57f   : > { %v3435_v50 = vmax.f32 %v3325_v17, %v3327_v32  ;;  %3433 = vmax.xlane.f32.xlu0 %v3432_v28  ;;  %v3459_v28 = vld [vmem:[%s12522_s6 + $0x318] sm:$0xff] }
 0x581   : > { %3436 = vmax.xlane.f32.xlu1 %v3435_v50  ;;  %5941 = vmatmul.mubr.bf16.gmra.mrb[184].mxu1 %v7902_v47  ;;  %v7705_v50 = vcombine.high %v3821_v40, %v3825_v6  ;;  %v3829_v47 = vld [vmem:[%s12523_s7 + $0x90] sm:$0xff] }
 0x582   : > { %5948 = vmatprep.mubr.bf16.mxu1 %v7911_v39  ;;  %v3833_v39 = vld [vmem:[%s12523_s7 + $0xb0] sm:$0xff] }
 0x583   : > { %v3331_v29 = vpop.f32.mrb[196].mxu0  ;;  %v7712_v18 = vcombine.low %v3829_v47, %v3833_v39 }
 0x584   : > { %v3333_v38 = vpop.f32.mrb[197].mxu0 }
 0x585   : > { %v3438_v59 = vmax.f32 %v3331_v29, %v3333_v38  ;;  %v3335_v41 = vpop.f32.mrb[198].mxu0 }
 0x586   : > { %v3337_v44 = vpop.f32.mrb[199].mxu0 }
 0x587   : > { %v3441_v12 = vmax.f32 %v3335_v41, %v3337_v44  ;;  %3439 = vmax.xlane.f32.xlu0 %v3438_v59  ;;  %v3460_v41 = vld [vmem:[%s12522_s6 + $0x320] sm:$0xff] }
 0x589   : > { %3442 = vmax.xlane.f32.xlu1 %v3441_v12  ;;  %5949 = vmatmul.mubr.bf16.gmra.mrb[188].mxu1 %v7910_v51  ;;  %v7713_v51 = vcombine.high %v3829_v47, %v3833_v39 }
 0x58a   : > { %5956 = vmatprep.mubr.bf16.mxu1 %v7919_v31 }
 0x58b   : > { %v3341_v35 = vpop.f32.mrb[200].mxu0 }
 0x58c   : > { %v3343_v61 = vpop.f32.mrb[201].mxu0 }
 0x58d   : > { %v3444_v34 = vmax.f32 %v3341_v35, %v3343_v61  ;;  %v3345_v36 = vpop.f32.mrb[202].mxu0  ;;  %v3524_v35 = vld [vmem:[#allocation2 + $0x320] sm:$0xff]  ;;  %v7704_v61 = vcombine.low %v3821_v40, %v3825_v6 }
 0x58e   : > { %v3347_v60 = vpop.f32.mrb[203].mxu0 }
 0x58f   : > { %v3447_v52 = vmax.f32 %v3345_v36, %v3347_v60  ;;  %3445 = vmax.xlane.f32.xlu0 %v3444_v34  ;;  %v3525_v36 = vld [vmem:[#allocation2 + $0x328] sm:$0xff] }
 0x591   : > { %3448 = vmax.xlane.f32.xlu1 %v3447_v52  ;;  %5957 = vmatmul.mubr.bf16.gmra.mrb[192].mxu1 %v7918_v8 }
 0x592   : > { %5964 = vmatprep.mubr.bf16.mxu1 %v7927_v48  ;;  %v3463_v48 = vld [vmem:[%s12522_s6 + $0x338] sm:$0xff] }
 0x593   : > { %v3351_v3 = vpop.f32.mrb[204].mxu0 }
 0x594   : > { %v3353_v16 = vpop.f32.mrb[205].mxu0 }
 0x595   : > { %v3450_v9 = vmax.f32 %v3351_v3, %v3353_v16  ;;  %v3355_v54 = vpop.f32.mrb[206].mxu0  ;;  %v3837_v16 = vld [vmem:[%s12523_s7 + $0xd0] sm:$0xff] }
 0x596   : > { %v3357_v22 = vpop.f32.mrb[207].mxu0 }
 0x597   : > { %v3453_v57 = vmax.f32 %v3355_v54, %v3357_v22  ;;  %3451 = vmax.xlane.f32.xlu0 %v3450_v9  ;;  %v3841_v54 = vld [vmem:[%s12523_s7 + $0xf0] sm:$0xff] }
 0x598   : > { %v3526_v22 = vld [vmem:[#allocation2 + $0x330] sm:$0xff] }
 0x599   : > { %3454 = vmax.xlane.f32.xlu1 %v3453_v57  ;;  %5965 = vmatmul.mubr.bf16.gmra.mrb[196].mxu1 %v7926_v63  ;;  %v3527_v63 = vld [vmem:[#allocation2 + $0x338] sm:$0xff] }
 0x59a   : > { %5972 = vmatprep.mubr.bf16.mxu1 %v7935_v23  ;;  %v7721_v23 = vcombine.high %v3837_v16, %v3841_v54 }
 0x5a1   : > { %5973 = vmatmul.mubr.bf16.gmra.mrb[200].mxu1 %v7934_v26 }
 0x5a2   : > { %5980 = vmatprep.mubr.bf16.mxu1 %v7943_v30 }
 0x5a4   : > { %v3362_v15 = vpop.xlane.xlu0 %3361 }
 0x5a5   : > { %v3488_v46 = vadd.f32 %v3456_v49, %v3362_v15 }
 0x5a7   : > { %v3365_v10 = vpop.xlane.xlu1 %3364  ;;  %v3552_v5 = vmax.f32 %v3520_v11, %v3488_v46  ;;  %v3849_v11 = vld [vmem:[%s12523_s7 + $0x130] sm:$0xff]  ;;  %v3528_v46 = vld [vmem:[#allocation2 + $0x340] sm:$0xff] }
 0x5a8   : > { %v3489_v1 = vadd.f32 %v3457_v24, %v3365_v10 }
 0x5a9   : > { %3584 = vst.msk [vmem:[#allocation2 + $0x300] sm:$0xff] %vm504_vm1, %v3552_v5  ;;  %5981 = vmatmul.mubr.bf16.gmra.mrb[204].mxu1 %v7942_v25  ;;  %v3465_v25 = vld [vmem:[%s12522_s6 + $0x348] sm:$0xff] }
 0x5aa   : > { %v3553_v33 = vmax.f32 %v3521_v20, %v3489_v1  ;;  %6021 = vmatprep.mubr.bf16.mxu1 %v7697_v2  ;;  %v7720_v20 = vcombine.low %v3837_v16, %v3841_v54  ;;  %v3529_v5 = vld [vmem:[#allocation2 + $0x348] sm:$0xff]  ;;  %v7729_v1 = vcombine.high %v3845_v45, %v3849_v11 }
 0x5ac   : > { %3585 = vst.msk [vmem:[#allocation2 + $0x308] sm:$0xff] %vm504_vm1, %v3553_v33 }
 0x5ad   : > { %v3368_v13 = vpop.xlane.xlu0 %3367 }
 0x5ae   : > { %v3490_v17 = vadd.f32 %v3458_v53, %v3368_v13  ;;  %v3371_v32 = vpop.xlane.xlu1 %3370 }
 0x5af   : > { %v3491_v42 = vadd.f32 %v3459_v28, %v3371_v32  ;;  %v3853_v28 = vld [vmem:[%s12523_s7 + $0x150] sm:$0xff] }
 0x5b0   : > { %v3554_v29 = vmax.f32 %v3522_v21, %v3490_v17  ;;  %v3715_v38 = vld [vmem:[#allocation2 + $0x300] sm:$0xff]  ;;  %v3466_v21 = vld [vmem:[%s12522_s6 + $0x350] sm:$0xff] }
 0x5b1   : > { %v3555_v4 = vmax.f32 %v3523_v37, %v3491_v42  ;;  %6022 = vmatmul.mubr.bf16.vlgmr.msra.gmra.mrb[80].mxu1 %v7696_v43  ;;  %v3857_v43 = vld [vmem:[%s12523_s7 + $0x170] sm:$0xff]  ;;  %v7728_v42 = vcombine.low %v3845_v45, %v3849_v11 }
 0x5b2   : > { %3586 = vst.msk [vmem:[#allocation2 + $0x310] sm:$0xff] %vm504_vm1, %v3554_v29  ;;  %6029 = vmatprep.mubr.bf16.mxu1 %v7705_v50  ;;  %v3530_v37 = vld [vmem:[#allocation2 + $0x350] sm:$0xff]  ;;  %v3467_v50 = vld [vmem:[%s12522_s6 + $0x358] sm:$0xff] }
 0x5b3   : > { %v3716_v59 = vld [vmem:[#allocation2 + $0x308] sm:$0xff]  ;;  %3587 = vst.msk [vmem:[#allocation2 + $0x318] sm:$0xff] %vm504_vm1, %v3555_v4  ;;  %v3374_v12 = vpop.xlane.xlu0 %3373 }
 0x5b4   : > { %v3795_v44 = vpack.c.bf16 %v3716_v59, %v3715_v38  ;;  %v3492_v58 = vadd.f32 %v3460_v41, %v3374_v12  ;;  %v3531_v38 = vld [vmem:[#allocation2 + $0x358] sm:$0xff]  ;;  %v7737_v59 = vcombine.high %v3853_v28, %v3857_v43 }
 0x5b5   : > { %v3377_v34 = vpop.xlane.xlu1 %3376 }
 0x5b6   : > { %6279 = vmatpush1.bf16.msra.mxu1 %v3795_v44  ;;  %v3556_v60 = vmax.f32 %v3524_v35, %v3492_v58  ;;  %v3493_v31 = vadd.f32 %v3461_v0, %v3377_v34  ;;  %v3468_v35 = vld [vmem:[%s12522_s6 + $0x360] sm:$0xff]  ;;  %v3861_v0 = vld [vmem:[%s12523_s7 + $0x190] sm:$0xff] }
 0x5b7   : > { %6280 = vmatprep.subr.bf16.mxu1 %v12727_v7 }
 0x5b8   : > { %3588 = vst.msk [vmem:[#allocation2 + $0x320] sm:$0xff] %vm504_vm1, %v3556_v60  ;;  %v3557_v52 = vmax.f32 %v3525_v36, %v3493_v31  ;;  %v3532_v36 = vld [vmem:[#allocation2 + $0x360] sm:$0xff]  ;;  %v7736_v31 = vcombine.low %v3853_v28, %v3857_v43 }
 0x5b9   : > { %6030 = vmatmul.mubr.bf16.gmra.mrb[84].mxu1 %v7704_v61  ;;  %v3717_v3 = vld [vmem:[#allocation2 + $0x310] sm:$0xff] }
 0x5ba   : > { %v3718_v62 = vld [vmem:[#allocation2 + $0x318] sm:$0xff]  ;;  %6037 = vmatprep.mubr.bf16.mxu1 %v7713_v51  ;;  %3589 = vst.msk [vmem:[#allocation2 + $0x328] sm:$0xff] %vm504_vm1, %v3557_v52  ;;  %v3865_v61 = vld [vmem:[%s12523_s7 + $0x1b0] sm:$0xff]  ;;  %v3469_v51 = vld [vmem:[%s12522_s6 + $0x368] sm:$0xff] }
 0x5bb   : > { %v3796_v9 = vpack.c.bf16 %v3718_v62, %v3717_v3  ;;  %v3533_v3 = vld [vmem:[#allocation2 + $0x368] sm:$0xff]  ;;  %v7745_v62 = vcombine.high %v3861_v0, %v3865_v61 }
 0x5bd   : > { %6281 = vmatpush1.bf16.msra.mxu1 %v3796_v9 }
 0x5be   : > { %6282 = vmatprep.subr.bf16.mxu1 %v12727_v7 }
 0x5bf   : > { %v3719_v30 = vld [vmem:[#allocation2 + $0x320] sm:$0xff] }
 0x5c1   : > { %6038 = vmatmul.mubr.bf16.gmra.mrb[88].mxu1 %v7712_v18  ;;  %v3720_v49 = vld [vmem:[#allocation2 + $0x328] sm:$0xff]  ;;  %v3873_v18 = vld [vmem:[%s12523_s7 + $0x1f0] sm:$0xff] }
 0x5c2   : > { %6045 = vmatprep.mubr.bf16.mxu1 %v7721_v23  ;;  %v3797_v15 = vpack.c.bf16 %v3720_v49, %v3719_v30  ;;  %v3471_v23 = vld [vmem:[%s12522_s6 + $0x378] sm:$0xff] }
 0x5c3   : > { %v3380_v8 = vpop.xlane.xlu0 %3379  ;;  %v3535_v30 = vld [vmem:[#allocation2 + $0x378] sm:$0xff] }
 0x5c4   : > { %v3494_v57 = vadd.f32 %v3462_v14, %v3380_v8  ;;  %6283 = vmatpush1.bf16.msra.mxu1 %v3797_v15 }
 0x5c5   : > { %v3383_v56 = vpop.xlane.xlu1 %3382  ;;  %6284 = vmatprep.subr.bf16.mxu1 %v12727_v7 }
 0x5c6   : > { %v3558_v55 = vmax.f32 %v3526_v22, %v3494_v57  ;;  %v3495_v19 = vadd.f32 %v3463_v48, %v3383_v56  ;;  %v3470_v22 = vld [vmem:[%s12522_s6 + $0x370] sm:$0xff] }
 0x5c7   : > { %v3869_v48 = vld [vmem:[%s12523_s7 + $0x1d0] sm:$0xff] }
 0x5c8   : > { %3590 = vst.msk [vmem:[#allocation2 + $0x330] sm:$0xff] %vm504_vm1, %v3558_v55  ;;  %v3559_v26 = vmax.f32 %v3527_v63, %v3495_v19  ;;  %v3534_v63 = vld [vmem:[#allocation2 + $0x370] sm:$0xff]  ;;  %v7744_v19 = vcombine.low %v3861_v0, %v3865_v61  ;;  %v7753_v49 = vcombine.high %v3869_v48, %v3873_v18 }
 0x5c9   : > { %6046 = vmatmul.mubr.bf16.gmra.mrb[92].mxu1 %v7720_v20  ;;  %v3881_v20 = vld [vmem:[%s12523_s7 + $0x230] sm:$0xff] }
 0x5ca   : > { %3591 = vst.msk [vmem:[#allocation2 + $0x338] sm:$0xff] %vm504_vm1, %v3559_v26  ;;  %6053 = vmatprep.mubr.bf16.mxu1 %v7729_v1  ;;  %v3473_v1 = vld [vmem:[%s12522_s6 + $0x388] sm:$0xff] }
 0x5cb   : > { %v3386_v24 = vpop.xlane.xlu0 %3385 }
 0x5cc   : > { %v3496_v10 = vadd.f32 %v3464_v27, %v3386_v24 }
 0x5cd   : > { %v3389_v2 = vpop.xlane.xlu1 %3388 }
 0x5ce   : > { %v3560_v33 = vmax.f32 %v3528_v46, %v3496_v10  ;;  %v3497_v53 = vadd.f32 %v3465_v25, %v3389_v2  ;;  %v3472_v46 = vld [vmem:[%s12522_s6 + $0x380] sm:$0xff]  ;;  %v3877_v25 = vld [vmem:[%s12523_s7 + $0x210] sm:$0xff] }
 0x5cf   : > { %v3721_v6 = vld [vmem:[#allocation2 + $0x330] sm:$0xff] }
 0x5d0   : > { %3592 = vst.msk [vmem:[#allocation2 + $0x340] sm:$0xff] %vm504_vm1, %v3560_v33  ;;  %v3561_v40 = vmax.f32 %v3529_v5, %v3497_v53  ;;  %v3536_v5 = vld [vmem:[#allocation2 + $0x380] sm:$0xff]  ;;  %v7752_v53 = vcombine.low %v3869_v48, %v3873_v18 }
 0x5d1   : > { %v3722_v13 = vld [vmem:[#allocation2 + $0x338] sm:$0xff]  ;;  %6054 = vmatmul.mubr.bf16.gmra.mrb[96].mxu1 %v7728_v42  ;;  %v3889_v42 = vld [vmem:[%s12523_s7 + $0x270] sm:$0xff] }
 0x5d2   : > { %3593 = vst.msk [vmem:[#allocation2 + $0x348] sm:$0xff] %vm504_vm1, %v3561_v40  ;;  %v3798_v17 = vpack.c.bf16 %v3722_v13, %v3721_v6  ;;  %6061 = vmatprep.mubr.bf16.mxu1 %v7737_v59  ;;  %v3537_v6 = vld [vmem:[#allocation2 + $0x388] sm:$0xff]  ;;  %v7761_v13 = vcombine.high %v3877_v25, %v3881_v20  ;;  %v3475_v59 = vld [vmem:[%s12522_s6 + $0x398] sm:$0xff] }
 0x5d3   : > { %v3392_v32 = vpop.xlane.xlu0 %3391 }
 0x5d4   : > { %6285 = vmatpush1.bf16.msra.mxu1 %v3798_v17  ;;  %v3498_v29 = vadd.f32 %v3466_v21, %v3392_v32 }
 0x5d5   : > { %v3395_v4 = vpop.xlane.xlu1 %3394  ;;  %6286 = vmatprep.subr.bf16.mxu1 %v12727_v7 }
 0x5d6   : > { %v3562_v41 = vmax.f32 %v3530_v37, %v3498_v29  ;;  %v3499_v47 = vadd.f32 %v3467_v50, %v3395_v4  ;;  %v3474_v37 = vld [vmem:[%s12522_s6 + $0x390] sm:$0xff] }
 0x5d7   : > { %v3723_v39 = vld [vmem:[#allocation2 + $0x340] sm:$0xff]  ;;  %v3885_v50 = vld [vmem:[%s12523_s7 + $0x250] sm:$0xff] }
 0x5d8   : > { %3594 = vst.msk [vmem:[#allocation2 + $0x350] sm:$0xff] %vm504_vm1, %v3562_v41  ;;  %v3563_v44 = vmax.f32 %v3531_v38, %v3499_v47  ;;  %v3538_v38 = vld [vmem:[#allocation2 + $0x390] sm:$0xff]  ;;  %v7760_v47 = vcombine.low %v3877_v25, %v3881_v20 }
 0x5d9   : > { %v3724_v12 = vld [vmem:[#allocation2 + $0x348] sm:$0xff]  ;;  %6062 = vmatmul.mubr.bf16.gmra.mrb[100].mxu1 %v7736_v31  ;;  %v3897_v31 = vld [vmem:[%s12523_s7 + $0x2b0] sm:$0xff] }
 0x5da   : > { %3595 = vst.msk [vmem:[#allocation2 + $0x358] sm:$0xff] %vm504_vm1, %v3563_v44  ;;  %v3799_v58 = vpack.c.bf16 %v3724_v12, %v3723_v39  ;;  %6069 = vmatprep.mubr.bf16.mxu1 %v7745_v62  ;;  %v3539_v39 = vld [vmem:[#allocation2 + $0x398] sm:$0xff]  ;;  %v7769_v12 = vcombine.high %v3885_v50, %v3889_v42  ;;  %v3477_v62 = vld [vmem:[%s12522_s6 + $0x3a8] sm:$0xff] }
 0x5db   : > { %v3398_v34 = vpop.xlane.xlu0 %3397 }
 0x5dc   : > { %6287 = vmatpush1.bf16.msra.mxu1 %v3799_v58  ;;  %v3500_v60 = vadd.f32 %v3468_v35, %v3398_v34 }
 0x5dd   : > { %v3401_v52 = vpop.xlane.xlu1 %3400  ;;  %6288 = vmatprep.subr.bf16.mxu1 %v12727_v7 }
 0x5de   : > { %v3564_v14 = vmax.f32 %v3532_v36, %v3500_v60  ;;  %v3501_v16 = vadd.f32 %v3469_v51, %v3401_v52  ;;  %v3476_v36 = vld [vmem:[%s12522_s6 + $0x3a0] sm:$0xff]  ;;  %v3893_v51 = vld [vmem:[%s12523_s7 + $0x290] sm:$0xff] }
 0x5df   : > { %v3725_v54 = vld [vmem:[#allocation2 + $0x350] sm:$0xff] }
 0x5e0   : > { %3596 = vst.msk [vmem:[#allocation2 + $0x360] sm:$0xff] %vm504_vm1, %v3564_v14  ;;  %v3565_v9 = vmax.f32 %v3533_v3, %v3501_v16  ;;  %v3540_v3 = vld [vmem:[#allocation2 + $0x3a0] sm:$0xff]  ;;  %v7768_v16 = vcombine.low %v3885_v50, %v3889_v42 }
 0x5e1   : > { %v3726_v8 = vld [vmem:[#allocation2 + $0x358] sm:$0xff]  ;;  %6070 = vmatmul.mubr.bf16.gmra.mrb[104].mxu1 %v7744_v19  ;;  %v3905_v19 = vld [vmem:[%s12523_s7 + $0x2f0] sm:$0xff] }
 0x5e2   : > { %3597 = vst.msk [vmem:[#allocation2 + $0x368] sm:$0xff] %vm504_vm1, %v3565_v9  ;;  %v3800_v57 = vpack.c.bf16 %v3726_v8, %v3725_v54  ;;  %6077 = vmatprep.mubr.bf16.mxu1 %v7753_v49  ;;  %v3541_v54 = vld [vmem:[#allocation2 + $0x3a8] sm:$0xff]  ;;  %v7777_v8 = vcombine.high %v3893_v51, %v3897_v31  ;;  %v3479_v49 = vld [vmem:[%s12522_s6 + $0x3b8] sm:$0xff] }
 0x5e4   : > { %v3404_v56 = vpop.xlane.xlu0 %3403  ;;  %6289 = vmatpush1.bf16.msra.mxu1 %v3800_v57 }
 0x5e5   : > { %v3502_v55 = vadd.f32 %v3470_v22, %v3404_v56  ;;  %6290 = vmatprep.subr.bf16.mxu1 %v12727_v7 }
 0x5e6   : > { %v3407_v26 = vpop.xlane.xlu1 %3406 }
 0x5e7   : > { %v3566_v27 = vmax.f32 %v3534_v63, %v3502_v55  ;;  %v3503_v45 = vadd.f32 %v3471_v23, %v3407_v26  ;;  %v3727_v11 = vld [vmem:[#allocation2 + $0x360] sm:$0xff]  ;;  %v3478_v63 = vld [vmem:[%s12522_s6 + $0x3b0] sm:$0xff] }
 0x5e8   : > { %v3901_v23 = vld [vmem:[%s12523_s7 + $0x2d0] sm:$0xff] }
 0x5e9   : > { %3598 = vst.msk [vmem:[#allocation2 + $0x370] sm:$0xff] %vm504_vm1, %v3566_v27  ;;  %v3567_v15 = vmax.f32 %v3535_v30, %v3503_v45  ;;  %v3728_v24 = vld [vmem:[#allocation2 + $0x368] sm:$0xff]  ;;  %6078 = vmatmul.mubr.bf16.gmra.mrb[108].mxu1 %v7752_v53  ;;  %v3542_v30 = vld [vmem:[#allocation2 + $0x3b0] sm:$0xff]  ;;  %v7776_v45 = vcombine.low %v3893_v51, %v3897_v31 }
 0x5ea   : > { %v3801_v10 = vpack.c.bf16 %v3728_v24, %v3727_v11  ;;  %6085 = vmatprep.mubr.bf16.mxu1 %v7761_v13  ;;  %v3543_v11 = vld [vmem:[#allocation2 + $0x3b8] sm:$0xff]  ;;  %v7785_v24 = vcombine.high %v3901_v23, %v3905_v19  ;;  %v3913_v53 = vld [vmem:[%s12523_s7 + $0x330] sm:$0xff]  ;;  %v3481_v13 = vld [vmem:[%s12522_s6 + $0x3c8] sm:$0xff] }
 0x5eb   : > { %3599 = vst.msk [vmem:[#allocation2 + $0x378] sm:$0xff] %vm504_vm1, %v3567_v15 }
 0x5ec   : > { %v3410_v2 = vpop.xlane.xlu0 %3409  ;;  %6291 = vmatpush1.bf16.msra.mxu1 %v3801_v10 }
 0x5ed   : > { %v3504_v33 = vadd.f32 %v3472_v46, %v3410_v2  ;;  %6292 = vmatprep.subr.bf16.mxu1 %v12727_v7 }
 0x5ee   : > { %v3413_v40 = vpop.xlane.xlu1 %3412 }
 0x5ef   : > { %v3568_v21 = vmax.f32 %v3536_v5, %v3504_v33  ;;  %v3505_v28 = vadd.f32 %v3473_v1, %v3413_v40  ;;  %v3480_v5 = vld [vmem:[%s12522_s6 + $0x3c0] sm:$0xff]  ;;  %v3909_v1 = vld [vmem:[%s12523_s7 + $0x310] sm:$0xff] }
 0x5f0   : > { %v3729_v43 = vld [vmem:[#allocation2 + $0x370] sm:$0xff] }
 0x5f1   : > { %3600 = vst.msk [vmem:[#allocation2 + $0x380] sm:$0xff] %vm504_vm1, %v3568_v21  ;;  %v3569_v17 = vmax.f32 %v3537_v6, %v3505_v28  ;;  %6086 = vmatmul.mubr.bf16.gmra.mrb[112].mxu1 %v7760_v47  ;;  %v3544_v6 = vld [vmem:[#allocation2 + $0x3c0] sm:$0xff]  ;;  %v7784_v28 = vcombine.low %v3901_v23, %v3905_v19  ;;  %v3921_v47 = vld [vmem:[%s12523_s7 + $0x370] sm:$0xff] }
 0x5f2   : > { %v3730_v32 = vld [vmem:[#allocation2 + $0x378] sm:$0xff]  ;;  %6093 = vmatprep.mubr.bf16.mxu1 %v7769_v12 }
 0x5f3   : > { %3601 = vst.msk [vmem:[#allocation2 + $0x388] sm:$0xff] %vm504_vm1, %v3569_v17  ;;  %v3802_v29 = vpack.c.bf16 %v3730_v32, %v3729_v43  ;;  %v3545_v43 = vld [vmem:[#allocation2 + $0x3c8] sm:$0xff]  ;;  %v7793_v32 = vcombine.high %v3909_v1, %v3913_v53  ;;  %v3483_v12 = vld [vmem:[%s12522_s6 + $0x3d8] sm:$0xff] }
 0x5f4   : > { %v3416_v4 = vpop.xlane.xlu0 %3415 }
 0x5f5   : > { %6293 = vmatpush1.bf16.msra.mxu1 %v3802_v29  ;;  %v3506_v41 = vadd.f32 %v3474_v37, %v3416_v4 }
 0x5f6   : > { %v3419_v44 = vpop.xlane.xlu1 %3418  ;;  %6294 = vmatprep.subr.bf16.mxu1 %v12727_v7 }
 0x5f7   : > { %v3570_v35 = vmax.f32 %v3538_v38, %v3506_v41  ;;  %v3507_v0 = vadd.f32 %v3475_v59, %v3419_v44  ;;  %v3482_v38 = vld [vmem:[%s12522_s6 + $0x3d0] sm:$0xff] }
 0x5f8   : > { %v3731_v61 = vld [vmem:[#allocation2 + $0x380] sm:$0xff]  ;;  %v3917_v59 = vld [vmem:[%s12523_s7 + $0x350] sm:$0xff] }
 0x5f9   : > { %3602 = vst.msk [vmem:[#allocation2 + $0x390] sm:$0xff] %vm504_vm1, %v3570_v35  ;;  %v3571_v58 = vmax.f32 %v3539_v39, %v3507_v0  ;;  %6094 = vmatmul.mubr.bf16.gmra.mrb[116].mxu1 %v7768_v16  ;;  %v3546_v39 = vld [vmem:[#allocation2 + $0x3d0] sm:$0xff]  ;;  %v7792_v0 = vcombine.low %v3909_v1, %v3913_v53 }
 0x5fa   : > { %v3732_v34 = vld [vmem:[#allocation2 + $0x388] sm:$0xff]  ;;  %6101 = vmatprep.mubr.bf16.mxu1 %v7777_v8  ;;  %v3929_v16 = vld [vmem:[%s12523_s7 + $0x3b0] sm:$0xff] }
 0x5fb   : > { %3603 = vst.msk [vmem:[#allocation2 + $0x398] sm:$0xff] %vm504_vm1, %v3571_v58  ;;  %v3803_v60 = vpack.c.bf16 %v3732_v34, %v3731_v61  ;;  %v3547_v61 = vld [vmem:[#allocation2 + $0x3d8] sm:$0xff]  ;;  %v7801_v34 = vcombine.high %v3917_v59, %v3921_v47  ;;  %v3485_v8 = vld [vmem:[%s12522_s6 + $0x3e8] sm:$0xff] }
 0x5fc   : > { %v3422_v52 = vpop.xlane.xlu0 %3421 }
 0x5fd   : > { %6295 = vmatpush1.bf16.msra.mxu1 %v3803_v60  ;;  %v3508_v14 = vadd.f32 %v3476_v36, %v3422_v52 }
 0x5fe   : > { %v3425_v9 = vpop.xlane.xlu1 %3424  ;;  %6296 = vmatprep.subr.bf16.mxu1 %v12727_v7 }
 0x5ff   : > { %v3572_v22 = vmax.f32 %v3540_v3, %v3508_v14  ;;  %v3509_v48 = vadd.f32 %v3477_v62, %v3425_v9  ;;  %v3484_v3 = vld [vmem:[%s12522_s6 + $0x3e0] sm:$0xff]  ;;  %v3925_v62 = vld [vmem:[%s12523_s7 + $0x390] sm:$0xff] }
 0x600   : > { %v3733_v18 = vld [vmem:[#allocation2 + $0x390] sm:$0xff] }
 0x601   : > { %3604 = vst.msk [vmem:[#allocation2 + $0x3a0] sm:$0xff] %vm504_vm1, %v3572_v22  ;;  %v3573_v57 = vmax.f32 %v3541_v54, %v3509_v48  ;;  %6102 = vmatmul.mubr.bf16.gmra.mrb[120].mxu1 %v7776_v45  ;;  %v3548_v54 = vld [vmem:[#allocation2 + $0x3e0] sm:$0xff]  ;;  %v7800_v48 = vcombine.low %v3917_v59, %v3921_v47  ;;  %v3937_v45 = vld [vmem:[%s12523_s7 + $0x3f0] sm:$0xff] }
 0x602   : > { %v3734_v56 = vld [vmem:[#allocation2 + $0x398] sm:$0xff]  ;;  %6109 = vmatprep.mubr.bf16.mxu1 %v7785_v24  ;;  %v3819_v47 = vld [vmem:[%s12523_s7 + $0x40] sm:$0xff] }
 0x603   : > { %3605 = vst.msk [vmem:[#allocation2 + $0x3a8] sm:$0xff] %vm504_vm1, %v3573_v57  ;;  %v3804_v55 = vpack.c.bf16 %v3734_v56, %v3733_v18  ;;  %v3549_v18 = vld [vmem:[#allocation2 + $0x3e8] sm:$0xff]  ;;  %v7809_v56 = vcombine.high %v3925_v62, %v3929_v16  ;;  %v3487_v24 = vld [vmem:[%s12522_s6 + $0x3f8] sm:$0xff] }
 0x604   : > { %v3428_v26 = vpop.xlane.xlu0 %3427 }
 0x605   : > { %6297 = vmatpush1.bf16.msra.mxu1 %v3804_v55  ;;  %v3510_v27 = vadd.f32 %v3478_v63, %v3428_v26 }
 0x606   : > { %v3431_v15 = vpop.xlane.xlu1 %3430  ;;  %6298 = vmatprep.subr.bf16.mxu1 %v12727_v7 }
 0x607   : > { %v3574_v46 = vmax.f32 %v3542_v30, %v3510_v27  ;;  %v3511_v25 = vadd.f32 %v3479_v49, %v3431_v15  ;;  %v3486_v30 = vld [vmem:[%s12522_s6 + $0x3f0] sm:$0xff] }
 0x608   : > { %v3735_v20 = vld [vmem:[#allocation2 + $0x3a0] sm:$0xff]  ;;  %v3933_v49 = vld [vmem:[%s12523_s7 + $0x3d0] sm:$0xff] }
 0x609   : > { %3606 = vst.msk [vmem:[#allocation2 + $0x3b0] sm:$0xff] %vm504_vm1, %v3574_v46  ;;  %v3575_v10 = vmax.f32 %v3543_v11, %v3511_v25  ;;  %6110 = vmatmul.mubr.bf16.gmra.mrb[124].mxu1 %v7784_v28  ;;  %v3550_v11 = vld [vmem:[#allocation2 + $0x3f0] sm:$0xff]  ;;  %v7808_v25 = vcombine.low %v3925_v62, %v3929_v16  ;;  %v7816_v28 = vcombine.low %v3933_v49, %v3937_v45  ;;  %v3839_v16 = vld [vmem:[%s12523_s7 + $0xe0] sm:$0xff] }
 0x60a   : > { %v3736_v2 = vld [vmem:[#allocation2 + $0x3a8] sm:$0xff]  ;;  %6117 = vmatprep.mubr.bf16.mxu1 %v7793_v32  ;;  %v3815_v32 = vld [vmem:[%s12523_s7 + $0x20] sm:$0xff] }
 0x60b   : > { %3607 = vst.msk [vmem:[#allocation2 + $0x3b8] sm:$0xff] %vm504_vm1, %v3575_v10  ;;  %v3805_v33 = vpack.c.bf16 %v3736_v2, %v3735_v20  ;;  %v3551_v20 = vld [vmem:[#allocation2 + $0x3f8] sm:$0xff]  ;;  %v7817_v2 = vcombine.high %v3933_v49, %v3937_v45  ;;  %v3851_v49 = vld [vmem:[%s12523_s7 + $0x140] sm:$0xff] }
 0x60c   : > { %v3434_v40 = vpop.xlane.xlu0 %3433 }
 0x60d   : > { %6299 = vmatpush1.bf16.msra.mxu1 %v3805_v33  ;;  %v3512_v21 = vadd.f32 %v3480_v5, %v3434_v40 }
 0x60e   : > { %v3437_v17 = vpop.xlane.xlu1 %3436  ;;  %6300 = vmatprep.subr.bf16.mxu1 %v12727_v7 }
 0x60f   : > { %v3576_v37 = vmax.f32 %v3544_v6, %v3512_v21  ;;  %v3513_v50 = vadd.f32 %v3481_v13, %v3437_v17  ;;  %v3941_v13 = vld [vmem:[%s12523_s7 + $0x410] sm:$0xff] }
 0x610   : > { %v3737_v42 = vld [vmem:[#allocation2 + $0x3b0] sm:$0xff] }
 0x611   : > { %3608 = vst.msk [vmem:[#allocation2 + $0x3c0] sm:$0xff] %vm504_vm1, %v3576_v37  ;;  %v3577_v29 = vmax.f32 %v3545_v43, %v3513_v50  ;;  %6118 = vmatmul.mubr.bf16.gmra.mrb[128].mxu1 %v7792_v0  ;;  %v3945_v21 = vld [vmem:[%s12523_s7 + $0x430] sm:$0xff]  ;;  %v3811_v43 = vld [vmem:[%s12523_s7] sm:$0xff] }
 0x612   : > { %v3738_v4 = vld [vmem:[#allocation2 + $0x3b8] sm:$0xff]  ;;  %6125 = vmatprep.mubr.bf16.mxu1 %v7801_v34  ;;  %v7825_v17 = vcombine.high %v3941_v13, %v3945_v21  ;;  %v7692_v50 = vcombine.low %v3811_v43, %v3815_v32  ;;  %v7824_v59 = vcombine.low %v3941_v13, %v3945_v21  ;;  %v3961_v0 = vld [vmem:[%s12523_s7 + $0x4b0] sm:$0xff]  ;;  %v3827_v34 = vld [vmem:[%s12523_s7 + $0x80] sm:$0xff] }
 0x613   : > { %3609 = vst.msk [vmem:[#allocation2 + $0x3c8] sm:$0xff] %vm504_vm1, %v3577_v29  ;;  %v3806_v41 = vpack.c.bf16 %v3738_v4, %v3737_v42  ;;  %v7693_v29 = vcombine.high %v3811_v43, %v3815_v32  ;;  %v3949_v4 = vld [vmem:[%s12523_s7 + $0x450] sm:$0xff]  ;;  %v3871_v13 = vld [vmem:[%s12523_s7 + $0x1e0] sm:$0xff] }
 0x614   : > { %v3440_v44 = vpop.xlane.xlu0 %3439  ;;  %v4009_v43 = vld [vmem:[%s12523_s7 + $0x630] sm:$0xff] }
 0x615   : > { %6301 = vmatpush1.bf16.msra.mxu1 %v3806_v41  ;;  %v3514_v35 = vadd.f32 %v3482_v38, %v3440_v44  ;;  %5443 = vmatprep.mubr.bf16.mxu0 %v7693_v29  ;;  %v3823_v44 = vld [vmem:[%s12523_s7 + $0x60] sm:$0xff] }
 0x616   : > { %v3443_v58 = vpop.xlane.xlu1 %3442  ;;  %6302 = vmatprep.subr.bf16.mxu1 %v12727_v7  ;;  %5444 = vmatmul.mubr.bf16.vlgmr.msra.gmra.mrb[208].mxu0 %v7692_v50  ;;  %v3875_v50 = vld [vmem:[%s12523_s7 + $0x200] sm:$0xff] }
 0x617   : > { %v3578_v36 = vmax.f32 %v3546_v39, %v3514_v35  ;;  %v3515_v51 = vadd.f32 %v3483_v12, %v3443_v58  ;;  %v7701_v39 = vcombine.high %v3819_v47, %v3823_v44  ;;  %v7700_v12 = vcombine.low %v3819_v47, %v3823_v44  ;;  %v3957_v35 = vld [vmem:[%s12523_s7 + $0x490] sm:$0xff]  ;;  %v3879_v29 = vld [vmem:[%s12523_s7 + $0x220] sm:$0xff] }
 0x618   : > { %v3739_v31 = vld [vmem:[#allocation2 + $0x3c0] sm:$0xff] }
 0x619   : > { %3610 = vst.msk [vmem:[#allocation2 + $0x3d0] sm:$0xff] %vm504_vm1, %v3578_v36  ;;  %v3579_v60 = vmax.f32 %v3547_v61, %v3515_v51  ;;  %6126 = vmatmul.mubr.bf16.gmra.mrb[132].mxu1 %v7800_v48  ;;  %5451 = vmatprep.mubr.bf16.mxu0 %v7701_v39  ;;  %v7841_v61 = vcombine.high %v3957_v35, %v3961_v0  ;;  %v3831_v36 = vld [vmem:[%s12523_s7 + $0xa0] sm:$0xff] }
 0x61a   : > { %v3740_v52 = vld [vmem:[#allocation2 + $0x3c8] sm:$0xff]  ;;  %6133 = vmatprep.mubr.bf16.mxu1 %v7809_v56  ;;  %v7709_v51 = vcombine.high %v3827_v34, %v3831_v36  ;;  %v3847_v56 = vld [vmem:[%s12523_s7 + $0x120] sm:$0xff] }
 0x61b   : > { %3611 = vst.msk [vmem:[#allocation2 + $0x3d8] sm:$0xff] %vm504_vm1, %v3579_v60  ;;  %v3807_v14 = vpack.c.bf16 %v3740_v52, %v3739_v31  ;;  %v7708_v60 = vcombine.low %v3827_v34, %v3831_v36  ;;  %v3965_v31 = vld [vmem:[%s12523_s7 + $0x4d0] sm:$0xff]  ;;  %v3883_v47 = vld [vmem:[%s12523_s7 + $0x240] sm:$0xff] }
 0x61c   : > { %v3446_v9 = vpop.xlane.xlu0 %3445  ;;  %v3969_v52 = vld [vmem:[%s12523_s7 + $0x4f0] sm:$0xff]  ;;  %v3887_v44 = vld [vmem:[%s12523_s7 + $0x260] sm:$0xff] }
 0x61d   : > { %6303 = vmatpush1.bf16.msra.mxu1 %v3807_v14  ;;  %v3516_v22 = vadd.f32 %v3484_v3, %v3446_v9  ;;  %v7840_v3 = vcombine.low %v3957_v35, %v3961_v0  ;;  %v7849_v62 = vcombine.high %v3965_v31, %v3969_v52  ;;  %v3835_v14 = vld [vmem:[%s12523_s7 + $0xc0] sm:$0xff]  ;;  %v7848_v48 = vcombine.low %v3965_v31, %v3969_v52  ;;  %v4021_v35 = vld [vmem:[%s12523_s7 + $0x690] sm:$0xff] }
 0x61e   : > { %v3449_v57 = vpop.xlane.xlu1 %3448  ;;  %6304 = vmatprep.subr.bf16.mxu1 %v12727_v7  ;;  %5452 = vmatmul.mubr.bf16.gmra.mrb[212].mxu0 %v7700_v12  ;;  %v7717_v9 = vcombine.high %v3835_v14, %v3839_v16  ;;  %v7765_v39 = vcombine.high %v3883_v47, %v3887_v44  ;;  %v7764_v12 = vcombine.low %v3883_v47, %v3887_v44  ;;  %v4025_v0 = vld [vmem:[%s12523_s7 + $0x6b0] sm:$0xff]  ;;  %v3891_v34 = vld [vmem:[%s12523_s7 + $0x280] sm:$0xff] }
 0x61f   : > { %v3580_v63 = vmax.f32 %v3548_v54, %v3516_v22  ;;  %v3517_v23 = vadd.f32 %v3485_v8, %v3449_v57  ;;  %5459 = vmatprep.mubr.bf16.mxu0 %v7709_v51  ;;  %v7716_v54 = vcombine.low %v3835_v14, %v3839_v16  ;;  %v3973_v8 = vld [vmem:[%s12523_s7 + $0x510] sm:$0xff]  ;;  %v3895_v36 = vld [vmem:[%s12523_s7 + $0x2a0] sm:$0xff] }
 0x620   : > { %v3741_v19 = vld [vmem:[#allocation2 + $0x3d0] sm:$0xff]  ;;  %v7773_v51 = vcombine.high %v3891_v34, %v3895_v36  ;;  %v3899_v14 = vld [vmem:[%s12523_s7 + $0x2c0] sm:$0xff] }
 0x621   : > { %3612 = vst.msk [vmem:[#allocation2 + $0x3e0] sm:$0xff] %vm504_vm1, %v3580_v63  ;;  %v3581_v55 = vmax.f32 %v3549_v18, %v3517_v23  ;;  %6134 = vmatmul.mubr.bf16.gmra.mrb[136].mxu1 %v7808_v25  ;;  %v3977_v22 = vld [vmem:[%s12523_s7 + $0x530] sm:$0xff]  ;;  %v3843_v18 = vld [vmem:[%s12523_s7 + $0x100] sm:$0xff] }
 0x622   : > { %v3742_v26 = vld [vmem:[#allocation2 + $0x3d8] sm:$0xff]  ;;  %6141 = vmatprep.mubr.bf16.mxu1 %v7817_v2  ;;  %v7857_v57 = vcombine.high %v3973_v8, %v3977_v22  ;;  %v7725_v63 = vcombine.high %v3843_v18, %v3847_v56  ;;  %v7724_v23 = vcombine.low %v3843_v18, %v3847_v56  ;;  %v4029_v31 = vld [vmem:[%s12523_s7 + $0x6d0] sm:$0xff]  ;;  %v3903_v16 = vld [vmem:[%s12523_s7 + $0x2e0] sm:$0xff] }
 0x623   : > { %3613 = vst.msk [vmem:[#allocation2 + $0x3e8] sm:$0xff] %vm504_vm1, %v3581_v55  ;;  %v3808_v27 = vpack.c.bf16 %v3742_v26, %v3741_v19  ;;  %v3981_v55 = vld [vmem:[%s12523_s7 + $0x550] sm:$0xff]  ;;  %v7856_v26 = vcombine.low %v3973_v8, %v3977_v22  ;;  %v3907_v18 = vld [vmem:[%s12523_s7 + $0x300] sm:$0xff] }
 0x624   : > { %v3452_v15 = vpop.xlane.xlu0 %3451  ;;  %v3985_v19 = vld [vmem:[%s12523_s7 + $0x570] sm:$0xff]  ;;  %v3911_v56 = vld [vmem:[%s12523_s7 + $0x320] sm:$0xff] }
 0x625   : > { %6305 = vmatpush1.bf16.msra.mxu1 %v3808_v27  ;;  %v3518_v46 = vadd.f32 %v3486_v30, %v3452_v15  ;;  %v7865_v30 = vcombine.high %v3981_v55, %v3985_v19  ;;  %v3855_v27 = vld [vmem:[%s12523_s7 + $0x160] sm:$0xff]  ;;  %v4033_v52 = vld [vmem:[%s12523_s7 + $0x6f0] sm:$0xff] }
 0x626   : > { %v3455_v10 = vpop.xlane.xlu1 %3454  ;;  %6306 = vmatprep.subr.bf16.mxu1 %v12727_v7  ;;  %5460 = vmatmul.mubr.bf16.gmra.mrb[216].mxu0 %v7708_v60  ;;  %v7733_v45 = vcombine.high %v3851_v49, %v3855_v27  ;;  %v7732_v15 = vcombine.low %v3851_v49, %v3855_v27  ;;  %v7772_v60 = vcombine.low %v3891_v34, %v3895_v36  ;;  %v4037_v8 = vld [vmem:[%s12523_s7 + $0x710] sm:$0xff]  ;;  %v3915_v49 = vld [vmem:[%s12523_s7 + $0x340] sm:$0xff] }
 0x627   : > { %v3582_v5 = vmax.f32 %v3550_v11, %v3518_v46  ;;  %v3519_v1 = vadd.f32 %v3487_v24, %v3455_v10  ;;  %5467 = vmatprep.mubr.bf16.mxu0 %v7717_v9  ;;  %v3989_v11 = vld [vmem:[%s12523_s7 + $0x590] sm:$0xff]  ;;  %v7864_v46 = vcombine.low %v3981_v55, %v3985_v19  ;;  %v3859_v10 = vld [vmem:[%s12523_s7 + $0x180] sm:$0xff]  ;;  %v7781_v9 = vcombine.high %v3899_v14, %v3903_v16 }
 0x628   : > { %v3743_v53 = vld [vmem:[#allocation2 + $0x3e0] sm:$0xff]  ;;  %v3993_v24 = vld [vmem:[%s12523_s7 + $0x5b0] sm:$0xff] }
 0x629   : > { %3614 = vst.msk [vmem:[#allocation2 + $0x3f0] sm:$0xff] %vm504_vm1, %v3582_v5  ;;  %v3583_v33 = vmax.f32 %v3551_v20, %v3519_v1  ;;  %6142 = vmatmul.mubr.bf16.gmra.mrb[140].mxu1 %v7816_v28  ;;  %v7873_v25 = vcombine.high %v3989_v11, %v3993_v24  ;;  %v3863_v20 = vld [vmem:[%s12523_s7 + $0x1a0] sm:$0xff]  ;;  %v3997_v1 = vld [vmem:[%s12523_s7 + $0x5d0] sm:$0xff] }
 0x62a   : > { %v3744_v40 = vld [vmem:[#allocation2 + $0x3e8] sm:$0xff]  ;;  %6149 = vmatprep.mubr.bf16.mxu1 %v7825_v17  ;;  %v7741_v2 = vcombine.high %v3859_v10, %v3863_v20  ;;  %v7740_v5 = vcombine.low %v3859_v10, %v3863_v20  ;;  %v4005_v17 = vld [vmem:[%s12523_s7 + $0x610] sm:$0xff]  ;;  %v3919_v27 = vld [vmem:[%s12523_s7 + $0x360] sm:$0xff] }
 0x62b   : > { %3615 = vst.msk [vmem:[#allocation2 + $0x3f8] sm:$0xff] %vm504_vm1, %v3583_v33  ;;  %v3809_v6 = vpack.c.bf16 %v3744_v40, %v3743_v53  ;;  %v4001_v33 = vld [vmem:[%s12523_s7 + $0x5f0] sm:$0xff]  ;;  %v7872_v53 = vcombine.low %v3989_v11, %v3993_v24  ;;  %v3923_v10 = vld [vmem:[%s12523_s7 + $0x380] sm:$0xff] }
 0x62c   : > { %v7881_v40 = vcombine.high %v3997_v1, %v4001_v33  ;;  %v7880_v32 = vcombine.low %v3997_v1, %v4001_v33  ;;  %v4041_v22 = vld [vmem:[%s12523_s7 + $0x730] sm:$0xff]  ;;  %v3927_v20 = vld [vmem:[%s12523_s7 + $0x3a0] sm:$0xff] }
 0x62d   : > { %6307 = vmatpush1.bf16.msra.mxu1 %v3809_v6  ;;  %v3867_v6 = vld [vmem:[%s12523_s7 + $0x1c0] sm:$0xff]  ;;  %v4045_v55 = vld [vmem:[%s12523_s7 + $0x750] sm:$0xff] }
 0x62e   : > { %6308 = vmatprep.subr.bf16.mxu1 %v12727_v7  ;;  %v3953_v7 = vld [vmem:[%s12523_s7 + $0x470] sm:$0xff]  ;;  %5468 = vmatmul.mubr.bf16.gmra.mrb[220].mxu0 %v7716_v54  ;;  %v7749_v21 = vcombine.high %v3867_v6, %v3871_v13  ;;  %v7748_v28 = vcombine.low %v3867_v6, %v3871_v13  ;;  %v7780_v54 = vcombine.low %v3899_v14, %v3903_v16  ;;  %v3931_v6 = vld [vmem:[%s12523_s7 + $0x3c0] sm:$0xff] }
 0x62f   : > { %v7833_v41 = vcombine.high %v3949_v4, %v3953_v7  ;;  %v7832_v58 = vcombine.low %v3949_v4, %v3953_v7  ;;  %5475 = vmatprep.mubr.bf16.mxu0 %v7725_v63  ;;  %v7756_v4 = vcombine.low %v3875_v50, %v3879_v29  ;;  %v4013_v7 = vld [vmem:[%s12523_s7 + $0x650] sm:$0xff]  ;;  %v7788_v63 = vcombine.low %v3907_v18, %v3911_v56  ;;  %v3935_v13 = vld [vmem:[%s12523_s7 + $0x3e0] sm:$0xff] }
 0x630   : > { %v3745_v37 = vld [vmem:[#allocation2 + $0x3f0] sm:$0xff]  ;;  %v3947_v47 = vld [vmem:[%s12523_s7 + $0x440] sm:$0xff] }
 0x631   : > { %6150 = vmatmul.mubr.bf16.gmra.mrb[144].mxu1 %v7824_v59  ;;  %v7888_v59 = vcombine.low %v4005_v17, %v4009_v43  ;;  %v4049_v19 = vld [vmem:[%s12523_s7 + $0x770] sm:$0xff]  ;;  %v3951_v44 = vld [vmem:[%s12523_s7 + $0x460] sm:$0xff] }
 0x632   : > { %v3746_v42 = vld [vmem:[#allocation2 + $0x3f8] sm:$0xff]  ;;  %6157 = vmatprep.mubr.bf16.mxu1 %v7833_v41  ;;  %v4053_v11 = vld [vmem:[%s12523_s7 + $0x790] sm:$0xff]  ;;  %v3955_v34 = vld [vmem:[%s12523_s7 + $0x480] sm:$0xff] }
 0x633   : > { %v3810_v38 = vpack.c.bf16 %v3746_v42, %v3745_v37  ;;  %v7889_v37 = vcombine.high %v4005_v17, %v4009_v43  ;;  %v7757_v42 = vcombine.high %v3875_v50, %v3879_v29  ;;  %v4057_v24 = vld [vmem:[%s12523_s7 + $0x7b0] sm:$0xff]  ;;  %v3814_v17 = vld [vmem:[%s12523_s7 + $0x18] sm:$0xff]  ;;  %v3939_v50 = vld [vmem:[%s12523_s7 + $0x400] sm:$0xff] }
 0x634   : > { %v4061_v1 = vld [vmem:[%s12523_s7 + $0x7d0] sm:$0xff]  ;;  %v3818_v43 = vld [vmem:[%s12523_s7 + $0x38] sm:$0xff]  ;;  %v3943_v29 = vld [vmem:[%s12523_s7 + $0x420] sm:$0xff] }
 0x635   : > { %6309 = vmatpush1.bf16.msra.mxu1 %v3810_v38  ;;  %v4017_v38 = vld [vmem:[%s12523_s7 + $0x670] sm:$0xff]  ;;  %v3959_v36 = vld [vmem:[%s12523_s7 + $0x4a0] sm:$0xff] }
 0x636   : > { %5476 = vmatmul.mubr.bf16.gmra.mrb[224].mxu0 %v7724_v23  ;;  %v7897_v41 = vcombine.high %v4013_v7, %v4017_v38  ;;  %v7789_v23 = vcombine.high %v3907_v18, %v3911_v56  ;;  %v4065_v33 = vld [vmem:[%s12523_s7 + $0x7f0] sm:$0xff]  ;;  %v3963_v14 = vld [vmem:[%s12523_s7 + $0x4c0] sm:$0xff] }
 0x637   : > { %5483 = vmatprep.mubr.bf16.mxu0 %v7733_v45  ;;  %v7796_v45 = vcombine.low %v3915_v49, %v3919_v27  ;;  %v3967_v16 = vld [vmem:[%s12523_s7 + $0x4e0] sm:$0xff] }
 0x638   : > { %v3971_v18 = vld [vmem:[%s12523_s7 + $0x500] sm:$0xff] }
 0x639   : > { %6158 = vmatmul.mubr.bf16.gmra.mrb[148].mxu1 %v7832_v58  ;;  %v7896_v58 = vcombine.low %v4013_v7, %v4017_v38  ;;  %v3822_v7 = vld [vmem:[%s12523_s7 + $0x58] sm:$0xff]  ;;  %v3975_v56 = vld [vmem:[%s12523_s7 + $0x520] sm:$0xff] }
 0x63a   : > { %6165 = vmatprep.mubr.bf16.mxu1 %v7841_v61  ;;  %v7905_v61 = vcombine.high %v4021_v35, %v4025_v0  ;;  %v3826_v38 = vld [vmem:[%s12523_s7 + $0x78] sm:$0xff] }
 0x63e   : > { %5484 = vmatmul.mubr.bf16.gmra.mrb[228].mxu0 %v7732_v15  ;;  %v7797_v15 = vcombine.high %v3915_v49, %v3919_v27  ;;  %v3979_v49 = vld [vmem:[%s12523_s7 + $0x540] sm:$0xff] }
 0x63f   : > { %5491 = vmatprep.mubr.bf16.mxu0 %v7741_v2  ;;  %v7804_v2 = vcombine.low %v3923_v10, %v3927_v20  ;;  %v3983_v27 = vld [vmem:[%s12523_s7 + $0x560] sm:$0xff] }
 0x641   : > { %6166 = vmatmul.mubr.bf16.gmra.mrb[152].mxu1 %v7840_v3  ;;  %v7904_v3 = vcombine.low %v4021_v35, %v4025_v0  ;;  %v3830_v35 = vld [vmem:[%s12523_s7 + $0x98] sm:$0xff] }
 0x642   : > { %6173 = vmatprep.mubr.bf16.mxu1 %v7849_v62  ;;  %v7913_v62 = vcombine.high %v4029_v31, %v4033_v52  ;;  %v3834_v0 = vld [vmem:[%s12523_s7 + $0xb8] sm:$0xff] }
 0x646   : > { %5492 = vmatmul.mubr.bf16.gmra.mrb[232].mxu0 %v7740_v5  ;;  %v7805_v5 = vcombine.high %v3923_v10, %v3927_v20  ;;  %v3987_v10 = vld [vmem:[%s12523_s7 + $0x580] sm:$0xff] }
 0x647   : > { %5499 = vmatprep.mubr.bf16.mxu0 %v7749_v21  ;;  %v7812_v21 = vcombine.low %v3931_v6, %v3935_v13  ;;  %v3991_v20 = vld [vmem:[%s12523_s7 + $0x5a0] sm:$0xff] }
 0x649   : > { %6174 = vmatmul.mubr.bf16.gmra.mrb[156].mxu1 %v7848_v48  ;;  %v7912_v48 = vcombine.low %v4029_v31, %v4033_v52  ;;  %v3838_v31 = vld [vmem:[%s12523_s7 + $0xd8] sm:$0xff] }
 0x64a   : > { %6181 = vmatprep.mubr.bf16.mxu1 %v7857_v57  ;;  %v7921_v57 = vcombine.high %v4037_v8, %v4041_v22  ;;  %v3842_v52 = vld [vmem:[%s12523_s7 + $0xf8] sm:$0xff] }
 0x64e   : > { %5500 = vmatmul.mubr.bf16.gmra.mrb[236].mxu0 %v7748_v28  ;;  %v7813_v28 = vcombine.high %v3931_v6, %v3935_v13  ;;  %v3995_v6 = vld [vmem:[%s12523_s7 + $0x5c0] sm:$0xff] }
 0x64f   : > { %5507 = vmatprep.mubr.bf16.mxu0 %v7757_v42  ;;  %v7820_v42 = vcombine.low %v3939_v50, %v3943_v29  ;;  %v3999_v13 = vld [vmem:[%s12523_s7 + $0x5e0] sm:$0xff] }
 0x651   : > { %6182 = vmatmul.mubr.bf16.gmra.mrb[160].mxu1 %v7856_v26  ;;  %v7920_v26 = vcombine.low %v4037_v8, %v4041_v22  ;;  %v3846_v8 = vld [vmem:[%s12523_s7 + $0x118] sm:$0xff] }
 0x652   : > { %6189 = vmatprep.mubr.bf16.mxu1 %v7865_v30  ;;  %v7929_v30 = vcombine.high %v4045_v55, %v4049_v19  ;;  %v3850_v22 = vld [vmem:[%s12523_s7 + $0x138] sm:$0xff] }
 0x656   : > { %5508 = vmatmul.mubr.bf16.gmra.mrb[240].mxu0 %v7756_v4  ;;  %v7821_v4 = vcombine.high %v3939_v50, %v3943_v29  ;;  %v4003_v50 = vld [vmem:[%s12523_s7 + $0x600] sm:$0xff] }
 0x657   : > { %5515 = vmatprep.mubr.bf16.mxu0 %v7765_v39  ;;  %v7828_v39 = vcombine.low %v3947_v47, %v3951_v44  ;;  %v4007_v29 = vld [vmem:[%s12523_s7 + $0x620] sm:$0xff] }
 0x659   : > { %6190 = vmatmul.mubr.bf16.gmra.mrb[164].mxu1 %v7864_v46  ;;  %v7928_v46 = vcombine.low %v4045_v55, %v4049_v19  ;;  %v3854_v55 = vld [vmem:[%s12523_s7 + $0x158] sm:$0xff] }
 0x65a   : > { %6197 = vmatprep.mubr.bf16.mxu1 %v7873_v25  ;;  %v7937_v25 = vcombine.high %v4053_v11, %v4057_v24  ;;  %v3858_v19 = vld [vmem:[%s12523_s7 + $0x178] sm:$0xff] }
 0x65e   : > { %5516 = vmatmul.mubr.bf16.gmra.mrb[244].mxu0 %v7764_v12  ;;  %v7829_v12 = vcombine.high %v3947_v47, %v3951_v44  ;;  %v4011_v47 = vld [vmem:[%s12523_s7 + $0x640] sm:$0xff] }
 0x65f   : > { %5523 = vmatprep.mubr.bf16.mxu0 %v7773_v51  ;;  %v7836_v51 = vcombine.low %v3955_v34, %v3959_v36  ;;  %v4015_v44 = vld [vmem:[%s12523_s7 + $0x660] sm:$0xff] }
 0x661   : > { %6198 = vmatmul.mubr.bf16.gmra.mrb[168].mxu1 %v7872_v53  ;;  %v7936_v53 = vcombine.low %v4053_v11, %v4057_v24  ;;  %v3862_v11 = vld [vmem:[%s12523_s7 + $0x198] sm:$0xff] }
 0x662   : > { %6205 = vmatprep.mubr.bf16.mxu1 %v7881_v40  ;;  %v7945_v40 = vcombine.high %v4061_v1, %v4065_v33  ;;  %v3866_v24 = vld [vmem:[%s12523_s7 + $0x1b8] sm:$0xff] }
 0x666   : > { %5524 = vmatmul.mubr.bf16.gmra.mrb[248].mxu0 %v7772_v60  ;;  %v7837_v60 = vcombine.high %v3955_v34, %v3959_v36  ;;  %v4019_v34 = vld [vmem:[%s12523_s7 + $0x680] sm:$0xff] }
 0x667   : > { %5531 = vmatprep.mubr.bf16.mxu0 %v7781_v9  ;;  %v7844_v9 = vcombine.low %v3963_v14, %v3967_v16  ;;  %v4023_v36 = vld [vmem:[%s12523_s7 + $0x6a0] sm:$0xff] }
 0x669   : > { %6206 = vmatmul.mubr.bf16.gmra.mrb[172].mxu1 %v7880_v32  ;;  %v7944_v32 = vcombine.low %v4061_v1, %v4065_v33  ;;  %v3870_v1 = vld [vmem:[%s12523_s7 + $0x1d8] sm:$0xff] }
 0x66a   : > { %6213 = vmatprep.mubr.bf16.mxu1 %v7889_v37  ;;  %v7699_v37 = vcombine.high %v3814_v17, %v3818_v43  ;;  %v3874_v33 = vld [vmem:[%s12523_s7 + $0x1f8] sm:$0xff] }
 0x66e   : > { %5532 = vmatmul.mubr.bf16.gmra.mrb[252].mxu0 %v7780_v54  ;;  %v7845_v54 = vcombine.high %v3963_v14, %v3967_v16 }
 0x66f   : > { %5539 = vmatprep.mubr.bf16.mxu0 %v7789_v23  ;;  %v7853_v23 = vcombine.high %v3971_v18, %v3975_v56 }
 0x671   : > { %6214 = vmatmul.mubr.bf16.gmra.mrb[176].mxu1 %v7888_v59  ;;  %v7698_v59 = vcombine.low %v3814_v17, %v3818_v43  ;;  %v3878_v17 = vld [vmem:[%s12523_s7 + $0x218] sm:$0xff] }
 0x672   : > { %6221 = vmatprep.mubr.bf16.mxu1 %v7897_v41  ;;  %v7707_v41 = vcombine.high %v3822_v7, %v3826_v38  ;;  %v3882_v43 = vld [vmem:[%s12523_s7 + $0x238] sm:$0xff] }
 0x676   : > { %5540 = vmatmul.mubr.bf16.gmra.mrb[0].mxu0 %v7788_v63  ;;  %v7852_v63 = vcombine.low %v3971_v18, %v3975_v56 }
 0x677   : > { %5547 = vmatprep.mubr.bf16.mxu0 %v7797_v15  ;;  %v7861_v15 = vcombine.high %v3979_v49, %v3983_v27 }
 0x679   : > { %6222 = vmatmul.mubr.bf16.gmra.mrb[180].mxu1 %v7896_v58  ;;  %v7706_v58 = vcombine.low %v3822_v7, %v3826_v38  ;;  %v3886_v7 = vld [vmem:[%s12523_s7 + $0x258] sm:$0xff] }
 0x67a   : > { %6229 = vmatprep.mubr.bf16.mxu1 %v7905_v61  ;;  %v7715_v61 = vcombine.high %v3830_v35, %v3834_v0  ;;  %v3890_v38 = vld [vmem:[%s12523_s7 + $0x278] sm:$0xff] }
 0x67e   : > { %5548 = vmatmul.mubr.bf16.gmra.mrb[4].mxu0 %v7796_v45  ;;  %v7860_v45 = vcombine.low %v3979_v49, %v3983_v27 }
 0x67f   : > { %5555 = vmatprep.mubr.bf16.mxu0 %v7805_v5  ;;  %v7869_v5 = vcombine.high %v3987_v10, %v3991_v20 }
 0x681   : > { %6230 = vmatmul.mubr.bf16.gmra.mrb[184].mxu1 %v7904_v3  ;;  %v7714_v3 = vcombine.low %v3830_v35, %v3834_v0  ;;  %v3894_v35 = vld [vmem:[%s12523_s7 + $0x298] sm:$0xff] }
 0x682   : > { %6237 = vmatprep.mubr.bf16.mxu1 %v7913_v62  ;;  %v7723_v62 = vcombine.high %v3838_v31, %v3842_v52  ;;  %v3898_v0 = vld [vmem:[%s12523_s7 + $0x2b8] sm:$0xff] }
 0x686   : > { %5556 = vmatmul.mubr.bf16.gmra.mrb[8].mxu0 %v7804_v2  ;;  %v7868_v2 = vcombine.low %v3987_v10, %v3991_v20 }
 0x687   : > { %5563 = vmatprep.mubr.bf16.mxu0 %v7813_v28  ;;  %v7877_v28 = vcombine.high %v3995_v6, %v3999_v13 }
 0x689   : > { %6238 = vmatmul.mubr.bf16.gmra.mrb[188].mxu1 %v7912_v48  ;;  %v7722_v48 = vcombine.low %v3838_v31, %v3842_v52  ;;  %v3902_v31 = vld [vmem:[%s12523_s7 + $0x2d8] sm:$0xff] }
 0x68a   : > { %6245 = vmatprep.mubr.bf16.mxu1 %v7921_v57  ;;  %v7731_v57 = vcombine.high %v3846_v8, %v3850_v22  ;;  %v3906_v52 = vld [vmem:[%s12523_s7 + $0x2f8] sm:$0xff] }
 0x68e   : > { %5564 = vmatmul.mubr.bf16.gmra.mrb[12].mxu0 %v7812_v21  ;;  %v7876_v21 = vcombine.low %v3995_v6, %v3999_v13 }
 0x68f   : > { %5571 = vmatprep.mubr.bf16.mxu0 %v7821_v4  ;;  %v7885_v4 = vcombine.high %v4003_v50, %v4007_v29 }
 0x691   : > { %6246 = vmatmul.mubr.bf16.gmra.mrb[192].mxu1 %v7920_v26  ;;  %v7730_v26 = vcombine.low %v3846_v8, %v3850_v22 }
 0x692   : > { %6253 = vmatprep.mubr.bf16.mxu1 %v7929_v30  ;;  %v7739_v30 = vcombine.high %v3854_v55, %v3858_v19 }
 0x696   : > { %5572 = vmatmul.mubr.bf16.gmra.mrb[16].mxu0 %v7820_v42  ;;  %v7884_v42 = vcombine.low %v4003_v50, %v4007_v29 }
 0x697   : > { %5579 = vmatprep.mubr.bf16.mxu0 %v7829_v12  ;;  %v7893_v12 = vcombine.high %v4011_v47, %v4015_v44 }
 0x699   : > { %6254 = vmatmul.mubr.bf16.gmra.mrb[196].mxu1 %v7928_v46  ;;  %v7738_v46 = vcombine.low %v3854_v55, %v3858_v19 }
 0x69a   : > { %6261 = vmatprep.mubr.bf16.mxu1 %v7937_v25  ;;  %v7747_v25 = vcombine.high %v3862_v11, %v3866_v24 }
 0x69e   : > { %5580 = vmatmul.mubr.bf16.gmra.mrb[20].mxu0 %v7828_v39  ;;  %v7892_v39 = vcombine.low %v4011_v47, %v4015_v44 }
 0x69f   : > { %5587 = vmatprep.mubr.bf16.mxu0 %v7837_v60  ;;  %v7901_v60 = vcombine.high %v4019_v34, %v4023_v36 }
 0x6a1   : > { %6262 = vmatmul.mubr.bf16.gmra.mrb[200].mxu1 %v7936_v53  ;;  %v7746_v53 = vcombine.low %v3862_v11, %v3866_v24 }
 0x6a2   : > { %6269 = vmatprep.mubr.bf16.mxu1 %v7945_v40  ;;  %v7755_v40 = vcombine.high %v3870_v1, %v3874_v33 }
 0x6a6   : > { %5588 = vmatmul.mubr.bf16.gmra.mrb[24].mxu0 %v7836_v51  ;;  %v7900_v51 = vcombine.low %v4019_v34, %v4023_v36 }
 0x6a7   : > { %5595 = vmatprep.mubr.bf16.mxu0 %v7845_v54  ;;  %v4031_v54 = vld [vmem:[%s12523_s7 + $0x6e0] sm:$0xff] }
 0x6a9   : > { %6270 = vmatmul.mubr.bf16.gmra.mrb[204].mxu1 %v7944_v32  ;;  %v7754_v32 = vcombine.low %v3870_v1, %v3874_v33 }
 0x6aa   : > { %6310 = vmatprep.mubr.bf16.mxu1 %v7699_v37  ;;  %v7763_v37 = vcombine.high %v3878_v17, %v3882_v43 }
 0x6ae   : > { %5596 = vmatmul.mubr.bf16.gmra.mrb[28].mxu0 %v7844_v9  ;;  %v4027_v9 = vld [vmem:[%s12523_s7 + $0x6c0] sm:$0xff] }
 0x6af   : > { %5603 = vmatprep.mubr.bf16.mxu0 %v7853_v23  ;;  %v7909_v22 = vcombine.high %v4027_v9, %v4031_v54  ;;  %v7908_v56 = vcombine.low %v4027_v9, %v4031_v54 }
 0x6b1   : > { %6311 = vmatmul.mubr.bf16.vlgmr.msra.gmra.mrb[80].mxu1 %v7698_v59  ;;  %v7762_v59 = vcombine.low %v3878_v17, %v3882_v43 }
 0x6b2   : > { %6318 = vmatprep.mubr.bf16.mxu1 %v7707_v41  ;;  %v7771_v41 = vcombine.high %v3886_v7, %v3890_v38 }
 0x6b6   : > { %5604 = vmatmul.mubr.bf16.gmra.mrb[32].mxu0 %v7852_v63  ;;  %v7786_v63 = vcombine.low %v3902_v31, %v3906_v52 }
 0x6b7   : > { %5611 = vmatprep.mubr.bf16.mxu0 %v7861_v15  ;;  %v3922_v15 = vld [vmem:[%s12523_s7 + $0x378] sm:$0xff] }
 0x6b9   : > { %6319 = vmatmul.mubr.bf16.gmra.mrb[84].mxu1 %v7706_v58  ;;  %v7770_v58 = vcombine.low %v3886_v7, %v3890_v38 }
 0x6ba   : > { %6326 = vmatprep.mubr.bf16.mxu1 %v7715_v61  ;;  %v7779_v61 = vcombine.high %v3894_v35, %v3898_v0 }
 0x6be   : > { %5612 = vmatmul.mubr.bf16.gmra.mrb[36].mxu0 %v7860_v45  ;;  %v3918_v45 = vld [vmem:[%s12523_s7 + $0x358] sm:$0xff] }
 0x6bf   : > { %5619 = vmatprep.mubr.bf16.mxu0 %v7869_v5  ;;  %v4047_v5 = vld [vmem:[%s12523_s7 + $0x760] sm:$0xff] }
 0x6c1   : > { %6327 = vmatmul.mubr.bf16.gmra.mrb[88].mxu1 %v7714_v3  ;;  %v7778_v3 = vcombine.low %v3894_v35, %v3898_v0 }
 0x6c2   : > { %6334 = vmatprep.mubr.bf16.mxu1 %v7723_v62  ;;  %v7787_v62 = vcombine.high %v3902_v31, %v3906_v52 }
 0x6c6   : > { %5620 = vmatmul.mubr.bf16.gmra.mrb[40].mxu0 %v7868_v2  ;;  %v4043_v2 = vld [vmem:[%s12523_s7 + $0x740] sm:$0xff] }
 0x6c7   : > { %5627 = vmatprep.mubr.bf16.mxu0 %v7877_v28  ;;  %v7925_v33 = vcombine.high %v4043_v2, %v4047_v5  ;;  %v7924_v13 = vcombine.low %v4043_v2, %v4047_v5 }
 0x6c9   : > { %6335 = vmatmul.mubr.bf16.gmra.mrb[92].mxu1 %v7722_v48  ;;  %v3910_v48 = vld [vmem:[%s12523_s7 + $0x318] sm:$0xff] }
 0x6ca   : > { %6342 = vmatprep.mubr.bf16.mxu1 %v7731_v57  ;;  %v3914_v57 = vld [vmem:[%s12523_s7 + $0x338] sm:$0xff] }
 0x6cb   : > { %v7795_v23 = vcombine.high %v3910_v48, %v3914_v57 }
 0x6ce   : > { %5628 = vmatmul.mubr.bf16.gmra.mrb[44].mxu0 %v7876_v21  ;;  %v7802_v21 = vcombine.low %v3918_v45, %v3922_v15 }
 0x6cf   : > { %5635 = vmatprep.mubr.bf16.mxu0 %v7885_v4  ;;  %v3938_v4 = vld [vmem:[%s12523_s7 + $0x3f8] sm:$0xff] }
 0x6d1   : > { %6343 = vmatmul.mubr.bf16.gmra.mrb[96].mxu1 %v7730_v26  ;;  %v4035_v26 = vld [vmem:[%s12523_s7 + $0x700] sm:$0xff] }
 0x6d2   : > { %6350 = vmatprep.mubr.bf16.mxu1 %v7739_v30  ;;  %v4039_v30 = vld [vmem:[%s12523_s7 + $0x720] sm:$0xff] }
 0x6d3   : > { %v7917_v27 = vcombine.high %v4035_v26, %v4039_v30  ;;  %v7916_v24 = vcombine.low %v4035_v26, %v4039_v30 }
 0x6d6   : > { %5636 = vmatmul.mubr.bf16.gmra.mrb[48].mxu0 %v7884_v42  ;;  %v3934_v42 = vld [vmem:[%s12523_s7 + $0x3d8] sm:$0xff] }
 0x6d7   : > { %5643 = vmatprep.mubr.bf16.mxu0 %v7893_v12  ;;  %v4063_v12 = vld [vmem:[%s12523_s7 + $0x7e0] sm:$0xff] }
 0x6d9   : > { %6351 = vmatmul.mubr.bf16.gmra.mrb[100].mxu1 %v7738_v46  ;;  %v7794_v46 = vcombine.low %v3910_v48, %v3914_v57 }
 0x6da   : > { %6358 = vmatprep.mubr.bf16.mxu1 %v7747_v25  ;;  %v7803_v25 = vcombine.high %v3918_v45, %v3922_v15  ;;  %v3966_v15 = vld [vmem:[%s12523_s7 + $0x4d8] sm:$0xff] }
 0x6de   : > { %5644 = vmatmul.mubr.bf16.gmra.mrb[52].mxu0 %v7892_v39  ;;  %v4059_v39 = vld [vmem:[%s12523_s7 + $0x7c0] sm:$0xff] }
 0x6df   : > { %5651 = vmatprep.mubr.bf16.mxu0 %v7901_v60  ;;  %v7941_v0 = vcombine.high %v4059_v39, %v4063_v12  ;;  %v7940_v36 = vcombine.low %v4059_v39, %v4063_v12 }
 0x6e1   : > { %6359 = vmatmul.mubr.bf16.gmra.mrb[104].mxu1 %v7746_v53  ;;  %v3926_v53 = vld [vmem:[%s12523_s7 + $0x398] sm:$0xff] }
 0x6e2   : > { %6366 = vmatprep.mubr.bf16.mxu1 %v7755_v40  ;;  %v3930_v40 = vld [vmem:[%s12523_s7 + $0x3b8] sm:$0xff] }
 0x6e3   : > { %v7811_v28 = vcombine.high %v3926_v53, %v3930_v40 }
 0x6e6   : > { %5652 = vmatmul.mubr.bf16.gmra.mrb[56].mxu0 %v7900_v51  ;;  %v7818_v51 = vcombine.low %v3934_v42, %v3938_v4 }
 0x6e7   : > { %5659 = vmatprep.mubr.bf16.mxu0 %v7909_v22 }
 0x6e9   : > { %6367 = vmatmul.mubr.bf16.gmra.mrb[108].mxu1 %v7754_v32  ;;  %v11692_v14 = vpop.f32.mrb[208].mxu0  ;;  %v4051_v32 = vld [vmem:[%s12523_s7 + $0x780] sm:$0xff] }
 0x6ea   : > { %6374 = vmatprep.mubr.bf16.mxu1 %v7763_v37  ;;  %v5447_v16 = vpop.f32.mrb[209].mxu0  ;;  %v4055_v37 = vld [vmem:[%s12523_s7 + $0x7a0] sm:$0xff] }
 0x6eb   : > { %v11700_v8 = vpop.f32.mrb[210].mxu0  ;;  %v7933_v29 = vcombine.high %v4051_v32, %v4055_v37  ;;  %v7932_v38 = vcombine.low %v4051_v32, %v4055_v37  ;;  %v3954_v16 = vld [vmem:[%s12523_s7 + $0x478] sm:$0xff] }
 0x6ec   : > { %v5450_v18 = vpop.f32.mrb[211].mxu0  ;;  %v3982_v32 = vld [vmem:[%s12523_s7 + $0x558] sm:$0xff] }
 0x6ed   : > { %v3986_v37 = vld [vmem:[%s12523_s7 + $0x578] sm:$0xff] }
 0x6ee   : > { %5660 = vmatmul.mubr.bf16.gmra.mrb[60].mxu0 %v7908_v56  ;;  %v3958_v56 = vld [vmem:[%s12523_s7 + $0x498] sm:$0xff]  ;;  %v7866_v12 = vcombine.low %v3982_v32, %v3986_v37 }
 0x6ef   : > { %5667 = vmatprep.mubr.bf16.mxu0 %v7917_v27 }
 0x6f1   : > { %6375 = vmatmul.mubr.bf16.gmra.mrb[112].mxu1 %v7762_v59  ;;  %v11708_v55 = vpop.f32.mrb[212].mxu0  ;;  %v7810_v59 = vcombine.low %v3926_v53, %v3930_v40  ;;  %v3978_v53 = vld [vmem:[%s12523_s7 + $0x538] sm:$0xff] }
 0x6f2   : > { %6382 = vmatprep.mubr.bf16.mxu1 %v7771_v41  ;;  %v5455_v19 = vpop.f32.mrb[213].mxu0  ;;  %v7819_v41 = vcombine.high %v3934_v42, %v3938_v4  ;;  %v7867_v4 = vcombine.high %v3982_v32, %v3986_v37 }
 0x6f3   : > { %v11716_v49 = vpop.f32.mrb[214].mxu0 }
 0x6f4   : > { %v5458_v11 = vpop.f32.mrb[215].mxu0 }
 0x6f5   : > { %v3970_v11 = vld [vmem:[%s12523_s7 + $0x4f8] sm:$0xff] }
 0x6f6   : > { %5668 = vmatmul.mubr.bf16.gmra.mrb[64].mxu0 %v7916_v24 }
 0x6f7   : > { %5675 = vmatprep.mubr.bf16.mxu0 %v7925_v33  ;;  %v3974_v33 = vld [vmem:[%s12523_s7 + $0x518] sm:$0xff] }
 0x6f8   : > { %v7858_v42 = vcombine.low %v3974_v33, %v3978_v53 }
 0x6f9   : > { %6383 = vmatmul.mubr.bf16.gmra.mrb[116].mxu1 %v7770_v58  ;;  %v11724_v10 = vpop.f32.mrb[216].mxu0  ;;  %v3942_v58 = vld [vmem:[%s12523_s7 + $0x418] sm:$0xff] }
 0x6fa   : > { %6390 = vmatprep.mubr.bf16.mxu1 %v7779_v61  ;;  %v5463_v20 = vpop.f32.mrb[217].mxu0  ;;  %v3946_v61 = vld [vmem:[%s12523_s7 + $0x438] sm:$0xff] }
 0x6fb   : > { %v11732_v1 = vpop.f32.mrb[218].mxu0  ;;  %v7827_v60 = vcombine.high %v3942_v58, %v3946_v61  ;;  %v7826_v54 = vcombine.low %v3942_v58, %v3946_v61 }
 0x6fc   : > { %v5466_v6 = vpop.f32.mrb[219].mxu0 }
 0x6fd   : > { %v7850_v6 = vcombine.low %v3966_v15, %v3970_v11 }
 0x6fe   : > { %5676 = vmatmul.mubr.bf16.gmra.mrb[68].mxu0 %v7924_v13  ;;  %v7859_v13 = vcombine.high %v3974_v33, %v3978_v53 }
 0x6ff   : > { %5683 = vmatprep.mubr.bf16.mxu0 %v7933_v29 }
 0x701   : > { %6391 = vmatmul.mubr.bf16.gmra.mrb[120].mxu1 %v7778_v3  ;;  %v11740_v17 = vpop.f32.mrb[220].mxu0 }
 0x702   : > { %6398 = vmatprep.mubr.bf16.mxu1 %v7787_v62  ;;  %v5471_v43 = vpop.f32.mrb[221].mxu0  ;;  %v3950_v62 = vld [vmem:[%s12523_s7 + $0x458] sm:$0xff] }
 0x703   : > { %v11748_v50 = vpop.f32.mrb[222].mxu0  ;;  %v7835_v22 = vcombine.high %v3950_v62, %v3954_v16  ;;  %v7834_v19 = vcombine.low %v3950_v62, %v3954_v16 }
 0x704   : > { %v5474_v7 = vpop.f32.mrb[223].mxu0 }
 0x706   : > { %5684 = vmatmul.mubr.bf16.gmra.mrb[72].mxu0 %v7932_v38 }
 0x707   : > { %5691 = vmatprep.mubr.bf16.mxu0 %v7941_v0 }
 0x709   : > { %6399 = vmatmul.mubr.bf16.gmra.mrb[124].mxu1 %v7786_v63  ;;  %v11756_v47 = vpop.f32.mrb[224].mxu0  ;;  %v3962_v63 = vld [vmem:[%s12523_s7 + $0x4b8] sm:$0xff] }
 0x70a   : > { %6406 = vmatprep.mubr.bf16.mxu1 %v7795_v23  ;;  %v5479_v44 = vpop.f32.mrb[225].mxu0  ;;  %v7843_v26 = vcombine.high %v3958_v56, %v3962_v63 }
 0x70b   : > { %v11764_v35 = vpop.f32.mrb[226].mxu0  ;;  %v3994_v44 = vld [vmem:[%s12523_s7 + $0x5b8] sm:$0xff] }
 0x70c   : > { %v5482_v34 = vpop.f32.mrb[227].mxu0 }
 0x70e   : > { %5692 = vmatmul.mubr.bf16.gmra.mrb[76].mxu0 %v7940_v36  ;;  %v3998_v36 = vld [vmem:[%s12523_s7 + $0x5d8] sm:$0xff] }
 0x711   : > { %6407 = vmatmul.mubr.bf16.gmra.mrb[128].mxu1 %v7794_v46  ;;  %v11772_v31 = vpop.f32.mrb[228].mxu0  ;;  %v7842_v46 = vcombine.low %v3958_v56, %v3962_v63 }
 0x712   : > { %6414 = vmatprep.mubr.bf16.mxu1 %v7803_v25  ;;  %v5487_v52 = vpop.f32.mrb[229].mxu0  ;;  %v7851_v25 = vcombine.high %v3966_v15, %v3970_v11  ;;  %v4014_v15 = vld [vmem:[%s12523_s7 + $0x658] sm:$0xff] }
 0x713   : > { %v11774_v3 = vpop.f32.mrb[230].mxu0  ;;  %v4018_v11 = vld [vmem:[%s12523_s7 + $0x678] sm:$0xff] }
 0x714   : > { %v5490_v9 = vpop.f32.mrb[231].mxu0 }
 0x719   : > { %6415 = vmatmul.mubr.bf16.gmra.mrb[132].mxu1 %v7802_v21  ;;  %v11782_v48 = vpop.f32.mrb[232].mxu0 }
 0x71a   : > { %6422 = vmatprep.mubr.bf16.mxu1 %v7811_v28  ;;  %v5495_v57 = vpop.f32.mrb[233].mxu0 }
 0x71b   : > { %v11784_v18 = vpop.f32.mrb[234].mxu0  ;;  %v4010_v57 = vld [vmem:[%s12523_s7 + $0x638] sm:$0xff] }
 0x71c   : > { %v5498_v23 = vpop.f32.mrb[235].mxu0 }
 0x721   : > { %6423 = vmatmul.mubr.bf16.gmra.mrb[136].mxu1 %v7810_v59  ;;  %v11792_v30 = vpop.f32.mrb[236].mxu0 }
 0x722   : > { %6430 = vmatprep.mubr.bf16.mxu1 %v7819_v41  ;;  %v5503_v27 = vpop.f32.mrb[237].mxu0  ;;  %v3990_v41 = vld [vmem:[%s12523_s7 + $0x598] sm:$0xff] }
 0x723   : > { %v11794_v45 = vpop.f32.mrb[238].mxu0  ;;  %v7875_v0 = vcombine.high %v3990_v41, %v3994_v44  ;;  %v7874_v52 = vcombine.low %v3990_v41, %v3994_v44 }
 0x724   : > { %v5506_v24 = vpop.f32.mrb[239].mxu0 }
 0x729   : > { %6431 = vmatmul.mubr.bf16.gmra.mrb[140].mxu1 %v7818_v51  ;;  %v11802_v20 = vpop.f32.mrb[240].mxu0  ;;  %v4002_v51 = vld [vmem:[%s12523_s7 + $0x5f8] sm:$0xff] }
 0x72a   : > { %6438 = vmatprep.mubr.bf16.mxu1 %v7827_v60  ;;  %v5511_v2 = vpop.f32.mrb[241].mxu0  ;;  %v7883_v62 = vcombine.high %v3998_v36, %v4002_v51  ;;  %v7882_v63 = vcombine.low %v3998_v36, %v4002_v51  ;;  %v4068_v51 = vld [vmem:[%s12524_s8 + $0x8] sm:$0xff] }
 0x72b   : > { %v11804_v5 = vpop.f32.mrb[242].mxu0 }
 0x72c   : > { %v5514_v40 = vpop.f32.mrb[243].mxu0 }
 0x72d   : > { %v4022_v40 = vld [vmem:[%s12523_s7 + $0x698] sm:$0xff] }
 0x731   : > { %6439 = vmatmul.mubr.bf16.gmra.mrb[144].mxu1 %v7826_v54  ;;  %v11812_v21 = vpop.f32.mrb[244].mxu0 }
 0x732   : > { %6446 = vmatprep.mubr.bf16.mxu1 %v7835_v22  ;;  %v5519_v28 = vpop.f32.mrb[245].mxu0  ;;  %v4006_v22 = vld [vmem:[%s12523_s7 + $0x618] sm:$0xff] }
 0x733   : > { %v11814_v43 = vpop.f32.mrb[246].mxu0  ;;  %v7891_v23 = vcombine.high %v4006_v22, %v4010_v57  ;;  %v7898_v28 = vcombine.low %v4014_v15, %v4018_v11 }
 0x734   : > { %v5522_v29 = vpop.f32.mrb[247].mxu0 }
 0x739   : > { %6447 = vmatmul.mubr.bf16.gmra.mrb[148].mxu1 %v7834_v19  ;;  %v11822_v7 = vpop.f32.mrb[248].mxu0 }
 0x73a   : > { %6454 = vmatprep.mubr.bf16.mxu1 %v7843_v26  ;;  %v5527_v38 = vpop.f32.mrb[249].mxu0 }
 0x73b   : > { %v11824_v59 = vpop.f32.mrb[250].mxu0  ;;  %v4034_v38 = vld [vmem:[%s12523_s7 + $0x6f8] sm:$0xff] }
 0x73c   : > { %v5530_v39 = vpop.f32.mrb[251].mxu0 }
 0x73d   : > { %v4067_v39 = vld [vmem:[%s12524_s8] sm:$0xff] }
 0x741   : > { %6455 = vmatmul.mubr.bf16.gmra.mrb[152].mxu1 %v7842_v46  ;;  %v11832_v58 = vpop.f32.mrb[252].mxu0  ;;  %v7890_v46 = vcombine.low %v4006_v22, %v4010_v57 }
 0x742   : > { %6462 = vmatprep.mubr.bf16.mxu1 %v7851_v25  ;;  %v5535_v61 = vpop.f32.mrb[253].mxu0  ;;  %v7899_v25 = vcombine.high %v4014_v15, %v4018_v11 }
 0x743   : > { %v11834_v34 = vpop.f32.mrb[254].mxu0  ;;  %v5446_v61 = vadd.f32 %v11692_v14, %v4067_v39 }
 0x744   : > { %v5538_v60 = vpop.f32.mrb[255].mxu0 }
 0x749   : > { %6463 = vmatmul.mubr.bf16.gmra.mrb[156].mxu1 %v7850_v6  ;;  %v11842_v16 = vpop.f32.mrb[0].mxu0  ;;  %v4026_v6 = vld [vmem:[%s12523_s7 + $0x6b8] sm:$0xff] }
 0x74a   : > { %6470 = vmatprep.mubr.bf16.mxu1 %v7859_v13  ;;  %v5543_v9 = vpop.f32.mrb[1].mxu0  ;;  %v7907_v32 = vcombine.high %v4022_v40, %v4026_v6  ;;  %v7906_v44 = vcombine.low %v4022_v40, %v4026_v6 }
 0x74b   : > { %v11844_v54 = vpop.f32.mrb[2].mxu0 }
 0x74c   : > { %v5546_v56 = vpop.f32.mrb[3].mxu0 }
 0x74d   : > { %v5449_v56 = vadd.f32 %v11700_v8, %v4068_v51  ;;  %v4070_v8 = vld [vmem:[%s12524_s8 + $0x18] sm:$0xff] }
 0x751   : > { %6471 = vmatmul.mubr.bf16.gmra.mrb[160].mxu1 %v7858_v42  ;;  %v11852_v19 = vpop.f32.mrb[4].mxu0 }
 0x752   : > { %6478 = vmatprep.mubr.bf16.mxu1 %v7867_v4  ;;  %v5551_v26 = vpop.f32.mrb[5].mxu0  ;;  %v4030_v4 = vld [vmem:[%s12523_s7 + $0x6d8] sm:$0xff] }
 0x753   : > { %v11854_v27 = vpop.f32.mrb[6].mxu0  ;;  %v4069_v26 = vld [vmem:[%s12524_s8 + $0x10] sm:$0xff] }
 0x754   : > { %v5554_v24 = vpop.f32.mrb[7].mxu0  ;;  %v5454_v6 = vadd.f32 %v11708_v55, %v4069_v26  ;;  %v4050_v55 = vld [vmem:[%s12523_s7 + $0x778] sm:$0xff] }
 0x755   : > { %v4054_v26 = vld [vmem:[%s12523_s7 + $0x798] sm:$0xff] }
 0x759   : > { %6479 = vmatmul.mubr.bf16.gmra.mrb[164].mxu1 %v7866_v12  ;;  %v11862_v2 = vpop.f32.mrb[8].mxu0  ;;  %v7915_v12 = vcombine.high %v4030_v4, %v4034_v38 }
 0x75a   : > { %6486 = vmatprep.mubr.bf16.mxu1 %v7875_v0  ;;  %v5559_v33 = vpop.f32.mrb[9].mxu0 }
 0x75b   : > { %v11864_v53 = vpop.f32.mrb[10].mxu0 }
 0x75c   : > { %v5562_v13 = vpop.f32.mrb[11].mxu0 }
 0x761   : > { %6487 = vmatmul.mubr.bf16.gmra.mrb[168].mxu1 %v7874_v52  ;;  %v11872_v37 = vpop.f32.mrb[12].mxu0  ;;  %v4038_v52 = vld [vmem:[%s12523_s7 + $0x718] sm:$0xff] }
 0x762   : > { %6494 = vmatprep.mubr.bf16.mxu1 %v7883_v62  ;;  %v5567_v29 = vpop.f32.mrb[13].mxu0  ;;  %v4042_v62 = vld [vmem:[%s12523_s7 + $0x738] sm:$0xff] }
 0x763   : > { %v11874_v42 = vpop.f32.mrb[14].mxu0  ;;  %v7923_v15 = vcombine.high %v4038_v52, %v4042_v62  ;;  %v4046_v29 = vld [vmem:[%s12523_s7 + $0x758] sm:$0xff] }
 0x764   : > { %v5570_v41 = vpop.f32.mrb[15].mxu0  ;;  %v7931_v51 = vcombine.high %v4046_v29, %v4050_v55 }
 0x765   : > { %v5457_v41 = vadd.f32 %v11716_v49, %v4070_v8  ;;  %v4072_v49 = vld [vmem:[%s12524_s8 + $0x28] sm:$0xff] }
 0x769   : > { %6495 = vmatmul.mubr.bf16.gmra.mrb[172].mxu1 %v7882_v63  ;;  %v11885_v0 = vpop.f32.mrb[16].mxu0  ;;  %v7914_v63 = vcombine.low %v4030_v4, %v4034_v38 }
 0x76a   : > { %6502 = vmatprep.mubr.bf16.mxu1 %v7891_v23  ;;  %v5575_v36 = vpop.f32.mrb[17].mxu0 }
 0x76b   : > { %v11891_v60 = vpop.f32.mrb[18].mxu0  ;;  %v4071_v36 = vld [vmem:[%s12524_s8 + $0x20] sm:$0xff] }
 0x76c   : > { %v5578_v9 = vpop.f32.mrb[19].mxu0 }
 0x771   : > { %6503 = vmatmul.mubr.bf16.gmra.mrb[176].mxu1 %v7890_v46  ;;  %v8806_v46 = vld [vmem:[#allocation5 + $0x4] ss:$16 sps:$4 sm:$0xff]  }
 0x772   : > { %6510 = vmatprep.mubr.bf16.mxu1 %v7899_v25  ;;  %v11903_v25 = vpop.f32.mrb[20].mxu0  ;;  %7111 = vmatprep.mubr.bf16.mxu0 %v8806_v46 }
 0x773   : > { %v5583_v13 = vpop.f32.mrb[21].mxu0 }
 0x774   : > { %v4073_v13 = vld [vmem:[%s12524_s8 + $0x30] sm:$0xff] }
 0x779   : > { %6511 = vmatmul.mubr.bf16.gmra.mrb[180].mxu1 %v7898_v28  ;;  %v11909_v28 = vpop.f32.mrb[22].mxu0 }
 0x77a   : > { %6518 = vmatprep.mubr.bf16.mxu1 %v7907_v32  ;;  %v5586_v4 = vpop.f32.mrb[23].mxu0 }
 0x781   : > { %6519 = vmatmul.mubr.bf16.gmra.mrb[184].mxu1 %v7906_v44 }
 0x782   : > { %6526 = vmatprep.mubr.bf16.mxu1 %v7915_v12  ;;  %v7922_v12 = vcombine.low %v4038_v52, %v4042_v62 }
 0x784   : > { %v6312_v22 = vpop.f32.mrb[80].mxu1 }
 0x785   : > { %v8281_v57 = vadd.f32 %v6312_v22, %v5446_v61  ;;  %v6314_v14 = vpop.f32.mrb[81].mxu1 }
 0x786   : > { %v6315_v23 = vpop.f32.mrb[82].mxu1 }
 0x787   : > { %v8283_v11 = vadd.f32 %v6315_v23, %v5449_v56  ;;  %v6317_v24 = vpop.f32.mrb[83].mxu1  ;;  %v6567_v33 = vmax.f32 %v8281_v57, 0.0  ;;  %v11923_v57 = vpop.f32.mrb[24].mxu0 }
 0x788   : > { %v5591_v23 = vpop.f32.mrb[25].mxu0  ;;  %v5465_v24 = vadd.f32 %v11732_v1, %v4072_v49  ;;  %v4074_v1 = vld [vmem:[%s12524_s8 + $0x38] sm:$0xff]  ;;  %v4075_v49 = vld [vmem:[%s12524_s8 + $0x40] sm:$0xff] }
 0x789   : > { %v6568_v40 = vmax.f32 %v8283_v11, 0.0  ;;  %6527 = vmatmul.mubr.bf16.gmra.mrb[188].mxu1 %v7914_v63  ;;  %v5462_v63 = vadd.f32 %v11724_v10, %v4071_v36  ;;  %v11929_v52 = vpop.f32.mrb[26].mxu0  ;;  %v4062_v36 = vld [vmem:[%s12523_s7 + $0x7d8] sm:$0xff] }
 0x78a   : > { %6534 = vmatprep.mubr.bf16.mxu1 %v7923_v15  ;;  %v4058_v15 = vld [vmem:[%s12523_s7 + $0x7b8] sm:$0xff]  ;;  %v5594_v10 = vpop.f32.mrb[27].mxu0 }
 0x78b   : > { %v11911_v32 = vpack.c.bf16 %v6568_v40, %v6567_v33  ;;  %v7930_v40 = vcombine.low %v4046_v29, %v4050_v55  ;;  %v7939_v8 = vcombine.high %v4054_v26, %v4058_v15 }
 0x78c   : > { %v6320_v38 = vpop.f32.mrb[84].mxu1 }
 0x78d   : > { %v8285_v44 = vadd.f32 %v6320_v38, %v5454_v6  ;;  %v6322_v39 = vpop.f32.mrb[85].mxu1 }
 0x78e   : > { %v6323_v61 = vpop.f32.mrb[86].mxu1 }
 0x78f   : > { %v8287_v9 = vadd.f32 %v6323_v61, %v5457_v41  ;;  %v6325_v22 = vpop.f32.mrb[87].mxu1  ;;  %v6569_v14 = vmax.f32 %v8285_v44, 0.0  ;;  %v11943_v41 = vpop.f32.mrb[28].mxu0 }
 0x790   : > { %v5599_v61 = vpop.f32.mrb[29].mxu0  ;;  %v5473_v22 = vadd.f32 %v11748_v50, %v4074_v1  ;;  %v4076_v50 = vld [vmem:[%s12524_s8 + $0x48] sm:$0xff] }
 0x791   : > { %v6570_v56 = vmax.f32 %v8287_v9, 0.0  ;;  %6535 = vmatmul.mubr.bf16.gmra.mrb[192].mxu1 %v7922_v12  ;;  %v5470_v12 = vadd.f32 %v11740_v17, %v4073_v13  ;;  %v11949_v29 = vpop.f32.mrb[30].mxu0 }
 0x792   : > { %6542 = vmatprep.mubr.bf16.mxu1 %v7931_v51  ;;  %v4066_v51 = vld [vmem:[%s12523_s7 + $0x7f8] sm:$0xff]  ;;  %v5602_v17 = vpop.f32.mrb[31].mxu0 }
 0x793   : > { %v11931_v62 = vpack.c.bf16 %v6570_v56, %v6569_v14  ;;  %v7947_v10 = vcombine.high %v4062_v36, %v4066_v51 }
 0x794   : > { %v6328_v11 = vpop.f32.mrb[88].mxu1 }
 0x795   : > { %v8289_v46 = vadd.f32 %v6328_v11, %v5462_v63  ;;  %v6330_v33 = vpop.f32.mrb[89].mxu1  ;;  %v7938_v63 = vcombine.low %v4054_v26, %v4058_v15 }
 0x796   : > { %v6331_v6 = vpop.f32.mrb[90].mxu1 }
 0x797   : > { %v8291_v4 = vadd.f32 %v6331_v6, %v5465_v24  ;;  %v6333_v38 = vpop.f32.mrb[91].mxu1  ;;  %v6571_v44 = vmax.f32 %v8289_v46, 0.0  ;;  %v11963_v46 = vpop.f32.mrb[32].mxu0  ;;  %v5478_v6 = vadd.f32 %v11756_v47, %v4075_v49  ;;  %v4077_v47 = vld [vmem:[%s12524_s8 + $0x50] sm:$0xff] }
 0x798   : > { %v5607_v13 = vpop.f32.mrb[33].mxu0  ;;  %v5481_v38 = vadd.f32 %v11764_v35, %v4076_v50  ;;  %v4078_v35 = vld [vmem:[%s12524_s8 + $0x58] sm:$0xff] }
 0x799   : > { %v6572_v39 = vmax.f32 %v8291_v4, 0.0  ;;  %6543 = vmatmul.mubr.bf16.gmra.mrb[196].mxu1 %v7930_v40  ;;  %v11969_v26 = vpop.f32.mrb[34].mxu0 }
 0x79a   : > { %6550 = vmatprep.mubr.bf16.mxu1 %v7939_v8  ;;  %v5610_v8 = vpop.f32.mrb[35].mxu0 }
 0x79b   : > { %v11951_v55 = vpack.c.bf16 %v6572_v39, %v6571_v44 }
 0x79c   : > { %v6336_v9 = vpop.f32.mrb[92].mxu1 }
 0x79d   : > { %v8293_v14 = vadd.f32 %v6336_v9, %v5470_v12  ;;  %v6338_v56 = vpop.f32.mrb[93].mxu1  ;;  %v7946_v12 = vcombine.low %v4062_v36, %v4066_v51  ;;  %v11977_v9 = vpop.f32.mrb[36].mxu0 }
 0x79e   : > { %v6339_v23 = vpop.f32.mrb[94].mxu1  ;;  %v5486_v56 = vadd.f32 %v11772_v31, %v4077_v47  ;;  %v4079_v31 = vld [vmem:[%s12524_s8 + $0x60] sm:$0xff] }
 0x79f   : > { %v8295_v11 = vadd.f32 %v6339_v23, %v5473_v22  ;;  %v6341_v24 = vpop.f32.mrb[95].mxu1  ;;  %v6573_v33 = vmax.f32 %v8293_v14, 0.0 }
 0x7a1   : > { %v6574_v40 = vmax.f32 %v8295_v11, 0.0  ;;  %6551 = vmatmul.mubr.bf16.gmra.mrb[200].mxu1 %v7938_v63  ;;  %v5615_v63 = vpop.f32.mrb[37].mxu0 }
 0x7a2   : > { %6558 = vmatprep.mubr.bf16.mxu1 %v7947_v10  ;;  %v11983_v36 = vpop.f32.mrb[38].mxu0  ;;  %v5489_v10 = vadd.f32 %v11774_v3, %v4078_v35  ;;  %v4080_v3 = vld [vmem:[%s12524_s8 + $0x68] sm:$0xff] }
 0x7a3   : > { %v11971_v15 = vpack.c.bf16 %v6574_v40, %v6573_v33  ;;  %v5618_v23 = vpop.f32.mrb[39].mxu0  ;;  %v5497_v47 = vadd.f32 %v11784_v18, %v4080_v3  ;;  %v4082_v18 = vld [vmem:[%s12524_s8 + $0x78] sm:$0xff] }
 0x7a4   : > { %v6344_v4 = vpop.f32.mrb[96].mxu1  ;;  %v11991_v13 = vpop.f32.mrb[40].mxu0 }
 0x7a5   : > { %v8297_v44 = vadd.f32 %v6344_v4, %v5478_v6  ;;  %v6346_v39 = vpop.f32.mrb[97].mxu1  ;;  %v5494_v4 = vadd.f32 %v11782_v48, %v4079_v31  ;;  %v4081_v48 = vld [vmem:[%s12524_s8 + $0x70] sm:$0xff] }
 0x7a6   : > { %v6347_v61 = vpop.f32.mrb[98].mxu1 }
 0x7a7   : > { %v8299_v1 = vadd.f32 %v6347_v61, %v5481_v38  ;;  %v6349_v17 = vpop.f32.mrb[99].mxu1  ;;  %v6575_v22 = vmax.f32 %v8297_v44, 0.0  ;;  %v5623_v38 = vpop.f32.mrb[41].mxu0 }
 0x7a8   : > { %v11997_v44 = vpop.f32.mrb[42].mxu0 }
 0x7a9   : > { %v6576_v14 = vmax.f32 %v8299_v1, 0.0  ;;  %6559 = vmatmul.mubr.bf16.gmra.mrb[204].mxu1 %v7946_v12  ;;  %v5626_v12 = vpop.f32.mrb[43].mxu0 }
 0x7aa   : > { %v12005_v63 = vpop.f32.mrb[44].mxu0 }
 0x7ab   : > { %v11985_v51 = vpack.c.bf16 %v6576_v14, %v6575_v22 }
 0x7ac   : > { %v6352_v49 = vpop.f32.mrb[100].mxu1 }
 0x7ad   : > { %v8301_v11 = vadd.f32 %v6352_v49, %v5486_v56  ;;  %v6354_v24 = vpop.f32.mrb[101].mxu1  ;;  %v5502_v49 = vadd.f32 %v11792_v30, %v4081_v48  ;;  %v4083_v30 = vld [vmem:[%s12524_s8 + $0x80] sm:$0xff] }
 0x7ae   : > { %v6355_v33 = vpop.f32.mrb[102].mxu1 }
 0x7af   : > { %v8303_v40 = vadd.f32 %v6355_v33, %v5489_v10  ;;  %v6357_v6 = vpop.f32.mrb[103].mxu1  ;;  %v6577_v50 = vmax.f32 %v8301_v11, 0.0  ;;  %v5631_v10 = vpop.f32.mrb[45].mxu0 }
 0x7b0   : > { %v12011_v11 = vpop.f32.mrb[46].mxu0 }
 0x7b1   : > { %v6578_v8 = vmax.f32 %v8303_v40, 0.0  ;;  %v5634_v33 = vpop.f32.mrb[47].mxu0  ;;  %v5505_v40 = vadd.f32 %v11794_v45, %v4082_v18  ;;  %v4084_v45 = vld [vmem:[%s12524_s8 + $0x88] sm:$0xff] }
 0x7b2   : > { %v12019_v3 = vpop.f32.mrb[48].mxu0 }
 0x7b3   : > { %v11999_v39 = vpack.c.bf16 %v6578_v8, %v6577_v50 }
 0x7b4   : > { %v6360_v61 = vpop.f32.mrb[104].mxu1 }
 0x7b5   : > { %v8305_v1 = vadd.f32 %v6360_v61, %v5494_v4  ;;  %v6362_v17 = vpop.f32.mrb[105].mxu1 }
 0x7b6   : > { %v6363_v22 = vpop.f32.mrb[106].mxu1 }
 0x7b7   : > { %v8307_v14 = vadd.f32 %v6363_v22, %v5497_v47  ;;  %v6365_v56 = vpop.f32.mrb[107].mxu1  ;;  %v6579_v35 = vmax.f32 %v8305_v1, 0.0  ;;  %v5510_v47 = vadd.f32 %v11802_v20, %v4083_v30  ;;  %v5639_v1 = vpop.f32.mrb[49].mxu0  ;;  %v4085_v20 = vld [vmem:[%s12524_s8 + $0x90] sm:$0xff] }
 0x7b8   : > { %v12025_v17 = vpop.f32.mrb[50].mxu0  ;;  %v5513_v56 = vadd.f32 %v11804_v5, %v4084_v45  ;;  %v4086_v5 = vld [vmem:[%s12524_s8 + $0x98] sm:$0xff] }
 0x7b9   : > { %v6580_v23 = vmax.f32 %v8307_v14, 0.0  ;;  %v5642_v48 = vpop.f32.mrb[51].mxu0 }
 0x7ba   : > { %v12033_v33 = vpop.f32.mrb[52].mxu0 }
 0x7bb   : > { %v12013_v24 = vpack.c.bf16 %v6580_v23, %v6579_v35 }
 0x7bc   : > { %v6368_v31 = vpop.f32.mrb[108].mxu1 }
 0x7bd   : > { %v8309_v6 = vadd.f32 %v6368_v31, %v5502_v49  ;;  %v6370_v50 = vpop.f32.mrb[109].mxu1 }
 0x7be   : > { %v6371_v8 = vpop.f32.mrb[110].mxu1  ;;  %v5647_v50 = vpop.f32.mrb[53].mxu0 }
 0x7bf   : > { %v8311_v4 = vadd.f32 %v6371_v8, %v5505_v40  ;;  %v6373_v38 = vpop.f32.mrb[111].mxu1  ;;  %v6581_v12 = vmax.f32 %v8309_v6, 0.0  ;;  %v5518_v6 = vadd.f32 %v11812_v21, %v4085_v20  ;;  %v12039_v8 = vpop.f32.mrb[54].mxu0  ;;  %v4087_v21 = vld [vmem:[%s12524_s8 + $0xa0] sm:$0xff] }
 0x7c1   : > { %v6582_v61 = vmax.f32 %v8311_v4, 0.0  ;;  %v5650_v4 = vpop.f32.mrb[55].mxu0 }
 0x7c3   : > { %v12027_v22 = vpack.c.bf16 %v6582_v61, %v6581_v12  ;;  %v5521_v12 = vadd.f32 %v11814_v43, %v4086_v5  ;;  %v4088_v43 = vld [vmem:[%s12524_s8 + $0xa8] sm:$0xff] }
 0x7c4   : > { %v6376_v14 = vpop.f32.mrb[112].mxu1 }
 0x7c5   : > { %v8313_v35 = vadd.f32 %v6376_v14, %v5510_v47  ;;  %v6378_v23 = vpop.f32.mrb[113].mxu1  ;;  %v12046_v14 = vpop.f32.mrb[56].mxu0 }
 0x7c6   : > { %v6379_v49 = vpop.f32.mrb[114].mxu1  ;;  %v5526_v23 = vadd.f32 %v11822_v7, %v4087_v21  ;;  %v4089_v7 = vld [vmem:[%s12524_s8 + $0xb0] sm:$0xff] }
 0x7c7   : > { %v8315_v10 = vadd.f32 %v6379_v49, %v5513_v56  ;;  %v6381_v18 = vpop.f32.mrb[115].mxu1  ;;  %v6583_v31 = vmax.f32 %v8313_v35, 0.0  ;;  %v5655_v49 = vpop.f32.mrb[57].mxu0 }
 0x7c8   : > { %v12052_v20 = vpop.f32.mrb[58].mxu0 }
 0x7c9   : > { %v6584_v40 = vmax.f32 %v8315_v10, 0.0  ;;  %v5658_v10 = vpop.f32.mrb[59].mxu0 }
 0x7ca   : > { %v12059_v4 = vpop.f32.mrb[60].mxu0 }
 0x7cb   : > { %v6639_v30 = vpack.c.bf16 %v6584_v40, %v6583_v31  ;;  %v5529_v31 = vadd.f32 %v11824_v59, %v4088_v43  ;;  %v4090_v59 = vld [vmem:[%s12524_s8 + $0xb8] sm:$0xff] }
 0x7cc   : > { %v6384_v38 = vpop.f32.mrb[116].mxu1 }
 0x7cd   : > { %v8317_v61 = vadd.f32 %v6384_v38, %v5518_v6  ;;  %v6386_v47 = vpop.f32.mrb[117].mxu1  ;;  %8018 = vmatprep.subr.bf16.mxu0 %v6639_v30 }
 0x7ce   : > { %v6387_v1 = vpop.f32.mrb[118].mxu1  ;;  %8019 = vmatpush3.bf16.msra.mxu0 %v11911_v32  ;;  %v5663_v47 = vpop.f32.mrb[61].mxu0 }
 0x7cf   : > { %v8319_v45 = vadd.f32 %v6387_v1, %v5521_v12  ;;  %v6389_v48 = vpop.f32.mrb[119].mxu1  ;;  %v6585_v56 = vmax.f32 %v8317_v61, 0.0  ;;  %v5534_v61 = vadd.f32 %v11832_v58, %v4089_v7  ;;  %v12065_v1 = vpop.f32.mrb[62].mxu0  ;;  %v4091_v58 = vld [vmem:[%s12524_s8 + $0xc0] sm:$0xff] }
 0x7d0   : > { %v5666_v21 = vpop.f32.mrb[63].mxu0  ;;  %v5537_v48 = vadd.f32 %v11834_v34, %v4090_v59  ;;  %v4092_v34 = vld [vmem:[%s12524_s8 + $0xc8] sm:$0xff] }
 0x7d1   : > { %v6586_v35 = vmax.f32 %v8319_v45, 0.0 }
 0x7d3   : > { %v6640_v32 = vpack.c.bf16 %v6586_v35, %v6585_v56 }
 0x7d4   : > { %v6392_v18 = vpop.f32.mrb[120].mxu1 }
 0x7d5   : > { %v8321_v40 = vadd.f32 %v6392_v18, %v5526_v23  ;;  %v6394_v6 = vpop.f32.mrb[121].mxu1  ;;  %8020 = vmatprep.subr.bf16.mxu0 %v6640_v32  ;;  %v12072_v32 = vpop.f32.mrb[64].mxu0 }
 0x7d6   : > { %v6395_v50 = vpop.f32.mrb[122].mxu1  ;;  %8021 = vmatpush3.bf16.msra.mxu0 %v11931_v62 }
 0x7d7   : > { %v8323_v5 = vadd.f32 %v6395_v50, %v5529_v31  ;;  %v6397_v30 = vpop.f32.mrb[123].mxu1  ;;  %v6587_v38 = vmax.f32 %v8321_v40, 0.0  ;;  %v5542_v31 = vadd.f32 %v11842_v16, %v4091_v58  ;;  %v5671_v40 = vpop.f32.mrb[65].mxu0  ;;  %v4093_v16 = vld [vmem:[%s12524_s8 + $0xd0] sm:$0xff] }
 0x7d8   : > { %v12078_v6 = vpop.f32.mrb[66].mxu0 }
 0x7d9   : > { %v6588_v12 = vmax.f32 %v8323_v5, 0.0  ;;  %v5674_v50 = vpop.f32.mrb[67].mxu0  ;;  %v5545_v5 = vadd.f32 %v11844_v54, %v4092_v34  ;;  %v4094_v54 = vld [vmem:[%s12524_s8 + $0xd8] sm:$0xff] }
 0x7da   : > { %v12085_v59 = vpop.f32.mrb[68].mxu0  ;;  %v5553_v58 = vadd.f32 %v11854_v27, %v4094_v54  ;;  %v4096_v27 = vld [vmem:[%s12524_s8 + $0xe8] sm:$0xff] }
 0x7db   : > { %v6641_v62 = vpack.c.bf16 %v6588_v12, %v6587_v38 }
 0x7dc   : > { %v6400_v45 = vpop.f32.mrb[124].mxu1 }
 0x7dd   : > { %v8325_v56 = vadd.f32 %v6400_v45, %v5534_v61  ;;  %v6402_v35 = vpop.f32.mrb[125].mxu1  ;;  %8022 = vmatprep.subr.bf16.mxu0 %v6641_v62  ;;  %v5550_v45 = vadd.f32 %v11852_v19, %v4093_v16  ;;  %v4095_v19 = vld [vmem:[%s12524_s8 + $0xe0] sm:$0xff] }
 0x7de   : > { %v6403_v23 = vpop.f32.mrb[126].mxu1  ;;  %8023 = vmatpush3.bf16.msra.mxu0 %v11951_v55  ;;  %v5558_v50 = vadd.f32 %v11862_v2, %v4095_v19  ;;  %v4097_v2 = vld [vmem:[%s12524_s8 + $0xf0] sm:$0xff] }
 0x7df   : > { %v8327_v49 = vadd.f32 %v6403_v23, %v5537_v48  ;;  %v6405_v43 = vpop.f32.mrb[127].mxu1  ;;  %v6589_v10 = vmax.f32 %v8325_v56, 0.0  ;;  %v5679_v48 = vpop.f32.mrb[69].mxu0 }
 0x7e0   : > { %v12091_v56 = vpop.f32.mrb[70].mxu0 }
 0x7e1   : > { %v6590_v18 = vmax.f32 %v8327_v49, 0.0  ;;  %v5682_v35 = vpop.f32.mrb[71].mxu0 }
 0x7e2   : > { %v12098_v40 = vpop.f32.mrb[72].mxu0 }
 0x7e3   : > { %v6642_v55 = vpack.c.bf16 %v6590_v18, %v6589_v10 }
 0x7e4   : > { %v6408_v7 = vpop.f32.mrb[128].mxu1 }
 0x7e5   : > { %v8329_v30 = vadd.f32 %v6408_v7, %v5542_v31  ;;  %v6410_v38 = vpop.f32.mrb[129].mxu1  ;;  %8024 = vmatprep.subr.bf16.mxu0 %v6642_v55  ;;  %v5687_v7 = vpop.f32.mrb[73].mxu0 }
 0x7e6   : > { %v6411_v12 = vpop.f32.mrb[130].mxu1  ;;  %8025 = vmatpush3.bf16.msra.mxu0 %v11971_v15 }
 0x7e7   : > { %v8331_v61 = vadd.f32 %v6411_v12, %v5545_v5  ;;  %v6413_v47 = vpop.f32.mrb[131].mxu1  ;;  %v6591_v62 = vmax.f32 %v8329_v30, 0.0  ;;  %v12104_v5 = vpop.f32.mrb[74].mxu0  ;;  %v5561_v12 = vadd.f32 %v11864_v53, %v4096_v27  ;;  %v4098_v53 = vld [vmem:[%s12524_s8 + $0xf8] sm:$0xff] }
 0x7e8   : > { %v5690_v30 = vpop.f32.mrb[75].mxu0 }
 0x7e9   : > { %v6592_v21 = vmax.f32 %v8331_v61, 0.0 }
 0x7eb   : > { %v6643_v15 = vpack.c.bf16 %v6592_v21, %v6591_v62 }
 0x7ec   : > { %v6416_v23 = vpop.f32.mrb[132].mxu1 }
 0x7ed   : > { %v8333_v49 = vadd.f32 %v6416_v23, %v5550_v45  ;;  %v6418_v43 = vpop.f32.mrb[133].mxu1  ;;  %8026 = vmatprep.subr.bf16.mxu0 %v6643_v15  ;;  %v12111_v45 = vpop.f32.mrb[76].mxu0  ;;  %v5566_v15 = vadd.f32 %v11872_v37, %v4097_v2  ;;  %v4099_v37 = vld [vmem:[%s12524_s8 + $0x100] sm:$0xff] }
 0x7ee   : > { %v6419_v10 = vpop.f32.mrb[134].mxu1  ;;  %8027 = vmatpush3.bf16.msra.mxu0 %v11985_v51  ;;  %v5695_v35 = vpop.f32.mrb[77].mxu0  ;;  %v5569_v43 = vadd.f32 %v11874_v42, %v4098_v53  ;;  %v5574_v7 = vadd.f32 %v11885_v0, %v4099_v37  ;;  %v4100_v42 = vld [vmem:[%s12524_s8 + $0x108] sm:$0xff]  ;;  %v8809_v0 = vld [vmem:[#allocation5 + $0x24] ss:$16 sps:$4 sm:$0xff]  }
 0x7ef   : > { %v8335_v18 = vadd.f32 %v6419_v10, %v5553_v58  ;;  %v6421_v31 = vpop.f32.mrb[135].mxu1  ;;  %v6593_v34 = vmax.f32 %v8333_v49, 0.0  ;;  %v12117_v23 = vpop.f32.mrb[78].mxu0  ;;  %v5577_v30 = vadd.f32 %v11891_v60, %v4100_v42  ;;  %v4102_v60 = vld [vmem:[%s12524_s8 + $0x118] sm:$0xff]  ;;  %v8810_v42 = vld [vmem:[#allocation5 + $0x40] ss:$16 sps:$4 sm:$0xff]  }
 0x7f0   : > { %v5698_v58 = vpop.f32.mrb[79].mxu0 }
 0x7f1   : > { %v6594_v55 = vmax.f32 %v8335_v18, 0.0 }
 0x7f3   : > { %v6644_v51 = vpack.c.bf16 %v6594_v55, %v6593_v34 }
 0x7f4   : > { %v6424_v38 = vpop.f32.mrb[136].mxu1 }
 0x7f5   : > { %v8337_v16 = vadd.f32 %v6424_v38, %v5558_v50  ;;  %v6426_v61 = vpop.f32.mrb[137].mxu1  ;;  %8028 = vmatprep.subr.bf16.mxu0 %v6644_v51 }
 0x7f6   : > { %v6427_v47 = vpop.f32.mrb[138].mxu1  ;;  %8029 = vmatpush3.bf16.msra.mxu0 %v11999_v39  ;;  %v4101_v61 = vld [vmem:[%s12524_s8 + $0x110] sm:$0xff] }
 0x7f7   : > { %v8339_v62 = vadd.f32 %v6427_v47, %v5561_v12  ;;  %v6429_v21 = vpop.f32.mrb[139].mxu1  ;;  %v6595_v48 = vmax.f32 %v8337_v16, 0.0  ;;  %v8804_v12 = vld [vmem:[#allocation5] ss:$16 sps:$4 sm:$0xff]  }
 0x7f9   : > { %v6596_v54 = vmax.f32 %v8339_v62, 0.0 }
 0x7fb   : > { %v6645_v39 = vpack.c.bf16 %v6596_v54, %v6595_v48  ;;  %v5582_v48 = vadd.f32 %v11903_v25, %v4101_v61 }
 0x7fc   : > { %v6432_v49 = vpop.f32.mrb[140].mxu1 }
 0x7fd   : > { %v8341_v10 = vadd.f32 %v6432_v49, %v5566_v15  ;;  %v6434_v19 = vpop.f32.mrb[141].mxu1  ;;  %8030 = vmatprep.subr.bf16.mxu0 %v6645_v39  ;;  %v5585_v15 = vadd.f32 %v11909_v28, %v4102_v60  ;;  %v8807_v39 = vld [vmem:[#allocation5 + $0x20] ss:$16 sps:$4 sm:$0xff]   ;;  %v4104_v28 = vld [vmem:[%s12524_s8 + $0x128] sm:$0xff] }
 0x7fe   : > { %v6435_v18 = vpop.f32.mrb[142].mxu1  ;;  %8031 = vmatpush3.bf16.msra.mxu0 %v12013_v24  ;;  %v4103_v49 = vld [vmem:[%s12524_s8 + $0x120] sm:$0xff] }
 0x7ff   : > { %v8343_v31 = vadd.f32 %v6435_v18, %v5569_v43  ;;  %v6437_v34 = vpop.f32.mrb[143].mxu1  ;;  %v6597_v55 = vmax.f32 %v8341_v10, 0.0  ;;  %v8812_v43 = vld [vmem:[#allocation5 + $0x44] ss:$16 sps:$4 sm:$0xff]   ;;  %v5590_v37 = vadd.f32 %v11923_v57, %v4103_v49 }
 0x800   : > { %v4107_v60 = vld [vmem:[%s12524_s8 + $0x140] sm:$0xff] }
 0x801   : > { %v6598_v50 = vmax.f32 %v8343_v31, 0.0 }
 0x803   : > { %v6646_v27 = vpack.c.bf16 %v6598_v50, %v6597_v55  ;;  %v5593_v55 = vadd.f32 %v11929_v52, %v4104_v28  ;;  %v4106_v52 = vld [vmem:[%s12524_s8 + $0x138] sm:$0xff]  ;;  %v8821_v28 = vld [vmem:[#allocation5 + $0xa4] ss:$16 sps:$4 sm:$0xff]  }
 0x804   : > { %v6440_v51 = vpop.f32.mrb[144].mxu1 }
 0x805   : > { %v8345_v38 = vadd.f32 %v6440_v51, %v5574_v7  ;;  %v6442_v24 = vpop.f32.mrb[145].mxu1  ;;  %8032 = vmatprep.subr.bf16.mxu0 %v6646_v27  ;;  %v4105_v51 = vld [vmem:[%s12524_s8 + $0x130] sm:$0xff] }
 0x806   : > { %v6443_v16 = vpop.f32.mrb[146].mxu1  ;;  %8033 = vmatpush3.bf16.msra.mxu0 %v12027_v22 }
 0x807   : > { %v8347_v47 = vadd.f32 %v6443_v16, %v5577_v30  ;;  %v6445_v2 = vpop.f32.mrb[147].mxu1  ;;  %v6599_v62 = vmax.f32 %v8345_v38, 0.0  ;;  %v8815_v30 = vld [vmem:[#allocation5 + $0x64] ss:$16 sps:$4 sm:$0xff]   ;;  %v5598_v16 = vadd.f32 %v11943_v41, %v4105_v51 }
 0x809   : > { %v6600_v21 = vmax.f32 %v8347_v47, 0.0  ;;  %7112 = vmatmul.mubr.bf16.vlgmr.msra.gmra.mrb[80].mxu0 %v8804_v12  ;;  %v5601_v47 = vadd.f32 %v11949_v29, %v4106_v52  ;;  %v4108_v29 = vld [vmem:[%s12524_s8 + $0x148] sm:$0xff] }
 0x80a   : > { %7119 = vmatprep.mubr.bf16.mxu0 %v8809_v0 }
 0x80b   : > { %v12137_v54 = vpack.c.bf16 %v6600_v21, %v6599_v62  ;;  %v8813_v21 = vld [vmem:[#allocation5 + $0x60] ss:$16 sps:$4 sm:$0xff]  }
 0x80c   : > { %v6448_v22 = vpop.f32.mrb[148].mxu1 }
 0x80d   : > { %v8349_v35 = vadd.f32 %v6448_v22, %v5582_v48  ;;  %v6450_v53 = vpop.f32.mrb[149].mxu1  ;;  %v8818_v22 = vld [vmem:[#allocation5 + $0x84] ss:$16 sps:$4 sm:$0xff]  }
 0x80e   : > { %v6451_v58 = vpop.f32.mrb[150].mxu1 }
 0x80f   : > { %v8351_v25 = vadd.f32 %v6451_v58, %v5585_v15  ;;  %v6453_v10 = vpop.f32.mrb[151].mxu1  ;;  %v6601_v19 = vmax.f32 %v8349_v35, 0.0 }
 0x811   : > { %v6602_v18 = vmax.f32 %v8351_v25, 0.0  ;;  %7120 = vmatmul.mubr.bf16.gmra.mrb[84].mxu0 %v8807_v39  ;;  %v5606_v39 = vadd.f32 %v11963_v46, %v4107_v60 }
 0x812   : > { %7127 = vmatprep.mubr.bf16.mxu0 %v8812_v43  ;;  %v5609_v43 = vadd.f32 %v11969_v26, %v4108_v29  ;;  %v4110_v26 = vld [vmem:[%s12524_s8 + $0x158] sm:$0xff] }
 0x813   : > { %v12147_v31 = vpack.c.bf16 %v6602_v18, %v6601_v19  ;;  %v8816_v19 = vld [vmem:[#allocation5 + $0x80] ss:$16 sps:$4 sm:$0xff]   ;;  %v5617_v51 = vadd.f32 %v11983_v36, %v4110_v26  ;;  %v4112_v36 = vld [vmem:[%s12524_s8 + $0x168] sm:$0xff] }
 0x814   : > { %v6456_v34 = vpop.f32.mrb[152].mxu1 }
 0x815   : > { %v8353_v50 = vadd.f32 %v6456_v34, %v5590_v37  ;;  %v6458_v7 = vpop.f32.mrb[153].mxu1  ;;  %v4109_v37 = vld [vmem:[%s12524_s8 + $0x150] sm:$0xff] }
 0x816   : > { %v6459_v27 = vpop.f32.mrb[154].mxu1  ;;  %v5614_v7 = vadd.f32 %v11977_v9, %v4109_v37 }
 0x817   : > { %v8355_v57 = vadd.f32 %v6459_v27, %v5593_v55  ;;  %v6461_v38 = vpop.f32.mrb[155].mxu1  ;;  %v6603_v24 = vmax.f32 %v8353_v50, 0.0 }
 0x818   : > { %v8819_v38 = vld [vmem:[#allocation5 + $0xa0] ss:$16 sps:$4 sm:$0xff]  }
 0x819   : > { %v6604_v12 = vmax.f32 %v8355_v57, 0.0  ;;  %7128 = vmatmul.mubr.bf16.gmra.mrb[88].mxu0 %v8810_v42 }
 0x81a   : > { %7135 = vmatprep.mubr.bf16.mxu0 %v8815_v30 }
 0x81b   : > { %v12157_v61 = vpack.c.bf16 %v6604_v12, %v6603_v24  ;;  %v4111_v12 = vld [vmem:[%s12524_s8 + $0x160] sm:$0xff] }
 0x81c   : > { %v6464_v0 = vpop.f32.mrb[156].mxu1 }
 0x81d   : > { %v8357_v2 = vadd.f32 %v6464_v0, %v5598_v16  ;;  %v6466_v62 = vpop.f32.mrb[157].mxu1  ;;  %v8824_v16 = vld [vmem:[#allocation5 + $0xc4] ss:$16 sps:$4 sm:$0xff]  }
 0x81e   : > { %v6467_v48 = vpop.f32.mrb[158].mxu1 }
 0x81f   : > { %v8359_v41 = vadd.f32 %v6467_v48, %v5601_v47  ;;  %v6469_v15 = vpop.f32.mrb[159].mxu1  ;;  %v6605_v35 = vmax.f32 %v8357_v2, 0.0  ;;  %v5622_v2 = vadd.f32 %v11991_v13, %v4111_v12  ;;  %v5625_v48 = vadd.f32 %v11997_v44, %v4112_v36  ;;  %v4114_v44 = vld [vmem:[%s12524_s8 + $0x178] sm:$0xff]  ;;  %v8828_v12 = vld [vmem:[#allocation5 + $0x100] ss:$16 sps:$4 sm:$0xff]  }
 0x821   : > { %v6606_v53 = vmax.f32 %v8359_v41, 0.0  ;;  %7136 = vmatmul.mubr.bf16.gmra.mrb[92].mxu0 %v8813_v21  ;;  %v8822_v41 = vld [vmem:[#allocation5 + $0xc0] ss:$16 sps:$4 sm:$0xff]  }
 0x822   : > { %7143 = vmatprep.mubr.bf16.mxu0 %v8818_v22 }
 0x823   : > { %v12167_v58 = vpack.c.bf16 %v6606_v53, %v6605_v35  ;;  %v4113_v35 = vld [vmem:[%s12524_s8 + $0x170] sm:$0xff] }
 0x824   : > { %v6472_v49 = vpop.f32.mrb[160].mxu1  ;;  %v8827_v53 = vld [vmem:[#allocation5 + $0xe4] ss:$16 sps:$4 sm:$0xff]  }
 0x825   : > { %v8361_v25 = vadd.f32 %v6472_v49, %v5606_v39  ;;  %v6474_v10 = vpop.f32.mrb[161].mxu1 }
 0x826   : > { %v6475_v18 = vpop.f32.mrb[162].mxu1 }
 0x827   : > { %v8363_v46 = vadd.f32 %v6475_v18, %v5609_v43  ;;  %v6477_v34 = vpop.f32.mrb[163].mxu1  ;;  %v6607_v55 = vmax.f32 %v8361_v25, 0.0  ;;  %v5630_v43 = vadd.f32 %v12005_v63, %v4113_v35 }
 0x828   : > { %v4115_v34 = vld [vmem:[%s12524_s8 + $0x180] sm:$0xff] }
 0x829   : > { %v6608_v50 = vmax.f32 %v8363_v46, 0.0  ;;  %7144 = vmatmul.mubr.bf16.gmra.mrb[96].mxu0 %v8816_v19  ;;  %v5633_v19 = vadd.f32 %v12011_v11, %v4114_v44  ;;  %v4116_v11 = vld [vmem:[%s12524_s8 + $0x188] sm:$0xff] }
 0x82a   : > { %7151 = vmatprep.mubr.bf16.mxu0 %v8821_v28  ;;  %v8825_v28 = vld [vmem:[#allocation5 + $0xe0] ss:$16 sps:$4 sm:$0xff]  }
 0x82b   : > { %v12177_v42 = vpack.c.bf16 %v6608_v50, %v6607_v55  ;;  %v8830_v55 = vld [vmem:[#allocation5 + $0x104] ss:$16 sps:$4 sm:$0xff]  }
 0x82c   : > { %v6480_v27 = vpop.f32.mrb[164].mxu1 }
 0x82d   : > { %v8365_v30 = vadd.f32 %v6480_v27, %v5614_v7  ;;  %v6482_v57 = vpop.f32.mrb[165].mxu1  ;;  %v5638_v27 = vadd.f32 %v12019_v3, %v4115_v34 }
 0x82e   : > { %v6483_v24 = vpop.f32.mrb[166].mxu1  ;;  %v5641_v57 = vadd.f32 %v12025_v17, %v4116_v11  ;;  %v4118_v17 = vld [vmem:[%s12524_s8 + $0x198] sm:$0xff] }
 0x82f   : > { %v8367_v9 = vadd.f32 %v6483_v24, %v5617_v51  ;;  %v6485_v52 = vpop.f32.mrb[167].mxu1  ;;  %v6609_v0 = vmax.f32 %v8365_v30, 0.0 }
 0x830   : > { %v8833_v52 = vld [vmem:[#allocation5 + $0x124] ss:$16 sps:$4 sm:$0xff]  }
 0x831   : > { %v6610_v47 = vmax.f32 %v8367_v9, 0.0  ;;  %7152 = vmatmul.mubr.bf16.gmra.mrb[100].mxu0 %v8819_v38  ;;  %v4117_v9 = vld [vmem:[%s12524_s8 + $0x190] sm:$0xff] }
 0x832   : > { %7159 = vmatprep.mubr.bf16.mxu0 %v8824_v16  ;;  %v5646_v36 = vadd.f32 %v12033_v33, %v4117_v9  ;;  %v4119_v33 = vld [vmem:[%s12524_s8 + $0x1a0] sm:$0xff] }
 0x833   : > { %v12187_v62 = vpack.c.bf16 %v6610_v47, %v6609_v0 }
 0x834   : > { %v6488_v21 = vpop.f32.mrb[168].mxu1 }
 0x835   : > { %v8369_v60 = vadd.f32 %v6488_v21, %v5622_v2  ;;  %v6490_v22 = vpop.f32.mrb[169].mxu1 }
 0x836   : > { %v6491_v15 = vpop.f32.mrb[170].mxu1 }
 0x837   : > { %v8371_v13 = vadd.f32 %v6491_v15, %v5625_v48  ;;  %v6493_v39 = vpop.f32.mrb[171].mxu1  ;;  %v6611_v29 = vmax.f32 %v8369_v60, 0.0  ;;  %v5649_v60 = vadd.f32 %v12039_v8, %v4118_v17  ;;  %v8831_v15 = vld [vmem:[#allocation5 + $0x120] ss:$16 sps:$4 sm:$0xff]   ;;  %v4120_v8 = vld [vmem:[%s12524_s8 + $0x1a8] sm:$0xff] }
 0x838   : > { %v8840_v17 = vld [vmem:[#allocation5 + $0x180] ss:$16 sps:$4 sm:$0xff]  }
 0x839   : > { %v6612_v49 = vmax.f32 %v8371_v13, 0.0  ;;  %7160 = vmatmul.mubr.bf16.gmra.mrb[104].mxu0 %v8822_v41 }
 0x83a   : > { %7167 = vmatprep.mubr.bf16.mxu0 %v8827_v53  ;;  %v8836_v53 = vld [vmem:[#allocation5 + $0x144] ss:$16 sps:$4 sm:$0xff]  }
 0x83b   : > { %v12197_v25 = vpack.c.bf16 %v6612_v49, %v6611_v29 }
 0x83c   : > { %v6496_v10 = vpop.f32.mrb[172].mxu1 }
 0x83d   : > { %v8373_v18 = vadd.f32 %v6496_v10, %v5630_v43  ;;  %v6498_v37 = vpop.f32.mrb[173].mxu1  ;;  %v5654_v43 = vadd.f32 %v12046_v14, %v4119_v33  ;;  %v4121_v14 = vld [vmem:[%s12524_s8 + $0x1b0] sm:$0xff] }
 0x83e   : > { %v6499_v46 = vpop.f32.mrb[174].mxu1  ;;  %v8834_v37 = vld [vmem:[#allocation5 + $0x140] ss:$16 sps:$4 sm:$0xff]  }
 0x83f   : > { %v8375_v63 = vadd.f32 %v6499_v46, %v5633_v19  ;;  %v6501_v50 = vpop.f32.mrb[175].mxu1  ;;  %v6613_v7 = vmax.f32 %v8373_v18, 0.0  ;;  %v8839_v46 = vld [vmem:[#allocation5 + $0x164] ss:$16 sps:$4 sm:$0xff]  }
 0x841   : > { %v6614_v26 = vmax.f32 %v8375_v63, 0.0  ;;  %7168 = vmatmul.mubr.bf16.gmra.mrb[108].mxu0 %v8825_v28 }
 0x842   : > { %7175 = vmatprep.mubr.bf16.mxu0 %v8830_v55 }
 0x843   : > { %v12207_v51 = vpack.c.bf16 %v6614_v26, %v6613_v7  ;;  %v5662_v7 = vadd.f32 %v12059_v4, %v4121_v14  ;;  %v4123_v4 = vld [vmem:[%s12524_s8 + $0x1c0] sm:$0xff] }
 0x844   : > { %v6504_v30 = vpop.f32.mrb[176].mxu1 }
 0x845   : > { %v8377_v38 = vadd.f32 %v6504_v30, %v5638_v27  ;;  %v6506_v24 = vpop.f32.mrb[177].mxu1 }
 0x846   : > { %v6507_v16 = vpop.f32.mrb[178].mxu1  ;;  %v8842_v24 = vld [vmem:[#allocation5 + $0x184] ss:$16 sps:$4 sm:$0xff]  }
 0x847   : > { %v8379_v3 = vadd.f32 %v6507_v16, %v5641_v57  ;;  %v6509_v0 = vpop.f32.mrb[179].mxu1  ;;  %v6615_v47 = vmax.f32 %v8377_v38, 0.0  ;;  %v8837_v57 = vld [vmem:[#allocation5 + $0x160] ss:$16 sps:$4 sm:$0xff]  }
 0x849   : > { %v6616_v2 = vmax.f32 %v8379_v3, 0.0  ;;  %7176 = vmatmul.mubr.bf16.gmra.mrb[112].mxu0 %v8828_v12  ;;  %v5670_v3 = vadd.f32 %v12072_v32, %v4123_v4  ;;  %v4125_v32 = vld [vmem:[%s12524_s8 + $0x1d0] sm:$0xff]  ;;  %v8854_v4 = vld [vmem:[#allocation5 + $0xc] ss:$16 sps:$4 sm:$0xff]  }
 0x84a   : > { %7183 = vmatprep.mubr.bf16.mxu0 %v8833_v52 }
 0x84b   : > { %v6655_v21 = vpack.c.bf16 %v6616_v2, %v6615_v47 }
 0x84c   : > { %v6512_v48 = vpop.f32.mrb[180].mxu1 }
 0x84d   : > { %v8381_v22 = vadd.f32 %v6512_v48, %v5646_v36  ;;  %v6514_v41 = vpop.f32.mrb[181].mxu1  ;;  %8130 = vmatprep.subr.bf16.mxu0 %v6655_v21  ;;  %v8845_v48 = vld [vmem:[#allocation5 + $0x1a4] ss:$16 sps:$4 sm:$0xff]  }
 0x84e   : > { %v6515_v35 = vpop.f32.mrb[182].mxu1  ;;  %8131 = vmatpush3.bf16.msra.mxu0 %v12137_v54  ;;  %v5657_v54 = vadd.f32 %v12052_v20, %v4120_v8  ;;  %v4122_v20 = vld [vmem:[%s12524_s8 + $0x1b8] sm:$0xff] }
 0x84f   : > { %v8383_v13 = vadd.f32 %v6515_v35, %v5649_v60  ;;  %v6517_v39 = vpop.f32.mrb[183].mxu1  ;;  %v6617_v29 = vmax.f32 %v8381_v22, 0.0  ;;  %v5678_v35 = vadd.f32 %v12085_v59, %v4125_v32  ;;  %v4127_v59 = vld [vmem:[%s12524_s8 + $0x1e0] sm:$0xff]  ;;  %v8875_v32 = vld [vmem:[#allocation5 + $0xec] ss:$16 sps:$4 sm:$0xff]  }
 0x851   : > { %v6618_v49 = vmax.f32 %v8383_v13, 0.0  ;;  %7184 = vmatmul.mubr.bf16.gmra.mrb[116].mxu0 %v8831_v15 }
 0x852   : > { %7191 = vmatprep.mubr.bf16.mxu0 %v8836_v53 }
 0x853   : > { %v6656_v44 = vpack.c.bf16 %v6618_v49, %v6617_v29  ;;  %v8843_v29 = vld [vmem:[#allocation5 + $0x1a0] ss:$16 sps:$4 sm:$0xff]  }
 0x854   : > { %v6520_v10 = vpop.f32.mrb[184].mxu1 }
 0x855   : > { %v8385_v19 = vadd.f32 %v6520_v10, %v5654_v43  ;;  %v6522_v18 = vpop.f32.mrb[185].mxu1  ;;  %8132 = vmatprep.subr.bf16.mxu0 %v6656_v44  ;;  %v8848_v43 = vld [vmem:[#allocation5 + $0x1c4] ss:$16 sps:$4 sm:$0xff]  }
 0x856   : > { %v6523_v28 = vpop.f32.mrb[186].mxu1  ;;  %8133 = vmatpush3.bf16.msra.mxu0 %v12147_v31  ;;  %v5665_v31 = vadd.f32 %v12065_v1, %v4122_v20  ;;  %v4124_v1 = vld [vmem:[%s12524_s8 + $0x1c8] sm:$0xff] }
 0x857   : > { %v8387_v34 = vadd.f32 %v6523_v28, %v5657_v54  ;;  %v6525_v55 = vpop.f32.mrb[187].mxu1  ;;  %v6619_v63 = vmax.f32 %v8385_v19, 0.0  ;;  %v5686_v19 = vadd.f32 %v12098_v40, %v4127_v59  ;;  %v4129_v40 = vld [vmem:[%s12524_s8 + $0x1f0] sm:$0xff] }
 0x858   : > { %v8851_v55 = vld [vmem:[#allocation5 + $0x1e4] ss:$16 sps:$4 sm:$0xff]  }
 0x859   : > { %v6620_v50 = vmax.f32 %v8387_v34, 0.0  ;;  %7192 = vmatmul.mubr.bf16.gmra.mrb[120].mxu0 %v8834_v37 }
 0x85a   : > { %7199 = vmatprep.mubr.bf16.mxu0 %v8839_v46  ;;  %v8846_v46 = vld [vmem:[#allocation5 + $0x1c0] ss:$16 sps:$4 sm:$0xff]  }
 0x85b   : > { %v6657_v26 = vpack.c.bf16 %v6620_v50, %v6619_v63 }
 0x85c   : > { %v6528_v27 = vpop.f32.mrb[188].mxu1 }
 0x85d   : > { %v8389_v11 = vadd.f32 %v6528_v27, %v5662_v7  ;;  %v6530_v30 = vpop.f32.mrb[189].mxu1  ;;  %8134 = vmatprep.subr.bf16.mxu0 %v6657_v26  ;;  %v5694_v26 = vadd.f32 %v12111_v45, %v4129_v40 }
 0x85e   : > { %v6531_v38 = vpop.f32.mrb[190].mxu1  ;;  %8135 = vmatpush3.bf16.msra.mxu0 %v12157_v61  ;;  %v5673_v61 = vadd.f32 %v12078_v6, %v4124_v1  ;;  %v4126_v6 = vld [vmem:[%s12524_s8 + $0x1d8] sm:$0xff] }
 0x85f   : > { %v8391_v12 = vadd.f32 %v6531_v38, %v5665_v31  ;;  %v6533_v16 = vpop.f32.mrb[191].mxu1  ;;  %v6621_v9 = vmax.f32 %v8389_v11, 0.0  ;;  %v8860_v1 = vld [vmem:[#allocation5 + $0x4c] ss:$16 sps:$4 sm:$0xff]  }
 0x861   : > { %v6622_v52 = vmax.f32 %v8391_v12, 0.0  ;;  %7200 = vmatmul.mubr.bf16.gmra.mrb[124].mxu0 %v8837_v57  ;;  %v8849_v57 = vld [vmem:[#allocation5 + $0x1e0] ss:$16 sps:$4 sm:$0xff]  }
 0x862   : > { %7207 = vmatprep.mubr.bf16.mxu0 %v8842_v24 }
 0x863   : > { %v6658_v0 = vpack.c.bf16 %v6622_v52, %v6621_v9  ;;  %v8852_v52 = vld [vmem:[#allocation5 + $0x8] ss:$16 sps:$4 sm:$0xff]  }
 0x864   : > { %v6536_v47 = vpop.f32.mrb[192].mxu1 }
 0x865   : > { %v8393_v2 = vadd.f32 %v6536_v47, %v5670_v3  ;;  %v6538_v36 = vpop.f32.mrb[193].mxu1  ;;  %8136 = vmatprep.subr.bf16.mxu0 %v6658_v0  ;;  %v8855_v3 = vld [vmem:[#allocation5 + $0x28] ss:$16 sps:$4 sm:$0xff]   ;;  %v8863_v0 = vld [vmem:[#allocation5 + $0x6c] ss:$16 sps:$4 sm:$0xff]  }
 0x866   : > { %v6539_v21 = vpop.f32.mrb[194].mxu1  ;;  %8137 = vmatpush3.bf16.msra.mxu0 %v12167_v58  ;;  %v5681_v58 = vadd.f32 %v12091_v56, %v4126_v6  ;;  %v4128_v56 = vld [vmem:[%s12524_s8 + $0x1e8] sm:$0xff] }
 0x867   : > { %v8395_v60 = vadd.f32 %v6539_v21, %v5673_v61  ;;  %v6541_v22 = vpop.f32.mrb[195].mxu1  ;;  %v6623_v41 = vmax.f32 %v8393_v2, 0.0  ;;  %v8861_v47 = vld [vmem:[#allocation5 + $0x68] ss:$16 sps:$4 sm:$0xff]   ;;  %v8866_v61 = vld [vmem:[#allocation5 + $0x8c] ss:$16 sps:$4 sm:$0xff]  }
 0x868   : > { %v8864_v2 = vld [vmem:[#allocation5 + $0x88] ss:$16 sps:$4 sm:$0xff]   ;;  %v8869_v36 = vld [vmem:[#allocation5 + $0xac] ss:$16 sps:$4 sm:$0xff]  }
 0x869   : > { %v6624_v15 = vmax.f32 %v8395_v60, 0.0  ;;  %7208 = vmatmul.mubr.bf16.gmra.mrb[128].mxu0 %v8840_v17  ;;  %v8872_v17 = vld [vmem:[#allocation5 + $0xcc] ss:$16 sps:$4 sm:$0xff]   ;;  %v8870_v21 = vld [vmem:[#allocation5 + $0xc8] ss:$16 sps:$4 sm:$0xff]  }
 0x86a   : > { %7215 = vmatprep.mubr.bf16.mxu0 %v8845_v48  ;;  %v8873_v48 = vld [vmem:[#allocation5 + $0xe8] ss:$16 sps:$4 sm:$0xff]   ;;  %v8878_v60 = vld [vmem:[#allocation5 + $0x10c] ss:$16 sps:$4 sm:$0xff]  }
 0x86b   : > { %v6659_v33 = vpack.c.bf16 %v6624_v15, %v6623_v41  ;;  %v8876_v22 = vld [vmem:[#allocation5 + $0x108] ss:$16 sps:$4 sm:$0xff]   ;;  %v8881_v41 = vld [vmem:[#allocation5 + $0x12c] ss:$16 sps:$4 sm:$0xff]  }
 0x86c   : > { %v6544_v53 = vpop.f32.mrb[196].mxu1  ;;  %v8879_v15 = vld [vmem:[#allocation5 + $0x128] ss:$16 sps:$4 sm:$0xff]  }
 0x86d   : > { %v8397_v13 = vadd.f32 %v6544_v53, %v5678_v35  ;;  %v6546_v39 = vpop.f32.mrb[197].mxu1  ;;  %8138 = vmatprep.subr.bf16.mxu0 %v6659_v33  ;;  %v8884_v35 = vld [vmem:[#allocation5 + $0x14c] ss:$16 sps:$4 sm:$0xff]   ;;  %v8882_v6 = vld [vmem:[#allocation5 + $0x148] ss:$16 sps:$4 sm:$0xff]  }
 0x86e   : > { %v6547_v49 = vpop.f32.mrb[198].mxu1  ;;  %8139 = vmatpush3.bf16.msra.mxu0 %v12177_v42  ;;  %v5689_v42 = vadd.f32 %v12104_v5, %v4128_v56  ;;  %v4130_v5 = vld [vmem:[%s12524_s8 + $0x1f8] sm:$0xff] }
 0x86f   : > { %v8399_v8 = vadd.f32 %v6547_v49, %v5681_v58  ;;  %v6549_v44 = vpop.f32.mrb[199].mxu1  ;;  %v6625_v10 = vmax.f32 %v8397_v13, 0.0  ;;  %v8887_v33 = vld [vmem:[#allocation5 + $0x16c] ss:$16 sps:$4 sm:$0xff]   ;;  %v8885_v58 = vld [vmem:[#allocation5 + $0x168] ss:$16 sps:$4 sm:$0xff]  }
 0x870   : > { %v8890_v39 = vld [vmem:[#allocation5 + $0x18c] ss:$16 sps:$4 sm:$0xff]   ;;  %v8888_v44 = vld [vmem:[#allocation5 + $0x188] ss:$16 sps:$4 sm:$0xff]  }
 0x871   : > { %v6626_v54 = vmax.f32 %v8399_v8, 0.0  ;;  %7216 = vmatmul.mubr.bf16.gmra.mrb[132].mxu0 %v8843_v29 }
 0x872   : > { %7223 = vmatprep.mubr.bf16.mxu0 %v8848_v43 }
 0x873   : > { %v6660_v18 = vpack.c.bf16 %v6626_v54, %v6625_v10  ;;  %v8893_v54 = vld [vmem:[#allocation5 + $0x1ac] ss:$16 sps:$4 sm:$0xff]  }
 0x874   : > { %v6552_v37 = vpop.f32.mrb[200].mxu1 }
 0x875   : > { %v8401_v28 = vadd.f32 %v6552_v37, %v5686_v19  ;;  %v6554_v14 = vpop.f32.mrb[201].mxu1  ;;  %8140 = vmatprep.subr.bf16.mxu0 %v6660_v18 }
 0x876   : > { %v6555_v34 = vpop.f32.mrb[202].mxu1  ;;  %8141 = vmatpush3.bf16.msra.mxu0 %v12187_v62  ;;  %v5697_v62 = vadd.f32 %v12117_v23, %v4130_v5  ;;  %v8857_v23 = vld [vmem:[#allocation5 + $0x2c] ss:$16 sps:$4 sm:$0xff]  }
 0x877   : > { %v8403_v63 = vadd.f32 %v6555_v34, %v5689_v42  ;;  %v6557_v50 = vpop.f32.mrb[203].mxu1  ;;  %v6627_v7 = vmax.f32 %v8401_v28, 0.0  ;;  %v8891_v28 = vld [vmem:[#allocation5 + $0x1a8] ss:$16 sps:$4 sm:$0xff]  }
 0x879   : > { %v6628_v20 = vmax.f32 %v8403_v63, 0.0  ;;  %7224 = vmatmul.mubr.bf16.gmra.mrb[136].mxu0 %v8846_v46  ;;  %v8896_v46 = vld [vmem:[#allocation5 + $0x1cc] ss:$16 sps:$4 sm:$0xff]  }
 0x87a   : > { %7231 = vmatprep.mubr.bf16.mxu0 %v8851_v55 }
 0x87b   : > { %v6661_v27 = vpack.c.bf16 %v6628_v20, %v6627_v7  ;;  %v8894_v7 = vld [vmem:[#allocation5 + $0x1c8] ss:$16 sps:$4 sm:$0xff]  }
 0x87c   : > { %v6560_v31 = vpop.f32.mrb[204].mxu1 }
 0x87d   : > { %v8405_v11 = vadd.f32 %v6560_v31, %v5694_v26  ;;  %v6562_v30 = vpop.f32.mrb[205].mxu1  ;;  %8142 = vmatprep.subr.bf16.mxu0 %v6661_v27  ;;  %v8899_v26 = vld [vmem:[#allocation5 + $0x1ec] ss:$16 sps:$4 sm:$0xff]  }
 0x87e   : > { %v6563_v38 = vpop.f32.mrb[206].mxu1  ;;  %8143 = vmatpush3.bf16.msra.mxu0 %v12197_v25  ;;  %v8858_v25 = vld [vmem:[#allocation5 + $0x48] ss:$16 sps:$4 sm:$0xff]  }
 0x87f   : > { %v8407_v24 = vadd.f32 %v6563_v38, %v5697_v62  ;;  %v6565_v12 = vpop.f32.mrb[207].mxu1  ;;  %v6629_v45 = vmax.f32 %v8405_v11, 0.0  ;;  %v8897_v30 = vld [vmem:[#allocation5 + $0x1e8] ss:$16 sps:$4 sm:$0xff]  }
 0x881   : > { %v6630_v16 = vmax.f32 %v8407_v24, 0.0  ;;  %7232 = vmatmul.mubr.bf16.gmra.mrb[140].mxu0 %v8849_v57 }
 0x882   : > { %7272 = vmatprep.mubr.bf16.mxu0 %v8854_v4 }
 0x883   : > { %v6662_v9 = vpack.c.bf16 %v6630_v16, %v6629_v45 }
 0x885   : > { %8144 = vmatprep.subr.bf16.mxu0 %v6662_v9 }
 0x886   : > { %8145 = vmatpush3.bf16.msra.mxu0 %v12207_v51  ;;  %v8867_v51 = vld [vmem:[#allocation5 + $0xa8] ss:$16 sps:$4 sm:$0xff]  }
 0x889   : > { %7273 = vmatmul.mubr.bf16.vlgmr.msra.gmra.mrb[144].mxu0 %v8852_v52 }
 0x88a   : > { %7280 = vmatprep.mubr.bf16.mxu0 %v8857_v23 }
 0x891   : > { %7281 = vmatmul.mubr.bf16.gmra.mrb[148].mxu0 %v8855_v3 }
 0x892   : > { %7288 = vmatprep.mubr.bf16.mxu0 %v8860_v1 }
 0x899   : > { %7289 = vmatmul.mubr.bf16.gmra.mrb[152].mxu0 %v8858_v25 }
 0x89a   : > { %7296 = vmatprep.mubr.bf16.mxu0 %v8863_v0 }
 0x8a1   : > { %7297 = vmatmul.mubr.bf16.gmra.mrb[156].mxu0 %v8861_v47 }
 0x8a2   : > { %7304 = vmatprep.mubr.bf16.mxu0 %v8866_v61 }
 0x8a9   : > { %7305 = vmatmul.mubr.bf16.gmra.mrb[160].mxu0 %v8864_v2 }
 0x8aa   : > { %7312 = vmatprep.mubr.bf16.mxu0 %v8869_v36 }
 0x8b1   : > { %7313 = vmatmul.mubr.bf16.gmra.mrb[164].mxu0 %v8867_v51 }
 0x8b2   : > { %7320 = vmatprep.mubr.bf16.mxu0 %v8872_v17 }
 0x8b9   : > { %7321 = vmatmul.mubr.bf16.gmra.mrb[168].mxu0 %v8870_v21 }
 0x8ba   : > { %7328 = vmatprep.mubr.bf16.mxu0 %v8875_v32 }
 0x8c1   : > { %7329 = vmatmul.mubr.bf16.gmra.mrb[172].mxu0 %v8873_v48 }
 0x8c2   : > { %7336 = vmatprep.mubr.bf16.mxu0 %v8878_v60 }
 0x8c9   : > { %7337 = vmatmul.mubr.bf16.gmra.mrb[176].mxu0 %v8876_v22 }
 0x8ca   : > { %7344 = vmatprep.mubr.bf16.mxu0 %v8881_v41 }
 0x8d1   : > { %7345 = vmatmul.mubr.bf16.gmra.mrb[180].mxu0 %v8879_v15 }
 0x8d2   : > { %7352 = vmatprep.mubr.bf16.mxu0 %v8884_v35 }
 0x8d9   : > { %7353 = vmatmul.mubr.bf16.gmra.mrb[184].mxu0 %v8882_v6 }
 0x8da   : > { %7360 = vmatprep.mubr.bf16.mxu0 %v8887_v33 }
 0x8dc   : > { %v8034_v53 = vpop.f32.mrb[80].mxu0 }
 0x8dd   : > { %v8035_v13 = vpop.f32.mrb[81].mxu0 }
 0x8de   : > { %v12274_v29 = vadd.f32 %v8035_v13, %v8034_v53  ;;  %v8037_v49 = vpop.f32.mrb[82].mxu0 }
 0x8df   : > { %v8038_v59 = vpop.f32.mrb[83].mxu0 }
 0x8e0   : > { %v12276_v43 = vadd.f32 %v8038_v59, %v8037_v49 }
 0x8e1   : > { %7361 = vmatmul.mubr.bf16.gmra.mrb[188].mxu0 %v8885_v58 }
 0x8e2   : > { %7368 = vmatprep.mubr.bf16.mxu0 %v8890_v39 }
 0x8e4   : > { %v8040_v8 = vpop.f32.mrb[84].mxu0 }
 0x8e5   : > { %v8041_v10 = vpop.f32.mrb[85].mxu0 }
 0x8e6   : > { %v12278_v19 = vadd.f32 %v8041_v10, %v8040_v8  ;;  %v8043_v56 = vpop.f32.mrb[86].mxu0 }
 0x8e7   : > { %v8044_v18 = vpop.f32.mrb[87].mxu0 }
 0x8e8   : > { %v12280_v37 = vadd.f32 %v8044_v18, %v8043_v56 }
 0x8e9   : > { %7369 = vmatmul.mubr.bf16.gmra.mrb[192].mxu0 %v8888_v44 }
 0x8ea   : > { %7376 = vmatprep.mubr.bf16.mxu0 %v8893_v54 }
 0x8ec   : > { %v8046_v42 = vpop.f32.mrb[88].mxu0 }
 0x8ed   : > { %v8047_v14 = vpop.f32.mrb[89].mxu0 }
 0x8ee   : > { %v12282_v34 = vadd.f32 %v8047_v14, %v8046_v42  ;;  %v8049_v40 = vpop.f32.mrb[90].mxu0 }
 0x8ef   : > { %v8050_v55 = vpop.f32.mrb[91].mxu0 }
 0x8f0   : > { %v12284_v63 = vadd.f32 %v8050_v55, %v8049_v40 }
 0x8f1   : > { %7377 = vmatmul.mubr.bf16.gmra.mrb[196].mxu0 %v8891_v28 }
 0x8f2   : > { %7384 = vmatprep.mubr.bf16.mxu0 %v8896_v46 }
 0x8f4   : > { %v8052_v50 = vpop.f32.mrb[92].mxu0 }
 0x8f5   : > { %v8053_v20 = vpop.f32.mrb[93].mxu0 }
 0x8f6   : > { %v12286_v5 = vadd.f32 %v8053_v20, %v8052_v50  ;;  %v8055_v27 = vpop.f32.mrb[94].mxu0 }
 0x8f7   : > { %v8056_v31 = vpop.f32.mrb[95].mxu0 }
 0x8f8   : > { %v12288_v62 = vadd.f32 %v8056_v31, %v8055_v27 }
 0x8f9   : > { %7385 = vmatmul.mubr.bf16.gmra.mrb[200].mxu0 %v8894_v7 }
 0x8fa   : > { %7392 = vmatprep.mubr.bf16.mxu0 %v8899_v26 }
 0x8fc   : > { %v8058_v11 = vpop.f32.mrb[96].mxu0 }
 0x8fd   : > { %v8059_v57 = vpop.f32.mrb[97].mxu0 }
 0x8fe   : > { %v12290_v38 = vadd.f32 %v8059_v57, %v8058_v11  ;;  %v8061_v4 = vpop.f32.mrb[98].mxu0 }
 0x8ff   : > { %v8062_v24 = vpop.f32.mrb[99].mxu0 }
 0x900   : > { %v12292_v12 = vadd.f32 %v8062_v24, %v8061_v4 }
 0x901   : > { %7393 = vmatmul.mubr.bf16.gmra.mrb[204].mxu0 %v8897_v30 }
 0x904   : > { %v8064_v45 = vpop.f32.mrb[100].mxu0 }
 0x905   : > { %v8065_v16 = vpop.f32.mrb[101].mxu0 }
 0x906   : > { %v12294_v9 = vadd.f32 %v8065_v16, %v8064_v45  ;;  %v8067_v52 = vpop.f32.mrb[102].mxu0 }
 0x907   : > { %v8068_v23 = vpop.f32.mrb[103].mxu0 }
 0x908   : > { %v12296_v3 = vadd.f32 %v8068_v23, %v8067_v52 }
 0x90c   : > { %v8070_v1 = vpop.f32.mrb[104].mxu0 }
 0x90d   : > { %v8071_v25 = vpop.f32.mrb[105].mxu0 }
 0x90e   : > { %v12298_v0 = vadd.f32 %v8071_v25, %v8070_v1  ;;  %v8073_v47 = vpop.f32.mrb[106].mxu0 }
 0x90f   : > { %v8074_v61 = vpop.f32.mrb[107].mxu0 }
 0x910   : > { %v12300_v2 = vadd.f32 %v8074_v61, %v8073_v47 }
 0x914   : > { %v8076_v36 = vpop.f32.mrb[108].mxu0 }
 0x915   : > { %v8077_v51 = vpop.f32.mrb[109].mxu0 }
 0x916   : > { %v12302_v17 = vadd.f32 %v8077_v51, %v8076_v36  ;;  %v8079_v21 = vpop.f32.mrb[110].mxu0 }
 0x917   : > { %v8080_v32 = vpop.f32.mrb[111].mxu0 }
 0x918   : > { %v12304_v48 = vadd.f32 %v8080_v32, %v8079_v21 }
 0x91c   : > { %v8082_v60 = vpop.f32.mrb[112].mxu0 }
 0x91d   : > { %v8083_v22 = vpop.f32.mrb[113].mxu0 }
 0x91e   : > { %v12306_v41 = vadd.f32 %v8083_v22, %v8082_v60  ;;  %v8085_v15 = vpop.f32.mrb[114].mxu0  ;;  %v6727_v60 = vld [vmem:[%s12526_s10] sm:$0xff] }
 0x91f   : > { %v8086_v35 = vpop.f32.mrb[115].mxu0 }
 0x920   : > { %v12308_v6 = vadd.f32 %v8086_v35, %v8085_v15  ;;  %v6728_v15 = vld [vmem:[%s12526_s10 + $0x8] sm:$0xff] }
 0x924   : > { %v8088_v33 = vpop.f32.mrb[116].mxu0 }
 0x925   : > { %v8089_v53 = vpop.f32.mrb[117].mxu0 }
 0x926   : > { %v12310_v58 = vadd.f32 %v8089_v53, %v8088_v33  ;;  %v8091_v13 = vpop.f32.mrb[118].mxu0  ;;  %v7114_v33 = vadd.f32 %v12274_v29, %v6727_v60 }
 0x927   : > { %v8092_v39 = vpop.f32.mrb[119].mxu0 }
 0x928   : > { %v12312_v49 = vadd.f32 %v8092_v39, %v8091_v13 }
 0x92c   : > { %v8094_v59 = vpop.f32.mrb[120].mxu0 }
 0x92d   : > { %v8095_v8 = vpop.f32.mrb[121].mxu0 }
 0x92e   : > { %v12314_v44 = vadd.f32 %v8095_v8, %v8094_v59  ;;  %v8097_v10 = vpop.f32.mrb[122].mxu0  ;;  %v7117_v59 = vadd.f32 %v12276_v43, %v6728_v15 }
 0x92f   : > { %v8098_v54 = vpop.f32.mrb[123].mxu0 }
 0x930   : > { %v12316_v56 = vadd.f32 %v8098_v54, %v8097_v10  ;;  %v8902_v54 = vld [vmem:[%s12527_s11 + $0x4] ss:$8 sps:$4 sm:$0x1f]  }
 0x931   : > { %7495 = vmatprep.mubr.bf16.mxu0 %v8902_v54 }
 0x934   : > { %v8100_v18 = vpop.f32.mrb[124].mxu0 }
 0x935   : > { %v8101_v42 = vpop.f32.mrb[125].mxu0 }
 0x936   : > { %v12318_v28 = vadd.f32 %v8101_v42, %v8100_v18  ;;  %v8103_v14 = vpop.f32.mrb[126].mxu0  ;;  %v6729_v42 = vld [vmem:[%s12526_s10 + $0x10] sm:$0xff] }
 0x937   : > { %v8104_v46 = vpop.f32.mrb[127].mxu0 }
 0x938   : > { %v12320_v40 = vadd.f32 %v8104_v46, %v8103_v14 }
 0x93c   : > { %v8106_v55 = vpop.f32.mrb[128].mxu0 }
 0x93d   : > { %v8107_v50 = vpop.f32.mrb[129].mxu0 }
 0x93e   : > { %v12322_v7 = vadd.f32 %v8107_v50, %v8106_v55  ;;  %v8109_v20 = vpop.f32.mrb[130].mxu0  ;;  %v6730_v55 = vld [vmem:[%s12526_s10 + $0x18] sm:$0xff]  ;;  %v7122_v50 = vadd.f32 %v12278_v19, %v6729_v42  ;;  %v6732_v19 = vld [vmem:[%s12526_s10 + $0x28] sm:$0xff] }
 0x93f   : > { %v8110_v26 = vpop.f32.mrb[131].mxu0 }
 0x940   : > { %v12324_v27 = vadd.f32 %v8110_v26, %v8109_v20 }
 0x944   : > { %v8112_v31 = vpop.f32.mrb[132].mxu0 }
 0x945   : > { %v8113_v11 = vpop.f32.mrb[133].mxu0 }
 0x946   : > { %v12326_v30 = vadd.f32 %v8113_v11, %v8112_v31  ;;  %v8115_v57 = vpop.f32.mrb[134].mxu0 }
 0x947   : > { %v8116_v4 = vpop.f32.mrb[135].mxu0 }
 0x948   : > { %v12328_v24 = vadd.f32 %v8116_v4, %v8115_v57  ;;  %v7125_v57 = vadd.f32 %v12280_v37, %v6730_v55 }
 0x94c   : > { %v8118_v45 = vpop.f32.mrb[136].mxu0 }
 0x94d   : > { %v8119_v16 = vpop.f32.mrb[137].mxu0 }
 0x94e   : > { %v12330_v52 = vadd.f32 %v8119_v16, %v8118_v45  ;;  %v8121_v23 = vpop.f32.mrb[138].mxu0 }
 0x94f   : > { %v8122_v1 = vpop.f32.mrb[139].mxu0 }
 0x950   : > { %v12332_v25 = vadd.f32 %v8122_v1, %v8121_v23  ;;  %v6731_v23 = vld [vmem:[%s12526_s10 + $0x20] sm:$0xff] }
 0x954   : > { %v8124_v47 = vpop.f32.mrb[140].mxu0 }
 0x955   : > { %v8125_v61 = vpop.f32.mrb[141].mxu0 }
 0x956   : > { %v12334_v36 = vadd.f32 %v8125_v61, %v8124_v47  ;;  %v8127_v51 = vpop.f32.mrb[142].mxu0 }
 0x957   : > { %v8128_v21 = vpop.f32.mrb[143].mxu0 }
 0x958   : > { %v12336_v32 = vadd.f32 %v8128_v21, %v8127_v51  ;;  %v7130_v21 = vadd.f32 %v12282_v34, %v6731_v23  ;;  %v6734_v34 = vld [vmem:[%s12526_s10 + $0x38] sm:$0xff] }
 0x95c   : > { %v8146_v22 = vpop.f32.mrb[144].mxu0 }
 0x95d   : > { %v8147_v35 = vpop.f32.mrb[145].mxu0 }
 0x95e   : > { %v8148_v53 = vadd.f32 %v8147_v35, %v8146_v22  ;;  %v8149_v13 = vpop.f32.mrb[146].mxu0  ;;  %v7133_v35 = vadd.f32 %v12284_v63, %v6732_v19 }
 0x95f   : > { %v8150_v39 = vpop.f32.mrb[147].mxu0 }
 0x960   : > { %v7275_v8 = vadd.f32 %v8148_v53, %v7114_v33  ;;  %v8151_v10 = vadd.f32 %v8150_v39, %v8149_v13  ;;  %v6733_v39 = vld [vmem:[%s12526_s10 + $0x30] sm:$0xff] }
 0x962   : > { %v7278_v18 = vadd.f32 %v8151_v10, %v7117_v59  ;;  %v7401_v14 = vmax.f32 %v7275_v8, 0.0 }
 0x964   : > { %v7402_v46 = vmax.f32 %v7278_v18, 0.0  ;;  %v8152_v29 = vpop.f32.mrb[148].mxu0  ;;  %v7138_v18 = vadd.f32 %v12286_v5, %v6733_v39  ;;  %v6736_v5 = vld [vmem:[%s12526_s10 + $0x48] sm:$0xff] }
 0x965   : > { %v8153_v43 = vpop.f32.mrb[149].mxu0 }
 0x966   : > { %v12356_v20 = vpack.c.bf16 %v7402_v46, %v7401_v14  ;;  %v8154_v26 = vadd.f32 %v8153_v43, %v8152_v29  ;;  %v8155_v31 = vpop.f32.mrb[150].mxu0  ;;  %v7141_v29 = vadd.f32 %v12288_v62, %v6734_v34 }
 0x967   : > { %v8156_v11 = vpop.f32.mrb[151].mxu0 }
 0x968   : > { %v7283_v4 = vadd.f32 %v8154_v26, %v7122_v50  ;;  %v8157_v45 = vadd.f32 %v8156_v11, %v8155_v31  ;;  %v6735_v26 = vld [vmem:[%s12526_s10 + $0x40] sm:$0xff] }
 0x96a   : > { %v7286_v16 = vadd.f32 %v8157_v45, %v7125_v57  ;;  %v7403_v1 = vmax.f32 %v7283_v4, 0.0  ;;  %v7146_v45 = vadd.f32 %v12290_v38, %v6735_v26  ;;  %v6738_v38 = vld [vmem:[%s12526_s10 + $0x58] sm:$0xff] }
 0x96c   : > { %v7404_v47 = vmax.f32 %v7286_v16, 0.0  ;;  %v8158_v61 = vpop.f32.mrb[152].mxu0 }
 0x96d   : > { %v8159_v51 = vpop.f32.mrb[153].mxu0 }
 0x96e   : > { %v12366_v60 = vpack.c.bf16 %v7404_v47, %v7403_v1  ;;  %v8160_v37 = vadd.f32 %v8159_v51, %v8158_v61  ;;  %v8161_v22 = vpop.f32.mrb[154].mxu0  ;;  %v7149_v47 = vadd.f32 %v12292_v12, %v6736_v5  ;;  %v6741_v5 = vld [vmem:[%s12526_s10 + $0x70] sm:$0xff] }
 0x96f   : > { %v8162_v15 = vpop.f32.mrb[155].mxu0 }
 0x970   : > { %v7291_v33 = vadd.f32 %v8160_v37, %v7130_v21  ;;  %v8163_v53 = vadd.f32 %v8162_v15, %v8161_v22  ;;  %v6737_v21 = vld [vmem:[%s12526_s10 + $0x50] sm:$0xff] }
 0x972   : > { %v7294_v13 = vadd.f32 %v8163_v53, %v7133_v35  ;;  %v7405_v59 = vmax.f32 %v7291_v33, 0.0  ;;  %v7154_v33 = vadd.f32 %v12294_v9, %v6737_v21  ;;  %v6740_v9 = vld [vmem:[%s12526_s10 + $0x68] sm:$0xff] }
 0x973   : > { %v7165_v26 = vadd.f32 %v12300_v2, %v6740_v9 }
 0x974   : > { %v7406_v8 = vmax.f32 %v7294_v13, 0.0  ;;  %v8164_v10 = vpop.f32.mrb[156].mxu0 }
 0x975   : > { %v8165_v54 = vpop.f32.mrb[157].mxu0 }
 0x976   : > { %v12376_v42 = vpack.c.bf16 %v7406_v8, %v7405_v59  ;;  %v8166_v63 = vadd.f32 %v8165_v54, %v8164_v10  ;;  %v8167_v14 = vpop.f32.mrb[158].mxu0  ;;  %v7157_v59 = vadd.f32 %v12296_v3, %v6738_v38  ;;  %v6739_v54 = vld [vmem:[%s12526_s10 + $0x60] sm:$0xff] }
 0x977   : > { %v8168_v46 = vpop.f32.mrb[159].mxu0 }
 0x978   : > { %v7299_v55 = vadd.f32 %v8166_v63, %v7138_v18  ;;  %v8169_v43 = vadd.f32 %v8168_v46, %v8167_v14 }
 0x97a   : > { %v7302_v50 = vadd.f32 %v8169_v43, %v7141_v29  ;;  %v7407_v31 = vmax.f32 %v7299_v55, 0.0  ;;  %v7162_v29 = vadd.f32 %v12298_v0, %v6739_v54  ;;  %v6742_v0 = vld [vmem:[%s12526_s10 + $0x78] sm:$0xff] }
 0x97c   : > { %v7408_v11 = vmax.f32 %v7302_v50, 0.0  ;;  %v8170_v57 = vpop.f32.mrb[160].mxu0 }
 0x97d   : > { %v8171_v4 = vpop.f32.mrb[161].mxu0 }
 0x97e   : > { %v12386_v16 = vpack.c.bf16 %v7408_v11, %v7407_v31  ;;  %v8172_v62 = vadd.f32 %v8171_v4, %v8170_v57  ;;  %v8173_v23 = vpop.f32.mrb[162].mxu0 }
 0x97f   : > { %v8174_v1 = vpop.f32.mrb[163].mxu0 }
 0x980   : > { %v7307_v61 = vadd.f32 %v8172_v62, %v7146_v45  ;;  %v8175_v19 = vadd.f32 %v8174_v1, %v8173_v23  ;;  %v7170_v1 = vadd.f32 %v12302_v17, %v6741_v5  ;;  %v6744_v17 = vld [vmem:[%s12526_s10 + $0x88] sm:$0xff] }
 0x982   : > { %v7310_v51 = vadd.f32 %v8175_v19, %v7149_v47  ;;  %v7409_v37 = vmax.f32 %v7307_v61, 0.0 }
 0x984   : > { %v7410_v22 = vmax.f32 %v7310_v51, 0.0  ;;  %v8176_v15 = vpop.f32.mrb[164].mxu0  ;;  %v7173_v51 = vadd.f32 %v12304_v48, %v6742_v0 }
 0x985   : > { %v8177_v35 = vpop.f32.mrb[165].mxu0 }
 0x986   : > { %v12396_v53 = vpack.c.bf16 %v7410_v22, %v7409_v37  ;;  %v8178_v12 = vadd.f32 %v8177_v35, %v8176_v15  ;;  %v8179_v13 = vpop.f32.mrb[166].mxu0  ;;  %v6743_v15 = vld [vmem:[%s12526_s10 + $0x80] sm:$0xff] }
 0x987   : > { %v8180_v39 = vpop.f32.mrb[167].mxu0 }
 0x988   : > { %v7315_v8 = vadd.f32 %v8178_v12, %v7154_v33  ;;  %v8181_v10 = vadd.f32 %v8180_v39, %v8179_v13  ;;  %v7178_v13 = vadd.f32 %v12306_v41, %v6743_v15  ;;  %v6746_v41 = vld [vmem:[%s12526_s10 + $0x98] sm:$0xff] }
 0x98a   : > { %v7318_v34 = vadd.f32 %v8181_v10, %v7157_v59  ;;  %v7411_v18 = vmax.f32 %v7315_v8, 0.0  ;;  %v7181_v10 = vadd.f32 %v12308_v6, %v6744_v17 }
 0x98c   : > { %v7412_v63 = vmax.f32 %v7318_v34, 0.0  ;;  %v8182_v14 = vpop.f32.mrb[168].mxu0 }
 0x98d   : > { %v8183_v46 = vpop.f32.mrb[169].mxu0 }
 0x98e   : > { %v12406_v55 = vpack.c.bf16 %v7412_v63, %v7411_v18  ;;  %v8184_v3 = vadd.f32 %v8183_v46, %v8182_v14  ;;  %v8185_v43 = vpop.f32.mrb[170].mxu0  ;;  %v6745_v63 = vld [vmem:[%s12526_s10 + $0x90] sm:$0xff] }
 0x98f   : > { %v8186_v50 = vpop.f32.mrb[171].mxu0 }
 0x990   : > { %v7323_v31 = vadd.f32 %v8184_v3, %v7162_v29  ;;  %v8187_v11 = vadd.f32 %v8186_v50, %v8185_v43  ;;  %v7186_v3 = vadd.f32 %v12310_v58, %v6745_v63  ;;  %v6748_v58 = vld [vmem:[%s12526_s10 + $0xa8] sm:$0xff] }
 0x992   : > { %v7326_v57 = vadd.f32 %v8187_v11, %v7165_v26  ;;  %v7413_v4 = vmax.f32 %v7323_v31, 0.0  ;;  %v7189_v31 = vadd.f32 %v12312_v49, %v6746_v41 }
 0x994   : > { %v7414_v45 = vmax.f32 %v7326_v57, 0.0  ;;  %v8188_v62 = vpop.f32.mrb[172].mxu0 }
 0x995   : > { %v8189_v23 = vpop.f32.mrb[173].mxu0 }
 0x996   : > { %v12416_v47 = vpack.c.bf16 %v7414_v45, %v7413_v4  ;;  %v8190_v2 = vadd.f32 %v8189_v23, %v8188_v62  ;;  %v8191_v61 = vpop.f32.mrb[174].mxu0  ;;  %v6747_v4 = vld [vmem:[%s12526_s10 + $0xa0] sm:$0xff] }
 0x997   : > { %v8192_v19 = vpop.f32.mrb[175].mxu0  ;;  %v7194_v49 = vadd.f32 %v12314_v44, %v6747_v4  ;;  %v6750_v44 = vld [vmem:[%s12526_s10 + $0xb8] sm:$0xff] }
 0x998   : > { %v7331_v21 = vadd.f32 %v8190_v2, %v7170_v1  ;;  %v8193_v37 = vadd.f32 %v8192_v19, %v8191_v61 }
 0x99a   : > { %v7334_v22 = vadd.f32 %v8193_v37, %v7173_v51  ;;  %v7415_v38 = vmax.f32 %v7331_v21, 0.0 }
 0x99c   : > { %v7416_v35 = vmax.f32 %v7334_v22, 0.0  ;;  %v8194_v33 = vpop.f32.mrb[176].mxu0  ;;  %v6749_v22 = vld [vmem:[%s12526_s10 + $0xb0] sm:$0xff] }
 0x99d   : > { %v8195_v12 = vpop.f32.mrb[177].mxu0 }
 0x99e   : > { %v12426_v39 = vpack.c.bf16 %v7416_v35, %v7415_v38  ;;  %v8196_v48 = vadd.f32 %v8195_v12, %v8194_v33  ;;  %v8197_v59 = vpop.f32.mrb[178].mxu0 }
 0x99f   : > { %v8198_v8 = vpop.f32.mrb[179].mxu0 }
 0x9a0   : > { %v7339_v34 = vadd.f32 %v8196_v48, %v7178_v13  ;;  %v8199_v54 = vadd.f32 %v8198_v8, %v8197_v59 }
 0x9a2   : > { %v7342_v18 = vadd.f32 %v8199_v54, %v7181_v10  ;;  %v7417_v14 = vmax.f32 %v7339_v34, 0.0  ;;  %v6751_v34 = vld [vmem:[%s12526_s10 + $0xc0] sm:$0xff] }
 0x9a4   : > { %v7418_v9 = vmax.f32 %v7342_v18, 0.0  ;;  %v8200_v46 = vpop.f32.mrb[180].mxu0 }
 0x9a5   : > { %v8201_v29 = vpop.f32.mrb[181].mxu0 }
 0x9a6   : > { %v8202_v43 = vadd.f32 %v8201_v29, %v8200_v46  ;;  %v8203_v50 = vpop.f32.mrb[182].mxu0  ;;  %v7441_v6 = vpack.c.bf16 %v7418_v9, %v7417_v14 }
 0x9a7   : > { %v8204_v26 = vpop.f32.mrb[183].mxu0 }
 0x9a8   : > { %v7347_v11 = vadd.f32 %v8202_v43, %v7186_v3  ;;  %v8205_v57 = vadd.f32 %v8204_v26, %v8203_v50  ;;  %8242 = vmatprep.subr.bf16.mxu0 %v7441_v6  ;;  %v6753_v6 = vld [vmem:[%s12526_s10 + $0xd0] sm:$0xff] }
 0x9a9   : > { %8243 = vmatpush3.bf16.msra.mxu0 %v12356_v20  ;;  %v7197_v20 = vadd.f32 %v12316_v56, %v6748_v58  ;;  %v7202_v56 = vadd.f32 %v12318_v28, %v6749_v22  ;;  %v6752_v28 = vld [vmem:[%s12526_s10 + $0xc8] sm:$0xff] }
 0x9aa   : > { %v7350_v5 = vadd.f32 %v8205_v57, %v7189_v31  ;;  %v7419_v45 = vmax.f32 %v7347_v11, 0.0 }
 0x9ac   : > { %v7420_v62 = vmax.f32 %v7350_v5, 0.0  ;;  %v8206_v0 = vpop.f32.mrb[184].mxu0 }
 0x9ad   : > { %v8207_v23 = vpop.f32.mrb[185].mxu0 }
 0x9ae   : > { %v8208_v1 = vadd.f32 %v8207_v23, %v8206_v0  ;;  %v8209_v2 = vpop.f32.mrb[186].mxu0  ;;  %v7442_v61 = vpack.c.bf16 %v7420_v62, %v7419_v45 }
 0x9af   : > { %v8210_v19 = vpop.f32.mrb[187].mxu0 }
 0x9b0   : > { %v7355_v51 = vadd.f32 %v8208_v1, %v7194_v49  ;;  %v8211_v21 = vadd.f32 %v8210_v19, %v8209_v2  ;;  %8244 = vmatprep.subr.bf16.mxu0 %v7442_v61  ;;  %v6755_v49 = vld [vmem:[%s12526_s10 + $0xe0] sm:$0xff] }
 0x9b1   : > { %8245 = vmatpush3.bf16.msra.mxu0 %v12366_v60  ;;  %v7205_v60 = vadd.f32 %v12320_v40, %v6750_v44  ;;  %v7210_v40 = vadd.f32 %v12322_v7, %v6751_v34  ;;  %v6754_v7 = vld [vmem:[%s12526_s10 + $0xd8] sm:$0xff] }
 0x9b2   : > { %v7358_v37 = vadd.f32 %v8211_v21, %v7197_v20  ;;  %v7421_v15 = vmax.f32 %v7355_v51, 0.0 }
 0x9b4   : > { %v7422_v38 = vmax.f32 %v7358_v37, 0.0  ;;  %v8212_v35 = vpop.f32.mrb[188].mxu0 }
 0x9b5   : > { %v8213_v33 = vpop.f32.mrb[189].mxu0 }
 0x9b6   : > { %v8214_v17 = vadd.f32 %v8213_v33, %v8212_v35  ;;  %v8215_v12 = vpop.f32.mrb[190].mxu0  ;;  %v7443_v13 = vpack.c.bf16 %v7422_v38, %v7421_v15  ;;  %v6757_v35 = vld [vmem:[%s12526_s10 + $0xf0] sm:$0xff] }
 0x9b7   : > { %v8216_v48 = vpop.f32.mrb[191].mxu0 }
 0x9b8   : > { %v7363_v59 = vadd.f32 %v8214_v17, %v7202_v56  ;;  %v8217_v8 = vadd.f32 %v8216_v48, %v8215_v12  ;;  %8246 = vmatprep.subr.bf16.mxu0 %v7443_v13 }
 0x9b9   : > { %8247 = vmatpush3.bf16.msra.mxu0 %v12376_v42  ;;  %v7213_v42 = vadd.f32 %v12324_v27, %v6752_v28  ;;  %v7218_v27 = vadd.f32 %v12326_v30, %v6753_v6  ;;  %v6756_v30 = vld [vmem:[%s12526_s10 + $0xe8] sm:$0xff] }
 0x9ba   : > { %v7366_v10 = vadd.f32 %v8217_v8, %v7205_v60  ;;  %v7423_v54 = vmax.f32 %v7363_v59, 0.0 }
 0x9bc   : > { %v7424_v18 = vmax.f32 %v7366_v10, 0.0  ;;  %v8218_v63 = vpop.f32.mrb[192].mxu0 }
 0x9bd   : > { %v8219_v14 = vpop.f32.mrb[193].mxu0 }
 0x9be   : > { %v8220_v9 = vadd.f32 %v8219_v14, %v8218_v63  ;;  %v8221_v46 = vpop.f32.mrb[194].mxu0  ;;  %v7444_v41 = vpack.c.bf16 %v7424_v18, %v7423_v54 }
 0x9bf   : > { %v8222_v29 = vpop.f32.mrb[195].mxu0 }
 0x9c0   : > { %v7371_v3 = vadd.f32 %v8220_v9, %v7210_v40  ;;  %v8223_v43 = vadd.f32 %v8222_v29, %v8221_v46  ;;  %8248 = vmatprep.subr.bf16.mxu0 %v7444_v41  ;;  %v7452_v40 = vld [vmem:[%s12528_s12 + $0x8] sm:$0x1] }
 0x9c1   : > { %8249 = vmatpush3.bf16.msra.mxu0 %v12386_v16  ;;  %v7221_v16 = vadd.f32 %v12328_v24, %v6754_v7  ;;  %v7226_v24 = vadd.f32 %v12330_v52, %v6755_v49  ;;  %v6758_v52 = vld [vmem:[%s12526_s10 + $0xf8] sm:$0xff] }
 0x9c2   : > { %v7374_v50 = vadd.f32 %v8223_v43, %v7213_v42  ;;  %v7425_v26 = vmax.f32 %v7371_v3, 0.0  ;;  %v7237_v60 = vadd.f32 %v12336_v32, %v6758_v52  ;;  %v7451_v32 = vld [vmem:[%s12528_s12] sm:$0xff] }
 0x9c4   : > { %v7426_v31 = vmax.f32 %v7374_v50, 0.0  ;;  %v8224_v11 = vpop.f32.mrb[196].mxu0 }
 0x9c5   : > { %v8225_v57 = vpop.f32.mrb[197].mxu0 }
 0x9c6   : > { %v8226_v5 = vadd.f32 %v8225_v57, %v8224_v11  ;;  %v8227_v4 = vpop.f32.mrb[198].mxu0  ;;  %v7445_v45 = vpack.c.bf16 %v7426_v31, %v7425_v26 }
 0x9c7   : > { %v8228_v62 = vpop.f32.mrb[199].mxu0 }
 0x9c8   : > { %v7379_v0 = vadd.f32 %v8226_v5, %v7218_v27  ;;  %v8229_v58 = vadd.f32 %v8228_v62, %v8227_v4  ;;  %8250 = vmatprep.subr.bf16.mxu0 %v7445_v45 }
 0x9c9   : > { %8251 = vmatpush3.bf16.msra.mxu0 %v12396_v53  ;;  %v7229_v53 = vadd.f32 %v12332_v25, %v6756_v30  ;;  %v7234_v25 = vadd.f32 %v12334_v36, %v6757_v35  ;;  %v8900_v36 = vld [vmem:[%s12527_s11] ss:$8 sps:$4 sm:$0x1f]  }
 0x9ca   : > { %v7382_v23 = vadd.f32 %v8229_v58, %v7221_v16  ;;  %v7427_v1 = vmax.f32 %v7379_v0, 0.0 }
 0x9cc   : > { %v7428_v2 = vmax.f32 %v7382_v23, 0.0  ;;  %v8230_v61 = vpop.f32.mrb[200].mxu0 }
 0x9cd   : > { %v8231_v19 = vpop.f32.mrb[201].mxu0 }
 0x9ce   : > { %v8232_v20 = vadd.f32 %v8231_v19, %v8230_v61  ;;  %v8233_v51 = vpop.f32.mrb[202].mxu0  ;;  %v7446_v21 = vpack.c.bf16 %v7428_v2, %v7427_v1 }
 0x9cf   : > { %v8234_v37 = vpop.f32.mrb[203].mxu0 }
 0x9d0   : > { %v7387_v22 = vadd.f32 %v8232_v20, %v7226_v24  ;;  %v8235_v15 = vadd.f32 %v8234_v37, %v8233_v51  ;;  %8252 = vmatprep.subr.bf16.mxu0 %v7446_v21 }
 0x9d1   : > { %8253 = vmatpush3.bf16.msra.mxu0 %v12406_v55 }
 0x9d2   : > { %v7390_v38 = vadd.f32 %v8235_v15, %v7229_v53  ;;  %v7429_v44 = vmax.f32 %v7387_v22, 0.0 }
 0x9d4   : > { %v7430_v33 = vmax.f32 %v7390_v38, 0.0  ;;  %v8236_v56 = vpop.f32.mrb[204].mxu0 }
 0x9d5   : > { %v8237_v17 = vpop.f32.mrb[205].mxu0 }
 0x9d6   : > { %v8238_v12 = vadd.f32 %v8237_v17, %v8236_v56  ;;  %v8239_v13 = vpop.f32.mrb[206].mxu0  ;;  %v7447_v48 = vpack.c.bf16 %v7430_v33, %v7429_v44 }
 0x9d7   : > { %v8240_v55 = vpop.f32.mrb[207].mxu0 }
 0x9d8   : > { %v7395_v59 = vadd.f32 %v8238_v12, %v7234_v25  ;;  %v8241_v8 = vadd.f32 %v8240_v55, %v8239_v13  ;;  %8254 = vmatprep.subr.bf16.mxu0 %v7447_v48 }
 0x9d9   : > { %8255 = vmatpush3.bf16.msra.mxu0 %v12416_v47 }
 0x9da   : > { %v7398_v10 = vadd.f32 %v8241_v8, %v7237_v60  ;;  %v7431_v34 = vmax.f32 %v7395_v59, 0.0 }
 0x9dc   : > { %v7432_v54 = vmax.f32 %v7398_v10, 0.0 }
 0x9de   : > { %v7448_v18 = vpack.c.bf16 %v7432_v54, %v7431_v34 }
 0x9e0   : > { %8256 = vmatprep.subr.bf16.mxu0 %v7448_v18 }
 0x9e1   : > { %8257 = vmatpush3.bf16.msra.mxu0 %v12426_v39 }
 0x9e4   : > { %7496 = vmatmul.mubr.bf16.vlgmr.msra.gmra.mrb[208].mxu0 %v8900_v36 }
 0xab7   : > { %v8258_v63 = vpop.f32.mrb[208].mxu0 }
 0xab8   : > { %v8259_v28 = vpop.f32.mrb[209].mxu0 }
 0xab9   : > { %v8260_v47 = vadd.f32 %v8259_v28, %v8258_v63  ;;  %v8261_v14 = vpop.f32.mrb[210].mxu0 }
 0xaba   : > { %v8262_v9 = vpop.f32.mrb[211].mxu0 }
 0xabb   : > { %v7498_v39 = vadd.f32 %v8260_v47, %v7451_v32  ;;  %v8263_v46 = vadd.f32 %v8262_v9, %v8261_v14 }
 0xabd   : > { %7504 = vst.msk [vmem:[%s498_s27] sm:$0xff] %vm504_vm1, %v7498_v39  ;;  %v7501_v41 = vadd.f32 %v8263_v46, %v7452_v40 }
 0xabf   : > { %7506 = vst.msk [vmem:[%s498_s27 + $0x8] sm:$0x1] %vm7505_vm2, %v7501_v41 }
 0xac0 PF: > { %s12856_s25 = sld [smem:[#allocation10_spill]]  ;;  %s12858_s26 = sld [smem:[#allocation11_spill]] }
 0xac6   : > { %s25_s27 = sadd.s32 1, %s12856_s25   ;;  %s12857_s25 = sld [smem:[#allocation9_spill]] }
 0xac7   : > { %p22_p3 = scmp.ge.s32.totalorder %s25_s27, 4  }
 0xac9   :  { %24 = sbr.rel (!%p22_p3) target bundleno = 3 (0x3), region = 119 }
 0xad0   :  { %7528 = vsyncpa [#allocation4], 1 }
 0xad1   :  { %7530 = vsyncpa [#allocation4 + $0x1], 1 }
 0xad2   :  { %7531 = vsyncpa [#allocation6], 1 }

</bundles_post_ra>
